<compile_context>
chip_gen: v7x
topology: tpu7x:2x2x1
jax: 0.10.0
libtpu: 0.0.40
codegen_flags: <defaults>
</compile_context>

<pallas_src>
import jax
import jax.numpy as jnp
from jax.experimental import pallas as pl
from jax.experimental.pallas import tpu as pltpu

# ---- small synthetic sizes consistent with the module's forward -------------
VOCAB = 32        # vocab_size
ENC = 16          # input_encoding_size
RNN = 32          # rnn_size
ATT_FEAT = 64     # att_feat_size
ATT_HID = 32      # att_hid_size
B = 2
H = W = 4
L = H * W
SEQ_T = 5         # seq length -> SEQ_T - 1 decode steps

GATE_PAD = 256    # padded fused-gate width (256-aligned N, no lane-tile straddle)
SIG_OFF = 0       # sigmoid (i,f,o) pre-activations in lanes [0, 3*RNN)
CELL_OFF = 128    # maxout-cell pre-activations in lanes [128, 128 + 2*RNN)
HEAD_W = 3 * VOCAB  # per-step output width (3 heads, 96 lanes)


def _decode_kernel(xt_ref, att_ref, attmean_ref, patt_ref,
                   wi_ref, wh_ref, wp_ref, bg_ref,
                   wa2c_ref, ba2c_ref,
                   wh2a_ref, bh2a_ref, walpha_ref, balpha_ref,
                   wimg_ref, bimg_ref, wlog_ref, blog_ref,
                   lp_ref, hrows_ref):
    """Entire decode: unrolled time loop of 3 stacked maxout-LSTMs + 2 additive
    attentions, then all log-softmax heads batched in one pass."""
    nsteps = xt_ref.shape[0]
    bsz = att_ref.shape[0]

    att3 = att_ref[...]            # (B, L, F)  resident for every step
    att_mean = attmean_ref[...]    # (B, F)     mean-pooled context (hoisted)

    def lstm(k, xt_k, h_k, c_k, prev_h, att_res):
        # three accumulating matmuls instead of concat([xt, h, prev_h]) @ W
        s = (jnp.dot(xt_k, wi_ref[k], preferred_element_type=jnp.float32)
             + jnp.dot(h_k, wh_ref[k], preferred_element_type=jnp.float32)
             + jnp.dot(prev_h, wp_ref[k], preferred_element_type=jnp.float32)
             + bg_ref[k])                                            # (B, GATE_PAD)
        sig = jax.nn.sigmoid(s[:, SIG_OFF:SIG_OFF + 3 * RNN])        # lanes [0:96]
        in_g = sig[:, :RNN]
        f_g = sig[:, RNN:2 * RNN]
        o_g = sig[:, 2 * RNN:3 * RNN]
        cell = (s[:, CELL_OFF:CELL_OFF + 2 * RNN]                    # lanes [128:192]
                + jnp.dot(att_res, wa2c_ref[k], preferred_element_type=jnp.float32)
                + ba2c_ref[k])
        cell = jnp.maximum(cell[:, :RNN], cell[:, RNN:2 * RNN])      # maxout cell
        nc = f_g * c_k + in_g * cell
        nh = o_g * jnp.tanh(nc)
        return nh, nc                                                # dropout == identity (eval)

    def attention(j, q):
        p_att = patt_ref[j]                                          # (B, L, A) hoisted ctx2att
        att_h = (jnp.dot(q, wh2a_ref[j], preferred_element_type=jnp.float32)
                 + bh2a_ref[j])                                      # (B, A)
        dot = jnp.tanh(p_att + att_h[:, None, :])                    # (B, L, A)
        score = jnp.sum(dot * walpha_ref[j][None, :, :], axis=-1) + balpha_ref[j]  # (B, L)
        score = score - jnp.max(score, axis=-1, keepdims=True)
        e = jnp.exp(score)
        w = e / jnp.sum(e, axis=-1, keepdims=True)                   # exact softmax (parity)
        # q=1 bmm as VPU multiply + sublane reduce (MXU push would be ~0.4% occupied)
        return jnp.sum(w[:, :, None] * att3, axis=1)                 # (B, F)

    h0 = jnp.zeros((bsz, RNN), jnp.float32)
    c0 = jnp.zeros((bsz, RNN), jnp.float32)
    h1 = jnp.zeros((bsz, RNN), jnp.float32)
    c1 = jnp.zeros((bsz, RNN), jnp.float32)
    h2 = jnp.zeros((bsz, RNN), jnp.float32)
    c2 = jnp.zeros((bsz, RNN), jnp.float32)

    # ---- statically unrolled time loop: recurrence never touches HBM --------
    for t in range(nsteps):
        xt = xt_ref[t]                                               # (3, B, ENC)
        nh0, nc0 = lstm(0, xt[0], h0, c0, h2, att_mean)              # prev_state = old h2
        att1 = attention(0, nh0)
        nh1, nc1 = lstm(1, xt[1], h1, c1, nh0, att1)
        q2 = (nh1
              + jnp.dot(att1, wimg_ref[...], preferred_element_type=jnp.float32)
              + bimg_ref[...])                                       # fine + image_linear(prev ctx)
        att2 = attention(1, q2)
        nh2, nc2 = lstm(2, xt[2], h2, c2, nh1, att2)
        h0, c0, h1, c1, h2, c2 = nh0, nc0, nh1, nc1, nh2, nc2
        # stash hidden states for the (off-critical-path) heads
        hrows_ref[pl.ds(t * bsz, bsz), :] = jnp.concatenate([nh0, nh1, nh2], axis=-1)

    # ---- log-softmax heads: one block-diagonal matmul over all steps --------
    h_rows = hrows_ref[...]                                          # (nsteps*B, 3*RNN)
    logits = (jnp.dot(h_rows, wlog_ref[...], preferred_element_type=jnp.float32)
              + blog_ref[...])                                       # (nsteps*B, 3*VOCAB)
    lps = []
    for k in range(3):
        lo = logits[:, k * VOCAB:(k + 1) * VOCAB]
        z = lo - jnp.max(lo, axis=-1, keepdims=True)
        lps.append(z - jnp.log(jnp.sum(jnp.exp(z), axis=-1, keepdims=True)))
    lps = jnp.concatenate(lps, axis=-1)                              # (nsteps*B, HEAD_W)

    # reorder (t-major rows) -> (B, nsteps*HEAD_W) lanes; single lane-dense store
    lp_ref[...] = jnp.concatenate(
        [lps[t * bsz:(t + 1) * bsz, :] for t in range(nsteps)], axis=-1)


def _decode_all(xt_all, att3, att_mean, p_att, pk):
    nsteps = xt_all.shape[0]
    bsz = att3.shape[0]
    return pl.pallas_call(
        _decode_kernel,
        out_shape=jax.ShapeDtypeStruct((bsz, nsteps * HEAD_W), jnp.float32),
        scratch_shapes=[pltpu.VMEM((nsteps * bsz, 3 * RNN), jnp.float32)],
    )(xt_all, att3, att_mean, p_att,
      pk["w_i2h"], pk["w_h2h"], pk["w_ph2h"], pk["b_gate"],
      pk["w_a2c"], pk["b_a2c"],
      pk["w_h2att"], pk["b_h2att"], pk["w_alpha"], pk["b_alpha"],
      pk["w_img"], pk["b_img"], pk["w_logit_bd"], pk["b_logit_bd"])


# ------------------------- parameters & packing ------------------------------
def init_params(key):
    keys = jax.random.split(key, 24)
    kit = iter(keys)

    def u(shape, scale=0.1):
        return jax.random.uniform(next(kit), shape, jnp.float32, -scale, scale)

    return {
        "embeds": u((3, VOCAB, ENC)),                         # embed{0,1,2} ~ U(-0.1,0.1)
        "w_i2h": u((3, ENC, 5 * RNN)), "b_i2h": u((3, 5 * RNN)),
        "w_h2h": u((3, RNN, 5 * RNN)), "b_h2h": u((3, 5 * RNN)),
        "w_ph2h": u((3, RNN, 5 * RNN)), "b_ph2h": u((3, 5 * RNN)),
        "w_a2c": u((3, ATT_FEAT, 2 * RNN)), "b_a2c": u((3, 1, 2 * RNN)),
        "w_logit": u((3, RNN, VOCAB)),                        # logit weight ~ U(-0.1,0.1)
        "b_logit": jnp.zeros((3, VOCAB), jnp.float32),        # logit bias filled with 0
        "w_ctx": u((2, ATT_FEAT, ATT_HID)), "b_ctx": u((2, 1, ATT_HID)),
        "w_h2att": u((2, RNN, ATT_HID)), "b_h2att": u((2, 1, ATT_HID)),
        "w_alpha": u((2, 1, ATT_HID)), "b_alpha": u((2, 1, 1)),
        "w_img": u((ATT_FEAT, RNN)), "b_img": u((1, RNN)),
    }


def pack_params(p):
    """Re-layout weights for the kernel: lane-aligned gates, summed gate bias,
    block-diagonal logit head."""
    def pack_gate(w):  # (..., 5*RNN) -> (..., GATE_PAD)
        out = jnp.zeros(w.shape[:-1] + (GATE_PAD,), jnp.float32)
        out = out.at[..., SIG_OFF:SIG_OFF + 3 * RNN].set(w[..., :3 * RNN])
        out = out.at[..., CELL_OFF:CELL_OFF + 2 * RNN].set(w[..., 3 * RNN:])
        return out

    b_gate = p["b_i2h"] + p["b_h2h"] + p["b_ph2h"]            # summed gate biases

    w_logit_bd = jnp.zeros((3 * RNN, 3 * VOCAB), jnp.float32)
    for k in range(3):
        w_logit_bd = w_logit_bd.at[k * RNN:(k + 1) * RNN,
                                   k * VOCAB:(k + 1) * VOCAB].set(p["w_logit"][k])

    return {
        "embeds": p["embeds"],
        "w_ctx": p["w_ctx"], "b_ctx": p["b_ctx"],             # used for the hoisted p_att
        "w_i2h": pack_gate(p["w_i2h"]),
        "w_h2h": pack_gate(p["w_h2h"]),
        "w_ph2h": pack_gate(p["w_ph2h"]),
        "b_gate": pack_gate(b_gate)[:, None, :],              # (3, 1, GATE_PAD)
        "w_a2c": p["w_a2c"], "b_a2c": p["b_a2c"],
        "w_h2att": p["w_h2att"], "b_h2att": p["b_h2att"],
        "w_alpha": p["w_alpha"], "b_alpha": p["b_alpha"],
        "w_img": p["w_img"], "b_img": p["b_img"],
        "w_logit_bd": w_logit_bd,
        "b_logit_bd": p["b_logit"].reshape(1, 3 * VOCAB),
    }


# ------------------------------ forward --------------------------------------
@jax.jit
def attention_model_forward(seq, att_feats, packed):
    """seq: (B, T) int32 token ids; att_feats: (B, H, W, att_feat_size) f32."""
    Bv, Hv, Wv, Fv = att_feats.shape
    att3 = att_feats.reshape(Bv, Hv * Wv, Fv)
    nsteps = seq.shape[1] - 1
    ids = seq[:, :nsteps].T                                          # (nsteps, B)

    # all per-step embeddings up front (it0 == it1 == it2 == seq[:, i] in eval)
    xt_all = jnp.stack([jnp.take(packed["embeds"][k], ids, axis=0)
                        for k in range(3)], axis=1)                  # (nsteps, 3, B, ENC)

    # loop-invariant pieces hoisted out of the time loop
    att_mean = jnp.mean(att3, axis=1)                                # (B, F)
    p_att = (jnp.einsum('blf,kfa->kbla', att3, packed["w_ctx"])
             + packed["b_ctx"][:, None])                             # (2, B, L, A)

    lp = _decode_all(xt_all, att3, att_mean, p_att, packed)          # (B, nsteps*96)
    lp = lp.reshape(Bv, nsteps, 3, VOCAB)
    return lp[:, :, 0, :], lp[:, :, 1, :], lp[:, :, 2, :]


# --------------------- pure-JAX reference (parity check) ---------------------
def _reference_forward(seq, att_feats, p):
    Bv, Hv, Wv, Fv = att_feats.shape
    att3 = att_feats.reshape(Bv, Hv * Wv, Fv)
    att_mean = att3.mean(axis=1)
    nsteps = seq.shape[1] - 1

    def lstm(k, xt, h, c, prev_h, att_res):
        s = (xt @ p["w_i2h"][k] + p["b_i2h"][k]
             + h @ p["w_h2h"][k] + p["b_h2h"][k]
             + prev_h @ p["w_ph2h"][k] + p["b_ph2h"][k])
        sig = jax.nn.sigmoid(s[:, :3 * RNN])
        i_g, f_g, o_g = sig[:, :RNN], sig[:, RNN:2 * RNN], sig[:, 2 * RNN:3 * RNN]
        cell = s[:, 3 * RNN:5 * RNN] + att_res @ p["w_a2c"][k] + p["b_a2c"][k]
        cell = jnp.maximum(cell[:, :RNN], cell[:, RNN:])
        nc = f_g * c + i_g * cell
        return o_g * jnp.tanh(nc), nc

    def attention(j, q):
        p_att = att3 @ p["w_ctx"][j] + p["b_ctx"][j]
        att_h = q @ p["w_h2att"][j] + p["b_h2att"][j]
        dot = jnp.tanh(p_att + att_h[:, None, :])
        score = jnp.sum(dot * p["w_alpha"][j], axis=-1) + p["b_alpha"][j]
        w = jax.nn.softmax(score, axis=-1)
        return jnp.einsum('bl,blf->bf', w, att3)

    h = [jnp.zeros((Bv, RNN), jnp.float32) for _ in range(3)]
    c = [jnp.zeros((Bv, RNN), jnp.float32) for _ in range(3)]
    o0s, o1s, o2s = [], [], []
    for t in range(nsteps):
        it = seq[:, t]
        xt = [p["embeds"][k][it] for k in range(3)]
        nh0, nc0 = lstm(0, xt[0], h[0], c[0], h[2], att_mean)
        a1 = attention(0, nh0)
        nh1, nc1 = lstm(1, xt[1], h[1], c[1], nh0, a1)
        a2 = attention(1, nh1 + a1 @ p["w_img"] + p["b_img"])
        nh2, nc2 = lstm(2, xt[2], h[2], c[2], nh1, a2)
        h, c = [nh0, nh1, nh2], [nc0, nc1, nc2]
        o0s.append(jax.nn.log_softmax(nh0 @ p["w_logit"][0] + p["b_logit"][0], axis=-1))
        o1s.append(jax.nn.log_softmax(nh1 @ p["w_logit"][1] + p["b_logit"][1], axis=-1))
        o2s.append(jax.nn.log_softmax(nh2 @ p["w_logit"][2] + p["b_logit"][2], axis=-1))
    return jnp.stack(o0s, 1), jnp.stack(o1s, 1), jnp.stack(o2s, 1)


if __name__ == "__main__":
    key = jax.random.PRNGKey(0)
    kp, ks, ka = jax.random.split(key, 3)
    raw = init_params(kp)
    packed = pack_params(raw)
    seq = jax.random.randint(ks, (B, SEQ_T), 1, VOCAB, dtype=jnp.int32)   # nonzero tokens
    att_feats = jax.random.normal(ka, (B, H, W, ATT_FEAT), jnp.float32)

    o0, o1, o2 = attention_model_forward(seq, att_feats, packed)
    jax.block_until_ready((o0, o1, o2))

    assert o0.shape == (B, SEQ_T - 1, VOCAB)
    assert o1.shape == (B, SEQ_T - 1, VOCAB)
    assert o2.shape == (B, SEQ_T - 1, VOCAB)
    assert bool(jnp.all(jnp.isfinite(o0)) & jnp.all(jnp.isfinite(o1)) & jnp.all(jnp.isfinite(o2)))

    # parity with a pure-JAX reference built from the unpacked weights
    r0, r1, r2 = _reference_forward(seq, att_feats, raw)
    for got, ref in ((o0, r0), (o1, r1), (o2, r2)):
        assert float(jnp.max(jnp.abs(got - ref))) < 5e-2

    print("KERNEL_OK")
</pallas_src>

<mosaic_0001>
module attributes {stable_mosaic.version = 11 : i64} {
  func.func @_decode_kernel(%arg0: memref<4x3x2x16xf32, #tpu.memory_space<vmem>>, %arg1: memref<2x16x64xf32, #tpu.memory_space<vmem>>, %arg2: memref<2x64xf32, #tpu.memory_space<vmem>>, %arg3: memref<2x2x16x32xf32, #tpu.memory_space<vmem>>, %arg4: memref<3x16x256xf32, #tpu.memory_space<vmem>>, %arg5: memref<3x32x256xf32, #tpu.memory_space<vmem>>, %arg6: memref<3x32x256xf32, #tpu.memory_space<vmem>>, %arg7: memref<3x1x256xf32, #tpu.memory_space<vmem>>, %arg8: memref<3x64x64xf32, #tpu.memory_space<vmem>>, %arg9: memref<3x1x64xf32, #tpu.memory_space<vmem>>, %arg10: memref<2x32x32xf32, #tpu.memory_space<vmem>>, %arg11: memref<2x1x32xf32, #tpu.memory_space<vmem>>, %arg12: memref<2x1x32xf32, #tpu.memory_space<vmem>>, %arg13: memref<2x1x1xf32, #tpu.memory_space<vmem>>, %arg14: memref<64x32xf32, #tpu.memory_space<vmem>>, %arg15: memref<1x32xf32, #tpu.memory_space<vmem>>, %arg16: memref<96x96xf32, #tpu.memory_space<vmem>>, %arg17: memref<1x96xf32, #tpu.memory_space<vmem>>, %arg18: memref<2x384xf32, #tpu.memory_space<vmem>>, %arg19: memref<8x96xf32, #tpu.memory_space<vmem>>) attributes {dimension_semantics = [], scalar_prefetch = 0 : i64, scratch_operands = 1 : i64, tpu.core_type = #tpu.core_type<tc>} {
    %c0 = arith.constant 0 : index
    %c0_0 = arith.constant 0 : index
    %c0_1 = arith.constant 0 : index
    %0 = vector.load %arg1[%c0, %c0_0, %c0_1] : memref<2x16x64xf32, #tpu.memory_space<vmem>>, vector<2x16x64xf32>
    %c0_2 = arith.constant 0 : index
    %c0_3 = arith.constant 0 : index
    %1 = vector.load %arg2[%c0_2, %c0_3] : memref<2x64xf32, #tpu.memory_space<vmem>>, vector<2x64xf32>
    %cst = arith.constant 0.000000e+00 : f32
    %2 = vector.broadcast %cst : f32 to vector<2x32xf32>
    %cst_4 = arith.constant 0.000000e+00 : f32
    %3 = vector.broadcast %cst_4 : f32 to vector<2x32xf32>
    %cst_5 = arith.constant 0.000000e+00 : f32
    %4 = vector.broadcast %cst_5 : f32 to vector<2x32xf32>
    %cst_6 = arith.constant 0.000000e+00 : f32
    %5 = vector.broadcast %cst_6 : f32 to vector<2x32xf32>
    %cst_7 = arith.constant 0.000000e+00 : f32
    %6 = vector.broadcast %cst_7 : f32 to vector<2x32xf32>
    %cst_8 = arith.constant 0.000000e+00 : f32
    %7 = vector.broadcast %cst_8 : f32 to vector<2x32xf32>
    %c0_9 = arith.constant 0 : index
    %c0_10 = arith.constant 0 : index
    %c0_11 = arith.constant 0 : index
    %c0_12 = arith.constant 0 : index
    %8 = vector.load %arg0[%c0_9, %c0_10, %c0_11, %c0_12] : memref<4x3x2x16xf32, #tpu.memory_space<vmem>>, vector<1x3x2x16xf32>
    %9 = vector.shape_cast %8 : vector<1x3x2x16xf32> to vector<3x2x16xf32>
    %10 = vector.extract_strided_slice %9 {offsets = [0, 0, 0], sizes = [1, 2, 16], strides = [1, 1, 1]} : vector<3x2x16xf32> to vector<1x2x16xf32>
    %11 = vector.shape_cast %10 : vector<1x2x16xf32> to vector<2x16xf32>
    %c0_13 = arith.constant 0 : index
    %c0_14 = arith.constant 0 : index
    %c0_15 = arith.constant 0 : index
    %12 = vector.load %arg4[%c0_13, %c0_14, %c0_15] : memref<3x16x256xf32, #tpu.memory_space<vmem>>, vector<1x16x256xf32>
    %13 = vector.shape_cast %12 : vector<1x16x256xf32> to vector<16x256xf32>
    %cst_16 = arith.constant dense<0.000000e+00> : vector<2x256xf32>
    %14 = tpu.matmul %11, %13, %cst_16 {dimension_numbers = #tpu.dot_dimension_numbers<[1], [0], [0], [1], [0, 0, 1, 1], [], []>} : vector<2x16xf32>, vector<16x256xf32>, vector<2x256xf32> -> vector<2x256xf32>
    %c0_17 = arith.constant 0 : index
    %c0_18 = arith.constant 0 : index
    %c0_19 = arith.constant 0 : index
    %15 = vector.load %arg5[%c0_17, %c0_18, %c0_19] : memref<3x32x256xf32, #tpu.memory_space<vmem>>, vector<1x32x256xf32>
    %16 = vector.shape_cast %15 : vector<1x32x256xf32> to vector<32x256xf32>
    %cst_20 = arith.constant dense<0.000000e+00> : vector<2x256xf32>
    %17 = tpu.matmul %2, %16, %cst_20 {dimension_numbers = #tpu.dot_dimension_numbers<[1], [0], [0], [1], [0, 0, 1, 1], [], []>} : vector<2x32xf32>, vector<32x256xf32>, vector<2x256xf32> -> vector<2x256xf32>
    %18 = arith.addf %14, %17 : vector<2x256xf32>
    %c0_21 = arith.constant 0 : index
    %c0_22 = arith.constant 0 : index
    %c0_23 = arith.constant 0 : index
    %19 = vector.load %arg6[%c0_21, %c0_22, %c0_23] : memref<3x32x256xf32, #tpu.memory_space<vmem>>, vector<1x32x256xf32>
    %20 = vector.shape_cast %19 : vector<1x32x256xf32> to vector<32x256xf32>
    %cst_24 = arith.constant dense<0.000000e+00> : vector<2x256xf32>
    %21 = tpu.matmul %6, %20, %cst_24 {dimension_numbers = #tpu.dot_dimension_numbers<[1], [0], [0], [1], [0, 0, 1, 1], [], []>} : vector<2x32xf32>, vector<32x256xf32>, vector<2x256xf32> -> vector<2x256xf32>
    %22 = arith.addf %18, %21 : vector<2x256xf32>
    %c0_25 = arith.constant 0 : index
    %c0_26 = arith.constant 0 : index
    %c0_27 = arith.constant 0 : index
    %23 = vector.load %arg7[%c0_25, %c0_26, %c0_27] : memref<3x1x256xf32, #tpu.memory_space<vmem>>, vector<1x1x256xf32>
    %24 = vector.shape_cast %23 : vector<1x1x256xf32> to vector<1x256xf32>
    %25 = vector.broadcast %24 : vector<1x256xf32> to vector<2x256xf32>
    %26 = arith.addf %22, %25 : vector<2x256xf32>
    %27 = vector.extract_strided_slice %26 {offsets = [0, 0], sizes = [2, 96], strides = [1, 1]} : vector<2x256xf32> to vector<2x96xf32>
    %28 = arith.negf %27 : vector<2x96xf32>
    %29 = math.exp %28 : vector<2x96xf32>
    %cst_28 = arith.constant 1.000000e+00 : f32
    %30 = vector.broadcast %cst_28 : f32 to vector<2x96xf32>
    %31 = arith.addf %30, %29 : vector<2x96xf32>
    %32 = arith.divf %30, %31 : vector<2x96xf32>
    %33 = vector.extract_strided_slice %32 {offsets = [0, 0], sizes = [2, 32], strides = [1, 1]} : vector<2x96xf32> to vector<2x32xf32>
    %34 = vector.extract_strided_slice %32 {offsets = [0, 32], sizes = [2, 32], strides = [1, 1]} : vector<2x96xf32> to vector<2x32xf32>
    %35 = vector.extract_strided_slice %32 {offsets = [0, 64], sizes = [2, 32], strides = [1, 1]} : vector<2x96xf32> to vector<2x32xf32>
    %36 = vector.extract_strided_slice %26 {offsets = [0, 128], sizes = [2, 64], strides = [1, 1]} : vector<2x256xf32> to vector<2x64xf32>
    %c0_29 = arith.constant 0 : index
    %c0_30 = arith.constant 0 : index
    %c0_31 = arith.constant 0 : index
    %37 = vector.load %arg8[%c0_29, %c0_30, %c0_31] : memref<3x64x64xf32, #tpu.memory_space<vmem>>, vector<1x64x64xf32>
    %38 = vector.shape_cast %37 : vector<1x64x64xf32> to vector<64x64xf32>
    %cst_32 = arith.constant dense<0.000000e+00> : vector<2x64xf32>
    %39 = tpu.matmul %1, %38, %cst_32 {dimension_numbers = #tpu.dot_dimension_numbers<[1], [0], [0], [1], [0, 0, 1, 1], [], []>} : vector<2x64xf32>, vector<64x64xf32>, vector<2x64xf32> -> vector<2x64xf32>
    %40 = arith.addf %36, %39 : vector<2x64xf32>
    %c0_33 = arith.constant 0 : index
    %c0_34 = arith.constant 0 : index
    %c0_35 = arith.constant 0 : index
    %41 = vector.load %arg9[%c0_33, %c0_34, %c0_35] : memref<3x1x64xf32, #tpu.memory_space<vmem>>, vector<1x1x64xf32>
    %42 = vector.shape_cast %41 : vector<1x1x64xf32> to vector<1x64xf32>
    %43 = vector.broadcast %42 : vector<1x64xf32> to vector<2x64xf32>
    %44 = arith.addf %40, %43 : vector<2x64xf32>
    %45 = vector.extract_strided_slice %44 {offsets = [0, 0], sizes = [2, 32], strides = [1, 1]} : vector<2x64xf32> to vector<2x32xf32>
    %46 = vector.extract_strided_slice %44 {offsets = [0, 32], sizes = [2, 32], strides = [1, 1]} : vector<2x64xf32> to vector<2x32xf32>
    %47 = arith.maximumf %45, %46 : vector<2x32xf32>
    %48 = arith.mulf %34, %3 : vector<2x32xf32>
    %49 = arith.mulf %33, %47 : vector<2x32xf32>
    %50 = arith.addf %48, %49 : vector<2x32xf32>
    %51 = math.tanh %50 : vector<2x32xf32>
    %52 = arith.mulf %35, %51 : vector<2x32xf32>
    %c0_36 = arith.constant 0 : index
    %c0_37 = arith.constant 0 : index
    %c0_38 = arith.constant 0 : index
    %c0_39 = arith.constant 0 : index
    %53 = vector.load %arg3[%c0_36, %c0_37, %c0_38, %c0_39] : memref<2x2x16x32xf32, #tpu.memory_space<vmem>>, vector<1x2x16x32xf32>
    %54 = vector.shape_cast %53 : vector<1x2x16x32xf32> to vector<2x16x32xf32>
    %c0_40 = arith.constant 0 : index
    %c0_41 = arith.constant 0 : index
    %c0_42 = arith.constant 0 : index
    %55 = vector.load %arg10[%c0_40, %c0_41, %c0_42] : memref<2x32x32xf32, #tpu.memory_space<vmem>>, vector<1x32x32xf32>
    %56 = vector.shape_cast %55 : vector<1x32x32xf32> to vector<32x32xf32>
    %cst_43 = arith.constant dense<0.000000e+00> : vector<2x32xf32>
    %57 = tpu.matmul %52, %56, %cst_43 {dimension_numbers = #tpu.dot_dimension_numbers<[1], [0], [0], [1], [0, 0, 1, 1], [], []>} : vector<2x32xf32>, vector<32x32xf32>, vector<2x32xf32> -> vector<2x32xf32>
    %c0_44 = arith.constant 0 : index
    %c0_45 = arith.constant 0 : index
    %c0_46 = arith.constant 0 : index
    %58 = vector.load %arg11[%c0_44, %c0_45, %c0_46] : memref<2x1x32xf32, #tpu.memory_space<vmem>>, vector<1x1x32xf32>
    %59 = vector.shape_cast %58 : vector<1x1x32xf32> to vector<1x32xf32>
    %60 = vector.broadcast %59 : vector<1x32xf32> to vector<2x32xf32>
    %61 = arith.addf %57, %60 : vector<2x32xf32>
    %62 = vector.shape_cast %61 : vector<2x32xf32> to vector<2x1x32xf32>
    %63 = vector.broadcast %62 : vector<2x1x32xf32> to vector<2x16x32xf32>
    %64 = arith.addf %54, %63 : vector<2x16x32xf32>
    %65 = math.tanh %64 : vector<2x16x32xf32>
    %c0_47 = arith.constant 0 : index
    %c0_48 = arith.constant 0 : index
    %c0_49 = arith.constant 0 : index
    %66 = vector.load %arg12[%c0_47, %c0_48, %c0_49] : memref<2x1x32xf32, #tpu.memory_space<vmem>>, vector<1x1x32xf32>
    %67 = vector.shape_cast %66 : vector<1x1x32xf32> to vector<1x32xf32>
    %68 = vector.shape_cast %67 : vector<1x32xf32> to vector<1x1x32xf32>
    %69 = vector.broadcast %68 : vector<1x1x32xf32> to vector<2x16x32xf32>
    %70 = arith.mulf %65, %69 : vector<2x16x32xf32>
    %cst_50 = arith.constant dense<0.000000e+00> : vector<2x16xf32>
    %71 = vector.multi_reduction <add>, %70, %cst_50 [2] : vector<2x16x32xf32> to vector<2x16xf32>
    %c0_51 = arith.constant 0 : index
    %c0_52 = arith.constant 0 : index
    %c0_53 = arith.constant 0 : index
    %72 = vector.load %arg13[%c0_51, %c0_52, %c0_53] : memref<2x1x1xf32, #tpu.memory_space<vmem>>, vector<1x1x1xf32>
    %73 = vector.shape_cast %72 : vector<1x1x1xf32> to vector<1x1xf32>
    %74 = vector.broadcast %73 : vector<1x1xf32> to vector<2x16xf32>
    %75 = arith.addf %71, %74 : vector<2x16xf32>
    %cst_54 = arith.constant dense<0xFF800000> : vector<2xf32>
    %76 = vector.multi_reduction <maximumf>, %75, %cst_54 [1] : vector<2x16xf32> to vector<2xf32>
    %77 = vector.shape_cast %76 : vector<2xf32> to vector<2x1xf32>
    %78 = vector.broadcast %77 : vector<2x1xf32> to vector<2x16xf32>
    %79 = arith.subf %75, %78 : vector<2x16xf32>
    %80 = math.exp %79 : vector<2x16xf32>
    %cst_55 = arith.constant dense<0.000000e+00> : vector<2xf32>
    %81 = vector.multi_reduction <add>, %80, %cst_55 [1] : vector<2x16xf32> to vector<2xf32>
    %82 = vector.shape_cast %81 : vector<2xf32> to vector<2x1xf32>
    %83 = vector.broadcast %82 : vector<2x1xf32> to vector<2x16xf32>
    %84 = arith.divf %80, %83 : vector<2x16xf32>
    %85 = vector.shape_cast %84 : vector<2x16xf32> to vector<2x16x1xf32>
    %86 = vector.broadcast %85 : vector<2x16x1xf32> to vector<2x16x64xf32>
    %87 = arith.mulf %86, %0 : vector<2x16x64xf32>
    %cst_56 = arith.constant dense<0.000000e+00> : vector<2x64xf32>
    %88 = vector.multi_reduction <add>, %87, %cst_56 [1] : vector<2x16x64xf32> to vector<2x64xf32>
    %89 = vector.extract_strided_slice %9 {offsets = [1, 0, 0], sizes = [1, 2, 16], strides = [1, 1, 1]} : vector<3x2x16xf32> to vector<1x2x16xf32>
    %90 = vector.shape_cast %89 : vector<1x2x16xf32> to vector<2x16xf32>
    %c1 = arith.constant 1 : index
    %c0_57 = arith.constant 0 : index
    %c0_58 = arith.constant 0 : index
    %91 = vector.load %arg4[%c1, %c0_57, %c0_58] : memref<3x16x256xf32, #tpu.memory_space<vmem>>, vector<1x16x256xf32>
    %92 = vector.shape_cast %91 : vector<1x16x256xf32> to vector<16x256xf32>
    %cst_59 = arith.constant dense<0.000000e+00> : vector<2x256xf32>
    %93 = tpu.matmul %90, %92, %cst_59 {dimension_numbers = #tpu.dot_dimension_numbers<[1], [0], [0], [1], [0, 0, 1, 1], [], []>} : vector<2x16xf32>, vector<16x256xf32>, vector<2x256xf32> -> vector<2x256xf32>
    %c1_60 = arith.constant 1 : index
    %c0_61 = arith.constant 0 : index
    %c0_62 = arith.constant 0 : index
    %94 = vector.load %arg5[%c1_60, %c0_61, %c0_62] : memref<3x32x256xf32, #tpu.memory_space<vmem>>, vector<1x32x256xf32>
    %95 = vector.shape_cast %94 : vector<1x32x256xf32> to vector<32x256xf32>
    %cst_63 = arith.constant dense<0.000000e+00> : vector<2x256xf32>
    %96 = tpu.matmul %4, %95, %cst_63 {dimension_numbers = #tpu.dot_dimension_numbers<[1], [0], [0], [1], [0, 0, 1, 1], [], []>} : vector<2x32xf32>, vector<32x256xf32>, vector<2x256xf32> -> vector<2x256xf32>
    %97 = arith.addf %93, %96 : vector<2x256xf32>
    %c1_64 = arith.constant 1 : index
    %c0_65 = arith.constant 0 : index
    %c0_66 = arith.constant 0 : index
    %98 = vector.load %arg6[%c1_64, %c0_65, %c0_66] : memref<3x32x256xf32, #tpu.memory_space<vmem>>, vector<1x32x256xf32>
    %99 = vector.shape_cast %98 : vector<1x32x256xf32> to vector<32x256xf32>
    %cst_67 = arith.constant dense<0.000000e+00> : vector<2x256xf32>
    %100 = tpu.matmul %52, %99, %cst_67 {dimension_numbers = #tpu.dot_dimension_numbers<[1], [0], [0], [1], [0, 0, 1, 1], [], []>} : vector<2x32xf32>, vector<32x256xf32>, vector<2x256xf32> -> vector<2x256xf32>
    %101 = arith.addf %97, %100 : vector<2x256xf32>
    %c1_68 = arith.constant 1 : index
    %c0_69 = arith.constant 0 : index
    %c0_70 = arith.constant 0 : index
    %102 = vector.load %arg7[%c1_68, %c0_69, %c0_70] : memref<3x1x256xf32, #tpu.memory_space<vmem>>, vector<1x1x256xf32>
    %103 = vector.shape_cast %102 : vector<1x1x256xf32> to vector<1x256xf32>
    %104 = vector.broadcast %103 : vector<1x256xf32> to vector<2x256xf32>
    %105 = arith.addf %101, %104 : vector<2x256xf32>
    %106 = vector.extract_strided_slice %105 {offsets = [0, 0], sizes = [2, 96], strides = [1, 1]} : vector<2x256xf32> to vector<2x96xf32>
    %107 = arith.negf %106 : vector<2x96xf32>
    %108 = math.exp %107 : vector<2x96xf32>
    %cst_71 = arith.constant 1.000000e+00 : f32
    %109 = vector.broadcast %cst_71 : f32 to vector<2x96xf32>
    %110 = arith.addf %109, %108 : vector<2x96xf32>
    %111 = arith.divf %109, %110 : vector<2x96xf32>
    %112 = vector.extract_strided_slice %111 {offsets = [0, 0], sizes = [2, 32], strides = [1, 1]} : vector<2x96xf32> to vector<2x32xf32>
    %113 = vector.extract_strided_slice %111 {offsets = [0, 32], sizes = [2, 32], strides = [1, 1]} : vector<2x96xf32> to vector<2x32xf32>
    %114 = vector.extract_strided_slice %111 {offsets = [0, 64], sizes = [2, 32], strides = [1, 1]} : vector<2x96xf32> to vector<2x32xf32>
    %115 = vector.extract_strided_slice %105 {offsets = [0, 128], sizes = [2, 64], strides = [1, 1]} : vector<2x256xf32> to vector<2x64xf32>
    %c1_72 = arith.constant 1 : index
    %c0_73 = arith.constant 0 : index
    %c0_74 = arith.constant 0 : index
    %116 = vector.load %arg8[%c1_72, %c0_73, %c0_74] : memref<3x64x64xf32, #tpu.memory_space<vmem>>, vector<1x64x64xf32>
    %117 = vector.shape_cast %116 : vector<1x64x64xf32> to vector<64x64xf32>
    %cst_75 = arith.constant dense<0.000000e+00> : vector<2x64xf32>
    %118 = tpu.matmul %88, %117, %cst_75 {dimension_numbers = #tpu.dot_dimension_numbers<[1], [0], [0], [1], [0, 0, 1, 1], [], []>} : vector<2x64xf32>, vector<64x64xf32>, vector<2x64xf32> -> vector<2x64xf32>
    %119 = arith.addf %115, %118 : vector<2x64xf32>
    %c1_76 = arith.constant 1 : index
    %c0_77 = arith.constant 0 : index
    %c0_78 = arith.constant 0 : index
    %120 = vector.load %arg9[%c1_76, %c0_77, %c0_78] : memref<3x1x64xf32, #tpu.memory_space<vmem>>, vector<1x1x64xf32>
    %121 = vector.shape_cast %120 : vector<1x1x64xf32> to vector<1x64xf32>
    %122 = vector.broadcast %121 : vector<1x64xf32> to vector<2x64xf32>
    %123 = arith.addf %119, %122 : vector<2x64xf32>
    %124 = vector.extract_strided_slice %123 {offsets = [0, 0], sizes = [2, 32], strides = [1, 1]} : vector<2x64xf32> to vector<2x32xf32>
    %125 = vector.extract_strided_slice %123 {offsets = [0, 32], sizes = [2, 32], strides = [1, 1]} : vector<2x64xf32> to vector<2x32xf32>
    %126 = arith.maximumf %124, %125 : vector<2x32xf32>
    %127 = arith.mulf %113, %5 : vector<2x32xf32>
    %128 = arith.mulf %112, %126 : vector<2x32xf32>
    %129 = arith.addf %127, %128 : vector<2x32xf32>
    %130 = math.tanh %129 : vector<2x32xf32>
    %131 = arith.mulf %114, %130 : vector<2x32xf32>
    %c0_79 = arith.constant 0 : index
    %c0_80 = arith.constant 0 : index
    %132 = vector.load %arg14[%c0_79, %c0_80] : memref<64x32xf32, #tpu.memory_space<vmem>>, vector<64x32xf32>
    %cst_81 = arith.constant dense<0.000000e+00> : vector<2x32xf32>
    %133 = tpu.matmul %88, %132, %cst_81 {dimension_numbers = #tpu.dot_dimension_numbers<[1], [0], [0], [1], [0, 0, 1, 1], [], []>} : vector<2x64xf32>, vector<64x32xf32>, vector<2x32xf32> -> vector<2x32xf32>
    %134 = arith.addf %131, %133 : vector<2x32xf32>
    %c0_82 = arith.constant 0 : index
    %c0_83 = arith.constant 0 : index
    %135 = vector.load %arg15[%c0_82, %c0_83] : memref<1x32xf32, #tpu.memory_space<vmem>>, vector<1x32xf32>
    %136 = vector.broadcast %135 : vector<1x32xf32> to vector<2x32xf32>
    %137 = arith.addf %134, %136 : vector<2x32xf32>
    %c1_84 = arith.constant 1 : index
    %c0_85 = arith.constant 0 : index
    %c0_86 = arith.constant 0 : index
    %c0_87 = arith.constant 0 : index
    %138 = vector.load %arg3[%c1_84, %c0_85, %c0_86, %c0_87] : memref<2x2x16x32xf32, #tpu.memory_space<vmem>>, vector<1x2x16x32xf32>
    %139 = vector.shape_cast %138 : vector<1x2x16x32xf32> to vector<2x16x32xf32>
    %c1_88 = arith.constant 1 : index
    %c0_89 = arith.constant 0 : index
    %c0_90 = arith.constant 0 : index
    %140 = vector.load %arg10[%c1_88, %c0_89, %c0_90] : memref<2x32x32xf32, #tpu.memory_space<vmem>>, vector<1x32x32xf32>
    %141 = vector.shape_cast %140 : vector<1x32x32xf32> to vector<32x32xf32>
    %cst_91 = arith.constant dense<0.000000e+00> : vector<2x32xf32>
    %142 = tpu.matmul %137, %141, %cst_91 {dimension_numbers = #tpu.dot_dimension_numbers<[1], [0], [0], [1], [0, 0, 1, 1], [], []>} : vector<2x32xf32>, vector<32x32xf32>, vector<2x32xf32> -> vector<2x32xf32>
    %c1_92 = arith.constant 1 : index
    %c0_93 = arith.constant 0 : index
    %c0_94 = arith.constant 0 : index
    %143 = vector.load %arg11[%c1_92, %c0_93, %c0_94] : memref<2x1x32xf32, #tpu.memory_space<vmem>>, vector<1x1x32xf32>
    %144 = vector.shape_cast %143 : vector<1x1x32xf32> to vector<1x32xf32>
    %145 = vector.broadcast %144 : vector<1x32xf32> to vector<2x32xf32>
    %146 = arith.addf %142, %145 : vector<2x32xf32>
    %147 = vector.shape_cast %146 : vector<2x32xf32> to vector<2x1x32xf32>
    %148 = vector.broadcast %147 : vector<2x1x32xf32> to vector<2x16x32xf32>
    %149 = arith.addf %139, %148 : vector<2x16x32xf32>
    %150 = math.tanh %149 : vector<2x16x32xf32>
    %c1_95 = arith.constant 1 : index
    %c0_96 = arith.constant 0 : index
    %c0_97 = arith.constant 0 : index
    %151 = vector.load %arg12[%c1_95, %c0_96, %c0_97] : memref<2x1x32xf32, #tpu.memory_space<vmem>>, vector<1x1x32xf32>
    %152 = vector.shape_cast %151 : vector<1x1x32xf32> to vector<1x32xf32>
    %153 = vector.shape_cast %152 : vector<1x32xf32> to vector<1x1x32xf32>
    %154 = vector.broadcast %153 : vector<1x1x32xf32> to vector<2x16x32xf32>
    %155 = arith.mulf %150, %154 : vector<2x16x32xf32>
    %cst_98 = arith.constant dense<0.000000e+00> : vector<2x16xf32>
    %156 = vector.multi_reduction <add>, %155, %cst_98 [2] : vector<2x16x32xf32> to vector<2x16xf32>
    %c1_99 = arith.constant 1 : index
    %c0_100 = arith.constant 0 : index
    %c0_101 = arith.constant 0 : index
    %157 = vector.load %arg13[%c1_99, %c0_100, %c0_101] : memref<2x1x1xf32, #tpu.memory_space<vmem>>, vector<1x1x1xf32>
    %158 = vector.shape_cast %157 : vector<1x1x1xf32> to vector<1x1xf32>
    %159 = vector.broadcast %158 : vector<1x1xf32> to vector<2x16xf32>
    %160 = arith.addf %156, %159 : vector<2x16xf32>
    %cst_102 = arith.constant dense<0xFF800000> : vector<2xf32>
    %161 = vector.multi_reduction <maximumf>, %160, %cst_102 [1] : vector<2x16xf32> to vector<2xf32>
    %162 = vector.shape_cast %161 : vector<2xf32> to vector<2x1xf32>
    %163 = vector.broadcast %162 : vector<2x1xf32> to vector<2x16xf32>
    %164 = arith.subf %160, %163 : vector<2x16xf32>
    %165 = math.exp %164 : vector<2x16xf32>
    %cst_103 = arith.constant dense<0.000000e+00> : vector<2xf32>
    %166 = vector.multi_reduction <add>, %165, %cst_103 [1] : vector<2x16xf32> to vector<2xf32>
    %167 = vector.shape_cast %166 : vector<2xf32> to vector<2x1xf32>
    %168 = vector.broadcast %167 : vector<2x1xf32> to vector<2x16xf32>
    %169 = arith.divf %165, %168 : vector<2x16xf32>
    %170 = vector.shape_cast %169 : vector<2x16xf32> to vector<2x16x1xf32>
    %171 = vector.broadcast %170 : vector<2x16x1xf32> to vector<2x16x64xf32>
    %172 = arith.mulf %171, %0 : vector<2x16x64xf32>
    %cst_104 = arith.constant dense<0.000000e+00> : vector<2x64xf32>
    %173 = vector.multi_reduction <add>, %172, %cst_104 [1] : vector<2x16x64xf32> to vector<2x64xf32>
    %174 = vector.extract_strided_slice %9 {offsets = [2, 0, 0], sizes = [1, 2, 16], strides = [1, 1, 1]} : vector<3x2x16xf32> to vector<1x2x16xf32>
    %175 = vector.shape_cast %174 : vector<1x2x16xf32> to vector<2x16xf32>
    %c2 = arith.constant 2 : index
    %c0_105 = arith.constant 0 : index
    %c0_106 = arith.constant 0 : index
    %176 = vector.load %arg4[%c2, %c0_105, %c0_106] : memref<3x16x256xf32, #tpu.memory_space<vmem>>, vector<1x16x256xf32>
    %177 = vector.shape_cast %176 : vector<1x16x256xf32> to vector<16x256xf32>
    %cst_107 = arith.constant dense<0.000000e+00> : vector<2x256xf32>
    %178 = tpu.matmul %175, %177, %cst_107 {dimension_numbers = #tpu.dot_dimension_numbers<[1], [0], [0], [1], [0, 0, 1, 1], [], []>} : vector<2x16xf32>, vector<16x256xf32>, vector<2x256xf32> -> vector<2x256xf32>
    %c2_108 = arith.constant 2 : index
    %c0_109 = arith.constant 0 : index
    %c0_110 = arith.constant 0 : index
    %179 = vector.load %arg5[%c2_108, %c0_109, %c0_110] : memref<3x32x256xf32, #tpu.memory_space<vmem>>, vector<1x32x256xf32>
    %180 = vector.shape_cast %179 : vector<1x32x256xf32> to vector<32x256xf32>
    %cst_111 = arith.constant dense<0.000000e+00> : vector<2x256xf32>
    %181 = tpu.matmul %6, %180, %cst_111 {dimension_numbers = #tpu.dot_dimension_numbers<[1], [0], [0], [1], [0, 0, 1, 1], [], []>} : vector<2x32xf32>, vector<32x256xf32>, vector<2x256xf32> -> vector<2x256xf32>
    %182 = arith.addf %178, %181 : vector<2x256xf32>
    %c2_112 = arith.constant 2 : index
    %c0_113 = arith.constant 0 : index
    %c0_114 = arith.constant 0 : index
    %183 = vector.load %arg6[%c2_112, %c0_113, %c0_114] : memref<3x32x256xf32, #tpu.memory_space<vmem>>, vector<1x32x256xf32>
    %184 = vector.shape_cast %183 : vector<1x32x256xf32> to vector<32x256xf32>
    %cst_115 = arith.constant dense<0.000000e+00> : vector<2x256xf32>
    %185 = tpu.matmul %131, %184, %cst_115 {dimension_numbers = #tpu.dot_dimension_numbers<[1], [0], [0], [1], [0, 0, 1, 1], [], []>} : vector<2x32xf32>, vector<32x256xf32>, vector<2x256xf32> -> vector<2x256xf32>
    %186 = arith.addf %182, %185 : vector<2x256xf32>
    %c2_116 = arith.constant 2 : index
    %c0_117 = arith.constant 0 : index
    %c0_118 = arith.constant 0 : index
    %187 = vector.load %arg7[%c2_116, %c0_117, %c0_118] : memref<3x1x256xf32, #tpu.memory_space<vmem>>, vector<1x1x256xf32>
    %188 = vector.shape_cast %187 : vector<1x1x256xf32> to vector<1x256xf32>
    %189 = vector.broadcast %188 : vector<1x256xf32> to vector<2x256xf32>
    %190 = arith.addf %186, %189 : vector<2x256xf32>
    %191 = vector.extract_strided_slice %190 {offsets = [0, 0], sizes = [2, 96], strides = [1, 1]} : vector<2x256xf32> to vector<2x96xf32>
    %192 = arith.negf %191 : vector<2x96xf32>
    %193 = math.exp %192 : vector<2x96xf32>
    %cst_119 = arith.constant 1.000000e+00 : f32
    %194 = vector.broadcast %cst_119 : f32 to vector<2x96xf32>
    %195 = arith.addf %194, %193 : vector<2x96xf32>
    %196 = arith.divf %194, %195 : vector<2x96xf32>
    %197 = vector.extract_strided_slice %196 {offsets = [0, 0], sizes = [2, 32], strides = [1, 1]} : vector<2x96xf32> to vector<2x32xf32>
    %198 = vector.extract_strided_slice %196 {offsets = [0, 32], sizes = [2, 32], strides = [1, 1]} : vector<2x96xf32> to vector<2x32xf32>
    %199 = vector.extract_strided_slice %196 {offsets = [0, 64], sizes = [2, 32], strides = [1, 1]} : vector<2x96xf32> to vector<2x32xf32>
    %200 = vector.extract_strided_slice %190 {offsets = [0, 128], sizes = [2, 64], strides = [1, 1]} : vector<2x256xf32> to vector<2x64xf32>
    %c2_120 = arith.constant 2 : index
    %c0_121 = arith.constant 0 : index
    %c0_122 = arith.constant 0 : index
    %201 = vector.load %arg8[%c2_120, %c0_121, %c0_122] : memref<3x64x64xf32, #tpu.memory_space<vmem>>, vector<1x64x64xf32>
    %202 = vector.shape_cast %201 : vector<1x64x64xf32> to vector<64x64xf32>
    %cst_123 = arith.constant dense<0.000000e+00> : vector<2x64xf32>
    %203 = tpu.matmul %173, %202, %cst_123 {dimension_numbers = #tpu.dot_dimension_numbers<[1], [0], [0], [1], [0, 0, 1, 1], [], []>} : vector<2x64xf32>, vector<64x64xf32>, vector<2x64xf32> -> vector<2x64xf32>
    %204 = arith.addf %200, %203 : vector<2x64xf32>
    %c2_124 = arith.constant 2 : index
    %c0_125 = arith.constant 0 : index
    %c0_126 = arith.constant 0 : index
    %205 = vector.load %arg9[%c2_124, %c0_125, %c0_126] : memref<3x1x64xf32, #tpu.memory_space<vmem>>, vector<1x1x64xf32>
    %206 = vector.shape_cast %205 : vector<1x1x64xf32> to vector<1x64xf32>
    %207 = vector.broadcast %206 : vector<1x64xf32> to vector<2x64xf32>
    %208 = arith.addf %204, %207 : vector<2x64xf32>
    %209 = vector.extract_strided_slice %208 {offsets = [0, 0], sizes = [2, 32], strides = [1, 1]} : vector<2x64xf32> to vector<2x32xf32>
    %210 = vector.extract_strided_slice %208 {offsets = [0, 32], sizes = [2, 32], strides = [1, 1]} : vector<2x64xf32> to vector<2x32xf32>
    %211 = arith.maximumf %209, %210 : vector<2x32xf32>
    %212 = arith.mulf %198, %7 : vector<2x32xf32>
    %213 = arith.mulf %197, %211 : vector<2x32xf32>
    %214 = arith.addf %212, %213 : vector<2x32xf32>
    %215 = math.tanh %214 : vector<2x32xf32>
    %216 = arith.mulf %199, %215 : vector<2x32xf32>
    %217 = tpu.concatenate %52, %131, %216 in 1 : vector<2x32xf32>, vector<2x32xf32>, vector<2x32xf32> -> vector<2x96xf32>
    %c0_127 = arith.constant 0 : index
    %c0_128 = arith.constant 0 : index
    %218 = vector.load %arg19[%c0_127, %c0_128] : memref<8x96xf32, #tpu.memory_space<vmem>>, vector<2x96xf32>
    tpu.vector_store %arg19[%c0_127, %c0_128], %217 {strides = array<i32>} : memref<8x96xf32, #tpu.memory_space<vmem>>, vector<2x96xf32>,
    %c1_129 = arith.constant 1 : index
    %c0_130 = arith.constant 0 : index
    %c0_131 = arith.constant 0 : index
    %c0_132 = arith.constant 0 : index
    %219 = vector.load %arg0[%c1_129, %c0_130, %c0_131, %c0_132] : memref<4x3x2x16xf32, #tpu.memory_space<vmem>>, vector<1x3x2x16xf32>
    %220 = vector.shape_cast %219 : vector<1x3x2x16xf32> to vector<3x2x16xf32>
    %221 = vector.extract_strided_slice %220 {offsets = [0, 0, 0], sizes = [1, 2, 16], strides = [1, 1, 1]} : vector<3x2x16xf32> to vector<1x2x16xf32>
    %222 = vector.shape_cast %221 : vector<1x2x16xf32> to vector<2x16xf32>
    %c0_133 = arith.constant 0 : index
    %c0_134 = arith.constant 0 : index
    %c0_135 = arith.constant 0 : index
    %223 = vector.load %arg4[%c0_133, %c0_134, %c0_135] : memref<3x16x256xf32, #tpu.memory_space<vmem>>, vector<1x16x256xf32>
    %224 = vector.shape_cast %223 : vector<1x16x256xf32> to vector<16x256xf32>
    %cst_136 = arith.constant dense<0.000000e+00> : vector<2x256xf32>
    %225 = tpu.matmul %222, %224, %cst_136 {dimension_numbers = #tpu.dot_dimension_numbers<[1], [0], [0], [1], [0, 0, 1, 1], [], []>} : vector<2x16xf32>, vector<16x256xf32>, vector<2x256xf32> -> vector<2x256xf32>
    %c0_137 = arith.constant 0 : index
    %c0_138 = arith.constant 0 : index
    %c0_139 = arith.constant 0 : index
    %226 = vector.load %arg5[%c0_137, %c0_138, %c0_139] : memref<3x32x256xf32, #tpu.memory_space<vmem>>, vector<1x32x256xf32>
    %227 = vector.shape_cast %226 : vector<1x32x256xf32> to vector<32x256xf32>
    %cst_140 = arith.constant dense<0.000000e+00> : vector<2x256xf32>
    %228 = tpu.matmul %52, %227, %cst_140 {dimension_numbers = #tpu.dot_dimension_numbers<[1], [0], [0], [1], [0, 0, 1, 1], [], []>} : vector<2x32xf32>, vector<32x256xf32>, vector<2x256xf32> -> vector<2x256xf32>
    %229 = arith.addf %225, %228 : vector<2x256xf32>
    %c0_141 = arith.constant 0 : index
    %c0_142 = arith.constant 0 : index
    %c0_143 = arith.constant 0 : index
    %230 = vector.load %arg6[%c0_141, %c0_142, %c0_143] : memref<3x32x256xf32, #tpu.memory_space<vmem>>, vector<1x32x256xf32>
    %231 = vector.shape_cast %230 : vector<1x32x256xf32> to vector<32x256xf32>
    %cst_144 = arith.constant dense<0.000000e+00> : vector<2x256xf32>
    %232 = tpu.matmul %216, %231, %cst_144 {dimension_numbers = #tpu.dot_dimension_numbers<[1], [0], [0], [1], [0, 0, 1, 1], [], []>} : vector<2x32xf32>, vector<32x256xf32>, vector<2x256xf32> -> vector<2x256xf32>
    %233 = arith.addf %229, %232 : vector<2x256xf32>
    %c0_145 = arith.constant 0 : index
    %c0_146 = arith.constant 0 : index
    %c0_147 = arith.constant 0 : index
    %234 = vector.load %arg7[%c0_145, %c0_146, %c0_147] : memref<3x1x256xf32, #tpu.memory_space<vmem>>, vector<1x1x256xf32>
    %235 = vector.shape_cast %234 : vector<1x1x256xf32> to vector<1x256xf32>
    %236 = vector.broadcast %235 : vector<1x256xf32> to vector<2x256xf32>
    %237 = arith.addf %233, %236 : vector<2x256xf32>
    %238 = vector.extract_strided_slice %237 {offsets = [0, 0], sizes = [2, 96], strides = [1, 1]} : vector<2x256xf32> to vector<2x96xf32>
    %239 = arith.negf %238 : vector<2x96xf32>
    %240 = math.exp %239 : vector<2x96xf32>
    %cst_148 = arith.constant 1.000000e+00 : f32
    %241 = vector.broadcast %cst_148 : f32 to vector<2x96xf32>
    %242 = arith.addf %241, %240 : vector<2x96xf32>
    %243 = arith.divf %241, %242 : vector<2x96xf32>
    %244 = vector.extract_strided_slice %243 {offsets = [0, 0], sizes = [2, 32], strides = [1, 1]} : vector<2x96xf32> to vector<2x32xf32>
    %245 = vector.extract_strided_slice %243 {offsets = [0, 32], sizes = [2, 32], strides = [1, 1]} : vector<2x96xf32> to vector<2x32xf32>
    %246 = vector.extract_strided_slice %243 {offsets = [0, 64], sizes = [2, 32], strides = [1, 1]} : vector<2x96xf32> to vector<2x32xf32>
    %247 = vector.extract_strided_slice %237 {offsets = [0, 128], sizes = [2, 64], strides = [1, 1]} : vector<2x256xf32> to vector<2x64xf32>
    %c0_149 = arith.constant 0 : index
    %c0_150 = arith.constant 0 : index
    %c0_151 = arith.constant 0 : index
    %248 = vector.load %arg8[%c0_149, %c0_150, %c0_151] : memref<3x64x64xf32, #tpu.memory_space<vmem>>, vector<1x64x64xf32>
    %249 = vector.shape_cast %248 : vector<1x64x64xf32> to vector<64x64xf32>
    %cst_152 = arith.constant dense<0.000000e+00> : vector<2x64xf32>
    %250 = tpu.matmul %1, %249, %cst_152 {dimension_numbers = #tpu.dot_dimension_numbers<[1], [0], [0], [1], [0, 0, 1, 1], [], []>} : vector<2x64xf32>, vector<64x64xf32>, vector<2x64xf32> -> vector<2x64xf32>
    %251 = arith.addf %247, %250 : vector<2x64xf32>
    %c0_153 = arith.constant 0 : index
    %c0_154 = arith.constant 0 : index
    %c0_155 = arith.constant 0 : index
    %252 = vector.load %arg9[%c0_153, %c0_154, %c0_155] : memref<3x1x64xf32, #tpu.memory_space<vmem>>, vector<1x1x64xf32>
    %253 = vector.shape_cast %252 : vector<1x1x64xf32> to vector<1x64xf32>
    %254 = vector.broadcast %253 : vector<1x64xf32> to vector<2x64xf32>
    %255 = arith.addf %251, %254 : vector<2x64xf32>
    %256 = vector.extract_strided_slice %255 {offsets = [0, 0], sizes = [2, 32], strides = [1, 1]} : vector<2x64xf32> to vector<2x32xf32>
    %257 = vector.extract_strided_slice %255 {offsets = [0, 32], sizes = [2, 32], strides = [1, 1]} : vector<2x64xf32> to vector<2x32xf32>
    %258 = arith.maximumf %256, %257 : vector<2x32xf32>
    %259 = arith.mulf %245, %50 : vector<2x32xf32>
    %260 = arith.mulf %244, %258 : vector<2x32xf32>
    %261 = arith.addf %259, %260 : vector<2x32xf32>
    %262 = math.tanh %261 : vector<2x32xf32>
    %263 = arith.mulf %246, %262 : vector<2x32xf32>
    %c0_156 = arith.constant 0 : index
    %c0_157 = arith.constant 0 : index
    %c0_158 = arith.constant 0 : index
    %c0_159 = arith.constant 0 : index
    %264 = vector.load %arg3[%c0_156, %c0_157, %c0_158, %c0_159] : memref<2x2x16x32xf32, #tpu.memory_space<vmem>>, vector<1x2x16x32xf32>
    %265 = vector.shape_cast %264 : vector<1x2x16x32xf32> to vector<2x16x32xf32>
    %c0_160 = arith.constant 0 : index
    %c0_161 = arith.constant 0 : index
    %c0_162 = arith.constant 0 : index
    %266 = vector.load %arg10[%c0_160, %c0_161, %c0_162] : memref<2x32x32xf32, #tpu.memory_space<vmem>>, vector<1x32x32xf32>
    %267 = vector.shape_cast %266 : vector<1x32x32xf32> to vector<32x32xf32>
    %cst_163 = arith.constant dense<0.000000e+00> : vector<2x32xf32>
    %268 = tpu.matmul %263, %267, %cst_163 {dimension_numbers = #tpu.dot_dimension_numbers<[1], [0], [0], [1], [0, 0, 1, 1], [], []>} : vector<2x32xf32>, vector<32x32xf32>, vector<2x32xf32> -> vector<2x32xf32>
    %c0_164 = arith.constant 0 : index
    %c0_165 = arith.constant 0 : index
    %c0_166 = arith.constant 0 : index
    %269 = vector.load %arg11[%c0_164, %c0_165, %c0_166] : memref<2x1x32xf32, #tpu.memory_space<vmem>>, vector<1x1x32xf32>
    %270 = vector.shape_cast %269 : vector<1x1x32xf32> to vector<1x32xf32>
    %271 = vector.broadcast %270 : vector<1x32xf32> to vector<2x32xf32>
    %272 = arith.addf %268, %271 : vector<2x32xf32>
    %273 = vector.shape_cast %272 : vector<2x32xf32> to vector<2x1x32xf32>
    %274 = vector.broadcast %273 : vector<2x1x32xf32> to vector<2x16x32xf32>
    %275 = arith.addf %265, %274 : vector<2x16x32xf32>
    %276 = math.tanh %275 : vector<2x16x32xf32>
    %c0_167 = arith.constant 0 : index
    %c0_168 = arith.constant 0 : index
    %c0_169 = arith.constant 0 : index
    %277 = vector.load %arg12[%c0_167, %c0_168, %c0_169] : memref<2x1x32xf32, #tpu.memory_space<vmem>>, vector<1x1x32xf32>
    %278 = vector.shape_cast %277 : vector<1x1x32xf32> to vector<1x32xf32>
    %279 = vector.shape_cast %278 : vector<1x32xf32> to vector<1x1x32xf32>
    %280 = vector.broadcast %279 : vector<1x1x32xf32> to vector<2x16x32xf32>
    %281 = arith.mulf %276, %280 : vector<2x16x32xf32>
    %cst_170 = arith.constant dense<0.000000e+00> : vector<2x16xf32>
    %282 = vector.multi_reduction <add>, %281, %cst_170 [2] : vector<2x16x32xf32> to vector<2x16xf32>
    %c0_171 = arith.constant 0 : index
    %c0_172 = arith.constant 0 : index
    %c0_173 = arith.constant 0 : index
    %283 = vector.load %arg13[%c0_171, %c0_172, %c0_173] : memref<2x1x1xf32, #tpu.memory_space<vmem>>, vector<1x1x1xf32>
    %284 = vector.shape_cast %283 : vector<1x1x1xf32> to vector<1x1xf32>
    %285 = vector.broadcast %284 : vector<1x1xf32> to vector<2x16xf32>
    %286 = arith.addf %282, %285 : vector<2x16xf32>
    %cst_174 = arith.constant dense<0xFF800000> : vector<2xf32>
    %287 = vector.multi_reduction <maximumf>, %286, %cst_174 [1] : vector<2x16xf32> to vector<2xf32>
    %288 = vector.shape_cast %287 : vector<2xf32> to vector<2x1xf32>
    %289 = vector.broadcast %288 : vector<2x1xf32> to vector<2x16xf32>
    %290 = arith.subf %286, %289 : vector<2x16xf32>
    %291 = math.exp %290 : vector<2x16xf32>
    %cst_175 = arith.constant dense<0.000000e+00> : vector<2xf32>
    %292 = vector.multi_reduction <add>, %291, %cst_175 [1] : vector<2x16xf32> to vector<2xf32>
    %293 = vector.shape_cast %292 : vector<2xf32> to vector<2x1xf32>
    %294 = vector.broadcast %293 : vector<2x1xf32> to vector<2x16xf32>
    %295 = arith.divf %291, %294 : vector<2x16xf32>
    %296 = vector.shape_cast %295 : vector<2x16xf32> to vector<2x16x1xf32>
    %297 = vector.broadcast %296 : vector<2x16x1xf32> to vector<2x16x64xf32>
    %298 = arith.mulf %297, %0 : vector<2x16x64xf32>
    %cst_176 = arith.constant dense<0.000000e+00> : vector<2x64xf32>
    %299 = vector.multi_reduction <add>, %298, %cst_176 [1] : vector<2x16x64xf32> to vector<2x64xf32>
    %300 = vector.extract_strided_slice %220 {offsets = [1, 0, 0], sizes = [1, 2, 16], strides = [1, 1, 1]} : vector<3x2x16xf32> to vector<1x2x16xf32>
    %301 = vector.shape_cast %300 : vector<1x2x16xf32> to vector<2x16xf32>
    %c1_177 = arith.constant 1 : index
    %c0_178 = arith.constant 0 : index
    %c0_179 = arith.constant 0 : index
    %302 = vector.load %arg4[%c1_177, %c0_178, %c0_179] : memref<3x16x256xf32, #tpu.memory_space<vmem>>, vector<1x16x256xf32>
    %303 = vector.shape_cast %302 : vector<1x16x256xf32> to vector<16x256xf32>
    %cst_180 = arith.constant dense<0.000000e+00> : vector<2x256xf32>
    %304 = tpu.matmul %301, %303, %cst_180 {dimension_numbers = #tpu.dot_dimension_numbers<[1], [0], [0], [1], [0, 0, 1, 1], [], []>} : vector<2x16xf32>, vector<16x256xf32>, vector<2x256xf32> -> vector<2x256xf32>
    %c1_181 = arith.constant 1 : index
    %c0_182 = arith.constant 0 : index
    %c0_183 = arith.constant 0 : index
    %305 = vector.load %arg5[%c1_181, %c0_182, %c0_183] : memref<3x32x256xf32, #tpu.memory_space<vmem>>, vector<1x32x256xf32>
    %306 = vector.shape_cast %305 : vector<1x32x256xf32> to vector<32x256xf32>
    %cst_184 = arith.constant dense<0.000000e+00> : vector<2x256xf32>
    %307 = tpu.matmul %131, %306, %cst_184 {dimension_numbers = #tpu.dot_dimension_numbers<[1], [0], [0], [1], [0, 0, 1, 1], [], []>} : vector<2x32xf32>, vector<32x256xf32>, vector<2x256xf32> -> vector<2x256xf32>
    %308 = arith.addf %304, %307 : vector<2x256xf32>
    %c1_185 = arith.constant 1 : index
    %c0_186 = arith.constant 0 : index
    %c0_187 = arith.constant 0 : index
    %309 = vector.load %arg6[%c1_185, %c0_186, %c0_187] : memref<3x32x256xf32, #tpu.memory_space<vmem>>, vector<1x32x256xf32>
    %310 = vector.shape_cast %309 : vector<1x32x256xf32> to vector<32x256xf32>
    %cst_188 = arith.constant dense<0.000000e+00> : vector<2x256xf32>
    %311 = tpu.matmul %263, %310, %cst_188 {dimension_numbers = #tpu.dot_dimension_numbers<[1], [0], [0], [1], [0, 0, 1, 1], [], []>} : vector<2x32xf32>, vector<32x256xf32>, vector<2x256xf32> -> vector<2x256xf32>
    %312 = arith.addf %308, %311 : vector<2x256xf32>
    %c1_189 = arith.constant 1 : index
    %c0_190 = arith.constant 0 : index
    %c0_191 = arith.constant 0 : index
    %313 = vector.load %arg7[%c1_189, %c0_190, %c0_191] : memref<3x1x256xf32, #tpu.memory_space<vmem>>, vector<1x1x256xf32>
    %314 = vector.shape_cast %313 : vector<1x1x256xf32> to vector<1x256xf32>
    %315 = vector.broadcast %314 : vector<1x256xf32> to vector<2x256xf32>
    %316 = arith.addf %312, %315 : vector<2x256xf32>
    %317 = vector.extract_strided_slice %316 {offsets = [0, 0], sizes = [2, 96], strides = [1, 1]} : vector<2x256xf32> to vector<2x96xf32>
    %318 = arith.negf %317 : vector<2x96xf32>
    %319 = math.exp %318 : vector<2x96xf32>
    %cst_192 = arith.constant 1.000000e+00 : f32
    %320 = vector.broadcast %cst_192 : f32 to vector<2x96xf32>
    %321 = arith.addf %320, %319 : vector<2x96xf32>
    %322 = arith.divf %320, %321 : vector<2x96xf32>
    %323 = vector.extract_strided_slice %322 {offsets = [0, 0], sizes = [2, 32], strides = [1, 1]} : vector<2x96xf32> to vector<2x32xf32>
    %324 = vector.extract_strided_slice %322 {offsets = [0, 32], sizes = [2, 32], strides = [1, 1]} : vector<2x96xf32> to vector<2x32xf32>
    %325 = vector.extract_strided_slice %322 {offsets = [0, 64], sizes = [2, 32], strides = [1, 1]} : vector<2x96xf32> to vector<2x32xf32>
    %326 = vector.extract_strided_slice %316 {offsets = [0, 128], sizes = [2, 64], strides = [1, 1]} : vector<2x256xf32> to vector<2x64xf32>
    %c1_193 = arith.constant 1 : index
    %c0_194 = arith.constant 0 : index
    %c0_195 = arith.constant 0 : index
    %327 = vector.load %arg8[%c1_193, %c0_194, %c0_195] : memref<3x64x64xf32, #tpu.memory_space<vmem>>, vector<1x64x64xf32>
    %328 = vector.shape_cast %327 : vector<1x64x64xf32> to vector<64x64xf32>
    %cst_196 = arith.constant dense<0.000000e+00> : vector<2x64xf32>
    %329 = tpu.matmul %299, %328, %cst_196 {dimension_numbers = #tpu.dot_dimension_numbers<[1], [0], [0], [1], [0, 0, 1, 1], [], []>} : vector<2x64xf32>, vector<64x64xf32>, vector<2x64xf32> -> vector<2x64xf32>
    %330 = arith.addf %326, %329 : vector<2x64xf32>
    %c1_197 = arith.constant 1 : index
    %c0_198 = arith.constant 0 : index
    %c0_199 = arith.constant 0 : index
    %331 = vector.load %arg9[%c1_197, %c0_198, %c0_199] : memref<3x1x64xf32, #tpu.memory_space<vmem>>, vector<1x1x64xf32>
    %332 = vector.shape_cast %331 : vector<1x1x64xf32> to vector<1x64xf32>
    %333 = vector.broadcast %332 : vector<1x64xf32> to vector<2x64xf32>
    %334 = arith.addf %330, %333 : vector<2x64xf32>
    %335 = vector.extract_strided_slice %334 {offsets = [0, 0], sizes = [2, 32], strides = [1, 1]} : vector<2x64xf32> to vector<2x32xf32>
    %336 = vector.extract_strided_slice %334 {offsets = [0, 32], sizes = [2, 32], strides = [1, 1]} : vector<2x64xf32> to vector<2x32xf32>
    %337 = arith.maximumf %335, %336 : vector<2x32xf32>
    %338 = arith.mulf %324, %129 : vector<2x32xf32>
    %339 = arith.mulf %323, %337 : vector<2x32xf32>
    %340 = arith.addf %338, %339 : vector<2x32xf32>
    %341 = math.tanh %340 : vector<2x32xf32>
    %342 = arith.mulf %325, %341 : vector<2x32xf32>
    %c0_200 = arith.constant 0 : index
    %c0_201 = arith.constant 0 : index
    %343 = vector.load %arg14[%c0_200, %c0_201] : memref<64x32xf32, #tpu.memory_space<vmem>>, vector<64x32xf32>
    %cst_202 = arith.constant dense<0.000000e+00> : vector<2x32xf32>
    %344 = tpu.matmul %299, %343, %cst_202 {dimension_numbers = #tpu.dot_dimension_numbers<[1], [0], [0], [1], [0, 0, 1, 1], [], []>} : vector<2x64xf32>, vector<64x32xf32>, vector<2x32xf32> -> vector<2x32xf32>
    %345 = arith.addf %342, %344 : vector<2x32xf32>
    %c0_203 = arith.constant 0 : index
    %c0_204 = arith.constant 0 : index
    %346 = vector.load %arg15[%c0_203, %c0_204] : memref<1x32xf32, #tpu.memory_space<vmem>>, vector<1x32xf32>
    %347 = vector.broadcast %346 : vector<1x32xf32> to vector<2x32xf32>
    %348 = arith.addf %345, %347 : vector<2x32xf32>
    %c1_205 = arith.constant 1 : index
    %c0_206 = arith.constant 0 : index
    %c0_207 = arith.constant 0 : index
    %c0_208 = arith.constant 0 : index
    %349 = vector.load %arg3[%c1_205, %c0_206, %c0_207, %c0_208] : memref<2x2x16x32xf32, #tpu.memory_space<vmem>>, vector<1x2x16x32xf32>
    %350 = vector.shape_cast %349 : vector<1x2x16x32xf32> to vector<2x16x32xf32>
    %c1_209 = arith.constant 1 : index
    %c0_210 = arith.constant 0 : index
    %c0_211 = arith.constant 0 : index
    %351 = vector.load %arg10[%c1_209, %c0_210, %c0_211] : memref<2x32x32xf32, #tpu.memory_space<vmem>>, vector<1x32x32xf32>
    %352 = vector.shape_cast %351 : vector<1x32x32xf32> to vector<32x32xf32>
    %cst_212 = arith.constant dense<0.000000e+00> : vector<2x32xf32>
    %353 = tpu.matmul %348, %352, %cst_212 {dimension_numbers = #tpu.dot_dimension_numbers<[1], [0], [0], [1], [0, 0, 1, 1], [], []>} : vector<2x32xf32>, vector<32x32xf32>, vector<2x32xf32> -> vector<2x32xf32>
    %c1_213 = arith.constant 1 : index
    %c0_214 = arith.constant 0 : index
    %c0_215 = arith.constant 0 : index
    %354 = vector.load %arg11[%c1_213, %c0_214, %c0_215] : memref<2x1x32xf32, #tpu.memory_space<vmem>>, vector<1x1x32xf32>
    %355 = vector.shape_cast %354 : vector<1x1x32xf32> to vector<1x32xf32>
    %356 = vector.broadcast %355 : vector<1x32xf32> to vector<2x32xf32>
    %357 = arith.addf %353, %356 : vector<2x32xf32>
    %358 = vector.shape_cast %357 : vector<2x32xf32> to vector<2x1x32xf32>
    %359 = vector.broadcast %358 : vector<2x1x32xf32> to vector<2x16x32xf32>
    %360 = arith.addf %350, %359 : vector<2x16x32xf32>
    %361 = math.tanh %360 : vector<2x16x32xf32>
    %c1_216 = arith.constant 1 : index
    %c0_217 = arith.constant 0 : index
    %c0_218 = arith.constant 0 : index
    %362 = vector.load %arg12[%c1_216, %c0_217, %c0_218] : memref<2x1x32xf32, #tpu.memory_space<vmem>>, vector<1x1x32xf32>
    %363 = vector.shape_cast %362 : vector<1x1x32xf32> to vector<1x32xf32>
    %364 = vector.shape_cast %363 : vector<1x32xf32> to vector<1x1x32xf32>
    %365 = vector.broadcast %364 : vector<1x1x32xf32> to vector<2x16x32xf32>
    %366 = arith.mulf %361, %365 : vector<2x16x32xf32>
    %cst_219 = arith.constant dense<0.000000e+00> : vector<2x16xf32>
    %367 = vector.multi_reduction <add>, %366, %cst_219 [2] : vector<2x16x32xf32> to vector<2x16xf32>
    %c1_220 = arith.constant 1 : index
    %c0_221 = arith.constant 0 : index
    %c0_222 = arith.constant 0 : index
    %368 = vector.load %arg13[%c1_220, %c0_221, %c0_222] : memref<2x1x1xf32, #tpu.memory_space<vmem>>, vector<1x1x1xf32>
    %369 = vector.shape_cast %368 : vector<1x1x1xf32> to vector<1x1xf32>
    %370 = vector.broadcast %369 : vector<1x1xf32> to vector<2x16xf32>
    %371 = arith.addf %367, %370 : vector<2x16xf32>
    %cst_223 = arith.constant dense<0xFF800000> : vector<2xf32>
    %372 = vector.multi_reduction <maximumf>, %371, %cst_223 [1] : vector<2x16xf32> to vector<2xf32>
    %373 = vector.shape_cast %372 : vector<2xf32> to vector<2x1xf32>
    %374 = vector.broadcast %373 : vector<2x1xf32> to vector<2x16xf32>
    %375 = arith.subf %371, %374 : vector<2x16xf32>
    %376 = math.exp %375 : vector<2x16xf32>
    %cst_224 = arith.constant dense<0.000000e+00> : vector<2xf32>
    %377 = vector.multi_reduction <add>, %376, %cst_224 [1] : vector<2x16xf32> to vector<2xf32>
    %378 = vector.shape_cast %377 : vector<2xf32> to vector<2x1xf32>
    %379 = vector.broadcast %378 : vector<2x1xf32> to vector<2x16xf32>
    %380 = arith.divf %376, %379 : vector<2x16xf32>
    %381 = vector.shape_cast %380 : vector<2x16xf32> to vector<2x16x1xf32>
    %382 = vector.broadcast %381 : vector<2x16x1xf32> to vector<2x16x64xf32>
    %383 = arith.mulf %382, %0 : vector<2x16x64xf32>
    %cst_225 = arith.constant dense<0.000000e+00> : vector<2x64xf32>
    %384 = vector.multi_reduction <add>, %383, %cst_225 [1] : vector<2x16x64xf32> to vector<2x64xf32>
    %385 = vector.extract_strided_slice %220 {offsets = [2, 0, 0], sizes = [1, 2, 16], strides = [1, 1, 1]} : vector<3x2x16xf32> to vector<1x2x16xf32>
    %386 = vector.shape_cast %385 : vector<1x2x16xf32> to vector<2x16xf32>
    %c2_226 = arith.constant 2 : index
    %c0_227 = arith.constant 0 : index
    %c0_228 = arith.constant 0 : index
    %387 = vector.load %arg4[%c2_226, %c0_227, %c0_228] : memref<3x16x256xf32, #tpu.memory_space<vmem>>, vector<1x16x256xf32>
    %388 = vector.shape_cast %387 : vector<1x16x256xf32> to vector<16x256xf32>
    %cst_229 = arith.constant dense<0.000000e+00> : vector<2x256xf32>
    %389 = tpu.matmul %386, %388, %cst_229 {dimension_numbers = #tpu.dot_dimension_numbers<[1], [0], [0], [1], [0, 0, 1, 1], [], []>} : vector<2x16xf32>, vector<16x256xf32>, vector<2x256xf32> -> vector<2x256xf32>
    %c2_230 = arith.constant 2 : index
    %c0_231 = arith.constant 0 : index
    %c0_232 = arith.constant 0 : index
    %390 = vector.load %arg5[%c2_230, %c0_231, %c0_232] : memref<3x32x256xf32, #tpu.memory_space<vmem>>, vector<1x32x256xf32>
    %391 = vector.shape_cast %390 : vector<1x32x256xf32> to vector<32x256xf32>
    %cst_233 = arith.constant dense<0.000000e+00> : vector<2x256xf32>
    %392 = tpu.matmul %216, %391, %cst_233 {dimension_numbers = #tpu.dot_dimension_numbers<[1], [0], [0], [1], [0, 0, 1, 1], [], []>} : vector<2x32xf32>, vector<32x256xf32>, vector<2x256xf32> -> vector<2x256xf32>
    %393 = arith.addf %389, %392 : vector<2x256xf32>
    %c2_234 = arith.constant 2 : index
    %c0_235 = arith.constant 0 : index
    %c0_236 = arith.constant 0 : index
    %394 = vector.load %arg6[%c2_234, %c0_235, %c0_236] : memref<3x32x256xf32, #tpu.memory_space<vmem>>, vector<1x32x256xf32>
    %395 = vector.shape_cast %394 : vector<1x32x256xf32> to vector<32x256xf32>
    %cst_237 = arith.constant dense<0.000000e+00> : vector<2x256xf32>
    %396 = tpu.matmul %342, %395, %cst_237 {dimension_numbers = #tpu.dot_dimension_numbers<[1], [0], [0], [1], [0, 0, 1, 1], [], []>} : vector<2x32xf32>, vector<32x256xf32>, vector<2x256xf32> -> vector<2x256xf32>
    %397 = arith.addf %393, %396 : vector<2x256xf32>
    %c2_238 = arith.constant 2 : index
    %c0_239 = arith.constant 0 : index
    %c0_240 = arith.constant 0 : index
    %398 = vector.load %arg7[%c2_238, %c0_239, %c0_240] : memref<3x1x256xf32, #tpu.memory_space<vmem>>, vector<1x1x256xf32>
    %399 = vector.shape_cast %398 : vector<1x1x256xf32> to vector<1x256xf32>
    %400 = vector.broadcast %399 : vector<1x256xf32> to vector<2x256xf32>
    %401 = arith.addf %397, %400 : vector<2x256xf32>
    %402 = vector.extract_strided_slice %401 {offsets = [0, 0], sizes = [2, 96], strides = [1, 1]} : vector<2x256xf32> to vector<2x96xf32>
    %403 = arith.negf %402 : vector<2x96xf32>
    %404 = math.exp %403 : vector<2x96xf32>
    %cst_241 = arith.constant 1.000000e+00 : f32
    %405 = vector.broadcast %cst_241 : f32 to vector<2x96xf32>
    %406 = arith.addf %405, %404 : vector<2x96xf32>
    %407 = arith.divf %405, %406 : vector<2x96xf32>
    %408 = vector.extract_strided_slice %407 {offsets = [0, 0], sizes = [2, 32], strides = [1, 1]} : vector<2x96xf32> to vector<2x32xf32>
    %409 = vector.extract_strided_slice %407 {offsets = [0, 32], sizes = [2, 32], strides = [1, 1]} : vector<2x96xf32> to vector<2x32xf32>
    %410 = vector.extract_strided_slice %407 {offsets = [0, 64], sizes = [2, 32], strides = [1, 1]} : vector<2x96xf32> to vector<2x32xf32>
    %411 = vector.extract_strided_slice %401 {offsets = [0, 128], sizes = [2, 64], strides = [1, 1]} : vector<2x256xf32> to vector<2x64xf32>
    %c2_242 = arith.constant 2 : index
    %c0_243 = arith.constant 0 : index
    %c0_244 = arith.constant 0 : index
    %412 = vector.load %arg8[%c2_242, %c0_243, %c0_244] : memref<3x64x64xf32, #tpu.memory_space<vmem>>, vector<1x64x64xf32>
    %413 = vector.shape_cast %412 : vector<1x64x64xf32> to vector<64x64xf32>
    %cst_245 = arith.constant dense<0.000000e+00> : vector<2x64xf32>
    %414 = tpu.matmul %384, %413, %cst_245 {dimension_numbers = #tpu.dot_dimension_numbers<[1], [0], [0], [1], [0, 0, 1, 1], [], []>} : vector<2x64xf32>, vector<64x64xf32>, vector<2x64xf32> -> vector<2x64xf32>
    %415 = arith.addf %411, %414 : vector<2x64xf32>
    %c2_246 = arith.constant 2 : index
    %c0_247 = arith.constant 0 : index
    %c0_248 = arith.constant 0 : index
    %416 = vector.load %arg9[%c2_246, %c0_247, %c0_248] : memref<3x1x64xf32, #tpu.memory_space<vmem>>, vector<1x1x64xf32>
    %417 = vector.shape_cast %416 : vector<1x1x64xf32> to vector<1x64xf32>
    %418 = vector.broadcast %417 : vector<1x64xf32> to vector<2x64xf32>
    %419 = arith.addf %415, %418 : vector<2x64xf32>
    %420 = vector.extract_strided_slice %419 {offsets = [0, 0], sizes = [2, 32], strides = [1, 1]} : vector<2x64xf32> to vector<2x32xf32>
    %421 = vector.extract_strided_slice %419 {offsets = [0, 32], sizes = [2, 32], strides = [1, 1]} : vector<2x64xf32> to vector<2x32xf32>
    %422 = arith.maximumf %420, %421 : vector<2x32xf32>
    %423 = arith.mulf %409, %214 : vector<2x32xf32>
    %424 = arith.mulf %408, %422 : vector<2x32xf32>
    %425 = arith.addf %423, %424 : vector<2x32xf32>
    %426 = math.tanh %425 : vector<2x32xf32>
    %427 = arith.mulf %410, %426 : vector<2x32xf32>
    %428 = tpu.concatenate %263, %342, %427 in 1 : vector<2x32xf32>, vector<2x32xf32>, vector<2x32xf32> -> vector<2x96xf32>
    %c2_249 = arith.constant 2 : index
    %c0_250 = arith.constant 0 : index
    %429 = vector.load %arg19[%c2_249, %c0_250] : memref<8x96xf32, #tpu.memory_space<vmem>>, vector<2x96xf32>
    tpu.vector_store %arg19[%c2_249, %c0_250], %428 {strides = array<i32>} : memref<8x96xf32, #tpu.memory_space<vmem>>, vector<2x96xf32>,
    %c2_251 = arith.constant 2 : index
    %c0_252 = arith.constant 0 : index
    %c0_253 = arith.constant 0 : index
    %c0_254 = arith.constant 0 : index
    %430 = vector.load %arg0[%c2_251, %c0_252, %c0_253, %c0_254] : memref<4x3x2x16xf32, #tpu.memory_space<vmem>>, vector<1x3x2x16xf32>
    %431 = vector.shape_cast %430 : vector<1x3x2x16xf32> to vector<3x2x16xf32>
    %432 = vector.extract_strided_slice %431 {offsets = [0, 0, 0], sizes = [1, 2, 16], strides = [1, 1, 1]} : vector<3x2x16xf32> to vector<1x2x16xf32>
    %433 = vector.shape_cast %432 : vector<1x2x16xf32> to vector<2x16xf32>
    %c0_255 = arith.constant 0 : index
    %c0_256 = arith.constant 0 : index
    %c0_257 = arith.constant 0 : index
    %434 = vector.load %arg4[%c0_255, %c0_256, %c0_257] : memref<3x16x256xf32, #tpu.memory_space<vmem>>, vector<1x16x256xf32>
    %435 = vector.shape_cast %434 : vector<1x16x256xf32> to vector<16x256xf32>
    %cst_258 = arith.constant dense<0.000000e+00> : vector<2x256xf32>
    %436 = tpu.matmul %433, %435, %cst_258 {dimension_numbers = #tpu.dot_dimension_numbers<[1], [0], [0], [1], [0, 0, 1, 1], [], []>} : vector<2x16xf32>, vector<16x256xf32>, vector<2x256xf32> -> vector<2x256xf32>
    %c0_259 = arith.constant 0 : index
    %c0_260 = arith.constant 0 : index
    %c0_261 = arith.constant 0 : index
    %437 = vector.load %arg5[%c0_259, %c0_260, %c0_261] : memref<3x32x256xf32, #tpu.memory_space<vmem>>, vector<1x32x256xf32>
    %438 = vector.shape_cast %437 : vector<1x32x256xf32> to vector<32x256xf32>
    %cst_262 = arith.constant dense<0.000000e+00> : vector<2x256xf32>
    %439 = tpu.matmul %263, %438, %cst_262 {dimension_numbers = #tpu.dot_dimension_numbers<[1], [0], [0], [1], [0, 0, 1, 1], [], []>} : vector<2x32xf32>, vector<32x256xf32>, vector<2x256xf32> -> vector<2x256xf32>
    %440 = arith.addf %436, %439 : vector<2x256xf32>
    %c0_263 = arith.constant 0 : index
    %c0_264 = arith.constant 0 : index
    %c0_265 = arith.constant 0 : index
    %441 = vector.load %arg6[%c0_263, %c0_264, %c0_265] : memref<3x32x256xf32, #tpu.memory_space<vmem>>, vector<1x32x256xf32>
    %442 = vector.shape_cast %441 : vector<1x32x256xf32> to vector<32x256xf32>
    %cst_266 = arith.constant dense<0.000000e+00> : vector<2x256xf32>
    %443 = tpu.matmul %427, %442, %cst_266 {dimension_numbers = #tpu.dot_dimension_numbers<[1], [0], [0], [1], [0, 0, 1, 1], [], []>} : vector<2x32xf32>, vector<32x256xf32>, vector<2x256xf32> -> vector<2x256xf32>
    %444 = arith.addf %440, %443 : vector<2x256xf32>
    %c0_267 = arith.constant 0 : index
    %c0_268 = arith.constant 0 : index
    %c0_269 = arith.constant 0 : index
    %445 = vector.load %arg7[%c0_267, %c0_268, %c0_269] : memref<3x1x256xf32, #tpu.memory_space<vmem>>, vector<1x1x256xf32>
    %446 = vector.shape_cast %445 : vector<1x1x256xf32> to vector<1x256xf32>
    %447 = vector.broadcast %446 : vector<1x256xf32> to vector<2x256xf32>
    %448 = arith.addf %444, %447 : vector<2x256xf32>
    %449 = vector.extract_strided_slice %448 {offsets = [0, 0], sizes = [2, 96], strides = [1, 1]} : vector<2x256xf32> to vector<2x96xf32>
    %450 = arith.negf %449 : vector<2x96xf32>
    %451 = math.exp %450 : vector<2x96xf32>
    %cst_270 = arith.constant 1.000000e+00 : f32
    %452 = vector.broadcast %cst_270 : f32 to vector<2x96xf32>
    %453 = arith.addf %452, %451 : vector<2x96xf32>
    %454 = arith.divf %452, %453 : vector<2x96xf32>
    %455 = vector.extract_strided_slice %454 {offsets = [0, 0], sizes = [2, 32], strides = [1, 1]} : vector<2x96xf32> to vector<2x32xf32>
    %456 = vector.extract_strided_slice %454 {offsets = [0, 32], sizes = [2, 32], strides = [1, 1]} : vector<2x96xf32> to vector<2x32xf32>
    %457 = vector.extract_strided_slice %454 {offsets = [0, 64], sizes = [2, 32], strides = [1, 1]} : vector<2x96xf32> to vector<2x32xf32>
    %458 = vector.extract_strided_slice %448 {offsets = [0, 128], sizes = [2, 64], strides = [1, 1]} : vector<2x256xf32> to vector<2x64xf32>
    %c0_271 = arith.constant 0 : index
    %c0_272 = arith.constant 0 : index
    %c0_273 = arith.constant 0 : index
    %459 = vector.load %arg8[%c0_271, %c0_272, %c0_273] : memref<3x64x64xf32, #tpu.memory_space<vmem>>, vector<1x64x64xf32>
    %460 = vector.shape_cast %459 : vector<1x64x64xf32> to vector<64x64xf32>
    %cst_274 = arith.constant dense<0.000000e+00> : vector<2x64xf32>
    %461 = tpu.matmul %1, %460, %cst_274 {dimension_numbers = #tpu.dot_dimension_numbers<[1], [0], [0], [1], [0, 0, 1, 1], [], []>} : vector<2x64xf32>, vector<64x64xf32>, vector<2x64xf32> -> vector<2x64xf32>
    %462 = arith.addf %458, %461 : vector<2x64xf32>
    %c0_275 = arith.constant 0 : index
    %c0_276 = arith.constant 0 : index
    %c0_277 = arith.constant 0 : index
    %463 = vector.load %arg9[%c0_275, %c0_276, %c0_277] : memref<3x1x64xf32, #tpu.memory_space<vmem>>, vector<1x1x64xf32>
    %464 = vector.shape_cast %463 : vector<1x1x64xf32> to vector<1x64xf32>
    %465 = vector.broadcast %464 : vector<1x64xf32> to vector<2x64xf32>
    %466 = arith.addf %462, %465 : vector<2x64xf32>
    %467 = vector.extract_strided_slice %466 {offsets = [0, 0], sizes = [2, 32], strides = [1, 1]} : vector<2x64xf32> to vector<2x32xf32>
    %468 = vector.extract_strided_slice %466 {offsets = [0, 32], sizes = [2, 32], strides = [1, 1]} : vector<2x64xf32> to vector<2x32xf32>
    %469 = arith.maximumf %467, %468 : vector<2x32xf32>
    %470 = arith.mulf %456, %261 : vector<2x32xf32>
    %471 = arith.mulf %455, %469 : vector<2x32xf32>
    %472 = arith.addf %470, %471 : vector<2x32xf32>
    %473 = math.tanh %472 : vector<2x32xf32>
    %474 = arith.mulf %457, %473 : vector<2x32xf32>
    %c0_278 = arith.constant 0 : index
    %c0_279 = arith.constant 0 : index
    %c0_280 = arith.constant 0 : index
    %c0_281 = arith.constant 0 : index
    %475 = vector.load %arg3[%c0_278, %c0_279, %c0_280, %c0_281] : memref<2x2x16x32xf32, #tpu.memory_space<vmem>>, vector<1x2x16x32xf32>
    %476 = vector.shape_cast %475 : vector<1x2x16x32xf32> to vector<2x16x32xf32>
    %c0_282 = arith.constant 0 : index
    %c0_283 = arith.constant 0 : index
    %c0_284 = arith.constant 0 : index
    %477 = vector.load %arg10[%c0_282, %c0_283, %c0_284] : memref<2x32x32xf32, #tpu.memory_space<vmem>>, vector<1x32x32xf32>
    %478 = vector.shape_cast %477 : vector<1x32x32xf32> to vector<32x32xf32>
    %cst_285 = arith.constant dense<0.000000e+00> : vector<2x32xf32>
    %479 = tpu.matmul %474, %478, %cst_285 {dimension_numbers = #tpu.dot_dimension_numbers<[1], [0], [0], [1], [0, 0, 1, 1], [], []>} : vector<2x32xf32>, vector<32x32xf32>, vector<2x32xf32> -> vector<2x32xf32>
    %c0_286 = arith.constant 0 : index
    %c0_287 = arith.constant 0 : index
    %c0_288 = arith.constant 0 : index
    %480 = vector.load %arg11[%c0_286, %c0_287, %c0_288] : memref<2x1x32xf32, #tpu.memory_space<vmem>>, vector<1x1x32xf32>
    %481 = vector.shape_cast %480 : vector<1x1x32xf32> to vector<1x32xf32>
    %482 = vector.broadcast %481 : vector<1x32xf32> to vector<2x32xf32>
    %483 = arith.addf %479, %482 : vector<2x32xf32>
    %484 = vector.shape_cast %483 : vector<2x32xf32> to vector<2x1x32xf32>
    %485 = vector.broadcast %484 : vector<2x1x32xf32> to vector<2x16x32xf32>
    %486 = arith.addf %476, %485 : vector<2x16x32xf32>
    %487 = math.tanh %486 : vector<2x16x32xf32>
    %c0_289 = arith.constant 0 : index
    %c0_290 = arith.constant 0 : index
    %c0_291 = arith.constant 0 : index
    %488 = vector.load %arg12[%c0_289, %c0_290, %c0_291] : memref<2x1x32xf32, #tpu.memory_space<vmem>>, vector<1x1x32xf32>
    %489 = vector.shape_cast %488 : vector<1x1x32xf32> to vector<1x32xf32>
    %490 = vector.shape_cast %489 : vector<1x32xf32> to vector<1x1x32xf32>
    %491 = vector.broadcast %490 : vector<1x1x32xf32> to vector<2x16x32xf32>
    %492 = arith.mulf %487, %491 : vector<2x16x32xf32>
    %cst_292 = arith.constant dense<0.000000e+00> : vector<2x16xf32>
    %493 = vector.multi_reduction <add>, %492, %cst_292 [2] : vector<2x16x32xf32> to vector<2x16xf32>
    %c0_293 = arith.constant 0 : index
    %c0_294 = arith.constant 0 : index
    %c0_295 = arith.constant 0 : index
    %494 = vector.load %arg13[%c0_293, %c0_294, %c0_295] : memref<2x1x1xf32, #tpu.memory_space<vmem>>, vector<1x1x1xf32>
    %495 = vector.shape_cast %494 : vector<1x1x1xf32> to vector<1x1xf32>
    %496 = vector.broadcast %495 : vector<1x1xf32> to vector<2x16xf32>
    %497 = arith.addf %493, %496 : vector<2x16xf32>
    %cst_296 = arith.constant dense<0xFF800000> : vector<2xf32>
    %498 = vector.multi_reduction <maximumf>, %497, %cst_296 [1] : vector<2x16xf32> to vector<2xf32>
    %499 = vector.shape_cast %498 : vector<2xf32> to vector<2x1xf32>
    %500 = vector.broadcast %499 : vector<2x1xf32> to vector<2x16xf32>
    %501 = arith.subf %497, %500 : vector<2x16xf32>
    %502 = math.exp %501 : vector<2x16xf32>
    %cst_297 = arith.constant dense<0.000000e+00> : vector<2xf32>
    %503 = vector.multi_reduction <add>, %502, %cst_297 [1] : vector<2x16xf32> to vector<2xf32>
    %504 = vector.shape_cast %503 : vector<2xf32> to vector<2x1xf32>
    %505 = vector.broadcast %504 : vector<2x1xf32> to vector<2x16xf32>
    %506 = arith.divf %502, %505 : vector<2x16xf32>
    %507 = vector.shape_cast %506 : vector<2x16xf32> to vector<2x16x1xf32>
    %508 = vector.broadcast %507 : vector<2x16x1xf32> to vector<2x16x64xf32>
    %509 = arith.mulf %508, %0 : vector<2x16x64xf32>
    %cst_298 = arith.constant dense<0.000000e+00> : vector<2x64xf32>
    %510 = vector.multi_reduction <add>, %509, %cst_298 [1] : vector<2x16x64xf32> to vector<2x64xf32>
    %511 = vector.extract_strided_slice %431 {offsets = [1, 0, 0], sizes = [1, 2, 16], strides = [1, 1, 1]} : vector<3x2x16xf32> to vector<1x2x16xf32>
    %512 = vector.shape_cast %511 : vector<1x2x16xf32> to vector<2x16xf32>
    %c1_299 = arith.constant 1 : index
    %c0_300 = arith.constant 0 : index
    %c0_301 = arith.constant 0 : index
    %513 = vector.load %arg4[%c1_299, %c0_300, %c0_301] : memref<3x16x256xf32, #tpu.memory_space<vmem>>, vector<1x16x256xf32>
    %514 = vector.shape_cast %513 : vector<1x16x256xf32> to vector<16x256xf32>
    %cst_302 = arith.constant dense<0.000000e+00> : vector<2x256xf32>
    %515 = tpu.matmul %512, %514, %cst_302 {dimension_numbers = #tpu.dot_dimension_numbers<[1], [0], [0], [1], [0, 0, 1, 1], [], []>} : vector<2x16xf32>, vector<16x256xf32>, vector<2x256xf32> -> vector<2x256xf32>
    %c1_303 = arith.constant 1 : index
    %c0_304 = arith.constant 0 : index
    %c0_305 = arith.constant 0 : index
    %516 = vector.load %arg5[%c1_303, %c0_304, %c0_305] : memref<3x32x256xf32, #tpu.memory_space<vmem>>, vector<1x32x256xf32>
    %517 = vector.shape_cast %516 : vector<1x32x256xf32> to vector<32x256xf32>
    %cst_306 = arith.constant dense<0.000000e+00> : vector<2x256xf32>
    %518 = tpu.matmul %342, %517, %cst_306 {dimension_numbers = #tpu.dot_dimension_numbers<[1], [0], [0], [1], [0, 0, 1, 1], [], []>} : vector<2x32xf32>, vector<32x256xf32>, vector<2x256xf32> -> vector<2x256xf32>
    %519 = arith.addf %515, %518 : vector<2x256xf32>
    %c1_307 = arith.constant 1 : index
    %c0_308 = arith.constant 0 : index
    %c0_309 = arith.constant 0 : index
    %520 = vector.load %arg6[%c1_307, %c0_308, %c0_309] : memref<3x32x256xf32, #tpu.memory_space<vmem>>, vector<1x32x256xf32>
    %521 = vector.shape_cast %520 : vector<1x32x256xf32> to vector<32x256xf32>
    %cst_310 = arith.constant dense<0.000000e+00> : vector<2x256xf32>
    %522 = tpu.matmul %474, %521, %cst_310 {dimension_numbers = #tpu.dot_dimension_numbers<[1], [0], [0], [1], [0, 0, 1, 1], [], []>} : vector<2x32xf32>, vector<32x256xf32>, vector<2x256xf32> -> vector<2x256xf32>
    %523 = arith.addf %519, %522 : vector<2x256xf32>
    %c1_311 = arith.constant 1 : index
    %c0_312 = arith.constant 0 : index
    %c0_313 = arith.constant 0 : index
    %524 = vector.load %arg7[%c1_311, %c0_312, %c0_313] : memref<3x1x256xf32, #tpu.memory_space<vmem>>, vector<1x1x256xf32>
    %525 = vector.shape_cast %524 : vector<1x1x256xf32> to vector<1x256xf32>
    %526 = vector.broadcast %525 : vector<1x256xf32> to vector<2x256xf32>
    %527 = arith.addf %523, %526 : vector<2x256xf32>
    %528 = vector.extract_strided_slice %527 {offsets = [0, 0], sizes = [2, 96], strides = [1, 1]} : vector<2x256xf32> to vector<2x96xf32>
    %529 = arith.negf %528 : vector<2x96xf32>
    %530 = math.exp %529 : vector<2x96xf32>
    %cst_314 = arith.constant 1.000000e+00 : f32
    %531 = vector.broadcast %cst_314 : f32 to vector<2x96xf32>
    %532 = arith.addf %531, %530 : vector<2x96xf32>
    %533 = arith.divf %531, %532 : vector<2x96xf32>
    %534 = vector.extract_strided_slice %533 {offsets = [0, 0], sizes = [2, 32], strides = [1, 1]} : vector<2x96xf32> to vector<2x32xf32>
    %535 = vector.extract_strided_slice %533 {offsets = [0, 32], sizes = [2, 32], strides = [1, 1]} : vector<2x96xf32> to vector<2x32xf32>
    %536 = vector.extract_strided_slice %533 {offsets = [0, 64], sizes = [2, 32], strides = [1, 1]} : vector<2x96xf32> to vector<2x32xf32>
    %537 = vector.extract_strided_slice %527 {offsets = [0, 128], sizes = [2, 64], strides = [1, 1]} : vector<2x256xf32> to vector<2x64xf32>
    %c1_315 = arith.constant 1 : index
    %c0_316 = arith.constant 0 : index
    %c0_317 = arith.constant 0 : index
    %538 = vector.load %arg8[%c1_315, %c0_316, %c0_317] : memref<3x64x64xf32, #tpu.memory_space<vmem>>, vector<1x64x64xf32>
    %539 = vector.shape_cast %538 : vector<1x64x64xf32> to vector<64x64xf32>
    %cst_318 = arith.constant dense<0.000000e+00> : vector<2x64xf32>
    %540 = tpu.matmul %510, %539, %cst_318 {dimension_numbers = #tpu.dot_dimension_numbers<[1], [0], [0], [1], [0, 0, 1, 1], [], []>} : vector<2x64xf32>, vector<64x64xf32>, vector<2x64xf32> -> vector<2x64xf32>
    %541 = arith.addf %537, %540 : vector<2x64xf32>
    %c1_319 = arith.constant 1 : index
    %c0_320 = arith.constant 0 : index
    %c0_321 = arith.constant 0 : index
    %542 = vector.load %arg9[%c1_319, %c0_320, %c0_321] : memref<3x1x64xf32, #tpu.memory_space<vmem>>, vector<1x1x64xf32>
    %543 = vector.shape_cast %542 : vector<1x1x64xf32> to vector<1x64xf32>
    %544 = vector.broadcast %543 : vector<1x64xf32> to vector<2x64xf32>
    %545 = arith.addf %541, %544 : vector<2x64xf32>
    %546 = vector.extract_strided_slice %545 {offsets = [0, 0], sizes = [2, 32], strides = [1, 1]} : vector<2x64xf32> to vector<2x32xf32>
    %547 = vector.extract_strided_slice %545 {offsets = [0, 32], sizes = [2, 32], strides = [1, 1]} : vector<2x64xf32> to vector<2x32xf32>
    %548 = arith.maximumf %546, %547 : vector<2x32xf32>
    %549 = arith.mulf %535, %340 : vector<2x32xf32>
    %550 = arith.mulf %534, %548 : vector<2x32xf32>
    %551 = arith.addf %549, %550 : vector<2x32xf32>
    %552 = math.tanh %551 : vector<2x32xf32>
    %553 = arith.mulf %536, %552 : vector<2x32xf32>
    %c0_322 = arith.constant 0 : index
    %c0_323 = arith.constant 0 : index
    %554 = vector.load %arg14[%c0_322, %c0_323] : memref<64x32xf32, #tpu.memory_space<vmem>>, vector<64x32xf32>
    %cst_324 = arith.constant dense<0.000000e+00> : vector<2x32xf32>
    %555 = tpu.matmul %510, %554, %cst_324 {dimension_numbers = #tpu.dot_dimension_numbers<[1], [0], [0], [1], [0, 0, 1, 1], [], []>} : vector<2x64xf32>, vector<64x32xf32>, vector<2x32xf32> -> vector<2x32xf32>
    %556 = arith.addf %553, %555 : vector<2x32xf32>
    %c0_325 = arith.constant 0 : index
    %c0_326 = arith.constant 0 : index
    %557 = vector.load %arg15[%c0_325, %c0_326] : memref<1x32xf32, #tpu.memory_space<vmem>>, vector<1x32xf32>
    %558 = vector.broadcast %557 : vector<1x32xf32> to vector<2x32xf32>
    %559 = arith.addf %556, %558 : vector<2x32xf32>
    %c1_327 = arith.constant 1 : index
    %c0_328 = arith.constant 0 : index
    %c0_329 = arith.constant 0 : index
    %c0_330 = arith.constant 0 : index
    %560 = vector.load %arg3[%c1_327, %c0_328, %c0_329, %c0_330] : memref<2x2x16x32xf32, #tpu.memory_space<vmem>>, vector<1x2x16x32xf32>
    %561 = vector.shape_cast %560 : vector<1x2x16x32xf32> to vector<2x16x32xf32>
    %c1_331 = arith.constant 1 : index
    %c0_332 = arith.constant 0 : index
    %c0_333 = arith.constant 0 : index
    %562 = vector.load %arg10[%c1_331, %c0_332, %c0_333] : memref<2x32x32xf32, #tpu.memory_space<vmem>>, vector<1x32x32xf32>
    %563 = vector.shape_cast %562 : vector<1x32x32xf32> to vector<32x32xf32>
    %cst_334 = arith.constant dense<0.000000e+00> : vector<2x32xf32>
    %564 = tpu.matmul %559, %563, %cst_334 {dimension_numbers = #tpu.dot_dimension_numbers<[1], [0], [0], [1], [0, 0, 1, 1], [], []>} : vector<2x32xf32>, vector<32x32xf32>, vector<2x32xf32> -> vector<2x32xf32>
    %c1_335 = arith.constant 1 : index
    %c0_336 = arith.constant 0 : index
    %c0_337 = arith.constant 0 : index
    %565 = vector.load %arg11[%c1_335, %c0_336, %c0_337] : memref<2x1x32xf32, #tpu.memory_space<vmem>>, vector<1x1x32xf32>
    %566 = vector.shape_cast %565 : vector<1x1x32xf32> to vector<1x32xf32>
    %567 = vector.broadcast %566 : vector<1x32xf32> to vector<2x32xf32>
    %568 = arith.addf %564, %567 : vector<2x32xf32>
    %569 = vector.shape_cast %568 : vector<2x32xf32> to vector<2x1x32xf32>
    %570 = vector.broadcast %569 : vector<2x1x32xf32> to vector<2x16x32xf32>
    %571 = arith.addf %561, %570 : vector<2x16x32xf32>
    %572 = math.tanh %571 : vector<2x16x32xf32>
    %c1_338 = arith.constant 1 : index
    %c0_339 = arith.constant 0 : index
    %c0_340 = arith.constant 0 : index
    %573 = vector.load %arg12[%c1_338, %c0_339, %c0_340] : memref<2x1x32xf32, #tpu.memory_space<vmem>>, vector<1x1x32xf32>
    %574 = vector.shape_cast %573 : vector<1x1x32xf32> to vector<1x32xf32>
    %575 = vector.shape_cast %574 : vector<1x32xf32> to vector<1x1x32xf32>
    %576 = vector.broadcast %575 : vector<1x1x32xf32> to vector<2x16x32xf32>
    %577 = arith.mulf %572, %576 : vector<2x16x32xf32>
    %cst_341 = arith.constant dense<0.000000e+00> : vector<2x16xf32>
    %578 = vector.multi_reduction <add>, %577, %cst_341 [2] : vector<2x16x32xf32> to vector<2x16xf32>
    %c1_342 = arith.constant 1 : index
    %c0_343 = arith.constant 0 : index
    %c0_344 = arith.constant 0 : index
    %579 = vector.load %arg13[%c1_342, %c0_343, %c0_344] : memref<2x1x1xf32, #tpu.memory_space<vmem>>, vector<1x1x1xf32>
    %580 = vector.shape_cast %579 : vector<1x1x1xf32> to vector<1x1xf32>
    %581 = vector.broadcast %580 : vector<1x1xf32> to vector<2x16xf32>
    %582 = arith.addf %578, %581 : vector<2x16xf32>
    %cst_345 = arith.constant dense<0xFF800000> : vector<2xf32>
    %583 = vector.multi_reduction <maximumf>, %582, %cst_345 [1] : vector<2x16xf32> to vector<2xf32>
    %584 = vector.shape_cast %583 : vector<2xf32> to vector<2x1xf32>
    %585 = vector.broadcast %584 : vector<2x1xf32> to vector<2x16xf32>
    %586 = arith.subf %582, %585 : vector<2x16xf32>
    %587 = math.exp %586 : vector<2x16xf32>
    %cst_346 = arith.constant dense<0.000000e+00> : vector<2xf32>
    %588 = vector.multi_reduction <add>, %587, %cst_346 [1] : vector<2x16xf32> to vector<2xf32>
    %589 = vector.shape_cast %588 : vector<2xf32> to vector<2x1xf32>
    %590 = vector.broadcast %589 : vector<2x1xf32> to vector<2x16xf32>
    %591 = arith.divf %587, %590 : vector<2x16xf32>
    %592 = vector.shape_cast %591 : vector<2x16xf32> to vector<2x16x1xf32>
    %593 = vector.broadcast %592 : vector<2x16x1xf32> to vector<2x16x64xf32>
    %594 = arith.mulf %593, %0 : vector<2x16x64xf32>
    %cst_347 = arith.constant dense<0.000000e+00> : vector<2x64xf32>
    %595 = vector.multi_reduction <add>, %594, %cst_347 [1] : vector<2x16x64xf32> to vector<2x64xf32>
    %596 = vector.extract_strided_slice %431 {offsets = [2, 0, 0], sizes = [1, 2, 16], strides = [1, 1, 1]} : vector<3x2x16xf32> to vector<1x2x16xf32>
    %597 = vector.shape_cast %596 : vector<1x2x16xf32> to vector<2x16xf32>
    %c2_348 = arith.constant 2 : index
    %c0_349 = arith.constant 0 : index
    %c0_350 = arith.constant 0 : index
    %598 = vector.load %arg4[%c2_348, %c0_349, %c0_350] : memref<3x16x256xf32, #tpu.memory_space<vmem>>, vector<1x16x256xf32>
    %599 = vector.shape_cast %598 : vector<1x16x256xf32> to vector<16x256xf32>
    %cst_351 = arith.constant dense<0.000000e+00> : vector<2x256xf32>
    %600 = tpu.matmul %597, %599, %cst_351 {dimension_numbers = #tpu.dot_dimension_numbers<[1], [0], [0], [1], [0, 0, 1, 1], [], []>} : vector<2x16xf32>, vector<16x256xf32>, vector<2x256xf32> -> vector<2x256xf32>
    %c2_352 = arith.constant 2 : index
    %c0_353 = arith.constant 0 : index
    %c0_354 = arith.constant 0 : index
    %601 = vector.load %arg5[%c2_352, %c0_353, %c0_354] : memref<3x32x256xf32, #tpu.memory_space<vmem>>, vector<1x32x256xf32>
    %602 = vector.shape_cast %601 : vector<1x32x256xf32> to vector<32x256xf32>
    %cst_355 = arith.constant dense<0.000000e+00> : vector<2x256xf32>
    %603 = tpu.matmul %427, %602, %cst_355 {dimension_numbers = #tpu.dot_dimension_numbers<[1], [0], [0], [1], [0, 0, 1, 1], [], []>} : vector<2x32xf32>, vector<32x256xf32>, vector<2x256xf32> -> vector<2x256xf32>
    %604 = arith.addf %600, %603 : vector<2x256xf32>
    %c2_356 = arith.constant 2 : index
    %c0_357 = arith.constant 0 : index
    %c0_358 = arith.constant 0 : index
    %605 = vector.load %arg6[%c2_356, %c0_357, %c0_358] : memref<3x32x256xf32, #tpu.memory_space<vmem>>, vector<1x32x256xf32>
    %606 = vector.shape_cast %605 : vector<1x32x256xf32> to vector<32x256xf32>
    %cst_359 = arith.constant dense<0.000000e+00> : vector<2x256xf32>
    %607 = tpu.matmul %553, %606, %cst_359 {dimension_numbers = #tpu.dot_dimension_numbers<[1], [0], [0], [1], [0, 0, 1, 1], [], []>} : vector<2x32xf32>, vector<32x256xf32>, vector<2x256xf32> -> vector<2x256xf32>
    %608 = arith.addf %604, %607 : vector<2x256xf32>
    %c2_360 = arith.constant 2 : index
    %c0_361 = arith.constant 0 : index
    %c0_362 = arith.constant 0 : index
    %609 = vector.load %arg7[%c2_360, %c0_361, %c0_362] : memref<3x1x256xf32, #tpu.memory_space<vmem>>, vector<1x1x256xf32>
    %610 = vector.shape_cast %609 : vector<1x1x256xf32> to vector<1x256xf32>
    %611 = vector.broadcast %610 : vector<1x256xf32> to vector<2x256xf32>
    %612 = arith.addf %608, %611 : vector<2x256xf32>
    %613 = vector.extract_strided_slice %612 {offsets = [0, 0], sizes = [2, 96], strides = [1, 1]} : vector<2x256xf32> to vector<2x96xf32>
    %614 = arith.negf %613 : vector<2x96xf32>
    %615 = math.exp %614 : vector<2x96xf32>
    %cst_363 = arith.constant 1.000000e+00 : f32
    %616 = vector.broadcast %cst_363 : f32 to vector<2x96xf32>
    %617 = arith.addf %616, %615 : vector<2x96xf32>
    %618 = arith.divf %616, %617 : vector<2x96xf32>
    %619 = vector.extract_strided_slice %618 {offsets = [0, 0], sizes = [2, 32], strides = [1, 1]} : vector<2x96xf32> to vector<2x32xf32>
    %620 = vector.extract_strided_slice %618 {offsets = [0, 32], sizes = [2, 32], strides = [1, 1]} : vector<2x96xf32> to vector<2x32xf32>
    %621 = vector.extract_strided_slice %618 {offsets = [0, 64], sizes = [2, 32], strides = [1, 1]} : vector<2x96xf32> to vector<2x32xf32>
    %622 = vector.extract_strided_slice %612 {offsets = [0, 128], sizes = [2, 64], strides = [1, 1]} : vector<2x256xf32> to vector<2x64xf32>
    %c2_364 = arith.constant 2 : index
    %c0_365 = arith.constant 0 : index
    %c0_366 = arith.constant 0 : index
    %623 = vector.load %arg8[%c2_364, %c0_365, %c0_366] : memref<3x64x64xf32, #tpu.memory_space<vmem>>, vector<1x64x64xf32>
    %624 = vector.shape_cast %623 : vector<1x64x64xf32> to vector<64x64xf32>
    %cst_367 = arith.constant dense<0.000000e+00> : vector<2x64xf32>
    %625 = tpu.matmul %595, %624, %cst_367 {dimension_numbers = #tpu.dot_dimension_numbers<[1], [0], [0], [1], [0, 0, 1, 1], [], []>} : vector<2x64xf32>, vector<64x64xf32>, vector<2x64xf32> -> vector<2x64xf32>
    %626 = arith.addf %622, %625 : vector<2x64xf32>
    %c2_368 = arith.constant 2 : index
    %c0_369 = arith.constant 0 : index
    %c0_370 = arith.constant 0 : index
    %627 = vector.load %arg9[%c2_368, %c0_369, %c0_370] : memref<3x1x64xf32, #tpu.memory_space<vmem>>, vector<1x1x64xf32>
    %628 = vector.shape_cast %627 : vector<1x1x64xf32> to vector<1x64xf32>
    %629 = vector.broadcast %628 : vector<1x64xf32> to vector<2x64xf32>
    %630 = arith.addf %626, %629 : vector<2x64xf32>
    %631 = vector.extract_strided_slice %630 {offsets = [0, 0], sizes = [2, 32], strides = [1, 1]} : vector<2x64xf32> to vector<2x32xf32>
    %632 = vector.extract_strided_slice %630 {offsets = [0, 32], sizes = [2, 32], strides = [1, 1]} : vector<2x64xf32> to vector<2x32xf32>
    %633 = arith.maximumf %631, %632 : vector<2x32xf32>
    %634 = arith.mulf %620, %425 : vector<2x32xf32>
    %635 = arith.mulf %619, %633 : vector<2x32xf32>
    %636 = arith.addf %634, %635 : vector<2x32xf32>
    %637 = math.tanh %636 : vector<2x32xf32>
    %638 = arith.mulf %621, %637 : vector<2x32xf32>
    %639 = tpu.concatenate %474, %553, %638 in 1 : vector<2x32xf32>, vector<2x32xf32>, vector<2x32xf32> -> vector<2x96xf32>
    %c4 = arith.constant 4 : index
    %c0_371 = arith.constant 0 : index
    %640 = vector.load %arg19[%c4, %c0_371] : memref<8x96xf32, #tpu.memory_space<vmem>>, vector<2x96xf32>
    tpu.vector_store %arg19[%c4, %c0_371], %639 {strides = array<i32>} : memref<8x96xf32, #tpu.memory_space<vmem>>, vector<2x96xf32>,
    %c3 = arith.constant 3 : index
    %c0_372 = arith.constant 0 : index
    %c0_373 = arith.constant 0 : index
    %c0_374 = arith.constant 0 : index
    %641 = vector.load %arg0[%c3, %c0_372, %c0_373, %c0_374] : memref<4x3x2x16xf32, #tpu.memory_space<vmem>>, vector<1x3x2x16xf32>
    %642 = vector.shape_cast %641 : vector<1x3x2x16xf32> to vector<3x2x16xf32>
    %643 = vector.extract_strided_slice %642 {offsets = [0, 0, 0], sizes = [1, 2, 16], strides = [1, 1, 1]} : vector<3x2x16xf32> to vector<1x2x16xf32>
    %644 = vector.shape_cast %643 : vector<1x2x16xf32> to vector<2x16xf32>
    %c0_375 = arith.constant 0 : index
    %c0_376 = arith.constant 0 : index
    %c0_377 = arith.constant 0 : index
    %645 = vector.load %arg4[%c0_375, %c0_376, %c0_377] : memref<3x16x256xf32, #tpu.memory_space<vmem>>, vector<1x16x256xf32>
    %646 = vector.shape_cast %645 : vector<1x16x256xf32> to vector<16x256xf32>
    %cst_378 = arith.constant dense<0.000000e+00> : vector<2x256xf32>
    %647 = tpu.matmul %644, %646, %cst_378 {dimension_numbers = #tpu.dot_dimension_numbers<[1], [0], [0], [1], [0, 0, 1, 1], [], []>} : vector<2x16xf32>, vector<16x256xf32>, vector<2x256xf32> -> vector<2x256xf32>
    %c0_379 = arith.constant 0 : index
    %c0_380 = arith.constant 0 : index
    %c0_381 = arith.constant 0 : index
    %648 = vector.load %arg5[%c0_379, %c0_380, %c0_381] : memref<3x32x256xf32, #tpu.memory_space<vmem>>, vector<1x32x256xf32>
    %649 = vector.shape_cast %648 : vector<1x32x256xf32> to vector<32x256xf32>
    %cst_382 = arith.constant dense<0.000000e+00> : vector<2x256xf32>
    %650 = tpu.matmul %474, %649, %cst_382 {dimension_numbers = #tpu.dot_dimension_numbers<[1], [0], [0], [1], [0, 0, 1, 1], [], []>} : vector<2x32xf32>, vector<32x256xf32>, vector<2x256xf32> -> vector<2x256xf32>
    %651 = arith.addf %647, %650 : vector<2x256xf32>
    %c0_383 = arith.constant 0 : index
    %c0_384 = arith.constant 0 : index
    %c0_385 = arith.constant 0 : index
    %652 = vector.load %arg6[%c0_383, %c0_384, %c0_385] : memref<3x32x256xf32, #tpu.memory_space<vmem>>, vector<1x32x256xf32>
    %653 = vector.shape_cast %652 : vector<1x32x256xf32> to vector<32x256xf32>
    %cst_386 = arith.constant dense<0.000000e+00> : vector<2x256xf32>
    %654 = tpu.matmul %638, %653, %cst_386 {dimension_numbers = #tpu.dot_dimension_numbers<[1], [0], [0], [1], [0, 0, 1, 1], [], []>} : vector<2x32xf32>, vector<32x256xf32>, vector<2x256xf32> -> vector<2x256xf32>
    %655 = arith.addf %651, %654 : vector<2x256xf32>
    %c0_387 = arith.constant 0 : index
    %c0_388 = arith.constant 0 : index
    %c0_389 = arith.constant 0 : index
    %656 = vector.load %arg7[%c0_387, %c0_388, %c0_389] : memref<3x1x256xf32, #tpu.memory_space<vmem>>, vector<1x1x256xf32>
    %657 = vector.shape_cast %656 : vector<1x1x256xf32> to vector<1x256xf32>
    %658 = vector.broadcast %657 : vector<1x256xf32> to vector<2x256xf32>
    %659 = arith.addf %655, %658 : vector<2x256xf32>
    %660 = vector.extract_strided_slice %659 {offsets = [0, 0], sizes = [2, 96], strides = [1, 1]} : vector<2x256xf32> to vector<2x96xf32>
    %661 = arith.negf %660 : vector<2x96xf32>
    %662 = math.exp %661 : vector<2x96xf32>
    %cst_390 = arith.constant 1.000000e+00 : f32
    %663 = vector.broadcast %cst_390 : f32 to vector<2x96xf32>
    %664 = arith.addf %663, %662 : vector<2x96xf32>
    %665 = arith.divf %663, %664 : vector<2x96xf32>
    %666 = vector.extract_strided_slice %665 {offsets = [0, 0], sizes = [2, 32], strides = [1, 1]} : vector<2x96xf32> to vector<2x32xf32>
    %667 = vector.extract_strided_slice %665 {offsets = [0, 32], sizes = [2, 32], strides = [1, 1]} : vector<2x96xf32> to vector<2x32xf32>
    %668 = vector.extract_strided_slice %665 {offsets = [0, 64], sizes = [2, 32], strides = [1, 1]} : vector<2x96xf32> to vector<2x32xf32>
    %669 = vector.extract_strided_slice %659 {offsets = [0, 128], sizes = [2, 64], strides = [1, 1]} : vector<2x256xf32> to vector<2x64xf32>
    %c0_391 = arith.constant 0 : index
    %c0_392 = arith.constant 0 : index
    %c0_393 = arith.constant 0 : index
    %670 = vector.load %arg8[%c0_391, %c0_392, %c0_393] : memref<3x64x64xf32, #tpu.memory_space<vmem>>, vector<1x64x64xf32>
    %671 = vector.shape_cast %670 : vector<1x64x64xf32> to vector<64x64xf32>
    %cst_394 = arith.constant dense<0.000000e+00> : vector<2x64xf32>
    %672 = tpu.matmul %1, %671, %cst_394 {dimension_numbers = #tpu.dot_dimension_numbers<[1], [0], [0], [1], [0, 0, 1, 1], [], []>} : vector<2x64xf32>, vector<64x64xf32>, vector<2x64xf32> -> vector<2x64xf32>
    %673 = arith.addf %669, %672 : vector<2x64xf32>
    %c0_395 = arith.constant 0 : index
    %c0_396 = arith.constant 0 : index
    %c0_397 = arith.constant 0 : index
    %674 = vector.load %arg9[%c0_395, %c0_396, %c0_397] : memref<3x1x64xf32, #tpu.memory_space<vmem>>, vector<1x1x64xf32>
    %675 = vector.shape_cast %674 : vector<1x1x64xf32> to vector<1x64xf32>
    %676 = vector.broadcast %675 : vector<1x64xf32> to vector<2x64xf32>
    %677 = arith.addf %673, %676 : vector<2x64xf32>
    %678 = vector.extract_strided_slice %677 {offsets = [0, 0], sizes = [2, 32], strides = [1, 1]} : vector<2x64xf32> to vector<2x32xf32>
    %679 = vector.extract_strided_slice %677 {offsets = [0, 32], sizes = [2, 32], strides = [1, 1]} : vector<2x64xf32> to vector<2x32xf32>
    %680 = arith.maximumf %678, %679 : vector<2x32xf32>
    %681 = arith.mulf %667, %472 : vector<2x32xf32>
    %682 = arith.mulf %666, %680 : vector<2x32xf32>
    %683 = arith.addf %681, %682 : vector<2x32xf32>
    %684 = math.tanh %683 : vector<2x32xf32>
    %685 = arith.mulf %668, %684 : vector<2x32xf32>
    %c0_398 = arith.constant 0 : index
    %c0_399 = arith.constant 0 : index
    %c0_400 = arith.constant 0 : index
    %c0_401 = arith.constant 0 : index
    %686 = vector.load %arg3[%c0_398, %c0_399, %c0_400, %c0_401] : memref<2x2x16x32xf32, #tpu.memory_space<vmem>>, vector<1x2x16x32xf32>
    %687 = vector.shape_cast %686 : vector<1x2x16x32xf32> to vector<2x16x32xf32>
    %c0_402 = arith.constant 0 : index
    %c0_403 = arith.constant 0 : index
    %c0_404 = arith.constant 0 : index
    %688 = vector.load %arg10[%c0_402, %c0_403, %c0_404] : memref<2x32x32xf32, #tpu.memory_space<vmem>>, vector<1x32x32xf32>
    %689 = vector.shape_cast %688 : vector<1x32x32xf32> to vector<32x32xf32>
    %cst_405 = arith.constant dense<0.000000e+00> : vector<2x32xf32>
    %690 = tpu.matmul %685, %689, %cst_405 {dimension_numbers = #tpu.dot_dimension_numbers<[1], [0], [0], [1], [0, 0, 1, 1], [], []>} : vector<2x32xf32>, vector<32x32xf32>, vector<2x32xf32> -> vector<2x32xf32>
    %c0_406 = arith.constant 0 : index
    %c0_407 = arith.constant 0 : index
    %c0_408 = arith.constant 0 : index
    %691 = vector.load %arg11[%c0_406, %c0_407, %c0_408] : memref<2x1x32xf32, #tpu.memory_space<vmem>>, vector<1x1x32xf32>
    %692 = vector.shape_cast %691 : vector<1x1x32xf32> to vector<1x32xf32>
    %693 = vector.broadcast %692 : vector<1x32xf32> to vector<2x32xf32>
    %694 = arith.addf %690, %693 : vector<2x32xf32>
    %695 = vector.shape_cast %694 : vector<2x32xf32> to vector<2x1x32xf32>
    %696 = vector.broadcast %695 : vector<2x1x32xf32> to vector<2x16x32xf32>
    %697 = arith.addf %687, %696 : vector<2x16x32xf32>
    %698 = math.tanh %697 : vector<2x16x32xf32>
    %c0_409 = arith.constant 0 : index
    %c0_410 = arith.constant 0 : index
    %c0_411 = arith.constant 0 : index
    %699 = vector.load %arg12[%c0_409, %c0_410, %c0_411] : memref<2x1x32xf32, #tpu.memory_space<vmem>>, vector<1x1x32xf32>
    %700 = vector.shape_cast %699 : vector<1x1x32xf32> to vector<1x32xf32>
    %701 = vector.shape_cast %700 : vector<1x32xf32> to vector<1x1x32xf32>
    %702 = vector.broadcast %701 : vector<1x1x32xf32> to vector<2x16x32xf32>
    %703 = arith.mulf %698, %702 : vector<2x16x32xf32>
    %cst_412 = arith.constant dense<0.000000e+00> : vector<2x16xf32>
    %704 = vector.multi_reduction <add>, %703, %cst_412 [2] : vector<2x16x32xf32> to vector<2x16xf32>
    %c0_413 = arith.constant 0 : index
    %c0_414 = arith.constant 0 : index
    %c0_415 = arith.constant 0 : index
    %705 = vector.load %arg13[%c0_413, %c0_414, %c0_415] : memref<2x1x1xf32, #tpu.memory_space<vmem>>, vector<1x1x1xf32>
    %706 = vector.shape_cast %705 : vector<1x1x1xf32> to vector<1x1xf32>
    %707 = vector.broadcast %706 : vector<1x1xf32> to vector<2x16xf32>
    %708 = arith.addf %704, %707 : vector<2x16xf32>
    %cst_416 = arith.constant dense<0xFF800000> : vector<2xf32>
    %709 = vector.multi_reduction <maximumf>, %708, %cst_416 [1] : vector<2x16xf32> to vector<2xf32>
    %710 = vector.shape_cast %709 : vector<2xf32> to vector<2x1xf32>
    %711 = vector.broadcast %710 : vector<2x1xf32> to vector<2x16xf32>
    %712 = arith.subf %708, %711 : vector<2x16xf32>
    %713 = math.exp %712 : vector<2x16xf32>
    %cst_417 = arith.constant dense<0.000000e+00> : vector<2xf32>
    %714 = vector.multi_reduction <add>, %713, %cst_417 [1] : vector<2x16xf32> to vector<2xf32>
    %715 = vector.shape_cast %714 : vector<2xf32> to vector<2x1xf32>
    %716 = vector.broadcast %715 : vector<2x1xf32> to vector<2x16xf32>
    %717 = arith.divf %713, %716 : vector<2x16xf32>
    %718 = vector.shape_cast %717 : vector<2x16xf32> to vector<2x16x1xf32>
    %719 = vector.broadcast %718 : vector<2x16x1xf32> to vector<2x16x64xf32>
    %720 = arith.mulf %719, %0 : vector<2x16x64xf32>
    %cst_418 = arith.constant dense<0.000000e+00> : vector<2x64xf32>
    %721 = vector.multi_reduction <add>, %720, %cst_418 [1] : vector<2x16x64xf32> to vector<2x64xf32>
    %722 = vector.extract_strided_slice %642 {offsets = [1, 0, 0], sizes = [1, 2, 16], strides = [1, 1, 1]} : vector<3x2x16xf32> to vector<1x2x16xf32>
    %723 = vector.shape_cast %722 : vector<1x2x16xf32> to vector<2x16xf32>
    %c1_419 = arith.constant 1 : index
    %c0_420 = arith.constant 0 : index
    %c0_421 = arith.constant 0 : index
    %724 = vector.load %arg4[%c1_419, %c0_420, %c0_421] : memref<3x16x256xf32, #tpu.memory_space<vmem>>, vector<1x16x256xf32>
    %725 = vector.shape_cast %724 : vector<1x16x256xf32> to vector<16x256xf32>
    %cst_422 = arith.constant dense<0.000000e+00> : vector<2x256xf32>
    %726 = tpu.matmul %723, %725, %cst_422 {dimension_numbers = #tpu.dot_dimension_numbers<[1], [0], [0], [1], [0, 0, 1, 1], [], []>} : vector<2x16xf32>, vector<16x256xf32>, vector<2x256xf32> -> vector<2x256xf32>
    %c1_423 = arith.constant 1 : index
    %c0_424 = arith.constant 0 : index
    %c0_425 = arith.constant 0 : index
    %727 = vector.load %arg5[%c1_423, %c0_424, %c0_425] : memref<3x32x256xf32, #tpu.memory_space<vmem>>, vector<1x32x256xf32>
    %728 = vector.shape_cast %727 : vector<1x32x256xf32> to vector<32x256xf32>
    %cst_426 = arith.constant dense<0.000000e+00> : vector<2x256xf32>
    %729 = tpu.matmul %553, %728, %cst_426 {dimension_numbers = #tpu.dot_dimension_numbers<[1], [0], [0], [1], [0, 0, 1, 1], [], []>} : vector<2x32xf32>, vector<32x256xf32>, vector<2x256xf32> -> vector<2x256xf32>
    %730 = arith.addf %726, %729 : vector<2x256xf32>
    %c1_427 = arith.constant 1 : index
    %c0_428 = arith.constant 0 : index
    %c0_429 = arith.constant 0 : index
    %731 = vector.load %arg6[%c1_427, %c0_428, %c0_429] : memref<3x32x256xf32, #tpu.memory_space<vmem>>, vector<1x32x256xf32>
    %732 = vector.shape_cast %731 : vector<1x32x256xf32> to vector<32x256xf32>
    %cst_430 = arith.constant dense<0.000000e+00> : vector<2x256xf32>
    %733 = tpu.matmul %685, %732, %cst_430 {dimension_numbers = #tpu.dot_dimension_numbers<[1], [0], [0], [1], [0, 0, 1, 1], [], []>} : vector<2x32xf32>, vector<32x256xf32>, vector<2x256xf32> -> vector<2x256xf32>
    %734 = arith.addf %730, %733 : vector<2x256xf32>
    %c1_431 = arith.constant 1 : index
    %c0_432 = arith.constant 0 : index
    %c0_433 = arith.constant 0 : index
    %735 = vector.load %arg7[%c1_431, %c0_432, %c0_433] : memref<3x1x256xf32, #tpu.memory_space<vmem>>, vector<1x1x256xf32>
    %736 = vector.shape_cast %735 : vector<1x1x256xf32> to vector<1x256xf32>
    %737 = vector.broadcast %736 : vector<1x256xf32> to vector<2x256xf32>
    %738 = arith.addf %734, %737 : vector<2x256xf32>
    %739 = vector.extract_strided_slice %738 {offsets = [0, 0], sizes = [2, 96], strides = [1, 1]} : vector<2x256xf32> to vector<2x96xf32>
    %740 = arith.negf %739 : vector<2x96xf32>
    %741 = math.exp %740 : vector<2x96xf32>
    %cst_434 = arith.constant 1.000000e+00 : f32
    %742 = vector.broadcast %cst_434 : f32 to vector<2x96xf32>
    %743 = arith.addf %742, %741 : vector<2x96xf32>
    %744 = arith.divf %742, %743 : vector<2x96xf32>
    %745 = vector.extract_strided_slice %744 {offsets = [0, 0], sizes = [2, 32], strides = [1, 1]} : vector<2x96xf32> to vector<2x32xf32>
    %746 = vector.extract_strided_slice %744 {offsets = [0, 32], sizes = [2, 32], strides = [1, 1]} : vector<2x96xf32> to vector<2x32xf32>
    %747 = vector.extract_strided_slice %744 {offsets = [0, 64], sizes = [2, 32], strides = [1, 1]} : vector<2x96xf32> to vector<2x32xf32>
    %748 = vector.extract_strided_slice %738 {offsets = [0, 128], sizes = [2, 64], strides = [1, 1]} : vector<2x256xf32> to vector<2x64xf32>
    %c1_435 = arith.constant 1 : index
    %c0_436 = arith.constant 0 : index
    %c0_437 = arith.constant 0 : index
    %749 = vector.load %arg8[%c1_435, %c0_436, %c0_437] : memref<3x64x64xf32, #tpu.memory_space<vmem>>, vector<1x64x64xf32>
    %750 = vector.shape_cast %749 : vector<1x64x64xf32> to vector<64x64xf32>
    %cst_438 = arith.constant dense<0.000000e+00> : vector<2x64xf32>
    %751 = tpu.matmul %721, %750, %cst_438 {dimension_numbers = #tpu.dot_dimension_numbers<[1], [0], [0], [1], [0, 0, 1, 1], [], []>} : vector<2x64xf32>, vector<64x64xf32>, vector<2x64xf32> -> vector<2x64xf32>
    %752 = arith.addf %748, %751 : vector<2x64xf32>
    %c1_439 = arith.constant 1 : index
    %c0_440 = arith.constant 0 : index
    %c0_441 = arith.constant 0 : index
    %753 = vector.load %arg9[%c1_439, %c0_440, %c0_441] : memref<3x1x64xf32, #tpu.memory_space<vmem>>, vector<1x1x64xf32>
    %754 = vector.shape_cast %753 : vector<1x1x64xf32> to vector<1x64xf32>
    %755 = vector.broadcast %754 : vector<1x64xf32> to vector<2x64xf32>
    %756 = arith.addf %752, %755 : vector<2x64xf32>
    %757 = vector.extract_strided_slice %756 {offsets = [0, 0], sizes = [2, 32], strides = [1, 1]} : vector<2x64xf32> to vector<2x32xf32>
    %758 = vector.extract_strided_slice %756 {offsets = [0, 32], sizes = [2, 32], strides = [1, 1]} : vector<2x64xf32> to vector<2x32xf32>
    %759 = arith.maximumf %757, %758 : vector<2x32xf32>
    %760 = arith.mulf %746, %551 : vector<2x32xf32>
    %761 = arith.mulf %745, %759 : vector<2x32xf32>
    %762 = arith.addf %760, %761 : vector<2x32xf32>
    %763 = math.tanh %762 : vector<2x32xf32>
    %764 = arith.mulf %747, %763 : vector<2x32xf32>
    %c0_442 = arith.constant 0 : index
    %c0_443 = arith.constant 0 : index
    %765 = vector.load %arg14[%c0_442, %c0_443] : memref<64x32xf32, #tpu.memory_space<vmem>>, vector<64x32xf32>
    %cst_444 = arith.constant dense<0.000000e+00> : vector<2x32xf32>
    %766 = tpu.matmul %721, %765, %cst_444 {dimension_numbers = #tpu.dot_dimension_numbers<[1], [0], [0], [1], [0, 0, 1, 1], [], []>} : vector<2x64xf32>, vector<64x32xf32>, vector<2x32xf32> -> vector<2x32xf32>
    %767 = arith.addf %764, %766 : vector<2x32xf32>
    %c0_445 = arith.constant 0 : index
    %c0_446 = arith.constant 0 : index
    %768 = vector.load %arg15[%c0_445, %c0_446] : memref<1x32xf32, #tpu.memory_space<vmem>>, vector<1x32xf32>
    %769 = vector.broadcast %768 : vector<1x32xf32> to vector<2x32xf32>
    %770 = arith.addf %767, %769 : vector<2x32xf32>
    %c1_447 = arith.constant 1 : index
    %c0_448 = arith.constant 0 : index
    %c0_449 = arith.constant 0 : index
    %c0_450 = arith.constant 0 : index
    %771 = vector.load %arg3[%c1_447, %c0_448, %c0_449, %c0_450] : memref<2x2x16x32xf32, #tpu.memory_space<vmem>>, vector<1x2x16x32xf32>
    %772 = vector.shape_cast %771 : vector<1x2x16x32xf32> to vector<2x16x32xf32>
    %c1_451 = arith.constant 1 : index
    %c0_452 = arith.constant 0 : index
    %c0_453 = arith.constant 0 : index
    %773 = vector.load %arg10[%c1_451, %c0_452, %c0_453] : memref<2x32x32xf32, #tpu.memory_space<vmem>>, vector<1x32x32xf32>
    %774 = vector.shape_cast %773 : vector<1x32x32xf32> to vector<32x32xf32>
    %cst_454 = arith.constant dense<0.000000e+00> : vector<2x32xf32>
    %775 = tpu.matmul %770, %774, %cst_454 {dimension_numbers = #tpu.dot_dimension_numbers<[1], [0], [0], [1], [0, 0, 1, 1], [], []>} : vector<2x32xf32>, vector<32x32xf32>, vector<2x32xf32> -> vector<2x32xf32>
    %c1_455 = arith.constant 1 : index
    %c0_456 = arith.constant 0 : index
    %c0_457 = arith.constant 0 : index
    %776 = vector.load %arg11[%c1_455, %c0_456, %c0_457] : memref<2x1x32xf32, #tpu.memory_space<vmem>>, vector<1x1x32xf32>
    %777 = vector.shape_cast %776 : vector<1x1x32xf32> to vector<1x32xf32>
    %778 = vector.broadcast %777 : vector<1x32xf32> to vector<2x32xf32>
    %779 = arith.addf %775, %778 : vector<2x32xf32>
    %780 = vector.shape_cast %779 : vector<2x32xf32> to vector<2x1x32xf32>
    %781 = vector.broadcast %780 : vector<2x1x32xf32> to vector<2x16x32xf32>
    %782 = arith.addf %772, %781 : vector<2x16x32xf32>
    %783 = math.tanh %782 : vector<2x16x32xf32>
    %c1_458 = arith.constant 1 : index
    %c0_459 = arith.constant 0 : index
    %c0_460 = arith.constant 0 : index
    %784 = vector.load %arg12[%c1_458, %c0_459, %c0_460] : memref<2x1x32xf32, #tpu.memory_space<vmem>>, vector<1x1x32xf32>
    %785 = vector.shape_cast %784 : vector<1x1x32xf32> to vector<1x32xf32>
    %786 = vector.shape_cast %785 : vector<1x32xf32> to vector<1x1x32xf32>
    %787 = vector.broadcast %786 : vector<1x1x32xf32> to vector<2x16x32xf32>
    %788 = arith.mulf %783, %787 : vector<2x16x32xf32>
    %cst_461 = arith.constant dense<0.000000e+00> : vector<2x16xf32>
    %789 = vector.multi_reduction <add>, %788, %cst_461 [2] : vector<2x16x32xf32> to vector<2x16xf32>
    %c1_462 = arith.constant 1 : index
    %c0_463 = arith.constant 0 : index
    %c0_464 = arith.constant 0 : index
    %790 = vector.load %arg13[%c1_462, %c0_463, %c0_464] : memref<2x1x1xf32, #tpu.memory_space<vmem>>, vector<1x1x1xf32>
    %791 = vector.shape_cast %790 : vector<1x1x1xf32> to vector<1x1xf32>
    %792 = vector.broadcast %791 : vector<1x1xf32> to vector<2x16xf32>
    %793 = arith.addf %789, %792 : vector<2x16xf32>
    %cst_465 = arith.constant dense<0xFF800000> : vector<2xf32>
    %794 = vector.multi_reduction <maximumf>, %793, %cst_465 [1] : vector<2x16xf32> to vector<2xf32>
    %795 = vector.shape_cast %794 : vector<2xf32> to vector<2x1xf32>
    %796 = vector.broadcast %795 : vector<2x1xf32> to vector<2x16xf32>
    %797 = arith.subf %793, %796 : vector<2x16xf32>
    %798 = math.exp %797 : vector<2x16xf32>
    %cst_466 = arith.constant dense<0.000000e+00> : vector<2xf32>
    %799 = vector.multi_reduction <add>, %798, %cst_466 [1] : vector<2x16xf32> to vector<2xf32>
    %800 = vector.shape_cast %799 : vector<2xf32> to vector<2x1xf32>
    %801 = vector.broadcast %800 : vector<2x1xf32> to vector<2x16xf32>
    %802 = arith.divf %798, %801 : vector<2x16xf32>
    %803 = vector.shape_cast %802 : vector<2x16xf32> to vector<2x16x1xf32>
    %804 = vector.broadcast %803 : vector<2x16x1xf32> to vector<2x16x64xf32>
    %805 = arith.mulf %804, %0 : vector<2x16x64xf32>
    %cst_467 = arith.constant dense<0.000000e+00> : vector<2x64xf32>
    %806 = vector.multi_reduction <add>, %805, %cst_467 [1] : vector<2x16x64xf32> to vector<2x64xf32>
    %807 = vector.extract_strided_slice %642 {offsets = [2, 0, 0], sizes = [1, 2, 16], strides = [1, 1, 1]} : vector<3x2x16xf32> to vector<1x2x16xf32>
    %808 = vector.shape_cast %807 : vector<1x2x16xf32> to vector<2x16xf32>
    %c2_468 = arith.constant 2 : index
    %c0_469 = arith.constant 0 : index
    %c0_470 = arith.constant 0 : index
    %809 = vector.load %arg4[%c2_468, %c0_469, %c0_470] : memref<3x16x256xf32, #tpu.memory_space<vmem>>, vector<1x16x256xf32>
    %810 = vector.shape_cast %809 : vector<1x16x256xf32> to vector<16x256xf32>
    %cst_471 = arith.constant dense<0.000000e+00> : vector<2x256xf32>
    %811 = tpu.matmul %808, %810, %cst_471 {dimension_numbers = #tpu.dot_dimension_numbers<[1], [0], [0], [1], [0, 0, 1, 1], [], []>} : vector<2x16xf32>, vector<16x256xf32>, vector<2x256xf32> -> vector<2x256xf32>
    %c2_472 = arith.constant 2 : index
    %c0_473 = arith.constant 0 : index
    %c0_474 = arith.constant 0 : index
    %812 = vector.load %arg5[%c2_472, %c0_473, %c0_474] : memref<3x32x256xf32, #tpu.memory_space<vmem>>, vector<1x32x256xf32>
    %813 = vector.shape_cast %812 : vector<1x32x256xf32> to vector<32x256xf32>
    %cst_475 = arith.constant dense<0.000000e+00> : vector<2x256xf32>
    %814 = tpu.matmul %638, %813, %cst_475 {dimension_numbers = #tpu.dot_dimension_numbers<[1], [0], [0], [1], [0, 0, 1, 1], [], []>} : vector<2x32xf32>, vector<32x256xf32>, vector<2x256xf32> -> vector<2x256xf32>
    %815 = arith.addf %811, %814 : vector<2x256xf32>
    %c2_476 = arith.constant 2 : index
    %c0_477 = arith.constant 0 : index
    %c0_478 = arith.constant 0 : index
    %816 = vector.load %arg6[%c2_476, %c0_477, %c0_478] : memref<3x32x256xf32, #tpu.memory_space<vmem>>, vector<1x32x256xf32>
    %817 = vector.shape_cast %816 : vector<1x32x256xf32> to vector<32x256xf32>
    %cst_479 = arith.constant dense<0.000000e+00> : vector<2x256xf32>
    %818 = tpu.matmul %764, %817, %cst_479 {dimension_numbers = #tpu.dot_dimension_numbers<[1], [0], [0], [1], [0, 0, 1, 1], [], []>} : vector<2x32xf32>, vector<32x256xf32>, vector<2x256xf32> -> vector<2x256xf32>
    %819 = arith.addf %815, %818 : vector<2x256xf32>
    %c2_480 = arith.constant 2 : index
    %c0_481 = arith.constant 0 : index
    %c0_482 = arith.constant 0 : index
    %820 = vector.load %arg7[%c2_480, %c0_481, %c0_482] : memref<3x1x256xf32, #tpu.memory_space<vmem>>, vector<1x1x256xf32>
    %821 = vector.shape_cast %820 : vector<1x1x256xf32> to vector<1x256xf32>
    %822 = vector.broadcast %821 : vector<1x256xf32> to vector<2x256xf32>
    %823 = arith.addf %819, %822 : vector<2x256xf32>
    %824 = vector.extract_strided_slice %823 {offsets = [0, 0], sizes = [2, 96], strides = [1, 1]} : vector<2x256xf32> to vector<2x96xf32>
    %825 = arith.negf %824 : vector<2x96xf32>
    %826 = math.exp %825 : vector<2x96xf32>
    %cst_483 = arith.constant 1.000000e+00 : f32
    %827 = vector.broadcast %cst_483 : f32 to vector<2x96xf32>
    %828 = arith.addf %827, %826 : vector<2x96xf32>
    %829 = arith.divf %827, %828 : vector<2x96xf32>
    %830 = vector.extract_strided_slice %829 {offsets = [0, 0], sizes = [2, 32], strides = [1, 1]} : vector<2x96xf32> to vector<2x32xf32>
    %831 = vector.extract_strided_slice %829 {offsets = [0, 32], sizes = [2, 32], strides = [1, 1]} : vector<2x96xf32> to vector<2x32xf32>
    %832 = vector.extract_strided_slice %829 {offsets = [0, 64], sizes = [2, 32], strides = [1, 1]} : vector<2x96xf32> to vector<2x32xf32>
    %833 = vector.extract_strided_slice %823 {offsets = [0, 128], sizes = [2, 64], strides = [1, 1]} : vector<2x256xf32> to vector<2x64xf32>
    %c2_484 = arith.constant 2 : index
    %c0_485 = arith.constant 0 : index
    %c0_486 = arith.constant 0 : index
    %834 = vector.load %arg8[%c2_484, %c0_485, %c0_486] : memref<3x64x64xf32, #tpu.memory_space<vmem>>, vector<1x64x64xf32>
    %835 = vector.shape_cast %834 : vector<1x64x64xf32> to vector<64x64xf32>
    %cst_487 = arith.constant dense<0.000000e+00> : vector<2x64xf32>
    %836 = tpu.matmul %806, %835, %cst_487 {dimension_numbers = #tpu.dot_dimension_numbers<[1], [0], [0], [1], [0, 0, 1, 1], [], []>} : vector<2x64xf32>, vector<64x64xf32>, vector<2x64xf32> -> vector<2x64xf32>
    %837 = arith.addf %833, %836 : vector<2x64xf32>
    %c2_488 = arith.constant 2 : index
    %c0_489 = arith.constant 0 : index
    %c0_490 = arith.constant 0 : index
    %838 = vector.load %arg9[%c2_488, %c0_489, %c0_490] : memref<3x1x64xf32, #tpu.memory_space<vmem>>, vector<1x1x64xf32>
    %839 = vector.shape_cast %838 : vector<1x1x64xf32> to vector<1x64xf32>
    %840 = vector.broadcast %839 : vector<1x64xf32> to vector<2x64xf32>
    %841 = arith.addf %837, %840 : vector<2x64xf32>
    %842 = vector.extract_strided_slice %841 {offsets = [0, 0], sizes = [2, 32], strides = [1, 1]} : vector<2x64xf32> to vector<2x32xf32>
    %843 = vector.extract_strided_slice %841 {offsets = [0, 32], sizes = [2, 32], strides = [1, 1]} : vector<2x64xf32> to vector<2x32xf32>
    %844 = arith.maximumf %842, %843 : vector<2x32xf32>
    %845 = arith.mulf %831, %636 : vector<2x32xf32>
    %846 = arith.mulf %830, %844 : vector<2x32xf32>
    %847 = arith.addf %845, %846 : vector<2x32xf32>
    %848 = math.tanh %847 : vector<2x32xf32>
    %849 = arith.mulf %832, %848 : vector<2x32xf32>
    %850 = tpu.concatenate %685, %764, %849 in 1 : vector<2x32xf32>, vector<2x32xf32>, vector<2x32xf32> -> vector<2x96xf32>
    %c6 = arith.constant 6 : index
    %c0_491 = arith.constant 0 : index
    %851 = vector.load %arg19[%c6, %c0_491] : memref<8x96xf32, #tpu.memory_space<vmem>>, vector<2x96xf32>
    tpu.vector_store %arg19[%c6, %c0_491], %850 {strides = array<i32>} : memref<8x96xf32, #tpu.memory_space<vmem>>, vector<2x96xf32>,
    %c0_492 = arith.constant 0 : index
    %c0_493 = arith.constant 0 : index
    %852 = vector.load %arg19[%c0_492, %c0_493] : memref<8x96xf32, #tpu.memory_space<vmem>>, vector<8x96xf32>
    %c0_494 = arith.constant 0 : index
    %c0_495 = arith.constant 0 : index
    %853 = vector.load %arg16[%c0_494, %c0_495] : memref<96x96xf32, #tpu.memory_space<vmem>>, vector<96x96xf32>
    %cst_496 = arith.constant dense<0.000000e+00> : vector<8x96xf32>
    %854 = tpu.matmul %852, %853, %cst_496 {dimension_numbers = #tpu.dot_dimension_numbers<[1], [0], [0], [1], [0, 0, 1, 1], [], []>} : vector<8x96xf32>, vector<96x96xf32>, vector<8x96xf32> -> vector<8x96xf32>
    %c0_497 = arith.constant 0 : index
    %c0_498 = arith.constant 0 : index
    %855 = vector.load %arg17[%c0_497, %c0_498] : memref<1x96xf32, #tpu.memory_space<vmem>>, vector<1x96xf32>
    %856 = vector.broadcast %855 : vector<1x96xf32> to vector<8x96xf32>
    %857 = arith.addf %854, %856 : vector<8x96xf32>
    %858 = vector.extract_strided_slice %857 {offsets = [0, 0], sizes = [8, 32], strides = [1, 1]} : vector<8x96xf32> to vector<8x32xf32>
    %cst_499 = arith.constant dense<0xFF800000> : vector<8xf32>
    %859 = vector.multi_reduction <maximumf>, %858, %cst_499 [1] : vector<8x32xf32> to vector<8xf32>
    %860 = vector.shape_cast %859 : vector<8xf32> to vector<8x1xf32>
    %861 = vector.broadcast %860 : vector<8x1xf32> to vector<8x32xf32>
    %862 = arith.subf %858, %861 : vector<8x32xf32>
    %863 = math.exp %862 : vector<8x32xf32>
    %cst_500 = arith.constant dense<0.000000e+00> : vector<8xf32>
    %864 = vector.multi_reduction <add>, %863, %cst_500 [1] : vector<8x32xf32> to vector<8xf32>
    %865 = vector.shape_cast %864 : vector<8xf32> to vector<8x1xf32>
    %866 = math.log %865 : vector<8x1xf32>
    %867 = vector.broadcast %866 : vector<8x1xf32> to vector<8x32xf32>
    %868 = arith.subf %862, %867 : vector<8x32xf32>
    %869 = vector.extract_strided_slice %857 {offsets = [0, 32], sizes = [8, 32], strides = [1, 1]} : vector<8x96xf32> to vector<8x32xf32>
    %cst_501 = arith.constant dense<0xFF800000> : vector<8xf32>
    %870 = vector.multi_reduction <maximumf>, %869, %cst_501 [1] : vector<8x32xf32> to vector<8xf32>
    %871 = vector.shape_cast %870 : vector<8xf32> to vector<8x1xf32>
    %872 = vector.broadcast %871 : vector<8x1xf32> to vector<8x32xf32>
    %873 = arith.subf %869, %872 : vector<8x32xf32>
    %874 = math.exp %873 : vector<8x32xf32>
    %cst_502 = arith.constant dense<0.000000e+00> : vector<8xf32>
    %875 = vector.multi_reduction <add>, %874, %cst_502 [1] : vector<8x32xf32> to vector<8xf32>
    %876 = vector.shape_cast %875 : vector<8xf32> to vector<8x1xf32>
    %877 = math.log %876 : vector<8x1xf32>
    %878 = vector.broadcast %877 : vector<8x1xf32> to vector<8x32xf32>
    %879 = arith.subf %873, %878 : vector<8x32xf32>
    %880 = vector.extract_strided_slice %857 {offsets = [0, 64], sizes = [8, 32], strides = [1, 1]} : vector<8x96xf32> to vector<8x32xf32>
    %cst_503 = arith.constant dense<0xFF800000> : vector<8xf32>
    %881 = vector.multi_reduction <maximumf>, %880, %cst_503 [1] : vector<8x32xf32> to vector<8xf32>
    %882 = vector.shape_cast %881 : vector<8xf32> to vector<8x1xf32>
    %883 = vector.broadcast %882 : vector<8x1xf32> to vector<8x32xf32>
    %884 = arith.subf %880, %883 : vector<8x32xf32>
    %885 = math.exp %884 : vector<8x32xf32>
    %cst_504 = arith.constant dense<0.000000e+00> : vector<8xf32>
    %886 = vector.multi_reduction <add>, %885, %cst_504 [1] : vector<8x32xf32> to vector<8xf32>
    %887 = vector.shape_cast %886 : vector<8xf32> to vector<8x1xf32>
    %888 = math.log %887 : vector<8x1xf32>
    %889 = vector.broadcast %888 : vector<8x1xf32> to vector<8x32xf32>
    %890 = arith.subf %884, %889 : vector<8x32xf32>
    %891 = tpu.concatenate %868, %879, %890 in 1 : vector<8x32xf32>, vector<8x32xf32>, vector<8x32xf32> -> vector<8x96xf32>
    %892 = vector.extract_strided_slice %891 {offsets = [0, 0], sizes = [2, 96], strides = [1, 1]} : vector<8x96xf32> to vector<2x96xf32>
    %893 = vector.extract_strided_slice %891 {offsets = [2, 0], sizes = [2, 96], strides = [1, 1]} : vector<8x96xf32> to vector<2x96xf32>
    %894 = vector.extract_strided_slice %891 {offsets = [4, 0], sizes = [2, 96], strides = [1, 1]} : vector<8x96xf32> to vector<2x96xf32>
    %895 = vector.extract_strided_slice %891 {offsets = [6, 0], sizes = [2, 96], strides = [1, 1]} : vector<8x96xf32> to vector<2x96xf32>
    %896 = tpu.concatenate %892, %893, %894, %895 in 1 : vector<2x96xf32>, vector<2x96xf32>, vector<2x96xf32>, vector<2x96xf32> -> vector<2x384xf32>
    %c0_505 = arith.constant 0 : index
    %c0_506 = arith.constant 0 : index
    %897 = vector.load %arg18[%c0_505, %c0_506] : memref<2x384xf32, #tpu.memory_space<vmem>>, vector<2x384xf32>
    tpu.vector_store %arg18[%c0_505, %c0_506], %896 {strides = array<i32>} : memref<2x384xf32, #tpu.memory_space<vmem>>, vector<2x384xf32>,
    return
  }
}

</mosaic_0001>

<bundles_post_ra>
// kernel: attention_model_forward.1
= control target key start
LH: loop header
LB: loop body
LE: loop exit
PB: predicated region body
PF: predicated region fallthrough
CT: control target
= control target key end

     0   :  { %v9489_v3 = vmov 0.0   ;;  %v9490_v31 = vmov 0.0|0.0   ;;  %vm154_vm0 = vcmask 130048   ;;  %vm9491_vm1 = vmmov 0   ;;  %s12074_s30 = smov 96   ;;  %s12078_s25 = smov 64   ;;  %s12052_s5 = inlined_call_operand.vmem [shape: f32[3,32,256], index: 5, kind: input, shape index: {}]   ;;  %s12053_s4 = inlined_call_operand.vmem [shape: f32[3,16,256], index: 4, kind: input, shape index: {}]   ;;  %s12054_s6 = inlined_call_operand.vmem [shape: f32[3,32,256], index: 6, kind: input, shape index: {}]   ;;  %s12055_s8 = inlined_call_operand.vmem [shape: f32[3,64,64], index: 8, kind: input, shape index: {}]   ;;  %s12056_s0 = inlined_call_operand.vmem [shape: f32[4,3,2,16], index: 0, kind: input, shape index: {}]   ;;  %s12057_s2 = inlined_call_operand.vmem [shape: f32[2,64], index: 2, kind: input, shape index: {}]   ;;  %s12058_s7 = inlined_call_operand.vmem [shape: f32[3,1,256], index: 7, kind: input, shape index: {}]   ;;  %s12059_s9 = inlined_call_operand.vmem [shape: f32[3,1,64], index: 9, kind: input, shape index: {}]   ;;  %s12060_s10 = inlined_call_operand.vmem [shape: f32[2,32,32], index: 10, kind: input, shape index: {}]   ;;  %s12061_s11 = inlined_call_operand.vmem [shape: f32[2,1,32], index: 11, kind: input, shape index: {}]   ;;  %s12062_s3 = inlined_call_operand.vmem [shape: f32[2,2,16,32], index: 3, kind: input, shape index: {}]   ;;  %s12063_s12 = inlined_call_operand.vmem [shape: f32[2,1,32], index: 12, kind: input, shape index: {}]   ;;  %s12064_s13 = inlined_call_operand.vmem [shape: f32[2,1,1], index: 13, kind: input, shape index: {}]   ;;  %s12065_s14 = inlined_call_operand.vmem [shape: f32[64,32], index: 14, kind: input, shape index: {}]   ;;  %s12066_s1 = inlined_call_operand.vmem [shape: f32[2,16,64], index: 1, kind: input, shape index: {}]   ;;  %s12067_s15 = inlined_call_operand.vmem [shape: f32[1,32], index: 15, kind: input, shape index: {}]   ;;  %s12068_s16 = inlined_call_operand.vmem [shape: f32[96,96], index: 16, kind: input, shape index: {}]   ;;  %s12069_s17 = inlined_call_operand.vmem [shape: f32[1,96], index: 17, kind: input, shape index: {}]   ;;  %s12070_s18 = inlined_call_operand.vmem [shape: f32[2,384], index: 18, kind: output, shape index: {}]  }
   0x1   :  { %12081 = sst [smem:[#allocation3_spill]] %s12052_s5  ;;  %147 = vmatprep.mubr.f32.mxu1 %v9489_v3  ;;  %301 = vmatprep.mubr.f32.mxu0 %v9489_v3  ;;  %v330_v32 = vld [vmem:[%s12055_s8] sm:$0xff]  ;;  %v331_v33 = vld [vmem:[%s12055_s8 + $0x8] sm:$0xff]  ;;  %v332_v36 = vld [vmem:[%s12055_s8 + $0x10] sm:$0xff]  ;;  %vm338_vm2 = vcmask 523264   ;;  %v312_v46 = vlaneseq  ;;  %s12076_s5 = smov 32  }
   0x2   :  { %12082 = sst [smem:[#allocation4_spill]] %s12053_s4  ;;  %s12087_s29 = sld [smem:[#allocation3_spill]]  ;;  %v64_v34 = vld [vmem:[%s12056_s0] sm:$0x3]  ;;  %v8694_v35 = vpack.c.bf16 %v331_v33, %v330_v32  ;;  %v333_v37 = vld [vmem:[%s12055_s8 + $0x18] sm:$0xff]  ;;  %v335_v40 = vld [vmem:[%s12055_s8 + $0x28] sm:$0xff] }
   0x3   :  { %12083 = sst [smem:[#allocation5_spill]] %s12054_s6  ;;  %s12088_s19 = sld [smem:[#allocation4_spill]]  ;;  %v8697_v38 = vpack.c.bf16 %v333_v37, %v332_v36  ;;  %v334_v39 = vld [vmem:[%s12055_s8 + $0x20] sm:$0xff]  ;;  %v336_v42 = vld [vmem:[%s12055_s8 + $0x30] sm:$0xff]  ;;  %v337_v43 = vld [vmem:[%s12055_s8 + $0x38] sm:$0xff]  ;;  %v9701_v47 = vshrl.u32 %v312_v46, 7 }
   0x4   :  { %12084 = sst [smem:[#allocation6_spill]] %s12068_s16  ;;  %s12089_s6 = sld [smem:[#allocation5_spill]]  ;;  %v8700_v41 = vpack.c.bf16 %v335_v40, %v334_v39  ;;  %v8703_v44 = vpack.c.bf16 %v337_v43, %v336_v42  ;;  %v63_v45 = vld [vmem:[%s12057_s2] sm:$0x3]  ;;  %v444_v32 = vld [vmem:[%s12060_s10 + $0x8] sm:$0xff]  ;;  %v445_v36 = vld [vmem:[%s12060_s10 + $0x10] sm:$0xff] }
   0x5   :  { %12085 = sst [smem:[#allocation7_spill]] %s12069_s17  ;;  %v9704_v48 = vsub.s32 0, %v9701_v47  ;;  %v310_v50 = vld [vmem:[%s12058_s7] sm:$0x3]  ;;  %v9711_v58 = vsub.s32 1, %v9701_v47  ;;  %v446_v37 = vld [vmem:[%s12060_s10 + $0x18] sm:$0xff] }
   0x6   :  { %12086 = sst [smem:[#allocation8_spill]] %s12070_s18  ;;  %v7657_v62 = vld [vmem:[%s12059_s9] ss:$0 sm:$0xff]  ;;  %v8709_v40 = vpack.c.bf16 %v446_v37, %v445_v36  ;;  %vm79_vm3 = vcmask 261120   ;;  %vm622_vm4 = vcmask 130112   ;;  %vm633_vm5 = vcmask 1041409  }
   0x7   :  { %v315_v52 = vrot.slane %v310_v50, %v9704_v48  ;;  %v319_v59 = vrot.slane %v310_v50, %v9711_v58  ;;  %vm636_vm6 = vcmask 123904   ;;  %s12090_s23 = smov 96   ;;  %s12091_s28 = smov 32   ;;  %vm1934_vm7 = vcmask 779264  }
   0x8   :  { %v72_v0 = vld [vmem:[%s12087_s29 + $0x8] sm:$0xff]  ;;  %v74_v1 = vld [vmem:[%s12087_s29 + $0x18] sm:$0xff]  ;;  %v71_v2 = vld [vmem:[%s12087_s29] sm:$0xff]  ;;  %s12092_s21 = smov 64   ;;  %vm7491_vm8 = vcmask 785408   ;;  %s12094_s17 = sld [smem:[#allocation7_spill]] }
   0x9   :  { %v8673_v4 = vpack.c.bf16 %v74_v1, %v72_v0  ;;  %v73_v5 = vld [vmem:[%s12087_s29 + $0x10] sm:$0xff]  ;;  %v76_v6 = vld [vmem:[%s12087_s29 + $0x28] sm:$0xff]  ;;  %v78_v7 = vld [vmem:[%s12087_s29 + $0x38] sm:$0xff]  ;;  %vm7594_vm9 = vcmask 785920   ;;  %vm7577_vm10 = vcmask 523520  }
   0xa   :  { %v8675_v8 = vpack.c.bf16 %v73_v5, %v71_v2  ;;  %v8677_v9 = vpack.c.bf16 %v78_v7, %v76_v6  ;;  %v75_v10 = vld [vmem:[%s12087_s29 + $0x20] sm:$0xff]  ;;  %v77_v11 = vld [vmem:[%s12087_s29 + $0x30] sm:$0xff]  ;;  %v68_v12 = vld [vmem:[%s12088_s19 + $0x8] sm:$0xff] }
   0xb   :  { %8674 = vmatprep.subr.bf16.mxu1 %v8673_v4  ;;  %v70_v13 = vld [vmem:[%s12088_s19 + $0x18] sm:$0xff]  ;;  %v230_v14 = vld [vmem:[%s12089_s6 + $0x8] sm:$0xff]  ;;  %v8679_v16 = vpack.c.bf16 %v77_v11, %v75_v10  ;;  %v67_v18 = vld [vmem:[%s12088_s19] sm:$0xff] }
   0xc   :  { %v232_v15 = vld [vmem:[%s12089_s6 + $0x18] sm:$0xff]  ;;  %8676 = vmatpush1.bf16.msra.mxu1 %v8675_v8  ;;  %v69_v19 = vld [vmem:[%s12088_s19 + $0x10] sm:$0xff]  ;;  %v229_v20 = vld [vmem:[%s12089_s6] sm:$0xff]  ;;  %v8681_v21 = vpack.c.bf16 %v70_v13, %v68_v12 }
   0xd   :  { %v8685_v17 = vpack.c.bf16 %v232_v15, %v230_v14  ;;  %8678 = vmatprep.subr.bf16.mxu1 %v8677_v9  ;;  %v231_v22 = vld [vmem:[%s12089_s6 + $0x10] sm:$0xff]  ;;  %v234_v23 = vld [vmem:[%s12089_s6 + $0x28] sm:$0xff]  ;;  %v236_v24 = vld [vmem:[%s12089_s6 + $0x38] sm:$0xff]  ;;  %v8683_v29 = vpack.c.bf16 %v69_v19, %v67_v18 }
   0xe   :  { %v8687_v25 = vpack.c.bf16 %v231_v22, %v229_v20  ;;  %v8689_v26 = vpack.c.bf16 %v236_v24, %v234_v23  ;;  %v233_v27 = vld [vmem:[%s12089_s6 + $0x20] sm:$0xff]  ;;  %v235_v28 = vld [vmem:[%s12089_s6 + $0x30] sm:$0xff]  ;;  %v7667_v13 = vld [vmem:[%s12087_s29 + $0x48] sm:$0xff] }
   0xf   :  { %8686 = vmatprep.subr.bf16.mxu0 %v8685_v17  ;;  %v8691_v30 = vpack.c.bf16 %v235_v28, %v233_v27  ;;  %v7669_v14 = vld [vmem:[%s12087_s29 + $0x58] sm:$0xff]  ;;  %v7666_v15 = vld [vmem:[%s12087_s29 + $0x40] sm:$0xff]  ;;  %v7668_v17 = vld [vmem:[%s12087_s29 + $0x50] sm:$0xff] }
  0x10   :  { %8680 = vmatpush1.bf16.msra.mxu1 %v8679_v16  ;;  %8688 = vmatpush1.bf16.msra.mxu0 %v8687_v25  ;;  %v8711_v16 = vpack.c.bf16 %v7669_v14, %v7667_v13  ;;  %v7671_v18 = vld [vmem:[%s12087_s29 + $0x68] sm:$0xff]  ;;  %v7673_v19 = vld [vmem:[%s12087_s29 + $0x78] sm:$0xff]  ;;  %v8713_v20 = vpack.c.bf16 %v7668_v17, %v7666_v15  ;;  %v7670_v22 = vld [vmem:[%s12087_s29 + $0x60] sm:$0xff] }
  0x11   :  { %8682 = vmatprep.subr.bf16.mxu1 %v8681_v21  ;;  %8690 = vmatprep.subr.bf16.mxu0 %v8689_v26  ;;  %v8715_v21 = vpack.c.bf16 %v7673_v19, %v7671_v18  ;;  %v7672_v23 = vld [vmem:[%s12087_s29 + $0x70] sm:$0xff]  ;;  %v7663_v24 = vld [vmem:[%s12088_s19 + $0x28] sm:$0xff]  ;;  %v7665_v25 = vld [vmem:[%s12088_s19 + $0x38] sm:$0xff] }
  0x12   :  { %v8717_v26 = vpack.c.bf16 %v7672_v23, %v7670_v22  ;;  %v7662_v27 = vld [vmem:[%s12088_s19 + $0x20] sm:$0xff]  ;;  %v8719_v28 = vpack.c.bf16 %v7665_v25, %v7663_v24  ;;  %v7676_v33 = vld [vmem:[%s12089_s6 + $0x48] sm:$0xff]  ;;  %v7677_v43 = vld [vmem:[%s12089_s6 + $0x50] sm:$0xff] }
  0x13   :  { %148 = vmatmul.mubr.f32.vlgmr.msra.gmra.mrb[0].mxu1 %v9489_v3  ;;  %v7675_v42 = vld [vmem:[%s12089_s6 + $0x40] sm:$0xff]  ;;  %v440_v15 = vld [vmem:[%s12062_s3 + $0x8] sm:$0xff]  ;;  %v441_v18 = vld [vmem:[%s12062_s3 + $0x10] sm:$0xff] }
  0x14   :  { %8684 = vmatpush1.bf16.msra.mxu1 %v8683_v29  ;;  %8692 = vmatpush1.bf16.msra.mxu0 %v8691_v30  ;;  %v7664_v29 = vld [vmem:[%s12088_s19 + $0x30] sm:$0xff]  ;;  %v443_v30 = vld [vmem:[%s12060_s10] sm:$0xff]  ;;  %v8725_v50 = vpack.c.bf16 %v7677_v43, %v7675_v42  ;;  %v442_v19 = vld [vmem:[%s12062_s3 + $0x18] sm:$0xff] }
  0x15   :  { %222 = vmatprep.mubr.f32.mxu1 %v9489_v3  ;;  %8693 = vmatprep.subr.bf16.mxu1 %v9490_v31  ;;  %v439_v14 = vld [vmem:[%s12062_s3] sm:$0xff] }
  0x16   :  { %8712 = vmatprep.subr.bf16.mxu0 %v8711_v16  ;;  %v7660_v25 = vld [vmem:[%s12063_s12] ss:$0 sm:$0xff] }
  0x17   :  { %302 = vmatmul.mubr.f32.vlgmr.msra.gmra.mrb[0].mxu0 %v9489_v3 }
  0x18   :  { %839 = vmatprep.mubr.f32.mxu0 %v9489_v3  ;;  %8714 = vmatpush1.bf16.msra.mxu0 %v8713_v20 }
  0x19   :  { %8716 = vmatprep.subr.bf16.mxu0 %v8715_v21 }
  0x1b   :  { %7654 = vmatmul.mubr.msk.f32.vlgmr.msra.gmra.mrb[0].mxu1 %vm154_vm0, %v64_v34  ;;  %v7678_v34 = vld [vmem:[%s12089_s6 + $0x58] sm:$0xff] }
  0x1c   :  { %8695 = vmatpush3.bf16.msra.mxu1 %v8694_v35  ;;  %8270 = vmatprep.mubr.msk.f32.mxu1 %vm9491_vm1, %v9489_v3  ;;  %v8706_v35 = vpack.c.bf16 %v444_v32, %v443_v30  ;;  %v8723_v39 = vpack.c.bf16 %v7678_v34, %v7676_v33 }
  0x1d   :  { %8696 = vmatprep.subr.bf16.mxu1 %v9490_v31  ;;  %8718 = vmatpush1.bf16.msra.mxu0 %v8717_v26 }
  0x1e   :  { %8720 = vmatprep.subr.bf16.mxu0 %v8719_v28 }
  0x20   :  { %8698 = vmatpush3.bf16.msra.mxu1 %v8697_v38  ;;  %v8721_v38 = vpack.c.bf16 %v7664_v29, %v7662_v27  ;;  %840 = vmatmul.mubr.f32.vlgmr.msra.gmra.mrb[2].mxu0 %v9489_v3 }
  0x21   :  { %8699 = vmatprep.subr.bf16.mxu1 %v9490_v31  ;;  %913 = vmatprep.mubr.f32.mxu0 %v9489_v3 }
  0x22   :  { %8722 = vmatpush1.bf16.msra.mxu0 %v8721_v38 }
  0x23   :  { %8724 = vmatprep.subr.bf16.mxu0 %v8723_v39  ;;  %v7661_v39 = vld [vmem:[%s12064_s13] ss:$0 sm:$0xff] }
  0x24   :  { %8701 = vmatpush3.bf16.msra.mxu1 %v8700_v41 }
  0x25   :  { %8702 = vmatprep.subr.bf16.mxu1 %v9490_v31 }
  0x28   :  { %8704 = vmatpush3.bf16.msra.mxu1 %v8703_v44  ;;  %v7680_v44 = vld [vmem:[%s12089_s6 + $0x68] sm:$0xff] }
  0x29   :  { %8705 = vmatprep.subr.bf16.mxu1 %v9490_v31 }
  0x2b   :  { %8271 = vmatmul.mubr.msk.f32.vlgmr.msra.gmra.mrb[2].mxu1 %vm338_vm2, %v63_v45  ;;  %v7682_v45 = vld [vmem:[%s12089_s6 + $0x78] sm:$0xff] }
  0x2c   :  { %8281 = vmatprep.mubr.msk.f32.mxu1 %vm9491_vm1, %v9489_v3  ;;  %8707 = vmatpush3.bf16.msra.mxu1 %v8706_v35 }
  0x2d   :  { %8708 = vmatprep.subr.bf16.mxu1 %v9490_v31 }
  0x30   :  { %8710 = vmatpush3.bf16.msra.mxu1 %v8709_v40  ;;  %v612_v40 = vand.u32 127, %v312_v46 }
  0x31   :  { %8731 = vmatprep.subr.bf16.mxu1 %v9490_v31 }
  0x32   :  { %v617_v42 = vadd.s32 4294967288, %v612_v40 }
  0xea   :  { %v303_v49 = vpop.f32.mrb[0].mxu0 }
  0xeb   :  { %v305_v51 = vpop.f32.mrb[1].mxu0 }
  0xee   :  { %v224_v53 = vpop.f32.mrb[0].mxu1 }
  0xef   :  { %v9171_v54 = vadd.f32 %v303_v49, %v224_v53  ;;  %v226_v55 = vpop.f32.mrb[1].mxu1  ;;  %v65_v49 = vld [vmem:[%s12056_s0 + $0x2] sm:$0x3]  ;;  %v7681_v53 = vld [vmem:[%s12089_s6 + $0x70] sm:$0xff] }
  0xf0   :  { %v9172_v56 = vadd.f32 %v305_v51, %v226_v55  ;;  %v8727_v51 = vpack.c.bf16 %v7682_v45, %v7680_v44  ;;  %7674 = vmatmul.mubr.msk.f32.vlgmr.msra.gmra.mrb[2].mxu0 %vm154_vm0, %v65_v49  ;;  %v9867_v45 = vsub.s32 %v612_v40, %v9701_v47  ;;  %v9870_v49 = vsub.s32 %v617_v42, %v9701_v47 }
  0xf1   :  { %v322_v57 = vadd.f32 %v9171_v54, %v315_v52  ;;  %v7679_v52 = vld [vmem:[%s12089_s6 + $0x60] sm:$0xff]  ;;  %8726 = vmatpush1.bf16.msra.mxu0 %v8725_v50  ;;  %993 = vmatprep.mubr.f32.mxu0 %v9489_v3 }
  0xf2   :  { %v323_v60 = vadd.f32 %v9172_v56, %v319_v59  ;;  %v8729_v54 = vpack.c.bf16 %v7681_v53, %v7679_v52  ;;  %8728 = vmatprep.subr.bf16.mxu0 %v8727_v51  ;;  %v9495_v59 = vmov 0  }
  0xf3   :  { %v7655_v2 = vmul.f32 -1.442695, %v322_v57  ;;  %9228 = vset.pattern.permute.xlu1 %v9495_v59  ;;  %9229 = vset.pattern.permute.xlu0 %v9495_v59 }
  0xf5   :  { %9230 = vpow2.f32 %v7655_v2  ;;  %8730 = vmatpush1.bf16.msra.mxu0 %v8729_v54 }
  0xf6   :  { %8743 = vmatprep.subr.bf16.mxu0 %v9490_v31 }
  0xfe   :  { %v408_v61 = vpop.f32.mrb[2].mxu1 }
  0xff   :  { %v412_v63 = vadd.f32 %v408_v61, %v323_v60  ;;  %v8272_v0 = vpop.f32.mrb[3].mxu1  ;;  %v9231_v4 = vpop.eup %9230  ;;  %v9496_v60 = vmov 1966171168  }
 0x100   :  { %v327_v5 = vadd.f32 1.0, %v9231_v4  ;;  %v531_v61 = vunpack.c.l.s4 %v9496_v60 }
 0x101   :  { %v420_v1 = vadd.f32 %v7657_v62, %v412_v63  ;;  %v9824_v62 = vld [vmem:[%s12058_s7 + $0x2] sm:$0x3] }
 0x102   :  { %9232 = vrcp.f32 %v327_v5  ;;  %v532_v63 = vunpack.c.0.s8 %v531_v61  ;;  %v1008_v0 = vrot.slane %v9824_v62, %v9704_v48 }
 0x103   :  { %422 = vrot.lane.b32.xlu0 %v420_v1, %s12074_s30 }
 0x104   :  { %v9832_v2 = vsub.s32 %v532_v63, %v9701_v47 }
 0x10c   :  { %v9718_v8 = vpop.eup %9232 }
 0x10d   :  { %v426_v10 = vmul.f32 0.0, %v9718_v8 }
 0x175   :  { %v423_v6 = vpop.permute.xlu0 %422 }
 0x176   :  { %v425_v7 = vmax.f32 %v420_v1, %v423_v6  ;;  %v7658_v1 = vld [vmem:[%s12061_s11] ss:$0 sm:$0xff] }
 0x178   :  { %v427_v9 = vmul.f32 %v9718_v8, %v425_v7 }
 0x17a   :  { %429 = vrot.lane.b32.xlu0 %v427_v9, %s12076_s5 }
 0x1ec   :  { %v430_v11 = vpop.permute.xlu0 %429 }
 0x1ed   :  { %v9723_v12 = vadd.f32 %v430_v11, %v426_v10 }
 0x1ef   :  { %9234 = vtanh.f32 %v9723_v12 }
 0x1f9   :  { %v9235_v41 = vpop.eup %9234 }
 0x1fa   :  { %435 = vrot.lane.b32.xlu1 %v9235_v41, %s12076_s5 }
 0x26c   :  { %v436_v55 = vpop.permute.xlu1 %435 }
 0x26d   :  { %v438_v56 = vmul.f32 %v9718_v8, %v436_v55 }
 0x26f   :  { %455 = vrot.lane.b32.xlu1 %v438_v56, %s12078_s25 }
 0x2e1   :  { %v9811_v57 = vpop.permute.xlu1 %455 }
 0x2e2   :  { %8282 = vmatmul.mubr.msk.f32.vlgmr.msra.gmra.mrb[4].mxu1 %vm79_vm3, %v9811_v57  ;;  %7683 = vmatmul.mubr.msk.f32.vlgmr.msra.gmra.mrb[2].mxu0 %vm79_vm3, %v9811_v57 }
 0x2e3   :  { %8300 = vmatprep.mubr.msk.f32.mxu1 %vm9491_vm1, %v9489_v3  ;;  %8319 = vmatprep.mubr.msk.f32.mxu0 %vm9491_vm1, %v9489_v3 }
 0x3b5   :  { %v525_v4 = vpop.f32.mrb[4].mxu1  ;;  %v995_v5 = vpop.f32.mrb[2].mxu0 }
 0x3b6   :  { %v526_v6 = vadd.f32 %v7658_v1, %v525_v4  ;;  %v9834_v7 = vadd.f32 %v1008_v0, %v995_v5  ;;  %v8283_v8 = vpop.f32.mrb[5].mxu1  ;;  %v9836_v9 = vpop.f32.mrb[3].mxu0 }
 0x3b8   :  { %v536_v10 = vrot.slane %v526_v6, %v9832_v2 }
 0x3ba   :  { %v537_v11 = vcombine.high %v536_v10, %v536_v10  ;;  %v544_v13 = vrot.slane %v536_v10, %v9832_v2 }
 0x3bc   :  { %v551_v16 = vrot.slane %v537_v11, %v9832_v2  ;;  %v555_v17 = vrot.slane %v544_v13, %v9704_v48 }
 0x3be   :  { %v559_v20 = vrot.slane %v551_v16, %v9704_v48  ;;  %v562_v21 = vadd.f32 %v555_v17, %v439_v14  ;;  %v563_v22 = vadd.f32 %v555_v17, %v440_v15 }
 0x3c0   :  { %v564_v23 = vadd.f32 %v559_v20, %v441_v18  ;;  %v565_v24 = vadd.f32 %v559_v20, %v442_v19  ;;  %9236 = vtanh.f32 %v562_v21 }
 0x3c1   :  { %9238 = vtanh.f32 %v563_v22 }
 0x3c2   :  { %9240 = vtanh.f32 %v564_v23 }
 0x3c3   :  { %9242 = vtanh.f32 %v565_v24 }
 0x3ca   :  { %v9237_v26 = vpop.eup %9236 }
 0x3cb   :  { %v9239_v27 = vpop.eup %9238  ;;  %v577_v28 = vmul.f32 %v9237_v26, %v7660_v25 }
 0x3cc   :  { %v9241_v29 = vpop.eup %9240  ;;  %v578_v30 = vmul.f32 %v9239_v27, %v7660_v25 }
 0x3cd   :  { %v581_v32 = vsel %vm79_vm3, %v577_v28, 0.0  ;;  %v579_v33 = vmul.f32 %v9241_v29, %v7660_v25  ;;  %v9243_v34 = vpop.eup %9242 }
 0x3ce   :  { %v584_v35 = vsel %vm79_vm3, %v578_v30, 0.0  ;;  %582 = vadd.xlane.f32.xlu0 %v581_v32  ;;  %v580_v37 = vmul.f32 %v9243_v34, %v7660_v25 }
 0x3cf   :  { %585 = vadd.xlane.f32.xlu1 %v584_v35  ;;  %v587_v36 = vsel %vm79_vm3, %v579_v33, 0.0 }
 0x3d0   :  { %v590_v38 = vsel %vm79_vm3, %v580_v37, 0.0 }
 0x3d2   :  { %588 = vadd.xlane.f32.xlu0 %v587_v36 }
 0x3d6   :  { %591 = vadd.xlane.f32.xlu0 %v590_v38 }
 0x3e0   :  { %600 = vperm.xlu1 %9228, %v7661_v39  }
 0x45b   :  { %v583_v41 = vpop.xlane.xlu0 %582 }
 0x45c   :  { %v586_v43 = vpop.xlane.xlu1 %585 }
 0x45f   :  { %v589_v44 = vpop.xlane.xlu0 %588 }
 0x460   :  { %v601_v50 = vpop.permute.xlu1 %600 }
 0x461   :  { %v603_v51 = vadd.f32 %v601_v50, %v583_v41  ;;  %v604_v52 = vadd.f32 %v601_v50, %v586_v43  ;;  %v605_v53 = vadd.f32 %v601_v50, %v589_v44  ;;  %v7686_v44 = vld [vmem:[%s12055_s8 + $0x40] sm:$0xff] }
 0x463   :  { %v592_v54 = vpop.xlane.xlu0 %591  ;;  %v616_v56 = vrot.slane %v603_v51, %v9867_v45  ;;  %v621_v46 = vrot.slane %v604_v52, %v9870_v49  ;;  %v627_v59 = vrot.slane %v605_v53, %v9867_v45 }
 0x464   :  { %v606_v55 = vadd.f32 %v601_v50, %v592_v54  ;;  %v7687_v50 = vld [vmem:[%s12055_s8 + $0x48] sm:$0xff] }
 0x465   :  { %v623_v61 = vsel %vm622_vm4, %v621_v46, %v616_v56  ;;  %v7689_v56 = vld [vmem:[%s12055_s8 + $0x58] sm:$0xff]  ;;  %v1137_v46 = vld [vmem:[%s12065_s14 + $0x10] sm:$0xff] }
 0x466   :  { %v631_v60 = vrot.slane %v606_v55, %v9870_v49 }
 0x468   :  { %v632_v63 = vsel %vm622_vm4, %v631_v60, %v627_v59  ;;  %v1138_v60 = vld [vmem:[%s12065_s14 + $0x18] sm:$0xff] }
 0x469   :  { %v634_v0 = vsel %vm633_vm5, %v632_v63, %v623_v61  ;;  %v8747_v61 = vpack.c.bf16 %v1138_v60, %v1137_v46  ;;  %v7690_v63 = vld [vmem:[%s12055_s8 + $0x60] sm:$0xff] }
 0x46a   :  { %v637_v1 = vsel %vm636_vm6, %v634_v0, -inf  ;;  %v7691_v0 = vld [vmem:[%s12055_s8 + $0x68] sm:$0xff] }
 0x46b   :  { %638 = vmax.xlane.f32.xlu0 %v637_v1  ;;  %v1139_v1 = vld [vmem:[%s12065_s14 + $0x20] sm:$0xff] }
 0x4f8   :  { %v639_v4 = vpop.xlane.xlu0 %638 }
 0x4f9   :  { %v644_v5 = vrot.slane %v639_v4, %v9704_v48  ;;  %v648_v6 = vrot.slane %v639_v4, %v9711_v58  ;;  %v8738_v4 = vpack.c.bf16 %v7691_v0, %v7690_v63  ;;  %v7685_v0 = vmul.f32 -1.442695, %v9834_v7  ;;  %v7703_v7 = vld [vmem:[%s12060_s10 + $0x20] sm:$0xff] }
 0x4fb   :  { %v651_v8 = vsub.f32 %v603_v51, %v644_v5  ;;  %v652_v10 = vsub.f32 %v604_v52, %v644_v5  ;;  %v653_v11 = vsub.f32 %v605_v53, %v648_v6  ;;  %v654_v15 = vsub.f32 %v606_v55, %v648_v6  ;;  %v1135_v51 = vld [vmem:[%s12065_s14] sm:$0xff]  ;;  %v1136_v53 = vld [vmem:[%s12065_s14 + $0x8] sm:$0xff]  ;;  %v7688_v55 = vld [vmem:[%s12055_s8 + $0x50] sm:$0xff] }
 0x4fc   :  { %v8732_v52 = vpack.c.bf16 %v7687_v50, %v7686_v44  ;;  %v8744_v54 = vpack.c.bf16 %v1136_v53, %v1135_v51  ;;  %v8735_v59 = vpack.c.bf16 %v7689_v56, %v7688_v55  ;;  %v1140_v5 = vld [vmem:[%s12065_s14 + $0x28] sm:$0xff]  ;;  %v1012_v53 = vrot.slane %v9824_v62, %v9711_v58  ;;  %v7696_v56 = vld [vmem:[%s12059_s9 + $0x1] ss:$0 sm:$0xff] }
 0x4fd   :  { %v655_v13 = vmul.f32 1.442695, %v651_v8  ;;  %v657_v14 = vmul.f32 1.442695, %v652_v10  ;;  %v659_v16 = vmul.f32 1.442695, %v653_v11  ;;  %v8750_v6 = vpack.c.bf16 %v1140_v5, %v1139_v1 }
 0x4fe   :  { %v661_v17 = vmul.f32 1.442695, %v654_v15  ;;  %8733 = vmatpush3.bf16.msra.mxu1 %v8732_v52  ;;  %8745 = vmatpush3.bf16.msra.mxu0 %v8744_v54  ;;  %v7692_v8 = vld [vmem:[%s12055_s8 + $0x70] sm:$0xff]  ;;  %v7693_v10 = vld [vmem:[%s12055_s8 + $0x78] sm:$0xff]  ;;  %v1016_v54 = vadd.f32 %v1012_v53, %v9836_v9 }
 0x4ff   :  { %9244 = vpow2.f32 %v655_v13  ;;  %8734 = vmatprep.subr.bf16.mxu1 %v9490_v31  ;;  %8746 = vmatprep.subr.bf16.mxu0 %v9490_v31  ;;  %v1141_v11 = vld [vmem:[%s12065_s14 + $0x30] sm:$0xff]  ;;  %v8741_v13 = vpack.c.bf16 %v7693_v10, %v7692_v8 }
 0x500   :  { %9246 = vpow2.f32 %v657_v14  ;;  %v1142_v14 = vld [vmem:[%s12065_s14 + $0x38] sm:$0xff] }
 0x501   :  { %9248 = vpow2.f32 %v659_v16  ;;  %v8753_v15 = vpack.c.bf16 %v1142_v14, %v1141_v11  ;;  %v9951_v16 = vld [vmem:[%s12066_s1] sm:$0xff]  ;;  %v7705_v14 = vld [vmem:[%s12060_s10 + $0x30] sm:$0xff] }
 0x502   :  { %9250 = vpow2.f32 %v661_v17  ;;  %8736 = vmatpush3.bf16.msra.mxu1 %v8735_v59  ;;  %8748 = vmatpush3.bf16.msra.mxu0 %v8747_v61 }
 0x503   :  { %8737 = vmatprep.subr.bf16.mxu1 %v9490_v31  ;;  %8749 = vmatprep.subr.bf16.mxu0 %v9490_v31 }
 0x506   :  { %8739 = vmatpush3.bf16.msra.mxu1 %v8738_v4  ;;  %8751 = vmatpush3.bf16.msra.mxu0 %v8750_v6 }
 0x507   :  { %8740 = vmatprep.subr.bf16.mxu1 %v9490_v31  ;;  %8752 = vmatprep.subr.bf16.mxu0 %v9490_v31 }
 0x509   :  { %v9245_v18 = vpop.eup %9244 }
 0x50a   :  { %v9247_v19 = vpop.eup %9246  ;;  %668 = vperm.xlu0 %9229, %v9245_v18   ;;  %8742 = vmatpush3.bf16.msra.mxu1 %v8741_v13  ;;  %v7704_v13 = vld [vmem:[%s12060_s10 + $0x28] sm:$0xff] }
 0x50b   :  { %671 = vperm.xlu1 %9228, %v9247_v19   ;;  %v9249_v20 = vpop.eup %9248  ;;  %8754 = vmatpush3.bf16.msra.mxu0 %v8753_v15  ;;  %v8756_v15 = vpack.c.bf16 %v7704_v13, %v7703_v7 }
 0x50c   :  { %v9251_v21 = vpop.eup %9250  ;;  %8755 = vmatprep.subr.bf16.mxu1 %v9490_v31  ;;  %8781 = vmatprep.subr.bf16.mxu0 %v9490_v31 }
 0x50f   :  { %674 = vperm.xlu1 %9228, %v9249_v20  }
 0x513   :  { %677 = vperm.xlu1 %9228, %v9251_v21  }
 0x589   :  { %v669_v23 = vpop.permute.xlu0 %668 }
 0x58a   :  { %v672_v22 = vpop.permute.xlu1 %671  ;;  %v682_v26 = vrot.slane %v669_v23, %v9867_v45 }
 0x58b   :  { %v686_v25 = vrot.slane %v672_v22, %v9870_v49 }
 0x58d   :  { %v687_v30 = vsel %vm622_vm4, %v686_v25, %v682_v26  ;;  %v9965_v25 = vld [vmem:[%s12066_s1 + $0x10] sm:$0xff] }
 0x58e   :  { %v675_v24 = vpop.permute.xlu1 %674 }
 0x58f   :  { %v691_v28 = vrot.slane %v675_v24, %v9867_v45 }
 0x592   :  { %v678_v27 = vpop.permute.xlu1 %677 }
 0x593   :  { %v695_v29 = vrot.slane %v678_v27, %v9870_v49 }
 0x595   :  { %v696_v32 = vsel %vm622_vm4, %v695_v29, %v691_v28  ;;  %v9970_v28 = vld [vmem:[%s12066_s1 + $0x18] sm:$0xff] }
 0x596   :  { %v697_v33 = vsel %vm633_vm5, %v696_v32, %v687_v30 }
 0x597   :  { %v699_v34 = vsel %vm636_vm6, %v697_v33, 0.0 }
 0x598   :  { %700 = vadd.xlane.f32.xlu1 %v699_v34 }
 0x625   :  { %v701_v35 = vpop.xlane.xlu1 %700 }
 0x626   :  { %v706_v36 = vrot.slane %v701_v35, %v9704_v48  ;;  %v710_v37 = vrot.slane %v701_v35, %v9711_v58 }
 0x628   :  { %9252 = vrcp.f32 %v706_v36 }
 0x629   :  { %9254 = vrcp.f32 %v710_v37 }
 0x62a   :  { %9256 = vpow2.f32 %v7685_v0 }
 0x632   :  { %v9253_v38 = vpop.eup %9252 }
 0x633   :  { %v714_v39 = vmul.f32 %v9253_v38, %v9245_v18  ;;  %v715_v40 = vmul.f32 %v9253_v38, %v9247_v19  ;;  %v9255_v41 = vpop.eup %9254  ;;  %v9956_v18 = vld [vmem:[%s12066_s1 + $0x8] sm:$0xff] }
 0x634   :  { %v717_v42 = vmul.f32 %v9255_v41, %v9249_v20  ;;  %v718_v43 = vmul.f32 %v9255_v41, %v9251_v21  ;;  %v9257_v1 = vpop.eup %9256 }
 0x635   :  { %721 = vperm.xlu0 %9229, %v714_v39   ;;  %v1020_v4 = vadd.f32 1.0, %v9257_v1 }
 0x637   :  { %9258 = vrcp.f32 %v1020_v4 }
 0x639   :  { %726 = vperm.xlu0 %9229, %v715_v40  }
 0x63d   :  { %731 = vperm.xlu0 %9229, %v717_v42  }
 0x641   :  { %736 = vperm.xlu0 %9229, %v718_v43   ;;  %v9259_v5 = vpop.eup %9258 }
 0x642   :  { %v1122_v8 = vmul.f32 0.0, %v9259_v5 }
 0x6b4   :  { %v722_v17 = vpop.permute.xlu0 %721 }
 0x6b5   :  { %v739_v19 = vmul.f32 %v722_v17, %v9951_v16  ;;  %v7706_v17 = vld [vmem:[%s12060_s10 + $0x38] sm:$0xff] }
 0x6b7   :  { %v743_v22 = vsel %vm338_vm2, %v739_v19, 0.0  ;;  %v8759_v19 = vpack.c.bf16 %v7706_v17, %v7705_v14 }
 0x6b8   :  { %v727_v20 = vpop.permute.xlu0 %726 }
 0x6b9   :  { %v740_v21 = vmul.f32 %v727_v20, %v9956_v18 }
 0x6bb   :  { %v744_v23 = vsel %vm338_vm2, %v740_v21, 0.0  ;;  %v7698_v21 = vld [vmem:[%s12067_s15] ss:$0 sm:$0xff] }
 0x6bc   :  { %v745_v24 = vadd.f32 %v744_v23, %v743_v22  ;;  %v732_v26 = vpop.permute.xlu0 %731 }
 0x6bd   :  { %v741_v29 = vmul.f32 %v732_v26, %v9965_v25 }
 0x6be   :  { %v746_v27 = vrot.slane %v745_v24, 4 }
 0x6bf   :  { %v752_v34 = vsel %vm338_vm2, %v741_v29, 0.0 }
 0x6c0   :  { %v747_v30 = vadd.f32 %v746_v27, %v745_v24  ;;  %v737_v32 = vpop.permute.xlu0 %736 }
 0x6c1   :  { %v742_v33 = vmul.f32 %v737_v32, %v9970_v28  ;;  %v7708_v32 = vld [vmem:[%s12061_s11 + $0x1] ss:$0 sm:$0xff] }
 0x6c2   :  { %v748_v36 = vrot.slane %v747_v30, 2 }
 0x6c3   :  { %v753_v35 = vsel %vm338_vm2, %v742_v33, 0.0 }
 0x6c4   :  { %v754_v37 = vadd.f32 %v753_v35, %v752_v34  ;;  %v749_v39 = vadd.f32 %v748_v36, %v747_v30 }
 0x6c6   :  { %v755_v38 = vrot.slane %v754_v37, 4  ;;  %v750_v42 = vrot.slane %v749_v39, 1 }
 0x6c8   :  { %v756_v40 = vadd.f32 %v755_v38, %v754_v37  ;;  %v751_v50 = vadd.f32 %v750_v42, %v749_v39  ;;  %v7699_v39 = vld [vmem:[%s12062_s3 + $0x20] sm:$0xff] }
 0x6ca   :  { %v757_v41 = vrot.slane %v756_v40, 2 }
 0x6cc   :  { %v758_v43 = vadd.f32 %v757_v41, %v756_v40  ;;  %v7700_v40 = vld [vmem:[%s12062_s3 + $0x28] sm:$0xff] }
 0x6ce   :  { %v759_v44 = vrot.slane %v758_v43, 1 }
 0x6d0   :  { %v760_v51 = vadd.f32 %v759_v44, %v758_v43  ;;  %v7701_v43 = vld [vmem:[%s12062_s3 + $0x30] sm:$0xff]  ;;  %v7702_v44 = vld [vmem:[%s12062_s3 + $0x38] sm:$0xff] }
 0x6d2   :  { %v1034_v52 = vsel %vm633_vm5, %v760_v51, %v751_v50 }
 0x6d3   :  { %8301 = vmatmul.mubr.msk.f32.vlgmr.msra.gmra.mrb[6].mxu1 %vm338_vm2, %v1034_v52  ;;  %8320 = vmatmul.mubr.msk.f32.vlgmr.msra.gmra.mrb[4].mxu0 %vm338_vm2, %v1034_v52 }
 0x6d4   :  { %8330 = vmatprep.mubr.msk.f32.mxu1 %vm9491_vm1, %v9489_v3  ;;  %8349 = vmatprep.mubr.msk.f32.mxu0 %vm9491_vm1, %v9489_v3 }
 0x6d5   :  { %8757 = vmatpush3.bf16.msra.mxu1 %v8756_v15 }
 0x6d6   :  { %8758 = vmatprep.subr.bf16.mxu1 %v9490_v31 }
 0x6d9   :  { %8760 = vmatpush3.bf16.msra.mxu1 %v8759_v19 }
 0x7a6   :  { %v1103_v55 = vpop.f32.mrb[6].mxu1  ;;  %v1209_v46 = vpop.f32.mrb[4].mxu0 }
 0x7a7   :  { %v1107_v59 = vadd.f32 %v1103_v55, %v1016_v54  ;;  %v8302_v60 = vpop.f32.mrb[7].mxu1  ;;  %v8321_v61 = vpop.f32.mrb[5].mxu0  ;;  %v7711_v55 = vld [vmem:[%s12063_s12 + $0x1] ss:$0 sm:$0xff] }
 0x7a9   :  { %v1116_v63 = vadd.f32 %v7696_v56, %v1107_v59 }
 0x7ab   :  { %1118 = vrot.lane.b32.xlu1 %v1116_v63, %s12090_s23 }
 0x81d   :  { %v1119_v62 = vpop.permute.xlu1 %1118 }
 0x81e   :  { %v1121_v9 = vmax.f32 %v1116_v63, %v1119_v62 }
 0x820   :  { %v1123_v6 = vmul.f32 %v9259_v5, %v1121_v9 }
 0x822   :  { %1125 = vrot.lane.b32.xlu0 %v1123_v6, %s12076_s5  ;;  %v7713_v6 = vld [vmem:[%s12064_s13 + $0x1] ss:$0 sm:$0xff] }
 0x826   :  { %1214 = vrot.lane.b32.xlu0 %v1209_v46, %s12078_s25 }
 0x894   :  { %v1126_v10 = vpop.permute.xlu0 %1125 }
 0x895   :  { %v9993_v11 = vadd.f32 %v1126_v10, %v1122_v8 }
 0x897   :  { %9260 = vtanh.f32 %v9993_v11 }
 0x898   :  { %v1215_v22 = vpop.permute.xlu0 %1214 }
 0x8a1   :  { %v9261_v20 = vpop.eup %9260 }
 0x8a2   :  { %1131 = vrot.lane.b32.xlu0 %v9261_v20, %s12076_s5  ;;  %s12093_s5 = sld [smem:[#allocation6_spill]] }
 0x8a6   :  { %1224 = vrot.lane.b32.xlu0 %v7698_v21, %s12078_s25 }
 0x914   :  { %v1132_v23 = vpop.permute.xlu0 %1131 }
 0x915   :  { %v10014_v24 = vmul.f32 %v9259_v5, %v1132_v23 }
 0x917   :  { %v1217_v26 = vadd.f32 %v1215_v22, %v10014_v24 }
 0x918   :  { %v1225_v27 = vpop.permute.xlu0 %1224 }
 0x919   :  { %v1227_v29 = vadd.f32 %v1225_v27, %v1217_v26 }
 0x91b   :  { %1247 = vrot.lane.b32.xlu1 %v1227_v29, %s12078_s25 }
 0x98d   :  { %v1248_v30 = vpop.permute.xlu1 %1247 }
 0x98e   :  { %8331 = vmatmul.mubr.msk.f32.vlgmr.msra.gmra.mrb[8].mxu1 %vm79_vm3, %v1248_v30 }
 0x98f   :  { %1627 = vmatprep.mubr.f32.mxu1 %v9489_v3 }
 0xa61   :  { %v1317_v33 = vpop.f32.mrb[8].mxu1 }
 0xa62   :  { %v1318_v34 = vadd.f32 %v7708_v32, %v1317_v33  ;;  %v8332_v35 = vpop.f32.mrb[9].mxu1 }
 0xa64   :  { %v1328_v36 = vrot.slane %v1318_v34, %v9832_v2 }
 0xa66   :  { %v1329_v37 = vcombine.high %v1328_v36, %v1328_v36  ;;  %v1336_v38 = vrot.slane %v1328_v36, %v9832_v2 }
 0xa68   :  { %v1343_v41 = vrot.slane %v1329_v37, %v9832_v2  ;;  %v1347_v42 = vrot.slane %v1336_v38, %v9704_v48 }
 0xa6a   :  { %v1351_v50 = vrot.slane %v1343_v41, %v9704_v48  ;;  %v1354_v51 = vadd.f32 %v7699_v39, %v1347_v42  ;;  %v1355_v52 = vadd.f32 %v7700_v40, %v1347_v42 }
 0xa6c   :  { %v1356_v53 = vadd.f32 %v7701_v43, %v1351_v50  ;;  %v1357_v54 = vadd.f32 %v7702_v44, %v1351_v50  ;;  %9262 = vtanh.f32 %v1354_v51 }
 0xa6d   :  { %9264 = vtanh.f32 %v1355_v52 }
 0xa6e   :  { %9266 = vtanh.f32 %v1356_v53 }
 0xa6f   :  { %9268 = vtanh.f32 %v1357_v54 }
 0xa76   :  { %v9263_v56 = vpop.eup %9262 }
 0xa77   :  { %v9265_v46 = vpop.eup %9264  ;;  %v1370_v59 = vmul.f32 %v9263_v56, %v7711_v55 }
 0xa78   :  { %v9267_v60 = vpop.eup %9266  ;;  %v1371_v61 = vmul.f32 %v9265_v46, %v7711_v55 }
 0xa79   :  { %v1374_v63 = vsel %vm79_vm3, %v1370_v59, 0.0  ;;  %v1372_v0 = vmul.f32 %v9267_v60, %v7711_v55  ;;  %v9269_v1 = vpop.eup %9268 }
 0xa7a   :  { %v1377_v4 = vsel %vm79_vm3, %v1371_v61, 0.0  ;;  %1375 = vadd.xlane.f32.xlu0 %v1374_v63  ;;  %v1373_v9 = vmul.f32 %v9269_v1, %v7711_v55 }
 0xa7b   :  { %1378 = vadd.xlane.f32.xlu1 %v1377_v4  ;;  %v1380_v62 = vsel %vm79_vm3, %v1372_v0, 0.0 }
 0xa7c   :  { %v1383_v5 = vsel %vm79_vm3, %v1373_v9, 0.0  ;;  %v7721_v9 = vld [vmem:[%s12087_s29 + $0x98] sm:$0xff] }
 0xa7e   :  { %1381 = vadd.xlane.f32.xlu0 %v1380_v62  ;;  %v7719_v62 = vld [vmem:[%s12087_s29 + $0x88] sm:$0xff] }
 0xa82   :  { %1384 = vadd.xlane.f32.xlu0 %v1383_v5  ;;  %v7718_v5 = vld [vmem:[%s12087_s29 + $0x80] sm:$0xff] }
 0xa98   :  { %1394 = vperm.xlu0 %9229, %v7713_v6   ;;  %v10077_v6 = vpack.c.bf16 %v7721_v9, %v7719_v62  ;;  %v7742_v9 = vld [vmem:[%s12055_s8 + $0xa0] sm:$0xff] }
 0xa9a   :  { %8762 = vmatprep.subr.bf16.mxu1 %v10077_v6 }
 0xb07   :  { %v1376_v8 = vpop.xlane.xlu0 %1375 }
 0xb08   :  { %v1379_v13 = vpop.xlane.xlu1 %1378 }
 0xb0b   :  { %v1382_v10 = vpop.xlane.xlu0 %1381 }
 0xb0f   :  { %v1385_v7 = vpop.xlane.xlu0 %1384 }
 0xb17   :  { %v1395_v14 = vpop.permute.xlu0 %1394 }
 0xb18   :  { %v1397_v15 = vadd.f32 %v1395_v14, %v1376_v8  ;;  %v1398_v17 = vadd.f32 %v1395_v14, %v1379_v13  ;;  %v1399_v19 = vadd.f32 %v1395_v14, %v1382_v10  ;;  %v1400_v20 = vadd.f32 %v1395_v14, %v1385_v7  ;;  %v7720_v8 = vld [vmem:[%s12087_s29 + $0x90] sm:$0xff]  ;;  %v7723_v10 = vld [vmem:[%s12087_s29 + $0xa8] sm:$0xff]  ;;  %v7725_v7 = vld [vmem:[%s12087_s29 + $0xb8] sm:$0xff] }
 0xb19   :  { %v10088_v13 = vpack.c.bf16 %v7720_v8, %v7718_v5  ;;  %v10090_v14 = vpack.c.bf16 %v7725_v7, %v7723_v10  ;;  %v7743_v5 = vld [vmem:[%s12055_s8 + $0xa8] sm:$0xff]  ;;  %v7744_v10 = vld [vmem:[%s12055_s8 + $0xb0] sm:$0xff]  ;;  %v7745_v7 = vld [vmem:[%s12055_s8 + $0xb8] sm:$0xff] }
 0xb1a   :  { %v1408_v21 = vrot.slane %v1397_v15, %v9867_v45  ;;  %v1412_v22 = vrot.slane %v1398_v17, %v9870_v49  ;;  %v1417_v23 = vrot.slane %v1399_v19, %v9867_v45  ;;  %v1421_v26 = vrot.slane %v1400_v20, %v9870_v49 }
 0xb1b   :  { %8764 = vmatpush1.bf16.msra.mxu1 %v10088_v13  ;;  %v8788_v8 = vpack.c.bf16 %v7743_v5, %v7742_v9 }
 0xb1c   :  { %v1413_v27 = vsel %vm622_vm4, %v1412_v22, %v1408_v21  ;;  %v1422_v29 = vsel %vm622_vm4, %v1421_v26, %v1417_v23  ;;  %8766 = vmatprep.subr.bf16.mxu1 %v10090_v14 }
 0xb1d   :  { %v1423_v30 = vsel %vm633_vm5, %v1422_v29, %v1413_v27  ;;  %v7715_v29 = vld [vmem:[%s12088_s19 + $0x48] sm:$0xff] }
 0xb1e   :  { %v1425_v32 = vsel %vm636_vm6, %v1423_v30, -inf  ;;  %v7717_v30 = vld [vmem:[%s12088_s19 + $0x58] sm:$0xff] }
 0xb1f   :  { %1426 = vmax.xlane.f32.xlu1 %v1425_v32 }
 0xbac   :  { %v1427_v33 = vpop.xlane.xlu1 %1426 }
 0xbad   :  { %v1432_v34 = vrot.slane %v1427_v33, %v9704_v48  ;;  %v1436_v35 = vrot.slane %v1427_v33, %v9711_v58  ;;  %v8769_v33 = vpack.c.bf16 %v7717_v30, %v7715_v29 }
 0xbaf   :  { %v1439_v36 = vsub.f32 %v1397_v15, %v1432_v34  ;;  %v1440_v37 = vsub.f32 %v1398_v17, %v1432_v34  ;;  %v1441_v38 = vsub.f32 %v1399_v19, %v1436_v35  ;;  %v1442_v41 = vsub.f32 %v1400_v20, %v1436_v35  ;;  %v7722_v15 = vld [vmem:[%s12087_s29 + $0xa0] sm:$0xff]  ;;  %v7724_v17 = vld [vmem:[%s12087_s29 + $0xb0] sm:$0xff] }
 0xbb0   :  { %v10100_v19 = vpack.c.bf16 %v7724_v17, %v7722_v15  ;;  %v7714_v34 = vld [vmem:[%s12088_s19 + $0x40] sm:$0xff]  ;;  %v7716_v35 = vld [vmem:[%s12088_s19 + $0x50] sm:$0xff]  ;;  %v8791_v15 = vpack.c.bf16 %v7745_v7, %v7744_v10 }
 0xbb1   :  { %v1443_v39 = vmul.f32 1.442695, %v1439_v36  ;;  %v1447_v40 = vmul.f32 1.442695, %v1441_v38  ;;  %v1445_v42 = vmul.f32 1.442695, %v1440_v37  ;;  %v8771_v36 = vpack.c.bf16 %v7716_v35, %v7714_v34 }
 0xbb2   :  { %v1449_v43 = vmul.f32 1.442695, %v1442_v41  ;;  %8768 = vmatpush1.bf16.msra.mxu1 %v10100_v19  ;;  %v7728_v38 = vld [vmem:[%s12089_s6 + $0x88] sm:$0xff]  ;;  %v7727_v41 = vld [vmem:[%s12089_s6 + $0x80] sm:$0xff] }
 0xbb3   :  { %9270 = vpow2.f32 %v1443_v39  ;;  %8770 = vmatprep.subr.bf16.mxu1 %v8769_v33  ;;  %v7730_v39 = vld [vmem:[%s12089_s6 + $0x98] sm:$0xff]  ;;  %v1944_v33 = vld [vmem:[%s12087_s29] sm:$0xff] }
 0xbb4   :  { %9272 = vpow2.f32 %v1447_v40  ;;  %v8773_v40 = vpack.c.bf16 %v7730_v39, %v7728_v38  ;;  %v7748_v10 = vld [vmem:[%s12059_s9 + $0x2] ss:$0 sm:$0xff] }
 0xbb5   :  { %9274 = vpow2.f32 %v1445_v42  ;;  %1628 = vmatmul.mubr.f32.vlgmr.msra.gmra.mrb[10].mxu1 %v9489_v3  ;;  %v7729_v42 = vld [vmem:[%s12089_s6 + $0x90] sm:$0xff] }
 0xbb6   :  { %9276 = vpow2.f32 %v1449_v43  ;;  %1701 = vmatprep.mubr.f32.mxu1 %v9489_v3  ;;  %8772 = vmatpush1.bf16.msra.mxu1 %v8771_v36  ;;  %v8775_v43 = vpack.c.bf16 %v7729_v42, %v7727_v41  ;;  %v1951_v36 = vld [vmem:[%s12087_s29 + $0x38] sm:$0xff]  ;;  %v1948_v41 = vld [vmem:[%s12087_s29 + $0x20] sm:$0xff]  ;;  %v1950_v42 = vld [vmem:[%s12087_s29 + $0x30] sm:$0xff] }
 0xbb7   :  { %8774 = vmatprep.subr.bf16.mxu1 %v8773_v40 }
 0xbbd   :  { %v9271_v44 = vpop.eup %9270 }
 0xbbe   :  { %1456 = vperm.xlu1 %9228, %v9271_v44   ;;  %v9273_v50 = vpop.eup %9272 }
 0xbbf   :  { %1462 = vperm.xlu0 %9229, %v9273_v50   ;;  %v9275_v51 = vpop.eup %9274 }
 0xbc0   :  { %v9277_v52 = vpop.eup %9276 }
 0xbc2   :  { %1459 = vperm.xlu1 %9228, %v9275_v51  }
 0xbc6   :  { %1465 = vperm.xlu1 %9228, %v9277_v52  }
 0xc3d   :  { %v1457_v53 = vpop.permute.xlu1 %1456 }
 0xc3e   :  { %v1463_v55 = vpop.permute.xlu0 %1462  ;;  %v1470_v60 = vrot.slane %v1457_v53, %v9867_v45  ;;  %v7734_v53 = vld [vmem:[%s12089_s6 + $0xb8] sm:$0xff] }
 0xc3f   :  { %v1479_v59 = vrot.slane %v1463_v55, %v9867_v45  ;;  %v7733_v55 = vld [vmem:[%s12089_s6 + $0xb0] sm:$0xff] }
 0xc41   :  { %v1460_v54 = vpop.permute.xlu1 %1459 }
 0xc42   :  { %v1474_v56 = vrot.slane %v1460_v54, %v9870_v49 }
 0xc44   :  { %v1475_v63 = vsel %vm622_vm4, %v1474_v56, %v1470_v60  ;;  %v1945_v60 = vld [vmem:[%s12087_s29 + $0x8] sm:$0xff] }
 0xc45   :  { %v1466_v46 = vpop.permute.xlu1 %1465 }
 0xc46   :  { %v1483_v61 = vrot.slane %v1466_v46, %v9870_v49  ;;  %v7738_v46 = vld [vmem:[%s12055_s8 + $0x80] sm:$0xff] }
 0xc48   :  { %v1484_v0 = vsel %vm622_vm4, %v1483_v61, %v1479_v59  ;;  %v7739_v59 = vld [vmem:[%s12055_s8 + $0x88] sm:$0xff] }
 0xc49   :  { %v1485_v1 = vsel %vm633_vm5, %v1484_v0, %v1475_v63  ;;  %v8782_v61 = vpack.c.bf16 %v7739_v59, %v7738_v46  ;;  %v1947_v63 = vld [vmem:[%s12087_s29 + $0x18] sm:$0xff] }
 0xc4a   :  { %v1487_v4 = vsel %vm636_vm6, %v1485_v1, 0.0  ;;  %v8793_v0 = vpack.c.bf16 %v1947_v63, %v1945_v60  ;;  %v7740_v1 = vld [vmem:[%s12055_s8 + $0x90] sm:$0xff]  ;;  %v7736_v63 = vld [vmem:[%s12058_s7 + $0x4] sm:$0x3] }
 0xc4b   :  { %1488 = vadd.xlane.f32.xlu0 %v1487_v4  ;;  %8783 = vmatpush3.bf16.msra.mxu0 %v8782_v61  ;;  %v7741_v4 = vld [vmem:[%s12055_s8 + $0x98] sm:$0xff]  ;;  %v1805_v9 = vrot.slane %v7736_v63, %v9711_v58 }
 0xc4c   :  { %8784 = vmatprep.subr.bf16.mxu0 %v9490_v31  ;;  %v8785_v62 = vpack.c.bf16 %v7741_v4, %v7740_v1 }
 0xc4f   :  { %8786 = vmatpush3.bf16.msra.mxu0 %v8785_v62 }
 0xc50   :  { %8787 = vmatprep.subr.bf16.mxu0 %v9490_v31 }
 0xc53   :  { %8789 = vmatpush3.bf16.msra.mxu0 %v8788_v8 }
 0xc54   :  { %8790 = vmatprep.subr.bf16.mxu0 %v9490_v31 }
 0xc57   :  { %8792 = vmatpush3.bf16.msra.mxu0 %v8791_v15 }
 0xc58   :  { %8813 = vmatprep.subr.bf16.mxu0 %v9490_v31 }
 0xcd8   :  { %v1489_v20 = vpop.xlane.xlu0 %1488 }
 0xcd9   :  { %v1494_v21 = vrot.slane %v1489_v20, %v9704_v48  ;;  %v1498_v22 = vrot.slane %v1489_v20, %v9711_v58 }
 0xcdb   :  { %9278 = vrcp.f32 %v1494_v21 }
 0xcdc   :  { %9280 = vrcp.f32 %v1498_v22 }
 0xce5   :  { %v9279_v23 = vpop.eup %9278 }
 0xce6   :  { %v1502_v26 = vmul.f32 %v9279_v23, %v9271_v44  ;;  %v1503_v27 = vmul.f32 %v9279_v23, %v9275_v51  ;;  %v9281_v32 = vpop.eup %9280  ;;  %v7732_v51 = vld [vmem:[%s12089_s6 + $0xa8] sm:$0xff] }
 0xce7   :  { %v1505_v37 = vmul.f32 %v9281_v32, %v9273_v50  ;;  %v1506_v44 = vmul.f32 %v9281_v32, %v9277_v52  ;;  %v66_v50 = vld [vmem:[%s12056_s0 + $0x4] sm:$0x3]  ;;  %v8777_v54 = vpack.c.bf16 %v7734_v53, %v7732_v51  ;;  %v8799_v51 = vpack.c.bf16 %v1950_v42, %v1948_v41  ;;  %v2100_v41 = vld [vmem:[%s12089_s6 + $0x18] sm:$0xff]  ;;  %v7749_v42 = vld [vmem:[%s12056_s0 + $0x6] sm:$0x3] }
 0xce8   :  { %1509 = vperm.xlu1 %9228, %v1502_v26   ;;  %7726 = vmatmul.mubr.msk.f32.vlgmr.msra.gmra.mrb[10].mxu1 %vm154_vm0, %v66_v50  ;;  %v7731_v52 = vld [vmem:[%s12089_s6 + $0xa0] sm:$0xff] }
 0xce9   :  { %8776 = vmatpush1.bf16.msra.mxu1 %v8775_v43  ;;  %v8779_v56 = vpack.c.bf16 %v7733_v55, %v7731_v52  ;;  %1786 = vmatprep.mubr.f32.mxu1 %v9489_v3 }
 0xcea   :  { %8778 = vmatprep.subr.bf16.mxu1 %v8777_v54 }
 0xcec   :  { %1514 = vperm.xlu1 %9228, %v1503_v27  }
 0xced   :  { %8780 = vmatpush1.bf16.msra.mxu1 %v8779_v56 }
 0xcee   :  { %8794 = vmatprep.subr.bf16.mxu1 %v8793_v0  ;;  %v1801_v0 = vrot.slane %v7736_v63, %v9704_v48  ;;  %v2208_v63 = vld [vmem:[%s12055_s8 + $0x28] sm:$0xff] }
 0xcf0   :  { %1519 = vperm.xlu1 %9228, %v1505_v37  }
 0xcf4   :  { %1524 = vperm.xlu1 %9228, %v1506_v44  }
 0xcf8   :  { %1718 = vrot.lane.b32.xlu1 %v10014_v24, %s12078_s25 }
 0xd67   :  { %v1510_v17 = vpop.permute.xlu1 %1509 }
 0xd68   :  { %v1527_v20 = vmul.f32 %v1510_v17, %v9951_v16  ;;  %v1946_v16 = vld [vmem:[%s12087_s29 + $0x10] sm:$0xff] }
 0xd69   :  { %v8795_v37 = vpack.c.bf16 %v1946_v16, %v1944_v33  ;;  %v1941_v16 = vld [vmem:[%s12088_s19 + $0x8] sm:$0xff] }
 0xd6a   :  { %v1531_v23 = vsel %vm338_vm2, %v1527_v20, 0.0 }
 0xd6b   :  { %v1515_v21 = vpop.permute.xlu1 %1514 }
 0xd6c   :  { %v1528_v22 = vmul.f32 %v1515_v21, %v9956_v18  ;;  %v1949_v18 = vld [vmem:[%s12087_s29 + $0x28] sm:$0xff] }
 0xd6d   :  { %v8797_v40 = vpack.c.bf16 %v1951_v36, %v1949_v18  ;;  %v1942_v36 = vld [vmem:[%s12088_s19 + $0x10] sm:$0xff] }
 0xd6e   :  { %v1532_v26 = vsel %vm338_vm2, %v1528_v22, 0.0 }
 0xd6f   :  { %v1533_v27 = vadd.f32 %v1532_v26, %v1531_v23  ;;  %v1520_v29 = vpop.permute.xlu1 %1519 }
 0xd70   :  { %v1529_v32 = vmul.f32 %v1520_v29, %v9965_v25 }
 0xd71   :  { %v1534_v30 = vrot.slane %v1533_v27, 4 }
 0xd72   :  { %v1540_v38 = vsel %vm338_vm2, %v1529_v32, 0.0 }
 0xd73   :  { %v1535_v34 = vadd.f32 %v1534_v30, %v1533_v27  ;;  %v1525_v35 = vpop.permute.xlu1 %1524 }
 0xd74   :  { %v1530_v25 = vmul.f32 %v1525_v35, %v9970_v28  ;;  %v1940_v35 = vld [vmem:[%s12088_s19] sm:$0xff] }
 0xd75   :  { %v1536_v43 = vrot.slane %v1535_v34, 2 }
 0xd76   :  { %v1541_v39 = vsel %vm338_vm2, %v1530_v25, 0.0  ;;  %v2203_v25 = vld [vmem:[%s12055_s8] sm:$0xff] }
 0xd77   :  { %v1542_v44 = vadd.f32 %v1541_v39, %v1540_v38  ;;  %v10211_v50 = vpop.permute.xlu1 %1718  ;;  %v1537_v53 = vadd.f32 %v1536_v43, %v1535_v34  ;;  %v1943_v34 = vld [vmem:[%s12088_s19 + $0x18] sm:$0xff]  ;;  %v8803_v38 = vpack.c.bf16 %v1942_v36, %v1940_v35  ;;  %v2183_v36 = vld [vmem:[%s12058_s7] sm:$0x3] }
 0xd78   :  { %7735 = vmatmul.mubr.msk.f32.vlgmr.msra.gmra.mrb[10].mxu1 %vm79_vm3, %v10211_v50  ;;  %v8801_v18 = vpack.c.bf16 %v1943_v34, %v1941_v16 }
 0xd79   :  { %v1543_v28 = vrot.slane %v1542_v44, 4  ;;  %8796 = vmatpush1.bf16.msra.mxu1 %v8795_v37  ;;  %2016 = vmatprep.mubr.f32.mxu1 %v9489_v3  ;;  %v1538_v55 = vrot.slane %v1537_v53, 1  ;;  %v2204_v37 = vld [vmem:[%s12055_s8 + $0x8] sm:$0xff] }
 0xd7a   :  { %8798 = vmatprep.subr.bf16.mxu1 %v8797_v40  ;;  %v8814_v39 = vpack.c.bf16 %v2204_v37, %v2203_v25  ;;  %v2098_v40 = vld [vmem:[%s12089_s6 + $0x8] sm:$0xff]  ;;  %v2188_v25 = vrot.slane %v2183_v36, %v9704_v48  ;;  %v2192_v37 = vrot.slane %v2183_v36, %v9711_v58 }
 0xd7b   :  { %v1544_v54 = vadd.f32 %v1543_v28, %v1542_v44  ;;  %v1539_v59 = vadd.f32 %v1538_v55, %v1537_v53  ;;  %v8805_v43 = vpack.c.bf16 %v2100_v41, %v2098_v40  ;;  %v2097_v44 = vld [vmem:[%s12089_s6] sm:$0xff]  ;;  %v2099_v28 = vld [vmem:[%s12089_s6 + $0x10] sm:$0xff]  ;;  %v2104_v55 = vld [vmem:[%s12089_s6 + $0x38] sm:$0xff] }
 0xd7c   :  { %v8807_v53 = vpack.c.bf16 %v2099_v28, %v2097_v44 }
 0xd7d   :  { %v1545_v52 = vrot.slane %v1544_v54, 2  ;;  %8800 = vmatpush1.bf16.msra.mxu1 %v8799_v51  ;;  %v2205_v51 = vld [vmem:[%s12055_s8 + $0x10] sm:$0xff] }
 0xd7e   :  { %8802 = vmatprep.subr.bf16.mxu1 %v8801_v18 }
 0xd7f   :  { %v1546_v56 = vadd.f32 %v1545_v52, %v1544_v54  ;;  %v2206_v54 = vld [vmem:[%s12055_s8 + $0x18] sm:$0xff]  ;;  %v2102_v52 = vld [vmem:[%s12089_s6 + $0x28] sm:$0xff] }
 0xd80   :  { %7752 = vmatmul.mubr.msk.f32.vlgmr.msra.gmra.mrb[12].mxu1 %vm79_vm3, %v9811_v57 }
 0xd81   :  { %v1547_v46 = vrot.slane %v1546_v56, 1  ;;  %2090 = vmatprep.mubr.f32.mxu1 %v9489_v3  ;;  %8804 = vmatpush1.bf16.msra.mxu1 %v8803_v38 }
 0xd82   :  { %8806 = vmatprep.subr.bf16.mxu1 %v8805_v43 }
 0xd83   :  { %v1548_v60 = vadd.f32 %v1547_v46, %v1546_v56  ;;  %v8817_v56 = vpack.c.bf16 %v2206_v54, %v2205_v51  ;;  %v8809_v46 = vpack.c.bf16 %v2104_v55, %v2102_v52 }
 0xd85   :  { %v1827_v61 = vsel %vm633_vm5, %v1548_v60, %v1539_v59  ;;  %v2101_v59 = vld [vmem:[%s12089_s6 + $0x20] sm:$0xff]  ;;  %v2103_v60 = vld [vmem:[%s12089_s6 + $0x30] sm:$0xff] }
 0xd86   :  { %8350 = vmatmul.mubr.msk.f32.vlgmr.msra.gmra.mrb[6].mxu0 %vm338_vm2, %v1827_v61  ;;  %v2207_v61 = vld [vmem:[%s12055_s8 + $0x20] sm:$0xff] }
 0xd87   :  { %8368 = vmatprep.mubr.msk.f32.mxu0 %vm9491_vm1, %v9489_v3  ;;  %8815 = vmatpush3.bf16.msra.mxu0 %v8814_v39 }
 0xd88   :  { %8816 = vmatprep.subr.bf16.mxu0 %v9490_v31  ;;  %7753 = vmatmul.mubr.msk.f32.vlgmr.msra.gmra.mrb[12].mxu1 %vm154_vm0, %v7749_v42 }
 0xd89   :  { %8808 = vmatpush1.bf16.msra.mxu1 %v8807_v53  ;;  %2174 = vmatprep.mubr.f32.mxu1 %v9489_v3 }
 0xd8a   :  { %8810 = vmatprep.subr.bf16.mxu1 %v8809_v46 }
 0xd8b   :  { %8818 = vmatpush3.bf16.msra.mxu0 %v8817_v56 }
 0xd8c   :  { %8819 = vmatprep.subr.bf16.mxu0 %v9490_v31 }
 0xe4b   :  { %v1788_v1 = vpop.f32.mrb[10].mxu1 }
 0xe4c   :  { %v1808_v4 = vadd.f32 %v1801_v0, %v1788_v1  ;;  %v1790_v62 = vpop.f32.mrb[11].mxu1  ;;  %v7767_v0 = vld [vmem:[%s12087_s29 + $0x48] sm:$0xff]  ;;  %v7769_v1 = vld [vmem:[%s12087_s29 + $0x58] sm:$0xff] }
 0xe4d   :  { %v1809_v5 = vadd.f32 %v1805_v9, %v1790_v62  ;;  %v8820_v62 = vpack.c.bf16 %v2208_v63, %v2207_v61  ;;  %v8831_v9 = vpack.c.bf16 %v7769_v1, %v7767_v0  ;;  %v7765_v61 = vld [vmem:[%s12088_s19 + $0x38] sm:$0xff]  ;;  %v7762_v63 = vld [vmem:[%s12088_s19 + $0x20] sm:$0xff]  ;;  %v7777_v1 = vld [vmem:[%s12089_s6 + $0x48] sm:$0xff] }
 0xe4e   :  { %v7737_v20 = vmul.f32 -1.442695, %v1808_v4  ;;  %v8811_v4 = vpack.c.bf16 %v2103_v60, %v2101_v59  ;;  %v7763_v60 = vld [vmem:[%s12088_s19 + $0x28] sm:$0xff] }
 0xe4f   :  { %8821 = vmatpush3.bf16.msra.mxu0 %v8820_v62  ;;  %v8839_v0 = vpack.c.bf16 %v7765_v61, %v7763_v60  ;;  %v7750_v62 = vld [vmem:[%s12056_s0 + $0x8] sm:$0x3]  ;;  %v2310_v60 = vld [vmem:[%s12062_s3 + $0x10] sm:$0xff]  ;;  %v2311_v61 = vld [vmem:[%s12062_s3 + $0x18] sm:$0xff] }
 0xe50   :  { %9282 = vpow2.f32 %v7737_v20  ;;  %8812 = vmatpush1.bf16.msra.mxu1 %v8811_v4  ;;  %8822 = vmatprep.subr.bf16.mxu0 %v9490_v31 }
 0xe51   :  { %8832 = vmatprep.subr.bf16.mxu1 %v8831_v9  ;;  %v7779_v9 = vld [vmem:[%s12089_s6 + $0x58] sm:$0xff] }
 0xe59   :  { %v1896_v8 = vpop.f32.mrb[6].mxu0 }
 0xe5a   :  { %v1900_v7 = vadd.f32 %v1896_v8, %v1809_v5  ;;  %v8351_v15 = vpop.f32.mrb[7].mxu0  ;;  %v9283_v21 = vpop.eup %9282  ;;  %v2209_v8 = vld [vmem:[%s12055_s8 + $0x30] sm:$0xff] }
 0xe5b   :  { %v1813_v22 = vadd.f32 1.0, %v9283_v21  ;;  %v9474_v15 = vld [vmem:[%s12057_s2] sm:$0x3] }
 0xe5c   :  { %v1909_v17 = vadd.f32 %v7748_v10, %v1900_v7  ;;  %v2210_v10 = vld [vmem:[%s12055_s8 + $0x38] sm:$0xff]  ;;  %v7766_v21 = vld [vmem:[%s12087_s29 + $0x40] sm:$0xff] }
 0xe5d   :  { %9284 = vrcp.f32 %v1813_v22  ;;  %v8823_v7 = vpack.c.bf16 %v2210_v10, %v2209_v8  ;;  %v7768_v22 = vld [vmem:[%s12087_s29 + $0x50] sm:$0xff]  ;;  %v2313_v8 = vld [vmem:[%s12060_s10 + $0x8] sm:$0xff]  ;;  %v8843_v10 = vpack.c.bf16 %v7779_v9, %v7777_v1 }
 0xe5e   :  { %1911 = vrot.lane.b32.xlu1 %v1909_v17, %s12090_s23 }
 0xe5f   :  { %8824 = vmatpush3.bf16.msra.mxu0 %v8823_v7 }
 0xe60   :  { %8825 = vmatprep.subr.bf16.mxu0 %v9490_v31 }
 0xe62   :  { %8369 = vmatmul.mubr.msk.f32.vlgmr.msra.gmra.mrb[8].mxu0 %vm338_vm2, %v9474_v15  ;;  %v7776_v15 = vld [vmem:[%s12089_s6 + $0x40] sm:$0xff] }
 0xe63   :  { %8379 = vmatprep.mubr.msk.f32.mxu0 %vm9491_vm1, %v9489_v3 }
 0xe67   :  { %v10232_v27 = vpop.eup %9284 }
 0xe68   :  { %v1915_v30 = vmul.f32 0.0, %v10232_v27 }
 0xed0   :  { %v1912_v23 = vpop.permute.xlu1 %1911 }
 0xed1   :  { %v1914_v26 = vmax.f32 %v1909_v17, %v1912_v23  ;;  %v7771_v23 = vld [vmem:[%s12087_s29 + $0x68] sm:$0xff] }
 0xed3   :  { %v1916_v29 = vmul.f32 %v10232_v27, %v1914_v26  ;;  %v7773_v26 = vld [vmem:[%s12087_s29 + $0x78] sm:$0xff] }
 0xed5   :  { %1918 = vrot.lane.b32.xlu1 %v1916_v29, %s12091_s28  ;;  %v8835_v29 = vpack.c.bf16 %v7773_v26, %v7771_v23  ;;  %v7783_v23 = vld [vmem:[%s12089_s6 + $0x78] sm:$0xff]  ;;  %v2314_v26 = vld [vmem:[%s12060_s10 + $0x10] sm:$0xff] }
 0xf35   :  { %v2277_v35 = vpop.f32.mrb[8].mxu0 }
 0xf36   :  { %v8370_v18 = vpop.f32.mrb[9].mxu0 }
 0xf47   :  { %v1919_v32 = vpop.permute.xlu1 %1918 }
 0xf48   :  { %v10237_v33 = vadd.f32 %v1919_v32, %v1915_v30  ;;  %v7770_v30 = vld [vmem:[%s12087_s29 + $0x60] sm:$0xff]  ;;  %v7772_v32 = vld [vmem:[%s12087_s29 + $0x70] sm:$0xff] }
 0xf49   :  { %v8837_v34 = vpack.c.bf16 %v7772_v32, %v7770_v30  ;;  %v7780_v32 = vld [vmem:[%s12089_s6 + $0x60] sm:$0xff] }
 0xf4a   :  { %9286 = vtanh.f32 %v10237_v33 }
 0xf54   :  { %v9287_v5 = vpop.eup %9286 }
 0xf55   :  { %1924 = vrot.lane.b32.xlu0 %v9287_v5, %s12091_s28  ;;  %v2312_v5 = vld [vmem:[%s12060_s10] sm:$0xff] }
 0xf56   :  { %v8826_v7 = vpack.c.bf16 %v2313_v8, %v2312_v5 }
 0xf58   :  { %8827 = vmatpush3.bf16.msra.mxu0 %v8826_v7 }
 0xf59   :  { %8828 = vmatprep.subr.bf16.mxu0 %v9490_v31 }
 0xfc7   :  { %v1925_v17 = vpop.permute.xlu0 %1924 }
 0xfc8   :  { %v10323_v20 = vmul.f32 %v10232_v27, %v1925_v17  ;;  %v8833_v27 = vpack.c.bf16 %v7768_v22, %v7766_v21  ;;  %v7778_v17 = vld [vmem:[%s12089_s6 + $0x50] sm:$0xff]  ;;  %v7781_v21 = vld [vmem:[%s12089_s6 + $0x68] sm:$0xff] }
 0xfc9   :  { %v8845_v22 = vpack.c.bf16 %v7778_v17, %v7776_v15 }
 0xfca   :  { %2106 = vrot.lane.b32.xlu1 %v10323_v20, %s12092_s21 }
0x103c   :  { %v10345_v16 = vpop.permute.xlu1 %2106 }
0x103d   :  { %7754 = vmatmul.mubr.msk.f32.vlgmr.msra.gmra.mrb[12].mxu1 %vm79_vm3, %v10345_v16 }
0x103e   :  { %8834 = vmatpush1.bf16.msra.mxu1 %v8833_v27  ;;  %2700 = vmatprep.mubr.f32.mxu1 %v9489_v3  ;;  %v2315_v27 = vld [vmem:[%s12060_s10 + $0x18] sm:$0xff] }
0x103f   :  { %8836 = vmatprep.subr.bf16.mxu1 %v8835_v29  ;;  %v8847_v29 = vpack.c.bf16 %v7783_v23, %v7781_v21  ;;  %v8829_v30 = vpack.c.bf16 %v2315_v27, %v2314_v26 }
0x1041   :  { %8830 = vmatpush3.bf16.msra.mxu0 %v8829_v30 }
0x1042   :  { %8838 = vmatpush1.bf16.msra.mxu1 %v8837_v34  ;;  %v7782_v34 = vld [vmem:[%s12089_s6 + $0x70] sm:$0xff]  ;;  %8851 = vmatprep.subr.bf16.mxu0 %v9490_v31 }
0x1043   :  { %8840 = vmatprep.subr.bf16.mxu1 %v8839_v0 }
0x1045   :  { %7774 = vmatmul.mubr.msk.f32.vlgmr.msra.gmra.mrb[14].mxu1 %vm79_vm3, %v10211_v50  ;;  %v7757_v50 = vld [vmem:[%s12059_s9] ss:$0 sm:$0xff] }
0x1046   :  { %2774 = vmatprep.mubr.f32.mxu1 %v9489_v3 }
0x1110   :  { %v2176_v38 = vpop.f32.mrb[12].mxu1 }
0x1111   :  { %v2195_v39 = vadd.f32 %v2188_v25, %v2176_v38  ;;  %v2178_v40 = vpop.f32.mrb[13].mxu1  ;;  %v10438_v38 = vld [vmem:[%s12058_s7 + $0x2] sm:$0x3] }
0x1112   :  { %v2196_v41 = vadd.f32 %v2192_v37, %v2178_v40  ;;  %v7758_v40 = vld [vmem:[%s12061_s11] ss:$0 sm:$0xff] }
0x1113   :  { %v7755_v44 = vmul.f32 -1.442695, %v2195_v39  ;;  %v2867_v39 = vrot.slane %v10438_v38, %v9704_v48 }
0x1114   :  { %v2281_v42 = vadd.f32 %v2277_v35, %v2196_v41  ;;  %v8849_v35 = vpack.c.bf16 %v7782_v34, %v7780_v32 }
0x1115   :  { %9288 = vpow2.f32 %v7755_v44 }
0x1116   :  { %v2289_v43 = vadd.f32 %v7757_v50, %v2281_v42 }
0x1118   :  { %2291 = vrot.lane.b32.xlu1 %v2289_v43, %s12090_s23 }
0x111f   :  { %v9289_v28 = vpop.eup %9288 }
0x1120   :  { %v2200_v51 = vadd.f32 1.0, %v9289_v28 }
0x1122   :  { %9290 = vrcp.f32 %v2200_v51 }
0x112c   :  { %v9291_v52 = vpop.eup %9290 }
0x112d   :  { %v2295_v56 = vmul.f32 %v9291_v52, %v9723_v12  ;;  %v7764_v12 = vld [vmem:[%s12088_s19 + $0x30] sm:$0xff] }
0x112e   :  { %v8841_v4 = vpack.c.bf16 %v7764_v12, %v7762_v63 }
0x1130   :  { %8842 = vmatpush1.bf16.msra.mxu1 %v8841_v4 }
0x1131   :  { %8844 = vmatprep.subr.bf16.mxu1 %v8843_v10 }
0x1133   :  { %7775 = vmatmul.mubr.msk.f32.vlgmr.msra.gmra.mrb[14].mxu1 %vm154_vm0, %v7750_v62  ;;  %v7760_v62 = vld [vmem:[%s12063_s12] ss:$0 sm:$0xff] }
0x1134   :  { %8846 = vmatpush1.bf16.msra.mxu1 %v8845_v22  ;;  %2853 = vmatprep.mubr.f32.mxu1 %v9489_v3 }
0x1135   :  { %8848 = vmatprep.subr.bf16.mxu1 %v8847_v29  ;;  %v7761_v29 = vld [vmem:[%s12064_s13] ss:$0 sm:$0xff] }
0x1138   :  { %8850 = vmatpush1.bf16.msra.mxu1 %v8849_v35 }
0x1139   :  { %8863 = vmatprep.subr.bf16.mxu1 %v9490_v31 }
0x118a   :  { %v2292_v53 = vpop.permute.xlu1 %2291 }
0x118b   :  { %v2294_v54 = vmax.f32 %v2289_v43, %v2292_v53 }
0x118d   :  { %v2296_v55 = vmul.f32 %v9291_v52, %v2294_v54 }
0x118f   :  { %2298 = vrot.lane.b32.xlu1 %v2296_v55, %s12091_s28  ;;  %v2309_v55 = vld [vmem:[%s12062_s3 + $0x8] sm:$0xff] }
0x1201   :  { %v2299_v46 = vpop.permute.xlu1 %2298 }
0x1202   :  { %v10364_v59 = vadd.f32 %v2299_v46, %v2295_v56 }
0x1204   :  { %9292 = vtanh.f32 %v10364_v59 }
0x120e   :  { %v9293_v18 = vpop.eup %9292 }
0x120f   :  { %2304 = vrot.lane.b32.xlu1 %v9293_v18, %s12091_s28 }
0x1281   :  { %v2305_v36 = vpop.permute.xlu1 %2304 }
0x1282   :  { %v2307_v25 = vmul.f32 %v9291_v52, %v2305_v36  ;;  %v2308_v52 = vld [vmem:[%s12062_s3] sm:$0xff] }
0x1284   :  { %2324 = vrot.lane.b32.xlu1 %v2307_v25, %s12092_s21 }
0x12f6   :  { %v10425_v37 = vpop.permute.xlu1 %2324 }
0x12f7   :  { %8380 = vmatmul.mubr.msk.f32.vlgmr.msra.gmra.mrb[10].mxu0 %vm79_vm3, %v10425_v37  ;;  %7784 = vmatmul.mubr.msk.f32.vlgmr.msra.gmra.mrb[14].mxu1 %vm79_vm3, %v10425_v37 }
0x12f8   :  { %8398 = vmatprep.mubr.msk.f32.mxu0 %vm9491_vm1, %v9489_v3  ;;  %8417 = vmatprep.mubr.msk.f32.mxu1 %vm9491_vm1, %v9489_v3 }
0x13ca   :  { %v2394_v41 = vpop.f32.mrb[10].mxu0  ;;  %v2855_v50 = vpop.f32.mrb[14].mxu1 }
0x13cb   :  { %v2395_v42 = vadd.f32 %v7758_v40, %v2394_v41  ;;  %v10445_v43 = vadd.f32 %v2867_v39, %v2855_v50  ;;  %v8381_v44 = vpop.f32.mrb[11].mxu0  ;;  %v10447_v28 = vpop.f32.mrb[15].mxu1 }
0x13cd   :  { %v2405_v51 = vrot.slane %v2395_v42, %v9832_v2 }
0x13cf   :  { %v2406_v53 = vcombine.high %v2405_v51, %v2405_v51  ;;  %v2413_v54 = vrot.slane %v2405_v51, %v9832_v2 }
0x13d1   :  { %v2420_v56 = vrot.slane %v2406_v53, %v9832_v2  ;;  %v2424_v46 = vrot.slane %v2413_v54, %v9704_v48 }
0x13d3   :  { %v2428_v63 = vrot.slane %v2420_v56, %v9704_v48  ;;  %v2431_v0 = vadd.f32 %v2424_v46, %v2308_v52  ;;  %v2432_v12 = vadd.f32 %v2424_v46, %v2309_v55 }
0x13d5   :  { %v2433_v1 = vadd.f32 %v2428_v63, %v2310_v60  ;;  %v2434_v4 = vadd.f32 %v2428_v63, %v2311_v61  ;;  %9294 = vtanh.f32 %v2431_v0 }
0x13d6   :  { %9296 = vtanh.f32 %v2432_v12 }
0x13d7   :  { %9298 = vtanh.f32 %v2433_v1 }
0x13d8   :  { %9300 = vtanh.f32 %v2434_v4 }
0x13df   :  { %v9295_v9 = vpop.eup %9294 }
0x13e0   :  { %v9297_v5 = vpop.eup %9296  ;;  %v2446_v8 = vmul.f32 %v9295_v9, %v7760_v62 }
0x13e1   :  { %v9299_v10 = vpop.eup %9298  ;;  %v2447_v7 = vmul.f32 %v9297_v5, %v7760_v62 }
0x13e2   :  { %v9301_v15 = vpop.eup %9300  ;;  %v2450_v17 = vsel %vm79_vm3, %v2446_v8, 0.0  ;;  %v2448_v23 = vmul.f32 %v9299_v10, %v7760_v62 }
0x13e3   :  { %v2453_v21 = vsel %vm79_vm3, %v2447_v7, 0.0  ;;  %2451 = vadd.xlane.f32.xlu1 %v2450_v17  ;;  %v2449_v22 = vmul.f32 %v9301_v15, %v7760_v62 }
0x13e4   :  { %2454 = vadd.xlane.f32.xlu0 %v2453_v21  ;;  %v2456_v27 = vsel %vm79_vm3, %v2448_v23, 0.0 }
0x13e5   :  { %v2459_v26 = vsel %vm79_vm3, %v2449_v22, 0.0 }
0x13e7   :  { %2460 = vadd.xlane.f32.xlu1 %v2459_v26 }
0x13e8   :  { %2457 = vadd.xlane.f32.xlu0 %v2456_v27 }
0x13fe   :  { %2469 = vperm.xlu0 %9229, %v7761_v29  }
0x1470   :  { %v2452_v32 = vpop.xlane.xlu1 %2451 }
0x1471   :  { %v2455_v30 = vpop.xlane.xlu0 %2454 }
0x1474   :  { %v2461_v35 = vpop.xlane.xlu1 %2460 }
0x1475   :  { %v2458_v34 = vpop.xlane.xlu0 %2457 }
0x147d   :  { %v2470_v18 = vpop.permute.xlu0 %2469 }
0x147e   :  { %v2472_v36 = vadd.f32 %v2470_v18, %v2452_v32  ;;  %v2473_v25 = vadd.f32 %v2470_v18, %v2455_v30  ;;  %v2474_v39 = vadd.f32 %v2470_v18, %v2458_v34  ;;  %v2475_v40 = vadd.f32 %v2470_v18, %v2461_v35 }
0x1480   :  { %v2483_v41 = vrot.slane %v2472_v36, %v9867_v45  ;;  %v2487_v50 = vrot.slane %v2473_v25, %v9870_v49  ;;  %v2492_v42 = vrot.slane %v2474_v39, %v9867_v45  ;;  %v2496_v44 = vrot.slane %v2475_v40, %v9870_v49 }
0x1482   :  { %v2488_v51 = vsel %vm622_vm4, %v2487_v50, %v2483_v41  ;;  %v2497_v53 = vsel %vm622_vm4, %v2496_v44, %v2492_v42  ;;  %v7787_v44 = vld [vmem:[%s12055_s8 + $0x40] sm:$0xff] }
0x1483   :  { %v2498_v54 = vsel %vm633_vm5, %v2497_v53, %v2488_v51  ;;  %v7788_v51 = vld [vmem:[%s12055_s8 + $0x48] sm:$0xff]  ;;  %v2992_v53 = vld [vmem:[%s12065_s14] sm:$0xff] }
0x1484   :  { %v2500_v52 = vsel %vm636_vm6, %v2498_v54, -inf  ;;  %v8852_v54 = vpack.c.bf16 %v7788_v51, %v7787_v44 }
0x1485   :  { %2501 = vmax.xlane.f32.xlu1 %v2500_v52  ;;  %v2993_v52 = vld [vmem:[%s12065_s14 + $0x8] sm:$0xff] }
0x1486   :  { %8853 = vmatpush3.bf16.msra.mxu0 %v8852_v54 }
0x1487   :  { %8854 = vmatprep.subr.bf16.mxu0 %v9490_v31 }
0x1512   :  { %v2502_v55 = vpop.xlane.xlu1 %2501 }
0x1513   :  { %v2507_v56 = vrot.slane %v2502_v55, %v9704_v48  ;;  %v2511_v46 = vrot.slane %v2502_v55, %v9711_v58  ;;  %v8864_v55 = vpack.c.bf16 %v2993_v52, %v2992_v53 }
0x1515   :  { %v2514_v60 = vsub.f32 %v2472_v36, %v2507_v56  ;;  %v2515_v61 = vsub.f32 %v2473_v25, %v2507_v56  ;;  %v2516_v63 = vsub.f32 %v2474_v39, %v2511_v46  ;;  %v2517_v0 = vsub.f32 %v2475_v40, %v2511_v46  ;;  %8865 = vmatpush3.bf16.msra.mxu1 %v8864_v55  ;;  %v7789_v56 = vld [vmem:[%s12055_s8 + $0x50] sm:$0xff]  ;;  %v7790_v46 = vld [vmem:[%s12055_s8 + $0x58] sm:$0xff] }
0x1516   :  { %8866 = vmatprep.subr.bf16.mxu1 %v9490_v31 }
0x1517   :  { %v2518_v12 = vmul.f32 1.442695, %v2514_v60  ;;  %v2520_v1 = vmul.f32 1.442695, %v2515_v61  ;;  %v2522_v4 = vmul.f32 1.442695, %v2516_v63  ;;  %v8855_v61 = vpack.c.bf16 %v7790_v46, %v7789_v56 }
0x1518   :  { %v2524_v62 = vmul.f32 1.442695, %v2517_v0  ;;  %v2994_v60 = vld [vmem:[%s12065_s14 + $0x10] sm:$0xff]  ;;  %v2995_v63 = vld [vmem:[%s12065_s14 + $0x18] sm:$0xff] }
0x1519   :  { %9302 = vpow2.f32 %v2518_v12  ;;  %v8867_v0 = vpack.c.bf16 %v2995_v63, %v2994_v60  ;;  %8856 = vmatpush3.bf16.msra.mxu0 %v8855_v61  ;;  %v7791_v12 = vld [vmem:[%s12055_s8 + $0x60] sm:$0xff] }
0x151a   :  { %9304 = vpow2.f32 %v2520_v1  ;;  %8857 = vmatprep.subr.bf16.mxu0 %v9490_v31  ;;  %v7792_v1 = vld [vmem:[%s12055_s8 + $0x68] sm:$0xff] }
0x151b   :  { %9306 = vpow2.f32 %v2522_v4  ;;  %8868 = vmatpush3.bf16.msra.mxu1 %v8867_v0  ;;  %v2996_v4 = vld [vmem:[%s12065_s14 + $0x20] sm:$0xff] }
0x151c   :  { %9308 = vpow2.f32 %v2524_v62  ;;  %8869 = vmatprep.subr.bf16.mxu1 %v9490_v31  ;;  %v8858_v62 = vpack.c.bf16 %v7792_v1, %v7791_v12 }
0x151e   :  { %8859 = vmatpush3.bf16.msra.mxu0 %v8858_v62 }
0x151f   :  { %8860 = vmatprep.subr.bf16.mxu0 %v9490_v31 }
0x1523   :  { %v9303_v9 = vpop.eup %9302 }
0x1524   :  { %v9305_v5 = vpop.eup %9304  ;;  %2531 = vperm.xlu1 %9228, %v9303_v9  }
0x1525   :  { %2534 = vperm.xlu0 %9229, %v9305_v5   ;;  %v9307_v8 = vpop.eup %9306 }
0x1526   :  { %v9309_v10 = vpop.eup %9308 }
0x1528   :  { %2537 = vperm.xlu1 %9228, %v9307_v8  }
0x1529   :  { %2540 = vperm.xlu0 %9229, %v9309_v10  }
0x15a3   :  { %v2532_v7 = vpop.permute.xlu1 %2531 }
0x15a4   :  { %v2535_v15 = vpop.permute.xlu0 %2534  ;;  %v2545_v21 = vrot.slane %v2532_v7, %v9867_v45  ;;  %v2998_v7 = vld [vmem:[%s12065_s14 + $0x30] sm:$0xff] }
0x15a5   :  { %v2549_v17 = vrot.slane %v2535_v15, %v9870_v49 }
0x15a7   :  { %v2538_v22 = vpop.permute.xlu1 %2537  ;;  %v2550_v29 = vsel %vm622_vm4, %v2549_v17, %v2545_v21  ;;  %v2999_v17 = vld [vmem:[%s12065_s14 + $0x38] sm:$0xff] }
0x15a8   :  { %v2541_v23 = vpop.permute.xlu0 %2540  ;;  %v2554_v26 = vrot.slane %v2538_v22, %v9867_v45  ;;  %v8873_v21 = vpack.c.bf16 %v2999_v17, %v2998_v7 }
0x15a9   :  { %v2558_v27 = vrot.slane %v2541_v23, %v9870_v49  ;;  %v10555_v23 = vld [vmem:[%s12066_s1] sm:$0xff] }
0x15ab   :  { %v2559_v30 = vsel %vm622_vm4, %v2558_v27, %v2554_v26 }
0x15ac   :  { %v2560_v32 = vsel %vm633_vm5, %v2559_v30, %v2550_v29  ;;  %v10561_v29 = vld [vmem:[%s12066_s1 + $0x8] sm:$0xff] }
0x15ad   :  { %v2562_v34 = vsel %vm636_vm6, %v2560_v32, 0.0 }
0x15ae   :  { %2563 = vadd.xlane.f32.xlu1 %v2562_v34 }
0x163b   :  { %v2564_v35 = vpop.xlane.xlu1 %2563 }
0x163c   :  { %v2569_v18 = vrot.slane %v2564_v35, %v9704_v48  ;;  %v2573_v36 = vrot.slane %v2564_v35, %v9711_v58 }
0x163e   :  { %9310 = vrcp.f32 %v2569_v18 }
0x163f   :  { %9312 = vrcp.f32 %v2573_v36 }
0x1648   :  { %v9311_v25 = vpop.eup %9310 }
0x1649   :  { %v2577_v39 = vmul.f32 %v9311_v25, %v9303_v9  ;;  %v2578_v40 = vmul.f32 %v9311_v25, %v9305_v5  ;;  %v9313_v41 = vpop.eup %9312  ;;  %v2997_v9 = vld [vmem:[%s12065_s14 + $0x28] sm:$0xff]  ;;  %v10569_v25 = vld [vmem:[%s12066_s1 + $0x10] sm:$0xff] }
0x164a   :  { %v2580_v50 = vmul.f32 %v9313_v41, %v9307_v8  ;;  %v2581_v42 = vmul.f32 %v9313_v41, %v9309_v10  ;;  %v8870_v5 = vpack.c.bf16 %v2997_v9, %v2996_v4  ;;  %v7793_v8 = vld [vmem:[%s12055_s8 + $0x70] sm:$0xff]  ;;  %v7794_v10 = vld [vmem:[%s12055_s8 + $0x78] sm:$0xff]  ;;  %v2871_v4 = vrot.slane %v10438_v38, %v9711_v58 }
0x164b   :  { %2584 = vperm.xlu0 %9229, %v2577_v39   ;;  %v8861_v15 = vpack.c.bf16 %v7794_v10, %v7793_v8 }
0x164c   :  { %8871 = vmatpush3.bf16.msra.mxu1 %v8870_v5  ;;  %v2875_v62 = vadd.f32 %v2871_v4, %v10447_v28  ;;  %v7797_v5 = vld [vmem:[%s12059_s9 + $0x1] ss:$0 sm:$0xff]  ;;  %v7803_v4 = vld [vmem:[%s12062_s3 + $0x38] sm:$0xff] }
0x164d   :  { %8872 = vmatprep.subr.bf16.mxu1 %v9490_v31  ;;  %8862 = vmatpush3.bf16.msra.mxu0 %v8861_v15 }
0x164e   :  { %8875 = vmatprep.subr.bf16.mxu0 %v9490_v31 }
0x164f   :  { %2589 = vperm.xlu0 %9229, %v2578_v40  }
0x1650   :  { %8874 = vmatpush3.bf16.msra.mxu1 %v8873_v21  ;;  %v7786_v21 = vmul.f32 -1.442695, %v10445_v43  ;;  %v7804_v43 = vld [vmem:[%s12060_s10 + $0x20] sm:$0xff] }
0x1651   :  { %8901 = vmatprep.subr.bf16.mxu1 %v9490_v31 }
0x1652   :  { %9314 = vpow2.f32 %v7786_v21 }
0x1653   :  { %2594 = vperm.xlu0 %9229, %v2580_v50   ;;  %v10575_v50 = vld [vmem:[%s12066_s1 + $0x18] sm:$0xff] }
0x1657   :  { %2599 = vperm.xlu0 %9229, %v2581_v42  }
0x16ca   :  { %v2585_v22 = vpop.permute.xlu0 %2584 }
0x16cb   :  { %v2602_v26 = vmul.f32 %v10555_v23, %v2585_v22  ;;  %v9315_v22 = vpop.eup %9314 }
0x16cd   :  { %v2606_v32 = vsel %vm338_vm2, %v2602_v26, 0.0  ;;  %v2879_v26 = vadd.f32 1.0, %v9315_v22 }
0x16ce   :  { %v2590_v27 = vpop.permute.xlu0 %2589 }
0x16cf   :  { %v2603_v30 = vmul.f32 %v10561_v29, %v2590_v27  ;;  %9316 = vrcp.f32 %v2879_v26 }
0x16d1   :  { %v2607_v34 = vsel %vm338_vm2, %v2603_v30, 0.0 }
0x16d2   :  { %v2608_v35 = vadd.f32 %v2607_v34, %v2606_v32  ;;  %v2595_v18 = vpop.permute.xlu0 %2594 }
0x16d3   :  { %v2604_v39 = vmul.f32 %v10569_v25, %v2595_v18  ;;  %v7805_v18 = vld [vmem:[%s12060_s10 + $0x28] sm:$0xff] }
0x16d4   :  { %v2609_v36 = vrot.slane %v2608_v35, 4 }
0x16d5   :  { %v2615_v44 = vsel %vm338_vm2, %v2604_v39, 0.0  ;;  %v8876_v39 = vpack.c.bf16 %v7805_v18, %v7804_v43  ;;  %v7814_v18 = vld [vmem:[%s12064_s13 + $0x1] ss:$0 sm:$0xff] }
0x16d6   :  { %v2610_v40 = vadd.f32 %v2609_v36, %v2608_v35  ;;  %v2600_v41 = vpop.permute.xlu0 %2599  ;;  %v7806_v36 = vld [vmem:[%s12060_s10 + $0x30] sm:$0xff] }
0x16d7   :  { %v2605_v42 = vmul.f32 %v10575_v50, %v2600_v41 }
0x16d8   :  { %v2611_v53 = vrot.slane %v2610_v40, 2 }
0x16d9   :  { %v2616_v51 = vsel %vm338_vm2, %v2605_v42, 0.0  ;;  %v9317_v27 = vpop.eup %9316  ;;  %v7799_v42 = vld [vmem:[%s12067_s15] ss:$0 sm:$0xff] }
0x16da   :  { %v2617_v54 = vadd.f32 %v2616_v51, %v2615_v44  ;;  %v2612_v55 = vadd.f32 %v2611_v53, %v2610_v40  ;;  %v2979_v32 = vmul.f32 %v9317_v27, %v9993_v11  ;;  %v7807_v11 = vld [vmem:[%s12060_s10 + $0x38] sm:$0xff] }
0x16db   :  { %v8879_v40 = vpack.c.bf16 %v7807_v11, %v7806_v36 }
0x16dc   :  { %v2618_v52 = vrot.slane %v2617_v54, 4  ;;  %v2613_v60 = vrot.slane %v2612_v55, 1 }
0x16de   :  { %v2619_v56 = vadd.f32 %v2618_v52, %v2617_v54  ;;  %v2614_v0 = vadd.f32 %v2613_v60, %v2612_v55 }
0x16e0   :  { %v2620_v46 = vrot.slane %v2619_v56, 2 }
0x16e2   :  { %v2621_v61 = vadd.f32 %v2620_v46, %v2619_v56 }
0x16e4   :  { %v2622_v63 = vrot.slane %v2621_v61, 1 }
0x16e6   :  { %v2623_v12 = vadd.f32 %v2622_v63, %v2621_v61 }
0x16e8   :  { %v2892_v1 = vsel %vm633_vm5, %v2623_v12, %v2614_v0 }
0x16e9   :  { %8399 = vmatmul.mubr.msk.f32.vlgmr.msra.gmra.mrb[12].mxu0 %vm338_vm2, %v2892_v1  ;;  %8418 = vmatmul.mubr.msk.f32.vlgmr.msra.gmra.mrb[16].mxu1 %vm338_vm2, %v2892_v1  ;;  %v7802_v1 = vld [vmem:[%s12062_s3 + $0x30] sm:$0xff] }
0x16ea   :  { %8428 = vmatprep.mubr.msk.f32.mxu0 %vm9491_vm1, %v9489_v3  ;;  %8447 = vmatprep.mubr.msk.f32.mxu1 %vm9491_vm1, %v9489_v3 }
0x16eb   :  { %8877 = vmatpush3.bf16.msra.mxu0 %v8876_v39 }
0x16ec   :  { %8878 = vmatprep.subr.bf16.mxu0 %v9490_v31 }
0x16ef   :  { %8880 = vmatpush3.bf16.msra.mxu0 %v8879_v40 }
0x16f0   :  { %8882 = vmatprep.subr.bf16.mxu0 %v10077_v6  ;;  %v7809_v6 = vld [vmem:[%s12061_s11 + $0x1] ss:$0 sm:$0xff] }
0x17bc   :  { %v2961_v9 = vpop.f32.mrb[12].mxu0  ;;  %v3066_v8 = vpop.f32.mrb[16].mxu1 }
0x17bd   :  { %v2965_v10 = vadd.f32 %v2961_v9, %v2875_v62  ;;  %v8400_v7 = vpop.f32.mrb[13].mxu0  ;;  %v8419_v15 = vpop.f32.mrb[17].mxu1 }
0x17be   :  { %v7812_v7 = vld [vmem:[%s12063_s12 + $0x1] ss:$0 sm:$0xff] }
0x17bf   :  { %v2973_v17 = vadd.f32 %v7797_v5, %v2965_v10 }
0x17c1   :  { %2975 = vrot.lane.b32.xlu0 %v2973_v17, %s12090_s23 }
0x1833   :  { %v2976_v38 = vpop.permute.xlu0 %2975 }
0x1834   :  { %v2978_v28 = vmax.f32 %v2973_v17, %v2976_v38 }
0x1836   :  { %v2980_v30 = vmul.f32 %v9317_v27, %v2978_v28 }
0x1838   :  { %2982 = vrot.lane.b32.xlu0 %v2980_v30, %s12091_s28 }
0x183c   :  { %3071 = vrot.lane.b32.xlu0 %v3066_v8, %s12092_s21 }
0x18aa   :  { %v2983_v34 = vpop.permute.xlu0 %2982 }
0x18ab   :  { %v10598_v35 = vadd.f32 %v2983_v34, %v2979_v32 }
0x18ad   :  { %9318 = vtanh.f32 %v10598_v35 }
0x18ae   :  { %v3072_v44 = vpop.permute.xlu0 %3071 }
0x18b7   :  { %v9319_v41 = vpop.eup %9318 }
0x18b8   :  { %2988 = vrot.lane.b32.xlu0 %v9319_v41, %s12091_s28 }
0x18bc   :  { %3081 = vrot.lane.b32.xlu0 %v7799_v42, %s12092_s21 }
0x192a   :  { %v2989_v51 = vpop.permute.xlu0 %2988 }
0x192b   :  { %v10620_v53 = vmul.f32 %v9317_v27, %v2989_v51 }
0x192d   :  { %v3074_v54 = vadd.f32 %v3072_v44, %v10620_v53 }
0x192e   :  { %v3082_v52 = vpop.permute.xlu0 %3081 }
0x192f   :  { %v3084_v55 = vadd.f32 %v3082_v52, %v3074_v54 }
0x1931   :  { %3101 = vrot.lane.b32.xlu1 %v3084_v55, %s12092_s21 }
0x19a3   :  { %v3102_v56 = vpop.permute.xlu1 %3101 }
0x19a4   :  { %8429 = vmatmul.mubr.msk.f32.vlgmr.msra.gmra.mrb[14].mxu0 %vm79_vm3, %v3102_v56 }
0x19a5   :  { %8884 = vmatpush1.bf16.msra.mxu0 %v10088_v13  ;;  %3477 = vmatprep.mubr.f32.mxu0 %v9489_v3 }
0x19a6   :  { %8886 = vmatprep.subr.bf16.mxu0 %v10090_v14  ;;  %v7800_v14 = vld [vmem:[%s12062_s3 + $0x20] sm:$0xff] }
0x19a9   :  { %8888 = vmatpush1.bf16.msra.mxu0 %v10100_v19  ;;  %v7801_v19 = vld [vmem:[%s12062_s3 + $0x28] sm:$0xff] }
0x19ac   :  { %7827 = vmatmul.mubr.msk.f32.vlgmr.msra.gmra.mrb[16].mxu0 %vm79_vm3, %v10345_v16 }
0x19ad   :  { %3551 = vmatprep.mubr.f32.mxu0 %v9489_v3 }
0x1a77   :  { %v3171_v46 = vpop.f32.mrb[14].mxu0 }
0x1a78   :  { %v3172_v60 = vadd.f32 %v7809_v6, %v3171_v46  ;;  %v8430_v61 = vpop.f32.mrb[15].mxu0 }
0x1a7a   :  { %v3182_v13 = vrot.slane %v3172_v60, %v9832_v2 }
0x1a7c   :  { %v3183_v63 = vcombine.high %v3182_v13, %v3182_v13  ;;  %v3190_v0 = vrot.slane %v3182_v13, %v9832_v2 }
0x1a7e   :  { %v3197_v16 = vrot.slane %v3183_v63, %v9832_v2  ;;  %v3201_v12 = vrot.slane %v3190_v0, %v9704_v48 }
0x1a80   :  { %v3205_v62 = vrot.slane %v3197_v16, %v9704_v48  ;;  %v3208_v9 = vadd.f32 %v7800_v14, %v3201_v12  ;;  %v3209_v5 = vadd.f32 %v7801_v19, %v3201_v12 }
0x1a82   :  { %v3210_v8 = vadd.f32 %v7802_v1, %v3205_v62  ;;  %v3211_v10 = vadd.f32 %v7803_v4, %v3205_v62  ;;  %9320 = vtanh.f32 %v3208_v9 }
0x1a83   :  { %9322 = vtanh.f32 %v3209_v5 }
0x1a84   :  { %9324 = vtanh.f32 %v3210_v8 }
0x1a85   :  { %9326 = vtanh.f32 %v3211_v10 }
0x1a8c   :  { %v9321_v15 = vpop.eup %9320 }
0x1a8d   :  { %v9323_v17 = vpop.eup %9322  ;;  %v3223_v21 = vmul.f32 %v9321_v15, %v7812_v7 }
0x1a8e   :  { %v9325_v22 = vpop.eup %9324  ;;  %v3224_v26 = vmul.f32 %v9323_v17, %v7812_v7 }
0x1a8f   :  { %v3227_v38 = vsel %vm79_vm3, %v3223_v21, 0.0  ;;  %v3225_v28 = vmul.f32 %v9325_v22, %v7812_v7  ;;  %v9327_v27 = vpop.eup %9326 }
0x1a90   :  { %v3230_v30 = vsel %vm79_vm3, %v3224_v26, 0.0  ;;  %3228 = vadd.xlane.f32.xlu0 %v3227_v38  ;;  %v3226_v34 = vmul.f32 %v9327_v27, %v7812_v7 }
0x1a91   :  { %3231 = vadd.xlane.f32.xlu1 %v3230_v30  ;;  %v3233_v32 = vsel %vm79_vm3, %v3225_v28, 0.0 }
0x1a92   :  { %v3236_v43 = vsel %vm79_vm3, %v3226_v34, 0.0 }
0x1a94   :  { %3234 = vadd.xlane.f32.xlu0 %v3233_v32 }
0x1a98   :  { %3237 = vadd.xlane.f32.xlu0 %v3236_v43 }
0x1aae   :  { %3246 = vperm.xlu0 %9229, %v7814_v18  }
0x1b1d   :  { %v3229_v36 = vpop.xlane.xlu0 %3228 }
0x1b1e   :  { %v3232_v40 = vpop.xlane.xlu1 %3231 }
0x1b21   :  { %v3235_v39 = vpop.xlane.xlu0 %3234 }
0x1b25   :  { %v3238_v11 = vpop.xlane.xlu0 %3237 }
0x1b2d   :  { %v3247_v41 = vpop.permute.xlu0 %3246 }
0x1b2e   :  { %v3249_v42 = vadd.f32 %v3247_v41, %v3229_v36  ;;  %v3250_v44 = vadd.f32 %v3247_v41, %v3232_v40  ;;  %v3251_v51 = vadd.f32 %v3247_v41, %v3235_v39  ;;  %v3252_v54 = vadd.f32 %v3247_v41, %v3238_v11 }
0x1b30   :  { %v3260_v52 = vrot.slane %v3249_v42, %v9867_v45  ;;  %v3264_v55 = vrot.slane %v3250_v44, %v9870_v49  ;;  %v3269_v56 = vrot.slane %v3251_v51, %v9867_v45  ;;  %v3273_v6 = vrot.slane %v3252_v54, %v9870_v49 }
0x1b32   :  { %v3265_v46 = vsel %vm622_vm4, %v3264_v55, %v3260_v52  ;;  %v3274_v60 = vsel %vm622_vm4, %v3273_v6, %v3269_v56  ;;  %v7815_v55 = vld [vmem:[%s12088_s19 + $0x40] sm:$0xff]  ;;  %v7817_v56 = vld [vmem:[%s12088_s19 + $0x50] sm:$0xff] }
0x1b33   :  { %v3275_v61 = vsel %vm633_vm5, %v3274_v60, %v3265_v46  ;;  %v8891_v6 = vpack.c.bf16 %v7817_v56, %v7815_v55  ;;  %v7830_v60 = vld [vmem:[%s12089_s6 + $0x88] sm:$0xff] }
0x1b34   :  { %v3277_v13 = vsel %vm636_vm6, %v3275_v61, -inf  ;;  %v7832_v61 = vld [vmem:[%s12089_s6 + $0x98] sm:$0xff] }
0x1b35   :  { %3278 = vmax.xlane.f32.xlu1 %v3277_v13  ;;  %v8893_v13 = vpack.c.bf16 %v7832_v61, %v7830_v60 }
0x1bc2   :  { %v3279_v63 = vpop.xlane.xlu1 %3278 }
0x1bc3   :  { %v3284_v0 = vrot.slane %v3279_v63, %v9704_v48  ;;  %v3288_v14 = vrot.slane %v3279_v63, %v9711_v58  ;;  %v7829_v63 = vld [vmem:[%s12089_s6 + $0x80] sm:$0xff] }
0x1bc5   :  { %v3291_v19 = vsub.f32 %v3249_v42, %v3284_v0  ;;  %v3292_v16 = vsub.f32 %v3250_v44, %v3284_v0  ;;  %v3293_v12 = vsub.f32 %v3251_v51, %v3288_v14  ;;  %v3294_v62 = vsub.f32 %v3252_v54, %v3288_v14  ;;  %v7816_v44 = vld [vmem:[%s12088_s19 + $0x48] sm:$0xff]  ;;  %v7818_v51 = vld [vmem:[%s12088_s19 + $0x58] sm:$0xff]  ;;  %v7831_v0 = vld [vmem:[%s12089_s6 + $0x90] sm:$0xff] }
0x1bc6   :  { %v8889_v52 = vpack.c.bf16 %v7818_v51, %v7816_v44  ;;  %v8895_v14 = vpack.c.bf16 %v7831_v0, %v7829_v63  ;;  %v3793_v63 = vld [vmem:[%s12087_s29 + $0x20] sm:$0xff]  ;;  %v3795_v0 = vld [vmem:[%s12087_s29 + $0x30] sm:$0xff] }
0x1bc7   :  { %v3295_v1 = vmul.f32 1.442695, %v3291_v19  ;;  %v3297_v4 = vmul.f32 1.442695, %v3292_v16  ;;  %v3299_v9 = vmul.f32 1.442695, %v3293_v12 }
0x1bc8   :  { %v3301_v5 = vmul.f32 1.442695, %v3294_v62  ;;  %8890 = vmatprep.subr.bf16.mxu0 %v8889_v52  ;;  %v7751_v19 = vld [vmem:[%s12056_s0 + $0xa] sm:$0x3]  ;;  %v7833_v62 = vld [vmem:[%s12089_s6 + $0xa0] sm:$0xff] }
0x1bc9   :  { %9328 = vpow2.f32 %v3295_v1  ;;  %8892 = vmatpush1.bf16.msra.mxu0 %v8891_v6  ;;  %v7834_v12 = vld [vmem:[%s12089_s6 + $0xa8] sm:$0xff]  ;;  %v7836_v1 = vld [vmem:[%s12089_s6 + $0xb8] sm:$0xff]  ;;  %v3789_v52 = vld [vmem:[%s12087_s29] sm:$0xff] }
0x1bca   :  { %9330 = vpow2.f32 %v3297_v4  ;;  %8894 = vmatprep.subr.bf16.mxu0 %v8893_v13  ;;  %v8897_v4 = vpack.c.bf16 %v7836_v1, %v7834_v12  ;;  %v3796_v6 = vld [vmem:[%s12087_s29 + $0x38] sm:$0xff]  ;;  %v8919_v12 = vpack.c.bf16 %v3795_v0, %v3793_v63  ;;  %v7851_v63 = vld [vmem:[%s12056_s0 + $0xc] sm:$0x3] }
0x1bcb   :  { %9332 = vpow2.f32 %v3299_v9  ;;  %v7835_v9 = vld [vmem:[%s12089_s6 + $0xb0] sm:$0xff] }
0x1bcc   :  { %9334 = vpow2.f32 %v3301_v5  ;;  %7828 = vmatmul.mubr.msk.f32.vlgmr.msra.gmra.mrb[16].mxu0 %vm154_vm0, %v7751_v19  ;;  %v8899_v5 = vpack.c.bf16 %v7835_v9, %v7833_v62 }
0x1bcd   :  { %8896 = vmatpush1.bf16.msra.mxu0 %v8895_v14  ;;  %3635 = vmatprep.mubr.f32.mxu0 %v9489_v3 }
0x1bce   :  { %8898 = vmatprep.subr.bf16.mxu0 %v8897_v4 }
0x1bd1   :  { %8900 = vmatpush1.bf16.msra.mxu0 %v8899_v5 }
0x1bd3   :  { %v9329_v8 = vpop.eup %9328 }
0x1bd4   :  { %v9331_v10 = vpop.eup %9330  ;;  %3308 = vperm.xlu1 %9228, %v9329_v8  }
0x1bd5   :  { %3311 = vperm.xlu0 %9229, %v9331_v10   ;;  %v9333_v7 = vpop.eup %9332 }
0x1bd6   :  { %v9335_v15 = vpop.eup %9334 }
0x1bd9   :  { %3314 = vperm.xlu0 %9229, %v9333_v7  }
0x1bdd   :  { %3317 = vperm.xlu0 %9229, %v9335_v15  }
0x1c53   :  { %v3309_v21 = vpop.permute.xlu1 %3308 }
0x1c54   :  { %v3312_v17 = vpop.permute.xlu0 %3311  ;;  %v3322_v38 = vrot.slane %v3309_v21, %v9867_v45 }
0x1c55   :  { %v3326_v26 = vrot.slane %v3312_v17, %v9870_v49  ;;  %v3792_v17 = vld [vmem:[%s12087_s29 + $0x18] sm:$0xff] }
0x1c57   :  { %v3327_v32 = vsel %vm622_vm4, %v3326_v26, %v3322_v38  ;;  %v7843_v26 = vld [vmem:[%s12055_s8 + $0x98] sm:$0xff] }
0x1c58   :  { %v3315_v22 = vpop.permute.xlu0 %3314 }
0x1c59   :  { %v3331_v27 = vrot.slane %v3315_v22, %v9867_v45  ;;  %v7842_v22 = vld [vmem:[%s12055_s8 + $0x90] sm:$0xff] }
0x1c5a   :  { %v8905_v38 = vpack.c.bf16 %v7843_v26, %v7842_v22 }
0x1c5c   :  { %v3318_v28 = vpop.permute.xlu0 %3317 }
0x1c5d   :  { %v3335_v30 = vrot.slane %v3318_v28, %v9870_v49  ;;  %v7844_v28 = vld [vmem:[%s12055_s8 + $0xa0] sm:$0xff] }
0x1c5f   :  { %v3336_v34 = vsel %vm622_vm4, %v3335_v30, %v3331_v27  ;;  %v7845_v27 = vld [vmem:[%s12055_s8 + $0xa8] sm:$0xff] }
0x1c60   :  { %v3337_v43 = vsel %vm633_vm5, %v3336_v34, %v3327_v32  ;;  %v8908_v30 = vpack.c.bf16 %v7845_v27, %v7844_v28  ;;  %v7846_v32 = vld [vmem:[%s12055_s8 + $0xb0] sm:$0xff]  ;;  %v7847_v34 = vld [vmem:[%s12055_s8 + $0xb8] sm:$0xff] }
0x1c61   :  { %v3339_v18 = vsel %vm636_vm6, %v3337_v43, 0.0  ;;  %v8911_v43 = vpack.c.bf16 %v7847_v34, %v7846_v32  ;;  %v7850_v32 = vld [vmem:[%s12059_s9 + $0x2] ss:$0 sm:$0xff] }
0x1c62   :  { %3340 = vadd.xlane.f32.xlu1 %v3339_v18 }
0x1cef   :  { %v3341_v36 = vpop.xlane.xlu1 %3340 }
0x1cf0   :  { %v3346_v39 = vrot.slane %v3341_v36, %v9704_v48  ;;  %v3350_v11 = vrot.slane %v3341_v36, %v9711_v58 }
0x1cf2   :  { %9336 = vrcp.f32 %v3346_v39 }
0x1cf3   :  { %9338 = vrcp.f32 %v3350_v11 }
0x1cfc   :  { %v9337_v40 = vpop.eup %9336 }
0x1cfd   :  { %v3354_v41 = vmul.f32 %v9337_v40, %v9329_v8  ;;  %v3355_v42 = vmul.f32 %v9337_v40, %v9331_v10  ;;  %v9339_v54 = vpop.eup %9338  ;;  %v7840_v8 = vld [vmem:[%s12055_s8 + $0x80] sm:$0xff]  ;;  %v7841_v10 = vld [vmem:[%s12055_s8 + $0x88] sm:$0xff] }
0x1cfe   :  { %v3357_v46 = vmul.f32 %v9339_v54, %v9333_v7  ;;  %v3358_v16 = vmul.f32 %v9339_v54, %v9335_v15  ;;  %v3790_v7 = vld [vmem:[%s12087_s29 + $0x8] sm:$0xff]  ;;  %v8902_v15 = vpack.c.bf16 %v7841_v10, %v7840_v8 }
0x1cff   :  { %3361 = vperm.xlu0 %9229, %v3354_v41   ;;  %v8913_v21 = vpack.c.bf16 %v3792_v17, %v3790_v7  ;;  %v7838_v17 = vld [vmem:[%s12058_s7 + $0x4] sm:$0x3] }
0x1d00   :  { %8903 = vmatpush3.bf16.msra.mxu1 %v8902_v15  ;;  %v3653_v28 = vrot.slane %v7838_v17, %v9711_v58 }
0x1d01   :  { %8914 = vmatprep.subr.bf16.mxu0 %v8913_v21  ;;  %8904 = vmatprep.subr.bf16.mxu1 %v9490_v31  ;;  %v3649_v21 = vrot.slane %v7838_v17, %v9704_v48  ;;  %v7869_v17 = vld [vmem:[%s12087_s29 + $0x48] sm:$0xff] }
0x1d03   :  { %3366 = vperm.xlu0 %9229, %v3355_v42  }
0x1d04   :  { %8906 = vmatpush3.bf16.msra.mxu1 %v8905_v38 }
0x1d05   :  { %8907 = vmatprep.subr.bf16.mxu1 %v9490_v31 }
0x1d07   :  { %3371 = vperm.xlu0 %9229, %v3357_v46  }
0x1d08   :  { %8909 = vmatpush3.bf16.msra.mxu1 %v8908_v30 }
0x1d09   :  { %8910 = vmatprep.subr.bf16.mxu1 %v9490_v31 }
0x1d0b   :  { %3376 = vperm.xlu0 %9229, %v3358_v16  }
0x1d0c   :  { %8912 = vmatpush3.bf16.msra.mxu1 %v8911_v43 }
0x1d0d   :  { %8933 = vmatprep.subr.bf16.mxu1 %v9490_v31 }
0x1d0f   :  { %3567 = vrot.lane.b32.xlu0 %v10620_v53, %s12092_s21 }
0x1d7e   :  { %v3362_v18 = vpop.permute.xlu0 %3361 }
0x1d7f   :  { %v3379_v36 = vmul.f32 %v10555_v23, %v3362_v18  ;;  %v3791_v23 = vld [vmem:[%s12087_s29 + $0x10] sm:$0xff] }
0x1d80   :  { %v8915_v46 = vpack.c.bf16 %v3791_v23, %v3789_v52  ;;  %v3786_v23 = vld [vmem:[%s12088_s19 + $0x8] sm:$0xff] }
0x1d81   :  { %v3383_v40 = vsel %vm338_vm2, %v3379_v36, 0.0 }
0x1d82   :  { %v3367_v39 = vpop.permute.xlu0 %3366 }
0x1d83   :  { %v3380_v11 = vmul.f32 %v10561_v29, %v3367_v39  ;;  %v3794_v29 = vld [vmem:[%s12087_s29 + $0x28] sm:$0xff] }
0x1d84   :  { %v8917_v13 = vpack.c.bf16 %v3796_v6, %v3794_v29  ;;  %v4048_v6 = vld [vmem:[%s12055_s8] sm:$0xff] }
0x1d85   :  { %v3384_v41 = vsel %vm338_vm2, %v3380_v11, 0.0 }
0x1d86   :  { %v3385_v42 = vadd.f32 %v3384_v41, %v3383_v40  ;;  %v3372_v44 = vpop.permute.xlu0 %3371 }
0x1d87   :  { %v3381_v54 = vmul.f32 %v10569_v25, %v3372_v44 }
0x1d88   :  { %v3386_v51 = vrot.slane %v3385_v42, 4 }
0x1d89   :  { %v3392_v60 = vsel %vm338_vm2, %v3381_v54, 0.0 }
0x1d8a   :  { %v3387_v55 = vadd.f32 %v3386_v51, %v3385_v42  ;;  %v3377_v56 = vpop.permute.xlu0 %3376 }
0x1d8b   :  { %v3382_v25 = vmul.f32 %v10575_v50, %v3377_v56  ;;  %v3785_v56 = vld [vmem:[%s12088_s19] sm:$0xff] }
0x1d8c   :  { %v3388_v14 = vrot.slane %v3387_v55, 2 }
0x1d8d   :  { %v3393_v61 = vsel %vm338_vm2, %v3382_v25, 0.0  ;;  %v4049_v25 = vld [vmem:[%s12055_s8 + $0x8] sm:$0xff] }
0x1d8e   :  { %v3394_v19 = vadd.f32 %v3393_v61, %v3392_v60  ;;  %v10785_v16 = vpop.permute.xlu0 %3567  ;;  %v3389_v1 = vadd.f32 %v3388_v14, %v3387_v55  ;;  %v3788_v55 = vld [vmem:[%s12088_s19 + $0x18] sm:$0xff]  ;;  %v8934_v60 = vpack.c.bf16 %v4049_v25, %v4048_v6  ;;  %v3943_v61 = vld [vmem:[%s12089_s6 + $0x8] sm:$0xff]  ;;  %v3942_v14 = vld [vmem:[%s12089_s6] sm:$0xff] }
0x1d8f   :  { %7837 = vmatmul.mubr.msk.f32.vlgmr.msra.gmra.mrb[16].mxu0 %vm79_vm3, %v10785_v16  ;;  %v8921_v29 = vpack.c.bf16 %v3788_v55, %v3786_v23 }
0x1d90   :  { %v3395_v50 = vrot.slane %v3394_v19, 4  ;;  %8916 = vmatpush1.bf16.msra.mxu0 %v8915_v46  ;;  %3861 = vmatprep.mubr.f32.mxu0 %v9489_v3  ;;  %v3390_v9 = vrot.slane %v3389_v1, 1 }
0x1d91   :  { %8918 = vmatprep.subr.bf16.mxu0 %v8917_v13  ;;  %v3945_v13 = vld [vmem:[%s12089_s6 + $0x18] sm:$0xff] }
0x1d92   :  { %v3396_v4 = vadd.f32 %v3395_v50, %v3394_v19  ;;  %v3391_v10 = vadd.f32 %v3390_v9, %v3389_v1  ;;  %v8925_v0 = vpack.c.bf16 %v3945_v13, %v3943_v61  ;;  %v3944_v19 = vld [vmem:[%s12089_s6 + $0x10] sm:$0xff]  ;;  %v4051_v1 = vld [vmem:[%s12055_s8 + $0x18] sm:$0xff] }
0x1d93   :  { %v4050_v50 = vld [vmem:[%s12055_s8 + $0x10] sm:$0xff] }
0x1d94   :  { %v3397_v62 = vrot.slane %v3396_v4, 2  ;;  %8920 = vmatpush1.bf16.msra.mxu0 %v8919_v12  ;;  %v8927_v12 = vpack.c.bf16 %v3944_v19, %v3942_v14  ;;  %v8937_v9 = vpack.c.bf16 %v4051_v1, %v4050_v50 }
0x1d95   :  { %8922 = vmatprep.subr.bf16.mxu0 %v8921_v29  ;;  %v4028_v29 = vld [vmem:[%s12058_s7] sm:$0x3] }
0x1d96   :  { %v3398_v5 = vadd.f32 %v3397_v62, %v3396_v4  ;;  %v3947_v4 = vld [vmem:[%s12089_s6 + $0x28] sm:$0xff]  ;;  %v3949_v62 = vld [vmem:[%s12089_s6 + $0x38] sm:$0xff]  ;;  %v4037_v6 = vrot.slane %v4028_v29, %v9711_v58 }
0x1d97   :  { %7854 = vmatmul.mubr.msk.f32.vlgmr.msra.gmra.mrb[18].mxu0 %vm79_vm3, %v10425_v37 }
0x1d98   :  { %v3399_v8 = vrot.slane %v3398_v5, 1  ;;  %3935 = vmatprep.mubr.f32.mxu0 %v9489_v3 }
0x1d9a   :  { %v3400_v7 = vadd.f32 %v3399_v8, %v3398_v5  ;;  %v8929_v5 = vpack.c.bf16 %v3949_v62, %v3947_v4  ;;  %v3946_v8 = vld [vmem:[%s12089_s6 + $0x20] sm:$0xff] }
0x1d9c   :  { %v3674_v15 = vsel %vm633_vm5, %v3400_v7, %v3391_v10  ;;  %v3948_v10 = vld [vmem:[%s12089_s6 + $0x30] sm:$0xff]  ;;  %v4052_v7 = vld [vmem:[%s12055_s8 + $0x20] sm:$0xff] }
0x1d9d   :  { %8448 = vmatmul.mubr.msk.f32.vlgmr.msra.gmra.mrb[18].mxu1 %vm338_vm2, %v3674_v15  ;;  %v4053_v15 = vld [vmem:[%s12055_s8 + $0x28] sm:$0xff] }
0x1d9e   :  { %8466 = vmatprep.mubr.msk.f32.mxu1 %vm9491_vm1, %v9489_v3  ;;  %8935 = vmatpush3.bf16.msra.mxu1 %v8934_v60 }
0x1d9f   :  { %8936 = vmatprep.subr.bf16.mxu1 %v9490_v31 }
0x1da2   :  { %8938 = vmatpush3.bf16.msra.mxu1 %v8937_v9 }
0x1da3   :  { %8939 = vmatprep.subr.bf16.mxu1 %v9490_v31 }
0x1e62   :  { %v3637_v22 = vpop.f32.mrb[16].mxu0 }
0x1e63   :  { %v3656_v26 = vadd.f32 %v3649_v21, %v3637_v22  ;;  %v3639_v38 = vpop.f32.mrb[17].mxu0  ;;  %v7871_v21 = vld [vmem:[%s12087_s29 + $0x58] sm:$0xff]  ;;  %v8931_v22 = vpack.c.bf16 %v3948_v10, %v3946_v8  ;;  %v7865_v8 = vld [vmem:[%s12088_s19 + $0x28] sm:$0xff] }
0x1e64   :  { %v3657_v27 = vadd.f32 %v3653_v28, %v3639_v38  ;;  %v8951_v38 = vpack.c.bf16 %v7871_v21, %v7869_v17  ;;  %v7867_v10 = vld [vmem:[%s12088_s19 + $0x38] sm:$0xff]  ;;  %v7879_v17 = vld [vmem:[%s12089_s6 + $0x48] sm:$0xff] }
0x1e65   :  { %v7839_v36 = vmul.f32 -1.442695, %v3656_v26  ;;  %v8940_v26 = vpack.c.bf16 %v4053_v15, %v4052_v7  ;;  %v7864_v7 = vld [vmem:[%s12088_s19 + $0x20] sm:$0xff]  ;;  %v8959_v15 = vpack.c.bf16 %v7867_v10, %v7865_v8  ;;  %v4156_v8 = vld [vmem:[%s12062_s3 + $0x18] sm:$0xff] }
0x1e67   :  { %9340 = vpow2.f32 %v7839_v36  ;;  %8941 = vmatpush3.bf16.msra.mxu1 %v8940_v26  ;;  %v7868_v36 = vld [vmem:[%s12087_s29 + $0x40] sm:$0xff]  ;;  %v7881_v26 = vld [vmem:[%s12089_s6 + $0x58] sm:$0xff] }
0x1e68   :  { %8942 = vmatprep.subr.bf16.mxu1 %v9490_v31 }
0x1e70   :  { %v3743_v30 = vpop.f32.mrb[18].mxu1 }
0x1e71   :  { %v3747_v34 = vadd.f32 %v3743_v30, %v3657_v27  ;;  %v8449_v43 = vpop.f32.mrb[19].mxu1  ;;  %v9341_v39 = vpop.eup %9340  ;;  %v4054_v27 = vld [vmem:[%s12055_s8 + $0x30] sm:$0xff]  ;;  %v4055_v30 = vld [vmem:[%s12055_s8 + $0x38] sm:$0xff] }
0x1e72   :  { %v3661_v11 = vadd.f32 1.0, %v9341_v39  ;;  %v7870_v39 = vld [vmem:[%s12087_s29 + $0x50] sm:$0xff] }
0x1e73   :  { %v3755_v18 = vadd.f32 %v7850_v32, %v3747_v34  ;;  %v8943_v32 = vpack.c.bf16 %v4055_v30, %v4054_v27  ;;  %v9479_v34 = vld [vmem:[%s12057_s2] sm:$0x3]  ;;  %v8963_v27 = vpack.c.bf16 %v7881_v26, %v7879_v17 }
0x1e74   :  { %9342 = vrcp.f32 %v3661_v11  ;;  %v7873_v11 = vld [vmem:[%s12087_s29 + $0x68] sm:$0xff] }
0x1e75   :  { %3757 = vrot.lane.b32.xlu0 %v3755_v18, %s12090_s23  ;;  %8944 = vmatpush3.bf16.msra.mxu1 %v8943_v32  ;;  %v7878_v32 = vld [vmem:[%s12089_s6 + $0x40] sm:$0xff] }
0x1e76   :  { %8945 = vmatprep.subr.bf16.mxu1 %v9490_v31 }
0x1e78   :  { %8467 = vmatmul.mubr.msk.f32.vlgmr.msra.gmra.mrb[20].mxu1 %vm338_vm2, %v9479_v34  ;;  %v7880_v34 = vld [vmem:[%s12089_s6 + $0x50] sm:$0xff] }
0x1e79   :  { %8477 = vmatprep.mubr.msk.f32.mxu1 %vm9491_vm1, %v9489_v3 }
0x1e7e   :  { %v10806_v42 = vpop.eup %9342 }
0x1e7f   :  { %v3761_v51 = vmul.f32 %v10806_v42, %v10237_v33  ;;  %v3787_v33 = vld [vmem:[%s12088_s19 + $0x10] sm:$0xff] }
0x1e80   :  { %v8923_v46 = vpack.c.bf16 %v3787_v33, %v3785_v56  ;;  %v4033_v33 = vrot.slane %v4028_v29, %v9704_v48 }
0x1e82   :  { %8924 = vmatpush1.bf16.msra.mxu0 %v8923_v46 }
0x1e83   :  { %8926 = vmatprep.subr.bf16.mxu0 %v8925_v0 }
0x1e85   :  { %7855 = vmatmul.mubr.msk.f32.vlgmr.msra.gmra.mrb[18].mxu0 %vm154_vm0, %v7851_v63 }
0x1e86   :  { %8928 = vmatpush1.bf16.msra.mxu0 %v8927_v12  ;;  %4019 = vmatprep.mubr.f32.mxu0 %v9489_v3 }
0x1e87   :  { %8930 = vmatprep.subr.bf16.mxu0 %v8929_v5 }
0x1e8a   :  { %8932 = vmatpush1.bf16.msra.mxu0 %v8931_v22  ;;  %v7852_v22 = vld [vmem:[%s12056_s0 + $0xe] sm:$0x3] }
0x1e8b   :  { %8952 = vmatprep.subr.bf16.mxu0 %v8951_v38  ;;  %v4157_v38 = vld [vmem:[%s12060_s10] sm:$0xff] }
0x1ee7   :  { %v3758_v40 = vpop.permute.xlu0 %3757 }
0x1ee8   :  { %v3760_v41 = vmax.f32 %v3755_v18, %v3758_v40  ;;  %v7875_v40 = vld [vmem:[%s12087_s29 + $0x78] sm:$0xff] }
0x1eea   :  { %v3762_v44 = vmul.f32 %v10806_v42, %v3760_v41  ;;  %v8953_v41 = vpack.c.bf16 %v7870_v39, %v7868_v36  ;;  %v8965_v36 = vpack.c.bf16 %v7880_v34, %v7878_v32  ;;  %v7885_v39 = vld [vmem:[%s12089_s6 + $0x78] sm:$0xff] }
0x1eec   :  { %3764 = vrot.lane.b32.xlu0 %v3762_v44, %s12091_s28  ;;  %v7872_v44 = vld [vmem:[%s12087_s29 + $0x60] sm:$0xff] }
0x1f4b   :  { %v4122_v55 = vpop.f32.mrb[20].mxu1 }
0x1f4c   :  { %v8468_v56 = vpop.f32.mrb[21].mxu1 }
0x1f5e   :  { %v3765_v54 = vpop.permute.xlu0 %3764 }
0x1f5f   :  { %v10812_v52 = vadd.f32 %v3765_v54, %v3761_v51  ;;  %v7874_v51 = vld [vmem:[%s12087_s29 + $0x70] sm:$0xff] }
0x1f60   :  { %v8957_v23 = vpack.c.bf16 %v7874_v51, %v7872_v44  ;;  %v7882_v44 = vld [vmem:[%s12089_s6 + $0x60] sm:$0xff]  ;;  %v7884_v51 = vld [vmem:[%s12089_s6 + $0x70] sm:$0xff] }
0x1f61   :  { %9344 = vtanh.f32 %v10812_v52 }
0x1f6b   :  { %v9345_v28 = vpop.eup %9344 }
0x1f6c   :  { %3770 = vrot.lane.b32.xlu0 %v9345_v28, %s12091_s28  ;;  %v4158_v28 = vld [vmem:[%s12060_s10 + $0x8] sm:$0xff] }
0x1f6d   :  { %v8946_v30 = vpack.c.bf16 %v4158_v28, %v4157_v38 }
0x1f6f   :  { %8947 = vmatpush3.bf16.msra.mxu1 %v8946_v30 }
0x1f70   :  { %8948 = vmatprep.subr.bf16.mxu1 %v9490_v31 }
0x1fde   :  { %v3771_v43 = vpop.permute.xlu0 %3770 }
0x1fdf   :  { %v10898_v18 = vmul.f32 %v10806_v42, %v3771_v43  ;;  %v8955_v42 = vpack.c.bf16 %v7875_v40, %v7873_v11  ;;  %v7883_v43 = vld [vmem:[%s12089_s6 + $0x68] sm:$0xff]  ;;  %v4159_v11 = vld [vmem:[%s12060_s10 + $0x10] sm:$0xff]  ;;  %v4160_v40 = vld [vmem:[%s12060_s10 + $0x18] sm:$0xff] }
0x1fe1   :  { %3951 = vrot.lane.b32.xlu0 %v10898_v18, %s12092_s21 }
0x2053   :  { %v10920_v54 = vpop.permute.xlu0 %3951 }
0x2054   :  { %7856 = vmatmul.mubr.msk.f32.vlgmr.msra.gmra.mrb[18].mxu0 %vm79_vm3, %v10920_v54 }
0x2055   :  { %8954 = vmatpush1.bf16.msra.mxu0 %v8953_v41  ;;  %4545 = vmatprep.mubr.f32.mxu0 %v9489_v3  ;;  %v8967_v41 = vpack.c.bf16 %v7885_v39, %v7883_v43 }
0x2056   :  { %8956 = vmatprep.subr.bf16.mxu0 %v8955_v42  ;;  %v8949_v42 = vpack.c.bf16 %v4160_v40, %v4159_v11  ;;  %v7863_v40 = vld [vmem:[%s12064_s13] ss:$0 sm:$0xff] }
0x2058   :  { %8950 = vmatpush3.bf16.msra.mxu1 %v8949_v42 }
0x2059   :  { %8958 = vmatpush1.bf16.msra.mxu0 %v8957_v23  ;;  %v8969_v23 = vpack.c.bf16 %v7884_v51, %v7882_v44  ;;  %8971 = vmatprep.subr.bf16.mxu1 %v9490_v31 }
0x205a   :  { %8960 = vmatprep.subr.bf16.mxu0 %v8959_v15 }
0x205c   :  { %7876 = vmatmul.mubr.msk.f32.vlgmr.msra.gmra.mrb[20].mxu0 %vm79_vm3, %v10785_v16  ;;  %v7859_v16 = vld [vmem:[%s12059_s9] ss:$0 sm:$0xff] }
0x205d   :  { %4619 = vmatprep.mubr.f32.mxu0 %v9489_v3 }
0x2127   :  { %v4021_v25 = vpop.f32.mrb[18].mxu0 }
0x2128   :  { %v4040_v46 = vadd.f32 %v4033_v33, %v4021_v25  ;;  %v4023_v60 = vpop.f32.mrb[19].mxu0 }
0x2129   :  { %v4041_v61 = vadd.f32 %v4037_v6, %v4023_v60  ;;  %v11013_v6 = vld [vmem:[%s12058_s7 + $0x2] sm:$0x3] }
0x212a   :  { %v7857_v0 = vmul.f32 -1.442695, %v4040_v46  ;;  %v4712_v25 = vrot.slane %v11013_v6, %v9704_v48  ;;  %v7860_v46 = vld [vmem:[%s12061_s11] ss:$0 sm:$0xff] }
0x212b   :  { %v4126_v13 = vadd.f32 %v4122_v55, %v4041_v61 }
0x212c   :  { %9346 = vpow2.f32 %v7857_v0 }
0x212d   :  { %v4134_v63 = vadd.f32 %v7859_v16, %v4126_v13 }
0x212f   :  { %4136 = vrot.lane.b32.xlu1 %v4134_v63, %s12090_s23 }
0x2136   :  { %v9347_v14 = vpop.eup %9346 }
0x2137   :  { %v4045_v19 = vadd.f32 1.0, %v9347_v14 }
0x2139   :  { %9348 = vrcp.f32 %v4045_v19 }
0x2143   :  { %v9349_v1 = vpop.eup %9348 }
0x2144   :  { %v4140_v62 = vmul.f32 %v9349_v1, %v10364_v59  ;;  %v7866_v59 = vld [vmem:[%s12088_s19 + $0x30] sm:$0xff] }
0x2145   :  { %v8961_v21 = vpack.c.bf16 %v7866_v59, %v7864_v7 }
0x2147   :  { %8962 = vmatpush1.bf16.msra.mxu0 %v8961_v21  ;;  %v7862_v21 = vld [vmem:[%s12063_s12] ss:$0 sm:$0xff] }
0x2148   :  { %8964 = vmatprep.subr.bf16.mxu0 %v8963_v27 }
0x214a   :  { %7877 = vmatmul.mubr.msk.f32.vlgmr.msra.gmra.mrb[20].mxu0 %vm154_vm0, %v7852_v22 }
0x214b   :  { %8966 = vmatpush1.bf16.msra.mxu0 %v8965_v36  ;;  %4698 = vmatprep.mubr.f32.mxu0 %v9489_v3 }
0x214c   :  { %8968 = vmatprep.subr.bf16.mxu0 %v8967_v41 }
0x214f   :  { %8970 = vmatpush1.bf16.msra.mxu0 %v8969_v23 }
0x2150   :  { %8983 = vmatprep.subr.bf16.mxu0 %v9490_v31 }
0x21a1   :  { %v4137_v50 = vpop.permute.xlu1 %4136 }
0x21a2   :  { %v4139_v12 = vmax.f32 %v4134_v63, %v4137_v50 }
0x21a4   :  { %v4141_v4 = vmul.f32 %v9349_v1, %v4139_v12  ;;  %v4153_v12 = vld [vmem:[%s12062_s3] sm:$0xff] }
0x21a6   :  { %4143 = vrot.lane.b32.xlu0 %v4141_v4, %s12091_s28 }
0x2218   :  { %v4144_v9 = vpop.permute.xlu0 %4143 }
0x2219   :  { %v10939_v5 = vadd.f32 %v4144_v9, %v4140_v62  ;;  %v4155_v9 = vld [vmem:[%s12062_s3 + $0x10] sm:$0xff] }
0x221b   :  { %9350 = vtanh.f32 %v10939_v5 }
0x2225   :  { %v9351_v55 = vpop.eup %9350 }
0x2226   :  { %4149 = vrot.lane.b32.xlu0 %v9351_v55, %s12091_s28 }
0x2298   :  { %v4150_v56 = vpop.permute.xlu0 %4149 }
0x2299   :  { %v4152_v29 = vmul.f32 %v9349_v1, %v4150_v56  ;;  %v4154_v1 = vld [vmem:[%s12062_s3 + $0x8] sm:$0xff] }
0x229b   :  { %4169 = vrot.lane.b32.xlu0 %v4152_v29, %s12092_s21 }
0x230d   :  { %v11000_v33 = vpop.permute.xlu0 %4169 }
0x230e   :  { %8478 = vmatmul.mubr.msk.f32.vlgmr.msra.gmra.mrb[22].mxu1 %vm79_vm3, %v11000_v33  ;;  %7886 = vmatmul.mubr.msk.f32.vlgmr.msra.gmra.mrb[20].mxu0 %vm79_vm3, %v11000_v33 }
0x230f   :  { %8496 = vmatprep.mubr.msk.f32.mxu1 %vm9491_vm1, %v9489_v3  ;;  %8515 = vmatprep.mubr.msk.f32.mxu0 %vm9491_vm1, %v9489_v3 }
0x23e1   :  { %v4239_v60 = vpop.f32.mrb[22].mxu1  ;;  %v4700_v61 = vpop.f32.mrb[20].mxu0 }
0x23e2   :  { %v4240_v16 = vadd.f32 %v7860_v46, %v4239_v60  ;;  %v11020_v13 = vadd.f32 %v4712_v25, %v4700_v61  ;;  %v8479_v63 = vpop.f32.mrb[23].mxu1  ;;  %v11022_v0 = vpop.f32.mrb[21].mxu0 }
0x23e4   :  { %v4250_v14 = vrot.slane %v4240_v16, %v9832_v2 }
0x23e6   :  { %v4251_v19 = vcombine.high %v4250_v14, %v4250_v14  ;;  %v4258_v50 = vrot.slane %v4250_v14, %v9832_v2 }
0x23e8   :  { %v4265_v4 = vrot.slane %v4251_v19, %v9832_v2  ;;  %v4269_v62 = vrot.slane %v4258_v50, %v9704_v48 }
0x23ea   :  { %v4273_v10 = vrot.slane %v4265_v4, %v9704_v48  ;;  %v4276_v7 = vadd.f32 %v4269_v62, %v4153_v12  ;;  %v4277_v15 = vadd.f32 %v4269_v62, %v4154_v1 }
0x23ec   :  { %v4278_v59 = vadd.f32 %v4273_v10, %v4155_v9  ;;  %v4279_v17 = vadd.f32 %v4273_v10, %v4156_v8  ;;  %9352 = vtanh.f32 %v4276_v7 }
0x23ed   :  { %9354 = vtanh.f32 %v4277_v15 }
0x23ee   :  { %9356 = vtanh.f32 %v4278_v59 }
0x23ef   :  { %9358 = vtanh.f32 %v4279_v17 }
0x23f6   :  { %v9353_v22 = vpop.eup %9352 }
0x23f7   :  { %v9355_v26 = vpop.eup %9354  ;;  %v4291_v38 = vmul.f32 %v9353_v22, %v7862_v21 }
0x23f8   :  { %v9357_v28 = vpop.eup %9356  ;;  %v4292_v27 = vmul.f32 %v9355_v26, %v7862_v21 }
0x23f9   :  { %v4295_v30 = vsel %vm79_vm3, %v4291_v38, 0.0  ;;  %v4293_v32 = vmul.f32 %v9357_v28, %v7862_v21  ;;  %v9359_v34 = vpop.eup %9358 }
0x23fa   :  { %v4298_v43 = vsel %vm79_vm3, %v4292_v27, 0.0  ;;  %4296 = vadd.xlane.f32.xlu0 %v4295_v30  ;;  %v4294_v39 = vmul.f32 %v9359_v34, %v7862_v21 }
0x23fb   :  { %4299 = vadd.xlane.f32.xlu1 %v4298_v43  ;;  %v4301_v36 = vsel %vm79_vm3, %v4293_v32, 0.0 }
0x23fc   :  { %v4304_v11 = vsel %vm79_vm3, %v4294_v39, 0.0 }
0x23fe   :  { %4302 = vadd.xlane.f32.xlu0 %v4301_v36 }
0x2402   :  { %4305 = vadd.xlane.f32.xlu0 %v4304_v11 }
0x2418   :  { %4314 = vperm.xlu0 %9229, %v7863_v40  }
0x2487   :  { %v4297_v41 = vpop.xlane.xlu0 %4296 }
0x2488   :  { %v4300_v51 = vpop.xlane.xlu1 %4299 }
0x248b   :  { %v4303_v42 = vpop.xlane.xlu0 %4302 }
0x248f   :  { %v4306_v44 = vpop.xlane.xlu0 %4305 }
0x2497   :  { %v4315_v23 = vpop.permute.xlu0 %4314 }
0x2498   :  { %v4317_v55 = vadd.f32 %v4315_v23, %v4297_v41  ;;  %v4318_v56 = vadd.f32 %v4315_v23, %v4300_v51  ;;  %v4319_v29 = vadd.f32 %v4315_v23, %v4303_v42  ;;  %v4320_v25 = vadd.f32 %v4315_v23, %v4306_v44 }
0x249a   :  { %v4328_v46 = vrot.slane %v4317_v55, %v9867_v45  ;;  %v4332_v60 = vrot.slane %v4318_v56, %v9870_v49  ;;  %v4337_v61 = vrot.slane %v4319_v29, %v9867_v45  ;;  %v4341_v16 = vrot.slane %v4320_v25, %v9870_v49 }
0x249c   :  { %v4333_v63 = vsel %vm622_vm4, %v4332_v60, %v4328_v46  ;;  %v4342_v14 = vsel %vm622_vm4, %v4341_v16, %v4337_v61  ;;  %v7889_v61 = vld [vmem:[%s12055_s8 + $0x40] sm:$0xff]  ;;  %v7890_v16 = vld [vmem:[%s12055_s8 + $0x48] sm:$0xff] }
0x249d   :  { %v4343_v19 = vsel %vm633_vm5, %v4342_v14, %v4333_v63  ;;  %v4837_v63 = vld [vmem:[%s12065_s14] sm:$0xff]  ;;  %v8972_v14 = vpack.c.bf16 %v7890_v16, %v7889_v61 }
0x249e   :  { %v4345_v50 = vsel %vm636_vm6, %v4343_v19, -inf  ;;  %v4838_v19 = vld [vmem:[%s12065_s14 + $0x8] sm:$0xff] }
0x249f   :  { %4346 = vmax.xlane.f32.xlu1 %v4345_v50  ;;  %v8984_v50 = vpack.c.bf16 %v4838_v19, %v4837_v63  ;;  %8973 = vmatpush3.bf16.msra.mxu1 %v8972_v14 }
0x24a0   :  { %8974 = vmatprep.subr.bf16.mxu1 %v9490_v31 }
0x24a1   :  { %8985 = vmatpush3.bf16.msra.mxu0 %v8984_v50 }
0x24a2   :  { %8986 = vmatprep.subr.bf16.mxu0 %v9490_v31 }
0x252c   :  { %v4347_v12 = vpop.xlane.xlu1 %4346 }
0x252d   :  { %v4352_v1 = vrot.slane %v4347_v12, %v9704_v48  ;;  %v4356_v4 = vrot.slane %v4347_v12, %v9711_v58  ;;  %v7891_v12 = vld [vmem:[%s12055_s8 + $0x50] sm:$0xff] }
0x252f   :  { %v4359_v62 = vsub.f32 %v4317_v55, %v4352_v1  ;;  %v4360_v9 = vsub.f32 %v4318_v56, %v4352_v1  ;;  %v4361_v8 = vsub.f32 %v4319_v29, %v4356_v4  ;;  %v4362_v10 = vsub.f32 %v4320_v25, %v4356_v4  ;;  %v7892_v1 = vld [vmem:[%s12055_s8 + $0x58] sm:$0xff]  ;;  %v4839_v4 = vld [vmem:[%s12065_s14 + $0x10] sm:$0xff] }
0x2531   :  { %v4363_v7 = vmul.f32 1.442695, %v4359_v62  ;;  %v4365_v15 = vmul.f32 1.442695, %v4360_v9  ;;  %v4367_v59 = vmul.f32 1.442695, %v4361_v8  ;;  %v8975_v62 = vpack.c.bf16 %v7892_v1, %v7891_v12 }
0x2532   :  { %v4369_v17 = vmul.f32 1.442695, %v4362_v10  ;;  %v4840_v9 = vld [vmem:[%s12065_s14 + $0x18] sm:$0xff]  ;;  %v7893_v10 = vld [vmem:[%s12055_s8 + $0x60] sm:$0xff] }
0x2533   :  { %9360 = vpow2.f32 %v4363_v7  ;;  %v8987_v8 = vpack.c.bf16 %v4840_v9, %v4839_v4  ;;  %8976 = vmatpush3.bf16.msra.mxu1 %v8975_v62  ;;  %v7894_v7 = vld [vmem:[%s12055_s8 + $0x68] sm:$0xff] }
0x2534   :  { %9362 = vpow2.f32 %v4365_v15  ;;  %8977 = vmatprep.subr.bf16.mxu1 %v9490_v31  ;;  %v4841_v15 = vld [vmem:[%s12065_s14 + $0x20] sm:$0xff] }
0x2535   :  { %9364 = vpow2.f32 %v4367_v59  ;;  %8988 = vmatpush3.bf16.msra.mxu0 %v8987_v8  ;;  %v8978_v59 = vpack.c.bf16 %v7894_v7, %v7893_v10  ;;  %v4716_v7 = vrot.slane %v11013_v6, %v9711_v58 }
0x2536   :  { %9366 = vpow2.f32 %v4369_v17  ;;  %8989 = vmatprep.subr.bf16.mxu0 %v9490_v31  ;;  %v4842_v17 = vld [vmem:[%s12065_s14 + $0x28] sm:$0xff] }
0x2537   :  { %8979 = vmatpush3.bf16.msra.mxu1 %v8978_v59 }
0x2538   :  { %8980 = vmatprep.subr.bf16.mxu1 %v9490_v31 }
0x253d   :  { %v9361_v21 = vpop.eup %9360 }
0x253e   :  { %v9363_v22 = vpop.eup %9362  ;;  %4376 = vperm.xlu1 %9228, %v9361_v21  }
0x253f   :  { %4379 = vperm.xlu0 %9229, %v9363_v22   ;;  %v9365_v26 = vpop.eup %9364 }
0x2540   :  { %v9367_v38 = vpop.eup %9366 }
0x2542   :  { %4382 = vperm.xlu1 %9228, %v9365_v26  }
0x2543   :  { %4385 = vperm.xlu0 %9229, %v9367_v38  }
0x25bd   :  { %v4377_v28 = vpop.permute.xlu1 %4376 }
0x25be   :  { %v4380_v27 = vpop.permute.xlu0 %4379  ;;  %v4390_v32 = vrot.slane %v4377_v28, %v9867_v45 }
0x25bf   :  { %v4394_v30 = vrot.slane %v4380_v27, %v9870_v49  ;;  %v4844_v27 = vld [vmem:[%s12065_s14 + $0x38] sm:$0xff] }
0x25c1   :  { %v4383_v34 = vpop.permute.xlu1 %4382  ;;  %v4395_v11 = vsel %vm622_vm4, %v4394_v30, %v4390_v32 }
0x25c2   :  { %v4386_v43 = vpop.permute.xlu0 %4385  ;;  %v4399_v36 = vrot.slane %v4383_v34, %v9867_v45  ;;  %v11130_v34 = vld [vmem:[%s12066_s1] sm:$0xff] }
0x25c3   :  { %v4403_v39 = vrot.slane %v4386_v43, %v9870_v49 }
0x25c5   :  { %v4404_v40 = vsel %vm622_vm4, %v4403_v39, %v4399_v36  ;;  %v11136_v39 = vld [vmem:[%s12066_s1 + $0x8] sm:$0xff] }
0x25c6   :  { %v4405_v41 = vsel %vm633_vm5, %v4404_v40, %v4395_v11 }
0x25c7   :  { %v4407_v42 = vsel %vm636_vm6, %v4405_v41, 0.0 }
0x25c8   :  { %4408 = vadd.xlane.f32.xlu1 %v4407_v42 }
0x2655   :  { %v4409_v44 = vpop.xlane.xlu1 %4408 }
0x2656   :  { %v4414_v51 = vrot.slane %v4409_v44, %v9704_v48  ;;  %v4418_v23 = vrot.slane %v4409_v44, %v9711_v58 }
0x2658   :  { %9368 = vrcp.f32 %v4414_v51 }
0x2659   :  { %9370 = vrcp.f32 %v4418_v23  ;;  %v11144_v23 = vld [vmem:[%s12066_s1 + $0x10] sm:$0xff] }
0x2662   :  { %v9369_v55 = vpop.eup %9368 }
0x2663   :  { %v4422_v56 = vmul.f32 %v9369_v55, %v9361_v21  ;;  %v4423_v29 = vmul.f32 %v9369_v55, %v9363_v22  ;;  %v9371_v25 = vpop.eup %9370  ;;  %v8990_v21 = vpack.c.bf16 %v4842_v17, %v4841_v15  ;;  %v7895_v22 = vld [vmem:[%s12055_s8 + $0x70] sm:$0xff]  ;;  %v4720_v15 = vadd.f32 %v4716_v7, %v11022_v0  ;;  %v7899_v17 = vld [vmem:[%s12059_s9 + $0x1] ss:$0 sm:$0xff] }
0x2664   :  { %v4425_v46 = vmul.f32 %v9371_v25, %v9365_v26  ;;  %v4426_v60 = vmul.f32 %v9371_v25, %v9367_v38  ;;  %v7896_v26 = vld [vmem:[%s12055_s8 + $0x78] sm:$0xff]  ;;  %v4843_v38 = vld [vmem:[%s12065_s14 + $0x30] sm:$0xff]  ;;  %v7925_v7 = vld [vmem:[%s12087_s29 + $0xa0] sm:$0xff] }
0x2665   :  { %4429 = vperm.xlu0 %9229, %v4422_v56   ;;  %8991 = vmatpush3.bf16.msra.mxu0 %v8990_v21  ;;  %v8981_v28 = vpack.c.bf16 %v7896_v26, %v7895_v22  ;;  %v8993_v30 = vpack.c.bf16 %v4844_v27, %v4843_v38  ;;  %v11150_v25 = vld [vmem:[%s12066_s1 + $0x18] sm:$0xff]  ;;  %v7888_v27 = vmul.f32 -1.442695, %v11020_v13  ;;  %v7906_v13 = vld [vmem:[%s12060_s10 + $0x20] sm:$0xff] }
0x2666   :  { %8992 = vmatprep.subr.bf16.mxu0 %v9490_v31 }
0x2667   :  { %8982 = vmatpush3.bf16.msra.mxu1 %v8981_v28  ;;  %9372 = vpow2.f32 %v7888_v27 }
0x2668   :  { %8995 = vmatprep.subr.bf16.mxu1 %v9490_v31 }
0x2669   :  { %4434 = vperm.xlu0 %9229, %v4423_v29   ;;  %8994 = vmatpush3.bf16.msra.mxu0 %v8993_v30 }
0x266a   :  { %9021 = vmatprep.subr.bf16.mxu0 %v9490_v31 }
0x266d   :  { %4439 = vperm.xlu0 %9229, %v4425_v46  }
0x2671   :  { %4444 = vperm.xlu0 %9229, %v4426_v60   ;;  %v9373_v30 = vpop.eup %9372 }
0x26e4   :  { %v4430_v32 = vpop.permute.xlu0 %4429 }
0x26e5   :  { %v4447_v43 = vmul.f32 %v11130_v34, %v4430_v32  ;;  %v4724_v32 = vadd.f32 1.0, %v9373_v30 }
0x26e7   :  { %v4451_v40 = vsel %vm338_vm2, %v4447_v43, 0.0  ;;  %9374 = vrcp.f32 %v4724_v32  ;;  %v7902_v32 = vld [vmem:[%s12062_s3 + $0x20] sm:$0xff] }
0x26e8   :  { %v4435_v36 = vpop.permute.xlu0 %4434 }
0x26e9   :  { %v4448_v11 = vmul.f32 %v11136_v39, %v4435_v36 }
0x26eb   :  { %v4452_v41 = vsel %vm338_vm2, %v4448_v11, 0.0 }
0x26ec   :  { %v4453_v42 = vadd.f32 %v4452_v41, %v4451_v40  ;;  %v4440_v44 = vpop.permute.xlu0 %4439 }
0x26ed   :  { %v4449_v55 = vmul.f32 %v11144_v23, %v4440_v44  ;;  %v7908_v44 = vld [vmem:[%s12060_s10 + $0x30] sm:$0xff] }
0x26ee   :  { %v4454_v51 = vrot.slane %v4453_v42, 4 }
0x26ef   :  { %v4460_v60 = vsel %vm338_vm2, %v4449_v55, 0.0  ;;  %v7922_v55 = vld [vmem:[%s12087_s29 + $0x88] sm:$0xff] }
0x26f0   :  { %v4455_v56 = vadd.f32 %v4454_v51, %v4453_v42  ;;  %v4445_v29 = vpop.permute.xlu0 %4444  ;;  %v7907_v42 = vld [vmem:[%s12060_s10 + $0x28] sm:$0xff] }
0x26f1   :  { %v4450_v46 = vmul.f32 %v11150_v25, %v4445_v29  ;;  %v9375_v43 = vpop.eup %9374  ;;  %v8996_v51 = vpack.c.bf16 %v7907_v42, %v7906_v13 }
0x26f2   :  { %v4456_v16 = vrot.slane %v4455_v56, 2  ;;  %v4824_v11 = vmul.f32 %v9375_v43, %v10598_v35  ;;  %v7909_v35 = vld [vmem:[%s12060_s10 + $0x38] sm:$0xff] }
0x26f3   :  { %v4461_v61 = vsel %vm338_vm2, %v4450_v46, 0.0  ;;  %v8999_v29 = vpack.c.bf16 %v7909_v35, %v7908_v44 }
0x26f4   :  { %v4462_v63 = vadd.f32 %v4461_v61, %v4460_v60  ;;  %v4457_v19 = vadd.f32 %v4456_v16, %v4455_v56  ;;  %v7924_v56 = vld [vmem:[%s12087_s29 + $0x98] sm:$0xff]  ;;  %v7901_v61 = vld [vmem:[%s12067_s15] ss:$0 sm:$0xff] }
0x26f5   :  { %v9001_v46 = vpack.c.bf16 %v7924_v56, %v7922_v55 }
0x26f6   :  { %v4463_v14 = vrot.slane %v4462_v63, 4  ;;  %v4458_v1 = vrot.slane %v4457_v19, 1 }
0x26f8   :  { %v4464_v50 = vadd.f32 %v4463_v14, %v4462_v63  ;;  %v4459_v9 = vadd.f32 %v4458_v1, %v4457_v19  ;;  %v7921_v1 = vld [vmem:[%s12087_s29 + $0x80] sm:$0xff] }
0x26fa   :  { %v4465_v12 = vrot.slane %v4464_v50, 2 }
0x26fc   :  { %v4466_v4 = vadd.f32 %v4465_v12, %v4464_v50 }
0x26fe   :  { %v4467_v62 = vrot.slane %v4466_v4, 1 }
0x2700   :  { %v4468_v8 = vadd.f32 %v4467_v62, %v4466_v4  ;;  %v7923_v4 = vld [vmem:[%s12087_s29 + $0x90] sm:$0xff]  ;;  %v7926_v62 = vld [vmem:[%s12087_s29 + $0xa8] sm:$0xff] }
0x2702   :  { %v4737_v10 = vsel %vm633_vm5, %v4468_v8, %v4459_v9  ;;  %v7928_v9 = vld [vmem:[%s12087_s29 + $0xb8] sm:$0xff]  ;;  %v9003_v8 = vpack.c.bf16 %v7923_v4, %v7921_v1  ;;  %v7916_v1 = vld [vmem:[%s12064_s13 + $0x1] ss:$0 sm:$0xff] }
0x2703   :  { %8497 = vmatmul.mubr.msk.f32.vlgmr.msra.gmra.mrb[24].mxu1 %vm338_vm2, %v4737_v10  ;;  %8516 = vmatmul.mubr.msk.f32.vlgmr.msra.gmra.mrb[22].mxu0 %vm338_vm2, %v4737_v10  ;;  %v9005_v10 = vpack.c.bf16 %v7928_v9, %v7926_v62 }
0x2704   :  { %8526 = vmatprep.mubr.msk.f32.mxu1 %vm9491_vm1, %v9489_v3  ;;  %8545 = vmatprep.mubr.msk.f32.mxu0 %vm9491_vm1, %v9489_v3 }
0x2705   :  { %8997 = vmatpush3.bf16.msra.mxu1 %v8996_v51  ;;  %v7914_v51 = vld [vmem:[%s12063_s12 + $0x1] ss:$0 sm:$0xff] }
0x2706   :  { %8998 = vmatprep.subr.bf16.mxu1 %v9490_v31 }
0x2709   :  { %9000 = vmatpush3.bf16.msra.mxu1 %v8999_v29 }
0x270a   :  { %9002 = vmatprep.subr.bf16.mxu1 %v9001_v46 }
0x27d6   :  { %v4806_v59 = vpop.f32.mrb[24].mxu1  ;;  %v4911_v21 = vpop.f32.mrb[22].mxu0 }
0x27d7   :  { %v4810_v22 = vadd.f32 %v4806_v59, %v4720_v15  ;;  %v8498_v26 = vpop.f32.mrb[25].mxu1  ;;  %v8517_v38 = vpop.f32.mrb[23].mxu0  ;;  %v7927_v15 = vld [vmem:[%s12087_s29 + $0xb0] sm:$0xff] }
0x27d9   :  { %v4818_v28 = vadd.f32 %v7899_v17, %v4810_v22  ;;  %v9007_v17 = vpack.c.bf16 %v7927_v15, %v7925_v7 }
0x27db   :  { %4820 = vrot.lane.b32.xlu0 %v4818_v28, %s12090_s23 }
0x284d   :  { %v4821_v6 = vpop.permute.xlu0 %4820 }
0x284e   :  { %v4823_v0 = vmax.f32 %v4818_v28, %v4821_v6 }
0x2850   :  { %v4825_v36 = vmul.f32 %v9375_v43, %v4823_v0 }
0x2852   :  { %4827 = vrot.lane.b32.xlu0 %v4825_v36, %s12091_s28  ;;  %v7905_v36 = vld [vmem:[%s12062_s3 + $0x38] sm:$0xff] }
0x2856   :  { %4916 = vrot.lane.b32.xlu0 %v4911_v21, %s12092_s21  ;;  %v7911_v21 = vld [vmem:[%s12061_s11 + $0x1] ss:$0 sm:$0xff] }
0x28c4   :  { %v4828_v40 = vpop.permute.xlu0 %4827 }
0x28c5   :  { %v11173_v41 = vadd.f32 %v4828_v40, %v4824_v11 }
0x28c7   :  { %9376 = vtanh.f32 %v11173_v41 }
0x28c8   :  { %v4917_v16 = vpop.permute.xlu0 %4916 }
0x28d1   :  { %v9377_v60 = vpop.eup %9376 }
0x28d2   :  { %4833 = vrot.lane.b32.xlu0 %v9377_v60, %s12091_s28 }
0x28d6   :  { %4926 = vrot.lane.b32.xlu0 %v7901_v61, %s12092_s21 }
0x2944   :  { %v4834_v63 = vpop.permute.xlu0 %4833 }
0x2945   :  { %v11200_v14 = vmul.f32 %v9375_v43, %v4834_v63  ;;  %v7904_v43 = vld [vmem:[%s12062_s3 + $0x30] sm:$0xff] }
0x2947   :  { %v4919_v19 = vadd.f32 %v4917_v16, %v11200_v14 }
0x2948   :  { %v4927_v50 = vpop.permute.xlu0 %4926 }
0x2949   :  { %v4929_v12 = vadd.f32 %v4927_v50, %v4919_v19 }
0x294b   :  { %4946 = vrot.lane.b32.xlu1 %v4929_v12, %s12092_s21 }
0x29bd   :  { %v4947_v59 = vpop.permute.xlu1 %4946 }
0x29be   :  { %8527 = vmatmul.mubr.msk.f32.vlgmr.msra.gmra.mrb[26].mxu1 %vm79_vm3, %v4947_v59 }
0x29bf   :  { %9004 = vmatpush1.bf16.msra.mxu1 %v9003_v8  ;;  %5322 = vmatprep.mubr.f32.mxu1 %v9489_v3 }
0x29c0   :  { %9006 = vmatprep.subr.bf16.mxu1 %v9005_v10 }
0x29c3   :  { %9008 = vmatpush1.bf16.msra.mxu1 %v9007_v17 }
0x29c6   :  { %7929 = vmatmul.mubr.msk.f32.vlgmr.msra.gmra.mrb[28].mxu1 %vm79_vm3, %v10920_v54  ;;  %v7903_v54 = vld [vmem:[%s12062_s3 + $0x28] sm:$0xff] }
0x29c7   :  { %5396 = vmatprep.mubr.f32.mxu1 %v9489_v3 }
0x2a91   :  { %v5016_v22 = vpop.f32.mrb[26].mxu1 }
0x2a92   :  { %v5017_v26 = vadd.f32 %v7911_v21, %v5016_v22  ;;  %v8528_v38 = vpop.f32.mrb[27].mxu1 }
0x2a94   :  { %v5027_v28 = vrot.slane %v5017_v26, %v9832_v2 }
0x2a96   :  { %v5028_v27 = vcombine.high %v5027_v28, %v5027_v28  ;;  %v5035_v30 = vrot.slane %v5027_v28, %v9832_v2 }
0x2a98   :  { %v5042_v6 = vrot.slane %v5028_v27, %v9832_v2  ;;  %v5046_v0 = vrot.slane %v5035_v30, %v9704_v48 }
0x2a9a   :  { %v5050_v11 = vrot.slane %v5042_v6, %v9704_v48  ;;  %v5053_v40 = vadd.f32 %v7902_v32, %v5046_v0  ;;  %v5054_v13 = vadd.f32 %v7903_v54, %v5046_v0 }
0x2a9c   :  { %v5055_v42 = vadd.f32 %v7904_v43, %v5050_v11  ;;  %v5056_v44 = vadd.f32 %v7905_v36, %v5050_v11  ;;  %9378 = vtanh.f32 %v5053_v40 }
0x2a9d   :  { %9380 = vtanh.f32 %v5054_v13 }
0x2a9e   :  { %9382 = vtanh.f32 %v5055_v42 }
0x2a9f   :  { %9384 = vtanh.f32 %v5056_v44 }
0x2aa6   :  { %v9379_v35 = vpop.eup %9378 }
0x2aa7   :  { %v9381_v55 = vpop.eup %9380  ;;  %v5068_v56 = vmul.f32 %v9379_v35, %v7914_v51 }
0x2aa8   :  { %v9383_v29 = vpop.eup %9382  ;;  %v5069_v46 = vmul.f32 %v9381_v55, %v7914_v51 }
0x2aa9   :  { %v5072_v60 = vsel %vm79_vm3, %v5068_v56, 0.0  ;;  %v5070_v61 = vmul.f32 %v9383_v29, %v7914_v51  ;;  %v9385_v16 = vpop.eup %9384 }
0x2aaa   :  { %v5075_v63 = vsel %vm79_vm3, %v5069_v46, 0.0  ;;  %5073 = vadd.xlane.f32.xlu0 %v5072_v60  ;;  %v5071_v50 = vmul.f32 %v9385_v16, %v7914_v51 }
0x2aab   :  { %5076 = vadd.xlane.f32.xlu1 %v5075_v63  ;;  %v5078_v19 = vsel %vm79_vm3, %v5070_v61, 0.0 }
0x2aac   :  { %v5081_v12 = vsel %vm79_vm3, %v5071_v50, 0.0 }
0x2aae   :  { %5079 = vadd.xlane.f32.xlu0 %v5078_v19 }
0x2ab2   :  { %5082 = vadd.xlane.f32.xlu0 %v5081_v12 }
0x2ac8   :  { %5091 = vperm.xlu0 %9229, %v7916_v1  }
0x2b37   :  { %v5074_v4 = vpop.xlane.xlu0 %5073 }
0x2b38   :  { %v5077_v8 = vpop.xlane.xlu1 %5076 }
0x2b3b   :  { %v5080_v62 = vpop.xlane.xlu0 %5079 }
0x2b3f   :  { %v5083_v9 = vpop.xlane.xlu0 %5082 }
0x2b47   :  { %v5092_v10 = vpop.permute.xlu0 %5091 }
0x2b48   :  { %v5094_v7 = vadd.f32 %v5092_v10, %v5074_v4  ;;  %v5095_v15 = vadd.f32 %v5092_v10, %v5077_v8  ;;  %v5096_v59 = vadd.f32 %v5092_v10, %v5080_v62  ;;  %v5097_v17 = vadd.f32 %v5092_v10, %v5083_v9 }
0x2b4a   :  { %v5105_v21 = vrot.slane %v5094_v7, %v9867_v45  ;;  %v5109_v22 = vrot.slane %v5095_v15, %v9870_v49  ;;  %v5114_v26 = vrot.slane %v5096_v59, %v9867_v45  ;;  %v5118_v38 = vrot.slane %v5097_v17, %v9870_v49 }
0x2b4c   :  { %v5110_v28 = vsel %vm622_vm4, %v5109_v22, %v5105_v21  ;;  %v5119_v27 = vsel %vm622_vm4, %v5118_v38, %v5114_v26  ;;  %v7918_v21 = vld [vmem:[%s12088_s19 + $0x48] sm:$0xff]  ;;  %v7920_v22 = vld [vmem:[%s12088_s19 + $0x58] sm:$0xff] }
0x2b4d   :  { %v5120_v30 = vsel %vm633_vm5, %v5119_v27, %v5110_v28  ;;  %v9009_v38 = vpack.c.bf16 %v7920_v22, %v7918_v21  ;;  %v7917_v28 = vld [vmem:[%s12088_s19 + $0x40] sm:$0xff]  ;;  %v7919_v27 = vld [vmem:[%s12088_s19 + $0x50] sm:$0xff] }
0x2b4e   :  { %v5122_v32 = vsel %vm636_vm6, %v5120_v30, -inf  ;;  %v9011_v30 = vpack.c.bf16 %v7919_v27, %v7917_v28 }
0x2b4f   :  { %5123 = vmax.xlane.f32.xlu1 %v5122_v32  ;;  %9010 = vmatprep.subr.bf16.mxu1 %v9009_v38 }
0x2b50   :  { %9012 = vmatpush1.bf16.msra.mxu1 %v9011_v30  ;;  %v5634_v30 = vld [vmem:[%s12087_s29] sm:$0xff] }
0x2bdc   :  { %v5124_v54 = vpop.xlane.xlu1 %5123 }
0x2bdd   :  { %v5129_v6 = vrot.slane %v5124_v54, %v9704_v48  ;;  %v5133_v0 = vrot.slane %v5124_v54, %v9711_v58  ;;  %v7932_v54 = vld [vmem:[%s12089_s6 + $0x88] sm:$0xff] }
0x2bdf   :  { %v5136_v43 = vsub.f32 %v5094_v7, %v5129_v6  ;;  %v5137_v36 = vsub.f32 %v5095_v15, %v5129_v6  ;;  %v5138_v11 = vsub.f32 %v5096_v59, %v5133_v0  ;;  %v5139_v42 = vsub.f32 %v5097_v17, %v5133_v0  ;;  %v7934_v6 = vld [vmem:[%s12089_s6 + $0x98] sm:$0xff] }
0x2be0   :  { %v9013_v0 = vpack.c.bf16 %v7934_v6, %v7932_v54  ;;  %v5641_v6 = vld [vmem:[%s12087_s29 + $0x38] sm:$0xff] }
0x2be1   :  { %v5140_v40 = vmul.f32 1.442695, %v5136_v43  ;;  %v5142_v13 = vmul.f32 1.442695, %v5137_v36  ;;  %v5144_v44 = vmul.f32 1.442695, %v5138_v11 }
0x2be2   :  { %v5146_v51 = vmul.f32 1.442695, %v5139_v42  ;;  %v7931_v43 = vld [vmem:[%s12089_s6 + $0x80] sm:$0xff]  ;;  %v7933_v36 = vld [vmem:[%s12089_s6 + $0x90] sm:$0xff]  ;;  %9014 = vmatprep.subr.bf16.mxu1 %v9013_v0  ;;  %v7936_v42 = vld [vmem:[%s12089_s6 + $0xa8] sm:$0xff] }
0x2be3   :  { %9386 = vpow2.f32 %v5140_v40  ;;  %v9015_v11 = vpack.c.bf16 %v7933_v36, %v7931_v43  ;;  %v7853_v40 = vld [vmem:[%s12056_s0 + $0x10] sm:$0x3] }
0x2be4   :  { %9388 = vpow2.f32 %v5142_v13  ;;  %7930 = vmatmul.mubr.msk.f32.vlgmr.msra.gmra.mrb[28].mxu1 %vm154_vm0, %v7853_v40  ;;  %v5638_v40 = vld [vmem:[%s12087_s29 + $0x20] sm:$0xff] }
0x2be5   :  { %9390 = vpow2.f32 %v5144_v44  ;;  %v7938_v44 = vld [vmem:[%s12089_s6 + $0xb8] sm:$0xff]  ;;  %9016 = vmatpush1.bf16.msra.mxu1 %v9015_v11  ;;  %5480 = vmatprep.mubr.f32.mxu1 %v9489_v3 }
0x2be6   :  { %9392 = vpow2.f32 %v5146_v51  ;;  %v9017_v51 = vpack.c.bf16 %v7938_v44, %v7936_v42 }
0x2be8   :  { %9018 = vmatprep.subr.bf16.mxu1 %v9017_v51 }
0x2bed   :  { %v9387_v35 = vpop.eup %9386 }
0x2bee   :  { %v9389_v55 = vpop.eup %9388  ;;  %5153 = vperm.xlu1 %9228, %v9387_v35  }
0x2bef   :  { %5156 = vperm.xlu0 %9229, %v9389_v55   ;;  %v9391_v56 = vpop.eup %9390 }
0x2bf0   :  { %v9393_v29 = vpop.eup %9392 }
0x2bf3   :  { %5159 = vperm.xlu0 %9229, %v9391_v56  }
0x2bf7   :  { %5162 = vperm.xlu0 %9229, %v9393_v29  }
0x2c6d   :  { %v5154_v60 = vpop.permute.xlu1 %5153 }
0x2c6e   :  { %v5157_v46 = vpop.permute.xlu0 %5156  ;;  %v5167_v63 = vrot.slane %v5154_v60, %v9867_v45  ;;  %v5635_v60 = vld [vmem:[%s12087_s29 + $0x8] sm:$0xff] }
0x2c6f   :  { %v5171_v16 = vrot.slane %v5157_v46, %v9870_v49  ;;  %v7943_v46 = vld [vmem:[%s12055_s8 + $0x88] sm:$0xff] }
0x2c71   :  { %v5172_v1 = vsel %vm622_vm4, %v5171_v16, %v5167_v63  ;;  %v5637_v16 = vld [vmem:[%s12087_s29 + $0x18] sm:$0xff] }
0x2c72   :  { %v5160_v61 = vpop.permute.xlu0 %5159  ;;  %v9033_v63 = vpack.c.bf16 %v5637_v16, %v5635_v60 }
0x2c73   :  { %v5176_v50 = vrot.slane %v5160_v61, %v9867_v45 }
0x2c76   :  { %v5163_v19 = vpop.permute.xlu0 %5162 }
0x2c77   :  { %v5180_v12 = vrot.slane %v5163_v19, %v9870_v49  ;;  %v7944_v19 = vld [vmem:[%s12055_s8 + $0x90] sm:$0xff] }
0x2c79   :  { %v5181_v4 = vsel %vm622_vm4, %v5180_v12, %v5176_v50  ;;  %v7945_v50 = vld [vmem:[%s12055_s8 + $0x98] sm:$0xff] }
0x2c7a   :  { %v5182_v62 = vsel %vm633_vm5, %v5181_v4, %v5172_v1  ;;  %v9025_v12 = vpack.c.bf16 %v7945_v50, %v7944_v19  ;;  %v7946_v1 = vld [vmem:[%s12055_s8 + $0xa0] sm:$0xff]  ;;  %v7947_v4 = vld [vmem:[%s12055_s8 + $0xa8] sm:$0xff] }
0x2c7b   :  { %v5184_v9 = vsel %vm636_vm6, %v5182_v62, 0.0  ;;  %v9028_v62 = vpack.c.bf16 %v7947_v4, %v7946_v1  ;;  %v7940_v50 = vld [vmem:[%s12058_s7 + $0x4] sm:$0x3] }
0x2c7c   :  { %5185 = vadd.xlane.f32.xlu1 %v5184_v9  ;;  %v7948_v9 = vld [vmem:[%s12055_s8 + $0xb0] sm:$0xff] }
0x2d09   :  { %v5186_v8 = vpop.xlane.xlu1 %5185 }
0x2d0a   :  { %v5191_v10 = vrot.slane %v5186_v8, %v9704_v48  ;;  %v5195_v7 = vrot.slane %v5186_v8, %v9711_v58  ;;  %v7949_v8 = vld [vmem:[%s12055_s8 + $0xb8] sm:$0xff] }
0x2d0c   :  { %9394 = vrcp.f32 %v5191_v10  ;;  %v9031_v10 = vpack.c.bf16 %v7949_v8, %v7948_v9  ;;  %v5498_v9 = vrot.slane %v7940_v50, %v9711_v58 }
0x2d0d   :  { %9396 = vrcp.f32 %v5195_v7 }
0x2d16   :  { %v9395_v15 = vpop.eup %9394 }
0x2d17   :  { %v5199_v59 = vmul.f32 %v9395_v15, %v9387_v35  ;;  %v5200_v17 = vmul.f32 %v9395_v15, %v9389_v55  ;;  %v9397_v26 = vpop.eup %9396  ;;  %v7935_v35 = vld [vmem:[%s12089_s6 + $0xa0] sm:$0xff]  ;;  %v7937_v55 = vld [vmem:[%s12089_s6 + $0xb0] sm:$0xff] }
0x2d18   :  { %v5202_v32 = vmul.f32 %v9397_v26, %v9391_v56  ;;  %v5203_v13 = vmul.f32 %v9397_v26, %v9393_v29  ;;  %v9019_v56 = vpack.c.bf16 %v7937_v55, %v7935_v35  ;;  %v7942_v29 = vld [vmem:[%s12055_s8 + $0x80] sm:$0xff] }
0x2d19   :  { %5206 = vperm.xlu0 %9229, %v5199_v59   ;;  %v9022_v61 = vpack.c.bf16 %v7943_v46, %v7942_v29 }
0x2d1a   :  { %9020 = vmatpush1.bf16.msra.mxu1 %v9019_v56 }
0x2d1b   :  { %9023 = vmatpush3.bf16.msra.mxu0 %v9022_v61  ;;  %9034 = vmatprep.subr.bf16.mxu1 %v9033_v63 }
0x2d1c   :  { %9024 = vmatprep.subr.bf16.mxu0 %v9490_v31 }
0x2d1d   :  { %5211 = vperm.xlu0 %9229, %v5200_v17  }
0x2d1f   :  { %9026 = vmatpush3.bf16.msra.mxu0 %v9025_v12  ;;  %v5494_v12 = vrot.slane %v7940_v50, %v9704_v48  ;;  %v5793_v50 = vld [vmem:[%s12089_s6 + $0x30] sm:$0xff] }
0x2d20   :  { %9027 = vmatprep.subr.bf16.mxu0 %v9490_v31 }
0x2d21   :  { %5216 = vperm.xlu0 %9229, %v5202_v32  }
0x2d23   :  { %9029 = vmatpush3.bf16.msra.mxu0 %v9028_v62 }
0x2d24   :  { %9030 = vmatprep.subr.bf16.mxu0 %v9490_v31 }
0x2d25   :  { %5221 = vperm.xlu0 %9229, %v5203_v13   ;;  %v5640_v13 = vld [vmem:[%s12087_s29 + $0x30] sm:$0xff] }
0x2d26   :  { %v9039_v35 = vpack.c.bf16 %v5640_v13, %v5638_v40  ;;  %v5788_v13 = vld [vmem:[%s12089_s6 + $0x8] sm:$0xff] }
0x2d27   :  { %9032 = vmatpush3.bf16.msra.mxu0 %v9031_v10 }
0x2d28   :  { %9053 = vmatprep.subr.bf16.mxu0 %v9490_v31 }
0x2d29   :  { %5412 = vrot.lane.b32.xlu0 %v11200_v14, %s12092_s21 }
0x2d98   :  { %v5207_v7 = vpop.permute.xlu0 %5206 }
0x2d99   :  { %v5224_v15 = vmul.f32 %v11130_v34, %v5207_v7  ;;  %v5636_v34 = vld [vmem:[%s12087_s29 + $0x10] sm:$0xff]  ;;  %v7952_v7 = vld [vmem:[%s12059_s9 + $0x2] ss:$0 sm:$0xff] }
0x2d9a   :  { %v9035_v0 = vpack.c.bf16 %v5636_v34, %v5634_v30 }
0x2d9b   :  { %v5228_v21 = vsel %vm338_vm2, %v5224_v15, 0.0 }
0x2d9c   :  { %v5212_v59 = vpop.permute.xlu0 %5211 }
0x2d9d   :  { %v5225_v17 = vmul.f32 %v11136_v39, %v5212_v59  ;;  %v5639_v39 = vld [vmem:[%s12087_s29 + $0x28] sm:$0xff] }
0x2d9e   :  { %v9037_v11 = vpack.c.bf16 %v5641_v6, %v5639_v39  ;;  %v5631_v39 = vld [vmem:[%s12088_s19 + $0x8] sm:$0xff]  ;;  %v5633_v6 = vld [vmem:[%s12088_s19 + $0x18] sm:$0xff] }
0x2d9f   :  { %v5229_v22 = vsel %vm338_vm2, %v5225_v17, 0.0 }
0x2da0   :  { %v5230_v26 = vadd.f32 %v5229_v22, %v5228_v21  ;;  %v5217_v38 = vpop.permute.xlu0 %5216 }
0x2da1   :  { %v5226_v27 = vmul.f32 %v11144_v23, %v5217_v38 }
0x2da2   :  { %v5231_v28 = vrot.slane %v5230_v26, 4 }
0x2da3   :  { %v5237_v43 = vsel %vm338_vm2, %v5226_v27, 0.0 }
0x2da4   :  { %v5232_v32 = vadd.f32 %v5231_v28, %v5230_v26  ;;  %v5222_v54 = vpop.permute.xlu0 %5221 }
0x2da5   :  { %v5227_v23 = vmul.f32 %v11150_v25, %v5222_v54 }
0x2da6   :  { %v5233_v42 = vrot.slane %v5232_v32, 2 }
0x2da7   :  { %v5238_v36 = vsel %vm338_vm2, %v5227_v23, 0.0  ;;  %v5630_v23 = vld [vmem:[%s12088_s19] sm:$0xff] }
0x2da8   :  { %v5239_v44 = vadd.f32 %v5238_v36, %v5237_v43  ;;  %v11380_v51 = vpop.permute.xlu0 %5412  ;;  %v5234_v55 = vadd.f32 %v5233_v42, %v5232_v32  ;;  %v5893_v43 = vld [vmem:[%s12055_s8] sm:$0xff]  ;;  %v5894_v36 = vld [vmem:[%s12055_s8 + $0x8] sm:$0xff]  ;;  %v5790_v42 = vld [vmem:[%s12089_s6 + $0x18] sm:$0xff] }
0x2da9   :  { %7939 = vmatmul.mubr.msk.f32.vlgmr.msra.gmra.mrb[28].mxu1 %vm79_vm3, %v11380_v51  ;;  %v9054_v40 = vpack.c.bf16 %v5894_v36, %v5893_v43  ;;  %v5873_v36 = vld [vmem:[%s12058_s7] sm:$0x3] }
0x2daa   :  { %v5240_v25 = vrot.slane %v5239_v44, 4  ;;  %9036 = vmatpush1.bf16.msra.mxu1 %v9035_v0  ;;  %5706 = vmatprep.mubr.f32.mxu1 %v9489_v3  ;;  %v5235_v46 = vrot.slane %v5234_v55, 1  ;;  %v9041_v0 = vpack.c.bf16 %v5633_v6, %v5631_v39  ;;  %v7974_v39 = vld [vmem:[%s12087_s29 + $0x60] sm:$0xff]  ;;  %v7976_v6 = vld [vmem:[%s12087_s29 + $0x70] sm:$0xff] }
0x2dab   :  { %9038 = vmatprep.subr.bf16.mxu1 %v9037_v11 }
0x2dac   :  { %v5241_v56 = vadd.f32 %v5240_v25, %v5239_v44  ;;  %v5236_v16 = vadd.f32 %v5235_v46, %v5234_v55  ;;  %v7953_v44 = vld [vmem:[%s12056_s0 + $0x12] sm:$0x3]  ;;  %v9045_v25 = vpack.c.bf16 %v5790_v42, %v5788_v13  ;;  %v5896_v46 = vld [vmem:[%s12055_s8 + $0x18] sm:$0xff] }
0x2dad   :  { %v5789_v55 = vld [vmem:[%s12089_s6 + $0x10] sm:$0xff] }
0x2dae   :  { %v5242_v29 = vrot.slane %v5241_v56, 2  ;;  %9040 = vmatpush1.bf16.msra.mxu1 %v9039_v35  ;;  %v5787_v35 = vld [vmem:[%s12089_s6] sm:$0xff] }
0x2daf   :  { %9042 = vmatprep.subr.bf16.mxu1 %v9041_v0  ;;  %v9077_v0 = vpack.c.bf16 %v7976_v6, %v7974_v39  ;;  %v6005_v39 = vld [vmem:[%s12060_s10 + $0x18] sm:$0xff] }
0x2db0   :  { %v5243_v60 = vadd.f32 %v5242_v29, %v5241_v56  ;;  %v5895_v56 = vld [vmem:[%s12055_s8 + $0x10] sm:$0xff]  ;;  %v9047_v29 = vpack.c.bf16 %v5789_v55, %v5787_v35 }
0x2db1   :  { %7956 = vmatmul.mubr.msk.f32.vlgmr.msra.gmra.mrb[30].mxu1 %vm79_vm3, %v11000_v33 }
0x2db2   :  { %v5244_v61 = vrot.slane %v5243_v60, 1  ;;  %5780 = vmatprep.mubr.f32.mxu1 %v9489_v3 }
0x2db4   :  { %v5245_v63 = vadd.f32 %v5244_v61, %v5243_v60  ;;  %v5792_v60 = vld [vmem:[%s12089_s6 + $0x28] sm:$0xff]  ;;  %v5794_v61 = vld [vmem:[%s12089_s6 + $0x38] sm:$0xff] }
0x2db6   :  { %v5519_v19 = vsel %vm633_vm5, %v5245_v63, %v5236_v16  ;;  %v9057_v16 = vpack.c.bf16 %v5896_v46, %v5895_v56  ;;  %v9049_v63 = vpack.c.bf16 %v5794_v61, %v5792_v60 }
0x2db7   :  { %8546 = vmatmul.mubr.msk.f32.vlgmr.msra.gmra.mrb[24].mxu0 %vm338_vm2, %v5519_v19  ;;  %v5791_v19 = vld [vmem:[%s12089_s6 + $0x20] sm:$0xff] }
0x2db8   :  { %8564 = vmatprep.mubr.msk.f32.mxu0 %vm9491_vm1, %v9489_v3  ;;  %9055 = vmatpush3.bf16.msra.mxu0 %v9054_v40  ;;  %v5882_v40 = vrot.slane %v5873_v36, %v9711_v58 }
0x2db9   :  { %9056 = vmatprep.subr.bf16.mxu0 %v9490_v31 }
0x2dbc   :  { %9058 = vmatpush3.bf16.msra.mxu0 %v9057_v16 }
0x2dbd   :  { %9059 = vmatprep.subr.bf16.mxu0 %v9490_v31 }
0x2e7c   :  { %v5482_v1 = vpop.f32.mrb[28].mxu1 }
0x2e7d   :  { %v5501_v4 = vadd.f32 %v5494_v12, %v5482_v1  ;;  %v5484_v62 = vpop.f32.mrb[29].mxu1  ;;  %v5897_v12 = vld [vmem:[%s12055_s8 + $0x20] sm:$0xff]  ;;  %v5898_v1 = vld [vmem:[%s12055_s8 + $0x28] sm:$0xff] }
0x2e7e   :  { %v5502_v8 = vadd.f32 %v5498_v9, %v5484_v62  ;;  %v7973_v62 = vld [vmem:[%s12087_s29 + $0x58] sm:$0xff]  ;;  %v9051_v9 = vpack.c.bf16 %v5793_v50, %v5791_v19 }
0x2e7f   :  { %v7941_v21 = vmul.f32 -1.442695, %v5501_v4  ;;  %v7971_v4 = vld [vmem:[%s12087_s29 + $0x48] sm:$0xff] }
0x2e81   :  { %9398 = vpow2.f32 %v7941_v21  ;;  %v9484_v21 = vld [vmem:[%s12057_s2] sm:$0x3] }
0x2e8a   :  { %v5588_v10 = vpop.f32.mrb[24].mxu0 }
0x2e8b   :  { %v5592_v15 = vadd.f32 %v5588_v10, %v5502_v8  ;;  %v8547_v59 = vpop.f32.mrb[25].mxu0  ;;  %v9399_v22 = vpop.eup %9398  ;;  %v9060_v8 = vpack.c.bf16 %v5898_v1, %v5897_v12  ;;  %v9071_v10 = vpack.c.bf16 %v7973_v62, %v7971_v4  ;;  %v7967_v1 = vld [vmem:[%s12088_s19 + $0x28] sm:$0xff]  ;;  %v7969_v4 = vld [vmem:[%s12088_s19 + $0x38] sm:$0xff]  ;;  %v7966_v62 = vld [vmem:[%s12088_s19 + $0x20] sm:$0xff] }
0x2e8c   :  { %v5506_v26 = vadd.f32 1.0, %v9399_v22  ;;  %v5900_v59 = vld [vmem:[%s12055_s8 + $0x38] sm:$0xff] }
0x2e8d   :  { %v5600_v17 = vadd.f32 %v7952_v7, %v5592_v15  ;;  %9061 = vmatpush3.bf16.msra.mxu0 %v9060_v8  ;;  %v5899_v15 = vld [vmem:[%s12055_s8 + $0x30] sm:$0xff]  ;;  %v7981_v8 = vld [vmem:[%s12089_s6 + $0x48] sm:$0xff] }
0x2e8e   :  { %9400 = vrcp.f32 %v5506_v26  ;;  %9062 = vmatprep.subr.bf16.mxu0 %v9490_v31 }
0x2e8f   :  { %5602 = vrot.lane.b32.xlu0 %v5600_v17, %s12090_s23 }
0x2e98   :  { %v11401_v27 = vpop.eup %9400 }
0x2e99   :  { %v5606_v34 = vmul.f32 %v11401_v27, %v10812_v52  ;;  %v5632_v52 = vld [vmem:[%s12088_s19 + $0x10] sm:$0xff] }
0x2e9a   :  { %v9043_v11 = vpack.c.bf16 %v5632_v52, %v5630_v23 }
0x2e9c   :  { %9044 = vmatpush1.bf16.msra.mxu1 %v9043_v11  ;;  %v5878_v11 = vrot.slane %v5873_v36, %v9704_v48 }
0x2e9d   :  { %9046 = vmatprep.subr.bf16.mxu1 %v9045_v25 }
0x2e9f   :  { %7957 = vmatmul.mubr.msk.f32.vlgmr.msra.gmra.mrb[30].mxu1 %vm154_vm0, %v7953_v44 }
0x2ea0   :  { %9048 = vmatpush1.bf16.msra.mxu1 %v9047_v29  ;;  %5864 = vmatprep.mubr.f32.mxu1 %v9489_v3 }
0x2ea1   :  { %9050 = vmatprep.subr.bf16.mxu1 %v9049_v63 }
0x2ea4   :  { %9052 = vmatpush1.bf16.msra.mxu1 %v9051_v9  ;;  %v9079_v9 = vpack.c.bf16 %v7969_v4, %v7967_v1  ;;  %v6000_v4 = vld [vmem:[%s12062_s3 + $0x10] sm:$0xff] }
0x2ea5   :  { %9072 = vmatprep.subr.bf16.mxu1 %v9071_v10 }
0x2f01   :  { %v5603_v38 = vpop.permute.xlu0 %5602 }
0x2f02   :  { %v5605_v28 = vmax.f32 %v5600_v17, %v5603_v38  ;;  %v9063_v17 = vpack.c.bf16 %v5900_v59, %v5899_v15  ;;  %v7970_v38 = vld [vmem:[%s12087_s29 + $0x40] sm:$0xff]  ;;  %v7983_v15 = vld [vmem:[%s12089_s6 + $0x58] sm:$0xff] }
0x2f03   :  { %v6002_v59 = vld [vmem:[%s12060_s10] sm:$0xff] }
0x2f04   :  { %v5607_v30 = vmul.f32 %v11401_v27, %v5605_v28  ;;  %9064 = vmatpush3.bf16.msra.mxu0 %v9063_v17  ;;  %v7972_v28 = vld [vmem:[%s12087_s29 + $0x50] sm:$0xff]  ;;  %v6003_v17 = vld [vmem:[%s12060_s10 + $0x8] sm:$0xff] }
0x2f05   :  { %9065 = vmatprep.subr.bf16.mxu0 %v9490_v31 }
0x2f06   :  { %5609 = vrot.lane.b32.xlu0 %v5607_v30, %s12091_s28  ;;  %v7975_v30 = vld [vmem:[%s12087_s29 + $0x68] sm:$0xff] }
0x2f07   :  { %8565 = vmatmul.mubr.msk.f32.vlgmr.msra.gmra.mrb[26].mxu0 %vm338_vm2, %v9484_v21  ;;  %v9083_v21 = vpack.c.bf16 %v7983_v15, %v7981_v8  ;;  %v7964_v15 = vld [vmem:[%s12063_s12] ss:$0 sm:$0xff] }
0x2f08   :  { %8575 = vmatprep.mubr.msk.f32.mxu0 %vm9491_vm1, %v9489_v3 }
0x2f78   :  { %v5610_v32 = vpop.permute.xlu0 %5609 }
0x2f79   :  { %v11407_v54 = vadd.f32 %v5610_v32, %v5606_v34  ;;  %v9073_v34 = vpack.c.bf16 %v7972_v28, %v7970_v38  ;;  %v7980_v38 = vld [vmem:[%s12089_s6 + $0x40] sm:$0xff]  ;;  %v7982_v28 = vld [vmem:[%s12089_s6 + $0x50] sm:$0xff] }
0x2f7b   :  { %9402 = vtanh.f32 %v11407_v54 }
0x2f85   :  { %v9403_v7 = vpop.eup %9402 }
0x2f86   :  { %5615 = vrot.lane.b32.xlu0 %v9403_v7, %s12091_s28  ;;  %v7954_v7 = vld [vmem:[%s12056_s0 + $0x14] sm:$0x3] }
0x2fda   :  { %v5967_v52 = vpop.f32.mrb[26].mxu0 }
0x2fdb   :  { %v8566_v43 = vpop.f32.mrb[27].mxu0 }
0x2fdc   :  { %v7986_v43 = vld [vmem:[%s12089_s6 + $0x70] sm:$0xff] }
0x2ff8   :  { %v5616_v22 = vpop.permute.xlu0 %5615 }
0x2ff9   :  { %v11493_v26 = vmul.f32 %v11401_v27, %v5616_v22  ;;  %v7977_v27 = vld [vmem:[%s12087_s29 + $0x78] sm:$0xff]  ;;  %v9066_v22 = vpack.c.bf16 %v6003_v17, %v6002_v59 }
0x2ffa   :  { %v9075_v32 = vpack.c.bf16 %v7977_v27, %v7975_v30  ;;  %v7985_v30 = vld [vmem:[%s12089_s6 + $0x68] sm:$0xff]  ;;  %v9085_v27 = vpack.c.bf16 %v7982_v28, %v7980_v38 }
0x2ffb   :  { %5796 = vrot.lane.b32.xlu0 %v11493_v26, %s12092_s21  ;;  %9067 = vmatpush3.bf16.msra.mxu0 %v9066_v22 }
0x2ffc   :  { %9068 = vmatprep.subr.bf16.mxu0 %v9490_v31 }
0x306d   :  { %v11515_v23 = vpop.permute.xlu0 %5796 }
0x306e   :  { %7958 = vmatmul.mubr.msk.f32.vlgmr.msra.gmra.mrb[30].mxu1 %vm79_vm3, %v11515_v23 }
0x306f   :  { %9074 = vmatpush1.bf16.msra.mxu1 %v9073_v34  ;;  %6390 = vmatprep.mubr.f32.mxu1 %v9489_v3  ;;  %v7987_v34 = vld [vmem:[%s12089_s6 + $0x78] sm:$0xff] }
0x3070   :  { %9076 = vmatprep.subr.bf16.mxu1 %v9075_v32  ;;  %v6004_v32 = vld [vmem:[%s12060_s10 + $0x10] sm:$0xff]  ;;  %v9087_v6 = vpack.c.bf16 %v7987_v34, %v7985_v30 }
0x3073   :  { %9078 = vmatpush1.bf16.msra.mxu1 %v9077_v0  ;;  %v9069_v0 = vpack.c.bf16 %v6005_v39, %v6004_v32 }
0x3074   :  { %9080 = vmatprep.subr.bf16.mxu1 %v9079_v9 }
0x3075   :  { %9070 = vmatpush3.bf16.msra.mxu0 %v9069_v0  ;;  %v7965_v0 = vld [vmem:[%s12064_s13] ss:$0 sm:$0xff] }
0x3076   :  { %7978 = vmatmul.mubr.msk.f32.vlgmr.msra.gmra.mrb[32].mxu1 %vm79_vm3, %v11380_v51  ;;  %v7961_v51 = vld [vmem:[%s12059_s9] ss:$0 sm:$0xff]  ;;  %9091 = vmatprep.subr.bf16.mxu0 %v9490_v31 }
0x3077   :  { %6464 = vmatprep.mubr.f32.mxu1 %v9489_v3 }
0x3141   :  { %v5866_v13 = vpop.f32.mrb[30].mxu1 }
0x3142   :  { %v5885_v42 = vadd.f32 %v5878_v11, %v5866_v13  ;;  %v5868_v44 = vpop.f32.mrb[31].mxu1 }
0x3143   :  { %v5886_v25 = vadd.f32 %v5882_v40, %v5868_v44  ;;  %v11605_v44 = vld [vmem:[%s12058_s7 + $0x2] sm:$0x3] }
0x3144   :  { %v7959_v56 = vmul.f32 -1.442695, %v5885_v42 }
0x3145   :  { %v5971_v35 = vadd.f32 %v5967_v52, %v5886_v25  ;;  %v7984_v52 = vld [vmem:[%s12089_s6 + $0x60] sm:$0xff]  ;;  %v6557_v25 = vrot.slane %v11605_v44, %v9704_v48 }
0x3146   :  { %9404 = vpow2.f32 %v7959_v56  ;;  %v9089_v36 = vpack.c.bf16 %v7986_v43, %v7984_v52 }
0x3147   :  { %v5979_v55 = vadd.f32 %v7961_v51, %v5971_v35  ;;  %v7962_v51 = vld [vmem:[%s12061_s11] ss:$0 sm:$0xff] }
0x3149   :  { %5981 = vrot.lane.b32.xlu1 %v5979_v55, %s12090_s23 }
0x3150   :  { %v9405_v29 = vpop.eup %9404 }
0x3151   :  { %v5890_v46 = vadd.f32 1.0, %v9405_v29 }
0x3153   :  { %9406 = vrcp.f32 %v5890_v46 }
0x315d   :  { %v9407_v16 = vpop.eup %9406 }
0x315e   :  { %v5985_v19 = vmul.f32 %v9407_v16, %v10939_v5  ;;  %v7968_v5 = vld [vmem:[%s12088_s19 + $0x30] sm:$0xff] }
0x315f   :  { %v9081_v10 = vpack.c.bf16 %v7968_v5, %v7966_v62  ;;  %v6001_v62 = vld [vmem:[%s12062_s3 + $0x18] sm:$0xff] }
0x3161   :  { %9082 = vmatpush1.bf16.msra.mxu1 %v9081_v10 }
0x3162   :  { %9084 = vmatprep.subr.bf16.mxu1 %v9083_v21 }
0x3164   :  { %7979 = vmatmul.mubr.msk.f32.vlgmr.msra.gmra.mrb[32].mxu1 %vm154_vm0, %v7954_v7 }
0x3165   :  { %9086 = vmatpush1.bf16.msra.mxu1 %v9085_v27  ;;  %6543 = vmatprep.mubr.f32.mxu1 %v9489_v3 }
0x3166   :  { %9088 = vmatprep.subr.bf16.mxu1 %v9087_v6 }
0x3169   :  { %9090 = vmatpush1.bf16.msra.mxu1 %v9089_v36 }
0x316a   :  { %9103 = vmatprep.subr.bf16.mxu1 %v9490_v31 }
0x31bb   :  { %v5982_v60 = vpop.permute.xlu1 %5981 }
0x31bc   :  { %v5984_v61 = vmax.f32 %v5979_v55, %v5982_v60 }
0x31be   :  { %v5986_v63 = vmul.f32 %v9407_v16, %v5984_v61 }
0x31c0   :  { %5988 = vrot.lane.b32.xlu0 %v5986_v63, %s12091_s28 }
0x3232   :  { %v5989_v50 = vpop.permute.xlu0 %5988 }
0x3233   :  { %v5991_v12 = vadd.f32 %v5989_v50, %v5985_v19  ;;  %v5998_v19 = vld [vmem:[%s12062_s3] sm:$0xff]  ;;  %v5999_v50 = vld [vmem:[%s12062_s3 + $0x8] sm:$0xff] }
0x3235   :  { %9408 = vtanh.f32 %v5991_v12 }
0x323f   :  { %v9409_v11 = vpop.eup %9408 }
0x3240   :  { %5994 = vrot.lane.b32.xlu0 %v9409_v11, %s12091_s28 }
0x32b2   :  { %v5995_v40 = vpop.permute.xlu0 %5994 }
0x32b3   :  { %v5997_v13 = vmul.f32 %v9407_v16, %v5995_v40 }
0x32b5   :  { %6014 = vrot.lane.b32.xlu0 %v5997_v13, %s12092_s21 }
0x3327   :  { %v11592_v42 = vpop.permute.xlu0 %6014 }
0x3328   :  { %8576 = vmatmul.mubr.msk.f32.vlgmr.msra.gmra.mrb[28].mxu0 %vm79_vm3, %v11592_v42  ;;  %7988 = vmatmul.mubr.msk.f32.vlgmr.msra.gmra.mrb[32].mxu1 %vm79_vm3, %v11592_v42 }
0x3329   :  { %8594 = vmatprep.mubr.msk.f32.mxu0 %vm9491_vm1, %v9489_v3  ;;  %8613 = vmatprep.mubr.msk.f32.mxu1 %vm9491_vm1, %v9489_v3 }
0x33fb   :  { %v6084_v35 = vpop.f32.mrb[28].mxu0  ;;  %v6545_v55 = vpop.f32.mrb[32].mxu1 }
0x33fc   :  { %v6085_v56 = vadd.f32 %v7962_v51, %v6084_v35  ;;  %v11612_v29 = vadd.f32 %v6557_v25, %v6545_v55  ;;  %v8577_v46 = vpop.f32.mrb[29].mxu0  ;;  %v11614_v60 = vpop.f32.mrb[33].mxu1 }
0x33fe   :  { %v6095_v61 = vrot.slane %v6085_v56, %v9832_v2 }
0x3400   :  { %v6096_v16 = vcombine.high %v6095_v61, %v6095_v61  ;;  %v6103_v63 = vrot.slane %v6095_v61, %v9832_v2 }
0x3402   :  { %v6110_v12 = vrot.slane %v6096_v16, %v9832_v2  ;;  %v6114_v1 = vrot.slane %v6103_v63, %v9704_v48 }
0x3404   :  { %v6118_v9 = vrot.slane %v6110_v12, %v9704_v48  ;;  %v6121_v5 = vadd.f32 %v6114_v1, %v5998_v19  ;;  %v6122_v8 = vadd.f32 %v6114_v1, %v5999_v50 }
0x3406   :  { %v6123_v10 = vadd.f32 %v6118_v9, %v6000_v4  ;;  %v6124_v7 = vadd.f32 %v6118_v9, %v6001_v62  ;;  %9410 = vtanh.f32 %v6121_v5 }
0x3407   :  { %9412 = vtanh.f32 %v6122_v8 }
0x3408   :  { %9414 = vtanh.f32 %v6123_v10 }
0x3409   :  { %9416 = vtanh.f32 %v6124_v7 }
0x3410   :  { %v9411_v59 = vpop.eup %9410 }
0x3411   :  { %v9413_v17 = vpop.eup %9412  ;;  %v6136_v21 = vmul.f32 %v9411_v59, %v7964_v15 }
0x3412   :  { %v9415_v22 = vpop.eup %9414  ;;  %v6137_v38 = vmul.f32 %v9413_v17, %v7964_v15 }
0x3413   :  { %v6140_v28 = vsel %vm79_vm3, %v6136_v21, 0.0  ;;  %v6138_v30 = vmul.f32 %v9415_v22, %v7964_v15  ;;  %v9417_v27 = vpop.eup %9416 }
0x3414   :  { %v6143_v34 = vsel %vm79_vm3, %v6137_v38, 0.0  ;;  %6141 = vadd.xlane.f32.xlu0 %v6140_v28  ;;  %v6139_v39 = vmul.f32 %v9417_v27, %v7964_v15 }
0x3415   :  { %6144 = vadd.xlane.f32.xlu1 %v6143_v34  ;;  %v6146_v32 = vsel %vm79_vm3, %v6138_v30, 0.0 }
0x3416   :  { %v6149_v6 = vsel %vm79_vm3, %v6139_v39, 0.0 }
0x3418   :  { %6147 = vadd.xlane.f32.xlu0 %v6146_v32 }
0x341c   :  { %6150 = vadd.xlane.f32.xlu0 %v6149_v6 }
0x3426   :  { %6159 = vperm.xlu1 %9228, %v7965_v0  }
0x34a1   :  { %v6142_v52 = vpop.xlane.xlu0 %6141 }
0x34a2   :  { %v6145_v43 = vpop.xlane.xlu1 %6144 }
0x34a5   :  { %v6148_v36 = vpop.xlane.xlu0 %6147 }
0x34a6   :  { %v6160_v11 = vpop.permute.xlu1 %6159 }
0x34a7   :  { %v6162_v40 = vadd.f32 %v6160_v11, %v6142_v52  ;;  %v6163_v13 = vadd.f32 %v6160_v11, %v6145_v43  ;;  %v6164_v25 = vadd.f32 %v6160_v11, %v6148_v36 }
0x34a9   :  { %v6151_v51 = vpop.xlane.xlu0 %6150  ;;  %v6173_v35 = vrot.slane %v6162_v40, %v9867_v45  ;;  %v6177_v55 = vrot.slane %v6163_v13, %v9870_v49  ;;  %v6182_v46 = vrot.slane %v6164_v25, %v9867_v45 }
0x34aa   :  { %v6165_v56 = vadd.f32 %v6160_v11, %v6151_v51 }
0x34ab   :  { %v6178_v16 = vsel %vm622_vm4, %v6177_v55, %v6173_v35 }
0x34ac   :  { %v6186_v61 = vrot.slane %v6165_v56, %v9870_v49 }
0x34ae   :  { %v6187_v63 = vsel %vm622_vm4, %v6186_v61, %v6182_v46 }
0x34af   :  { %v6188_v19 = vsel %vm633_vm5, %v6187_v63, %v6178_v16  ;;  %v7991_v16 = vld [vmem:[%s12055_s8 + $0x40] sm:$0xff]  ;;  %v7992_v63 = vld [vmem:[%s12055_s8 + $0x48] sm:$0xff] }
0x34b0   :  { %v6190_v50 = vsel %vm636_vm6, %v6188_v19, -inf  ;;  %v6682_v19 = vld [vmem:[%s12065_s14] sm:$0xff] }
0x34b1   :  { %6191 = vmax.xlane.f32.xlu0 %v6190_v50  ;;  %v9092_v50 = vpack.c.bf16 %v7992_v63, %v7991_v16 }
0x34b3   :  { %9093 = vmatpush3.bf16.msra.mxu0 %v9092_v50 }
0x34b4   :  { %9094 = vmatprep.subr.bf16.mxu0 %v9490_v31 }
0x353e   :  { %v6192_v12 = vpop.xlane.xlu0 %6191 }
0x353f   :  { %v6197_v1 = vrot.slane %v6192_v12, %v9704_v48  ;;  %v6201_v4 = vrot.slane %v6192_v12, %v9711_v58  ;;  %v6683_v12 = vld [vmem:[%s12065_s14 + $0x8] sm:$0xff] }
0x3541   :  { %v6204_v62 = vsub.f32 %v6162_v40, %v6197_v1  ;;  %v6205_v9 = vsub.f32 %v6163_v13, %v6197_v1  ;;  %v6206_v5 = vsub.f32 %v6164_v25, %v6201_v4  ;;  %v6207_v7 = vsub.f32 %v6165_v56, %v6201_v4  ;;  %v7993_v4 = vld [vmem:[%s12055_s8 + $0x50] sm:$0xff] }
0x3542   :  { %v9104_v1 = vpack.c.bf16 %v6683_v12, %v6682_v19 }
0x3543   :  { %v6208_v8 = vmul.f32 1.442695, %v6204_v62  ;;  %v6210_v10 = vmul.f32 1.442695, %v6205_v9  ;;  %v6212_v15 = vmul.f32 1.442695, %v6206_v5 }
0x3544   :  { %v6214_v59 = vmul.f32 1.442695, %v6207_v7  ;;  %9105 = vmatpush3.bf16.msra.mxu1 %v9104_v1  ;;  %v7994_v62 = vld [vmem:[%s12055_s8 + $0x58] sm:$0xff]  ;;  %v6684_v9 = vld [vmem:[%s12065_s14 + $0x10] sm:$0xff]  ;;  %v7995_v7 = vld [vmem:[%s12055_s8 + $0x60] sm:$0xff] }
0x3545   :  { %9418 = vpow2.f32 %v6208_v8  ;;  %9106 = vmatprep.subr.bf16.mxu1 %v9490_v31  ;;  %v9095_v5 = vpack.c.bf16 %v7994_v62, %v7993_v4  ;;  %v6685_v8 = vld [vmem:[%s12065_s14 + $0x18] sm:$0xff] }
0x3546   :  { %9420 = vpow2.f32 %v6210_v10  ;;  %v9107_v10 = vpack.c.bf16 %v6685_v8, %v6684_v9 }
0x3547   :  { %9422 = vpow2.f32 %v6212_v15  ;;  %9096 = vmatpush3.bf16.msra.mxu0 %v9095_v5  ;;  %v7996_v15 = vld [vmem:[%s12055_s8 + $0x68] sm:$0xff] }
0x3548   :  { %9424 = vpow2.f32 %v6214_v59  ;;  %9108 = vmatpush3.bf16.msra.mxu1 %v9107_v10  ;;  %9097 = vmatprep.subr.bf16.mxu0 %v9490_v31  ;;  %v6686_v59 = vld [vmem:[%s12065_s14 + $0x20] sm:$0xff] }
0x3549   :  { %9109 = vmatprep.subr.bf16.mxu1 %v9490_v31 }
0x354f   :  { %v9419_v17 = vpop.eup %9418 }
0x3550   :  { %v9421_v21 = vpop.eup %9420  ;;  %6221 = vperm.xlu0 %9229, %v9419_v17  }
0x3551   :  { %6224 = vperm.xlu1 %9228, %v9421_v21   ;;  %v9423_v22 = vpop.eup %9422 }
0x3552   :  { %v9425_v38 = vpop.eup %9424 }
0x3555   :  { %6227 = vperm.xlu1 %9228, %v9423_v22  }
0x3559   :  { %6230 = vperm.xlu1 %9228, %v9425_v38  }
0x35cf   :  { %v6222_v30 = vpop.permute.xlu0 %6221 }
0x35d0   :  { %v6225_v28 = vpop.permute.xlu1 %6224  ;;  %v6235_v32 = vrot.slane %v6222_v30, %v9867_v45  ;;  %v6688_v30 = vld [vmem:[%s12065_s14 + $0x30] sm:$0xff] }
0x35d1   :  { %v6239_v34 = vrot.slane %v6225_v28, %v9870_v49  ;;  %v7998_v28 = vld [vmem:[%s12055_s8 + $0x78] sm:$0xff] }
0x35d3   :  { %v6240_v52 = vsel %vm622_vm4, %v6239_v34, %v6235_v32  ;;  %v6689_v34 = vld [vmem:[%s12065_s14 + $0x38] sm:$0xff] }
0x35d4   :  { %v6228_v27 = vpop.permute.xlu1 %6227  ;;  %v9113_v32 = vpack.c.bf16 %v6689_v34, %v6688_v30 }
0x35d5   :  { %v6244_v6 = vrot.slane %v6228_v27, %v9867_v45 }
0x35d8   :  { %v6231_v39 = vpop.permute.xlu1 %6230 }
0x35d9   :  { %v6248_v0 = vrot.slane %v6231_v39, %v9870_v49 }
0x35db   :  { %v6249_v43 = vsel %vm622_vm4, %v6248_v0, %v6244_v6  ;;  %v11722_v6 = vld [vmem:[%s12066_s1] sm:$0xff] }
0x35dc   :  { %v6250_v36 = vsel %vm633_vm5, %v6249_v43, %v6240_v52  ;;  %v11728_v43 = vld [vmem:[%s12066_s1 + $0x8] sm:$0xff] }
0x35dd   :  { %v6252_v11 = vsel %vm636_vm6, %v6250_v36, 0.0 }
0x35de   :  { %6253 = vadd.xlane.f32.xlu0 %v6252_v11 }
0x366b   :  { %v6254_v40 = vpop.xlane.xlu0 %6253 }
0x366c   :  { %v6259_v13 = vrot.slane %v6254_v40, %v9704_v48  ;;  %v6263_v25 = vrot.slane %v6254_v40, %v9711_v58 }
0x366e   :  { %9426 = vrcp.f32 %v6259_v13 }
0x366f   :  { %9428 = vrcp.f32 %v6263_v25 }
0x3678   :  { %v9427_v51 = vpop.eup %9426 }
0x3679   :  { %v6267_v35 = vmul.f32 %v9427_v51, %v9419_v17  ;;  %v6268_v55 = vmul.f32 %v9427_v51, %v9421_v21  ;;  %v9429_v56 = vpop.eup %9428  ;;  %v9098_v17 = vpack.c.bf16 %v7996_v15, %v7995_v7  ;;  %v6687_v21 = vld [vmem:[%s12065_s14 + $0x28] sm:$0xff] }
0x367a   :  { %v6270_v46 = vmul.f32 %v9429_v56, %v9423_v22  ;;  %v6271_v61 = vmul.f32 %v9429_v56, %v9425_v38  ;;  %v9110_v22 = vpack.c.bf16 %v6687_v21, %v6686_v59  ;;  %v7997_v38 = vld [vmem:[%s12055_s8 + $0x70] sm:$0xff] }
0x367b   :  { %6274 = vperm.xlu1 %9228, %v6267_v35   ;;  %9099 = vmatpush3.bf16.msra.mxu0 %v9098_v17  ;;  %v9101_v27 = vpack.c.bf16 %v7998_v28, %v7997_v38  ;;  %v11736_v35 = vld [vmem:[%s12066_s1 + $0x10] sm:$0xff]  ;;  %v6561_v17 = vrot.slane %v11605_v44, %v9711_v58  ;;  %v8001_v38 = vld [vmem:[%s12059_s9 + $0x1] ss:$0 sm:$0xff] }
0x367c   :  { %9111 = vmatpush3.bf16.msra.mxu1 %v9110_v22  ;;  %9100 = vmatprep.subr.bf16.mxu0 %v9490_v31 }
0x367d   :  { %9112 = vmatprep.subr.bf16.mxu1 %v9490_v31  ;;  %v6565_v21 = vadd.f32 %v6561_v17, %v11614_v60 }
0x367f   :  { %6279 = vperm.xlu1 %9228, %v6268_v55   ;;  %9102 = vmatpush3.bf16.msra.mxu0 %v9101_v27 }
0x3680   :  { %9114 = vmatpush3.bf16.msra.mxu1 %v9113_v32  ;;  %9115 = vmatprep.subr.bf16.mxu0 %v9490_v31 }
0x3681   :  { %9141 = vmatprep.subr.bf16.mxu1 %v9490_v31 }
0x3683   :  { %6284 = vperm.xlu1 %9228, %v6270_v46  }
0x3687   :  { %6289 = vperm.xlu1 %9228, %v6271_v61   ;;  %v11742_v61 = vld [vmem:[%s12066_s1 + $0x18] sm:$0xff] }
0x36fa   :  { %v6275_v39 = vpop.permute.xlu1 %6274 }
0x36fb   :  { %v6292_v0 = vmul.f32 %v11722_v6, %v6275_v39  ;;  %v7990_v39 = vmul.f32 -1.442695, %v11612_v29 }
0x36fd   :  { %v6296_v11 = vsel %vm338_vm2, %v6292_v0, 0.0  ;;  %9430 = vpow2.f32 %v7990_v39 }
0x36fe   :  { %v6280_v52 = vpop.permute.xlu1 %6279 }
0x36ff   :  { %v6293_v36 = vmul.f32 %v11728_v43, %v6280_v52 }
0x3701   :  { %v6297_v40 = vsel %vm338_vm2, %v6293_v36, 0.0 }
0x3702   :  { %v6298_v13 = vadd.f32 %v6297_v40, %v6296_v11  ;;  %v6285_v25 = vpop.permute.xlu1 %6284  ;;  %v8003_v40 = vld [vmem:[%s12067_s15] ss:$0 sm:$0xff] }
0x3703   :  { %v6294_v55 = vmul.f32 %v11736_v35, %v6285_v25  ;;  %6771 = vrot.lane.b32.xlu0 %v8003_v40, %s12092_s21  ;;  %v8006_v40 = vld [vmem:[%s12062_s3 + $0x30] sm:$0xff] }
0x3704   :  { %v6299_v51 = vrot.slane %v6298_v13, 4 }
0x3705   :  { %v6305_v63 = vsel %vm338_vm2, %v6294_v55, 0.0  ;;  %v8009_v55 = vld [vmem:[%s12060_s10 + $0x28] sm:$0xff] }
0x3706   :  { %v6300_v56 = vadd.f32 %v6299_v51, %v6298_v13  ;;  %v6290_v46 = vpop.permute.xlu1 %6289  ;;  %v8008_v51 = vld [vmem:[%s12060_s10 + $0x20] sm:$0xff] }
0x3707   :  { %v6295_v16 = vmul.f32 %v11742_v61, %v6290_v46  ;;  %v9431_v0 = vpop.eup %9430  ;;  %v9116_v46 = vpack.c.bf16 %v8009_v55, %v8008_v51 }
0x3708   :  { %v6301_v50 = vrot.slane %v6300_v56, 2  ;;  %v6569_v52 = vadd.f32 1.0, %v9431_v0 }
0x3709   :  { %v6306_v19 = vsel %vm338_vm2, %v6295_v16, 0.0  ;;  %v8024_v16 = vld [vmem:[%s12087_s29 + $0x88] sm:$0xff] }
0x370a   :  { %v6307_v12 = vadd.f32 %v6306_v19, %v6305_v63  ;;  %v6302_v4 = vadd.f32 %v6301_v50, %v6300_v56  ;;  %9432 = vrcp.f32 %v6569_v52  ;;  %v8010_v56 = vld [vmem:[%s12060_s10 + $0x30] sm:$0xff]  ;;  %v8026_v63 = vld [vmem:[%s12087_s29 + $0x98] sm:$0xff] }
0x370c   :  { %v6308_v1 = vrot.slane %v6307_v12, 4  ;;  %v6303_v5 = vrot.slane %v6302_v4, 1 }
0x370e   :  { %v6309_v62 = vadd.f32 %v6308_v1, %v6307_v12  ;;  %v6304_v7 = vadd.f32 %v6303_v5, %v6302_v4  ;;  %v9121_v12 = vpack.c.bf16 %v8026_v63, %v8024_v16 }
0x3710   :  { %v6310_v9 = vrot.slane %v6309_v62, 2 }
0x3712   :  { %v6311_v8 = vadd.f32 %v6310_v9, %v6309_v62 }
0x3714   :  { %v6312_v10 = vrot.slane %v6311_v8, 1  ;;  %v9433_v36 = vpop.eup %9432 }
0x3715   :  { %v6669_v13 = vmul.f32 %v9433_v36, %v11173_v41  ;;  %v8011_v41 = vld [vmem:[%s12060_s10 + $0x38] sm:$0xff] }
0x3716   :  { %v6313_v15 = vadd.f32 %v6312_v10, %v6311_v8  ;;  %v9119_v19 = vpack.c.bf16 %v8011_v41, %v8010_v56  ;;  %v8023_v10 = vld [vmem:[%s12087_s29 + $0x80] sm:$0xff] }
0x3718   :  { %v6582_v59 = vsel %vm633_vm5, %v6313_v15, %v6304_v7  ;;  %v8025_v7 = vld [vmem:[%s12087_s29 + $0x90] sm:$0xff]  ;;  %v8028_v15 = vld [vmem:[%s12087_s29 + $0xa8] sm:$0xff] }
0x3719   :  { %8595 = vmatmul.mubr.msk.f32.vlgmr.msra.gmra.mrb[30].mxu0 %vm338_vm2, %v6582_v59  ;;  %8614 = vmatmul.mubr.msk.f32.vlgmr.msra.gmra.mrb[34].mxu1 %vm338_vm2, %v6582_v59  ;;  %v8030_v59 = vld [vmem:[%s12087_s29 + $0xb8] sm:$0xff]  ;;  %v9123_v17 = vpack.c.bf16 %v8025_v7, %v8023_v10  ;;  %v8018_v10 = vld [vmem:[%s12064_s13 + $0x1] ss:$0 sm:$0xff] }
0x371a   :  { %8624 = vmatprep.mubr.msk.f32.mxu0 %vm9491_vm1, %v9489_v3  ;;  %8643 = vmatprep.mubr.msk.f32.mxu1 %vm9491_vm1, %v9489_v3 }
0x371b   :  { %9117 = vmatpush3.bf16.msra.mxu0 %v9116_v46 }
0x371c   :  { %9118 = vmatprep.subr.bf16.mxu0 %v9490_v31 }
0x371f   :  { %9120 = vmatpush3.bf16.msra.mxu0 %v9119_v19 }
0x3720   :  { %9122 = vmatprep.subr.bf16.mxu0 %v9121_v12 }
0x3775   :  { %v6772_v9 = vpop.permute.xlu0 %6771 }
0x37ec   :  { %v6651_v22 = vpop.f32.mrb[30].mxu0  ;;  %v6756_v28 = vpop.f32.mrb[34].mxu1 }
0x37ed   :  { %v6655_v30 = vadd.f32 %v6651_v22, %v6565_v21  ;;  %v8596_v27 = vpop.f32.mrb[31].mxu0  ;;  %v8615_v34 = vpop.f32.mrb[35].mxu1  ;;  %v9125_v21 = vpack.c.bf16 %v8030_v59, %v8028_v15  ;;  %v8027_v22 = vld [vmem:[%s12087_s29 + $0xa0] sm:$0xff] }
0x37ee   :  { %v8013_v27 = vld [vmem:[%s12061_s11 + $0x1] ss:$0 sm:$0xff] }
0x37ef   :  { %v6663_v32 = vadd.f32 %v8001_v38, %v6655_v30  ;;  %v8029_v38 = vld [vmem:[%s12087_s29 + $0xb0] sm:$0xff] }
0x37f0   :  { %v9127_v30 = vpack.c.bf16 %v8029_v38, %v8027_v22 }
0x37f1   :  { %6665 = vrot.lane.b32.xlu1 %v6663_v32, %s12090_s23 }
0x3863   :  { %v6666_v44 = vpop.permute.xlu1 %6665 }
0x3864   :  { %v6668_v60 = vmax.f32 %v6663_v32, %v6666_v44 }
0x3866   :  { %v6670_v11 = vmul.f32 %v9433_v36, %v6668_v60  ;;  %v8004_v60 = vld [vmem:[%s12062_s3 + $0x20] sm:$0xff] }
0x3868   :  { %6672 = vrot.lane.b32.xlu1 %v6670_v11, %s12091_s28 }
0x38da   :  { %v6673_v25 = vpop.permute.xlu1 %6672 }
0x38db   :  { %v6675_v29 = vadd.f32 %v6673_v25, %v6669_v13  ;;  %v8007_v13 = vld [vmem:[%s12062_s3 + $0x38] sm:$0xff] }
0x38dd   :  { %9434 = vtanh.f32 %v6675_v29 }
0x38e7   :  { %v9435_v50 = vpop.eup %9434 }
0x38e8   :  { %6678 = vrot.lane.b32.xlu1 %v9435_v50, %s12091_s28 }
0x38ec   :  { %6761 = vrot.lane.b32.xlu1 %v6756_v28, %s12092_s21 }
0x395a   :  { %v6679_v1 = vpop.permute.xlu1 %6678 }
0x395b   :  { %v11789_v4 = vmul.f32 %v9433_v36, %v6679_v1 }
0x395e   :  { %v6762_v62 = vpop.permute.xlu1 %6761 }
0x395f   :  { %v6764_v5 = vadd.f32 %v6762_v62, %v11789_v4 }
0x3961   :  { %v6774_v8 = vadd.f32 %v6772_v9, %v6764_v5 }
0x3963   :  { %6791 = vrot.lane.b32.xlu1 %v6774_v8, %s12092_s21 }
0x39d5   :  { %v6792_v28 = vpop.permute.xlu1 %6791 }
0x39d6   :  { %8625 = vmatmul.mubr.msk.f32.vlgmr.msra.gmra.mrb[32].mxu0 %vm79_vm3, %v6792_v28 }
0x39d7   :  { %9124 = vmatpush1.bf16.msra.mxu0 %v9123_v17  ;;  %7167 = vmatprep.mubr.f32.mxu0 %v9489_v3 }
0x39d8   :  { %9126 = vmatprep.subr.bf16.mxu0 %v9125_v21 }
0x39db   :  { %9128 = vmatpush1.bf16.msra.mxu0 %v9127_v30 }
0x39de   :  { %8031 = vmatmul.mubr.msk.f32.vlgmr.msra.gmra.mrb[34].mxu0 %vm79_vm3, %v11515_v23  ;;  %v8005_v23 = vld [vmem:[%s12062_s3 + $0x28] sm:$0xff] }
0x39df   :  { %7241 = vmatprep.mubr.f32.mxu0 %v9489_v3 }
0x3aa9   :  { %v6861_v34 = vpop.f32.mrb[32].mxu0 }
0x3aaa   :  { %v6862_v32 = vadd.f32 %v8013_v27, %v6861_v34  ;;  %v8626_v39 = vpop.f32.mrb[33].mxu0 }
0x3aac   :  { %v6872_v0 = vrot.slane %v6862_v32, %v9832_v2 }
0x3aae   :  { %v6873_v52 = vcombine.high %v6872_v0, %v6872_v0  ;;  %v6880_v44 = vrot.slane %v6872_v0, %v9832_v2 }
0x3ab0   :  { %v6887_v36 = vrot.slane %v6873_v52, %v9832_v2  ;;  %v6891_v11 = vrot.slane %v6880_v44, %v9704_v48  ;;  %v8016_v2 = vld [vmem:[%s12063_s12 + $0x1] ss:$0 sm:$0xff] }
0x3ab2   :  { %v6895_v25 = vrot.slane %v6887_v36, %v9704_v48  ;;  %v6898_v29 = vadd.f32 %v8004_v60, %v6891_v11  ;;  %v6899_v51 = vadd.f32 %v8005_v23, %v6891_v11 }
0x3ab4   :  { %v6900_v55 = vadd.f32 %v8006_v40, %v6895_v25  ;;  %v6901_v56 = vadd.f32 %v8007_v13, %v6895_v25  ;;  %9436 = vtanh.f32 %v6898_v29 }
0x3ab5   :  { %9438 = vtanh.f32 %v6899_v51 }
0x3ab6   :  { %9440 = vtanh.f32 %v6900_v55 }
0x3ab7   :  { %9442 = vtanh.f32 %v6901_v56 }
0x3abe   :  { %v9437_v46 = vpop.eup %9436 }
0x3abf   :  { %v9439_v41 = vpop.eup %9438  ;;  %v6913_v16 = vmul.f32 %v9437_v46, %v8016_v2 }
0x3ac0   :  { %v9441_v63 = vpop.eup %9440  ;;  %v6914_v19 = vmul.f32 %v9439_v41, %v8016_v2 }
0x3ac1   :  { %v6917_v50 = vsel %vm79_vm3, %v6913_v16, 0.0  ;;  %v6915_v12 = vmul.f32 %v9441_v63, %v8016_v2  ;;  %v9443_v1 = vpop.eup %9442 }
0x3ac2   :  { %v6920_v62 = vsel %vm79_vm3, %v6914_v19, 0.0  ;;  %6918 = vadd.xlane.f32.xlu1 %v6917_v50  ;;  %v6916_v5 = vmul.f32 %v9443_v1, %v8016_v2 }
0x3ac3   :  { %6921 = vadd.xlane.f32.xlu0 %v6920_v62  ;;  %v6923_v9 = vsel %vm79_vm3, %v6915_v12, 0.0 }
0x3ac4   :  { %v6926_v8 = vsel %vm79_vm3, %v6916_v5, 0.0 }
0x3ac6   :  { %6924 = vadd.xlane.f32.xlu1 %v6923_v9 }
0x3aca   :  { %6927 = vadd.xlane.f32.xlu1 %v6926_v8 }
0x3adb   :  { %6936 = vperm.xlu1 %9228, %v8018_v10  }
0x3b4f   :  { %v6919_v7 = vpop.xlane.xlu1 %6918 }
0x3b50   :  { %v6922_v17 = vpop.xlane.xlu0 %6921 }
0x3b53   :  { %v6925_v15 = vpop.xlane.xlu1 %6924 }
0x3b57   :  { %v6928_v59 = vpop.xlane.xlu1 %6927 }
0x3b5b   :  { %v6937_v21 = vpop.permute.xlu1 %6936 }
0x3b5c   :  { %v6939_v22 = vadd.f32 %v6937_v21, %v6919_v7  ;;  %v6940_v38 = vadd.f32 %v6937_v21, %v6922_v17  ;;  %v6941_v28 = vadd.f32 %v6937_v21, %v6925_v15  ;;  %v6942_v30 = vadd.f32 %v6937_v21, %v6928_v59 }
0x3b5e   :  { %v6950_v27 = vrot.slane %v6939_v22, %v9867_v45  ;;  %v6954_v34 = vrot.slane %v6940_v38, %v9870_v49  ;;  %v6959_v32 = vrot.slane %v6941_v28, %v9867_v45  ;;  %v6963_v39 = vrot.slane %v6942_v30, %v9870_v49 }
0x3b60   :  { %v6955_v0 = vsel %vm622_vm4, %v6954_v34, %v6950_v27  ;;  %v6964_v52 = vsel %vm622_vm4, %v6963_v39, %v6959_v32  ;;  %v8020_v34 = vld [vmem:[%s12088_s19 + $0x48] sm:$0xff]  ;;  %v8022_v32 = vld [vmem:[%s12088_s19 + $0x58] sm:$0xff]  ;;  %v8021_v39 = vld [vmem:[%s12088_s19 + $0x50] sm:$0xff] }
0x3b61   :  { %v6965_v44 = vsel %vm633_vm5, %v6964_v52, %v6955_v0 }
0x3b62   :  { %v6967_v60 = vsel %vm636_vm6, %v6965_v44, -inf  ;;  %v8034_v44 = vld [vmem:[%s12089_s6 + $0x88] sm:$0xff] }
0x3b63   :  { %6968 = vmax.xlane.f32.xlu0 %v6967_v60  ;;  %v8036_v60 = vld [vmem:[%s12089_s6 + $0x98] sm:$0xff] }
0x3bf0   :  { %v6969_v23 = vpop.xlane.xlu0 %6968 }
0x3bf1   :  { %v6974_v36 = vrot.slane %v6969_v23, %v9704_v48  ;;  %v6978_v11 = vrot.slane %v6969_v23, %v9711_v58  ;;  %v9133_v23 = vpack.c.bf16 %v8036_v60, %v8034_v44 }
0x3bf3   :  { %v6981_v40 = vsub.f32 %v6939_v22, %v6974_v36  ;;  %v6982_v13 = vsub.f32 %v6940_v38, %v6974_v36  ;;  %v6983_v25 = vsub.f32 %v6941_v28, %v6978_v11  ;;  %v6984_v55 = vsub.f32 %v6942_v30, %v6978_v11  ;;  %v8033_v36 = vld [vmem:[%s12089_s6 + $0x80] sm:$0xff]  ;;  %v8035_v11 = vld [vmem:[%s12089_s6 + $0x90] sm:$0xff] }
0x3bf5   :  { %v6985_v29 = vmul.f32 1.442695, %v6981_v40  ;;  %v6987_v51 = vmul.f32 1.442695, %v6982_v13  ;;  %v6989_v56 = vmul.f32 1.442695, %v6983_v25  ;;  %v9135_v13 = vpack.c.bf16 %v8035_v11, %v8033_v36 }
0x3bf6   :  { %v6991_v2 = vmul.f32 1.442695, %v6984_v55  ;;  %v7955_v40 = vld [vmem:[%s12056_s0 + $0x16] sm:$0x3]  ;;  %v8042_v11 = vld [vmem:[%s12058_s7 + $0x4] sm:$0x3] }
0x3bf7   :  { %9444 = vpow2.f32 %v6985_v29  ;;  %v8038_v29 = vld [vmem:[%s12089_s6 + $0xa8] sm:$0xff] }
0x3bf8   :  { %9446 = vpow2.f32 %v6987_v51  ;;  %v8040_v51 = vld [vmem:[%s12089_s6 + $0xb8] sm:$0xff] }
0x3bf9   :  { %9448 = vpow2.f32 %v6989_v56  ;;  %v9137_v55 = vpack.c.bf16 %v8040_v51, %v8038_v29  ;;  %v8037_v56 = vld [vmem:[%s12089_s6 + $0xa0] sm:$0xff]  ;;  %v7343_v29 = vrot.slane %v8042_v11, %v9711_v58 }
0x3bfa   :  { %9450 = vpow2.f32 %v6991_v2  ;;  %v8039_v2 = vld [vmem:[%s12089_s6 + $0xb0] sm:$0xff] }
0x3c01   :  { %v9445_v46 = vpop.eup %9444 }
0x3c02   :  { %v9447_v41 = vpop.eup %9446  ;;  %6998 = vperm.xlu0 %9229, %v9445_v46  }
0x3c03   :  { %7001 = vperm.xlu1 %9228, %v9447_v41   ;;  %v9449_v16 = vpop.eup %9448 }
0x3c04   :  { %v9451_v63 = vpop.eup %9450 }
0x3c07   :  { %7004 = vperm.xlu1 %9228, %v9449_v16  }
0x3c0b   :  { %7007 = vperm.xlu1 %9228, %v9451_v63  }
0x3c81   :  { %v6999_v50 = vpop.permute.xlu0 %6998 }
0x3c82   :  { %v7002_v19 = vpop.permute.xlu1 %7001  ;;  %v7012_v62 = vrot.slane %v6999_v50, %v9867_v45  ;;  %v8047_v50 = vld [vmem:[%s12055_s8 + $0x98] sm:$0xff] }
0x3c83   :  { %v7016_v1 = vrot.slane %v7002_v19, %v9870_v49  ;;  %v8046_v19 = vld [vmem:[%s12055_s8 + $0x90] sm:$0xff] }
0x3c85   :  { %v7017_v10 = vsel %vm622_vm4, %v7016_v1, %v7012_v62  ;;  %v8048_v1 = vld [vmem:[%s12055_s8 + $0xa0] sm:$0xff]  ;;  %v8049_v62 = vld [vmem:[%s12055_s8 + $0xa8] sm:$0xff] }
0x3c86   :  { %v7005_v12 = vpop.permute.xlu1 %7004 }
0x3c87   :  { %v7021_v5 = vrot.slane %v7005_v12, %v9867_v45  ;;  %v9145_v12 = vpack.c.bf16 %v8047_v50, %v8046_v19 }
0x3c8a   :  { %v7008_v9 = vpop.permute.xlu1 %7007 }
0x3c8b   :  { %v7025_v8 = vrot.slane %v7008_v9, %v9870_v49  ;;  %v9148_v9 = vpack.c.bf16 %v8049_v62, %v8048_v1  ;;  %v7472_v1 = vld [vmem:[%s12093_s5] sm:$0xff]  ;;  %v7473_v62 = vld [vmem:[%s12093_s5 + $0x8] sm:$0xff] }
0x3c8d   :  { %v7026_v7 = vsel %vm622_vm4, %v7025_v8, %v7021_v5  ;;  %v8050_v5 = vld [vmem:[%s12055_s8 + $0xb0] sm:$0xff]  ;;  %v8051_v8 = vld [vmem:[%s12055_s8 + $0xb8] sm:$0xff] }
0x3c8e   :  { %v7027_v15 = vsel %vm633_vm5, %v7026_v7, %v7017_v10  ;;  %v9151_v10 = vpack.c.bf16 %v8051_v8, %v8050_v5  ;;  %v9154_v5 = vpack.c.bf16 %v7473_v62, %v7472_v1  ;;  %v7475_v8 = vld [vmem:[%s12093_s5 + $0x18] sm:$0xff] }
0x3c8f   :  { %v7029_v59 = vsel %vm636_vm6, %v7027_v15, 0.0 }
0x3c90   :  { %7030 = vadd.xlane.f32.xlu0 %v7029_v59 }
0x3ca6   :  { %1929 = vrot.lane.b32.xlu0 %v10014_v24, %s12090_s23 }
0x3d1d   :  { %v7031_v17 = vpop.xlane.xlu0 %7030 }
0x3d1e   :  { %v7036_v21 = vrot.slane %v7031_v17, %v9704_v48  ;;  %v7040_v49 = vrot.slane %v7031_v17, %v9711_v58 }
0x3d20   :  { %9452 = vrcp.f32 %v7036_v21 }
0x3d21   :  { %v1930_v45 = vpop.permute.xlu0 %1929  ;;  %9454 = vrcp.f32 %v7040_v49 }
0x3d22   :  { %v1932_v22 = vsel %vm79_vm3, %v9811_v57, %v1930_v45  ;;  %v9129_v57 = vpack.c.bf16 %v8022_v32, %v8020_v34 }
0x3d23   :  { %v1933_v38 = vsel %vm338_vm2, %v1932_v22, %v10323_v20  ;;  %v8019_v20 = vld [vmem:[%s12088_s19 + $0x40] sm:$0xff] }
0x3d24   :  { %1935 = vst.msk [vmem:[#allocation2] sm:$0x3] %vm1934_vm7, %v1933_v38  ;;  %v9131_v0 = vpack.c.bf16 %v8021_v39, %v8019_v20  ;;  %9130 = vmatprep.subr.bf16.mxu0 %v9129_v57 }
0x3d26   :  { %9132 = vmatpush1.bf16.msra.mxu0 %v9131_v0 }
0x3d27   :  { %9134 = vmatprep.subr.bf16.mxu0 %v9133_v23 }
0x3d29   :  { %8032 = vmatmul.mubr.msk.f32.vlgmr.msra.gmra.mrb[34].mxu0 %vm154_vm0, %v7955_v40  ;;  %v7339_v40 = vrot.slane %v8042_v11, %v9704_v48 }
0x3d2a   :  { %v9453_v28 = vpop.eup %9452  ;;  %9136 = vmatpush1.bf16.msra.mxu0 %v9135_v13  ;;  %7325 = vmatprep.mubr.f32.mxu0 %v9489_v3 }
0x3d2b   :  { %v7044_v30 = vmul.f32 %v9453_v28, %v9445_v46  ;;  %v7045_v24 = vmul.f32 %v9453_v28, %v9447_v41  ;;  %v9455_v27 = vpop.eup %9454  ;;  %v9139_v46 = vpack.c.bf16 %v8039_v2, %v8037_v56  ;;  %9138 = vmatprep.subr.bf16.mxu0 %v9137_v55  ;;  %v8044_v41 = vld [vmem:[%s12055_s8 + $0x80] sm:$0xff] }
0x3d2c   :  { %v7047_v52 = vmul.f32 %v9455_v27, %v9449_v16  ;;  %v7048_v25 = vmul.f32 %v9455_v27, %v9451_v63  ;;  %v8045_v16 = vld [vmem:[%s12055_s8 + $0x88] sm:$0xff]  ;;  %v8054_v56 = vld [vmem:[%s12059_s9 + $0x2] ss:$0 sm:$0xff] }
0x3d2d   :  { %7051 = vperm.xlu1 %9228, %v7044_v30   ;;  %v9142_v63 = vpack.c.bf16 %v8045_v16, %v8044_v41 }
0x3d2e   :  { %9140 = vmatpush1.bf16.msra.mxu0 %v9139_v46 }
0x3d2f   :  { %9153 = vmatprep.subr.bf16.mxu0 %v9490_v31  ;;  %9143 = vmatpush3.bf16.msra.mxu1 %v9142_v63 }
0x3d30   :  { %9144 = vmatprep.subr.bf16.mxu1 %v9490_v31 }
0x3d31   :  { %7056 = vperm.xlu1 %9228, %v7045_v24  }
0x3d33   :  { %9146 = vmatpush3.bf16.msra.mxu1 %v9145_v12 }
0x3d34   :  { %9147 = vmatprep.subr.bf16.mxu1 %v9490_v31 }
0x3d35   :  { %7061 = vperm.xlu1 %9228, %v7047_v52  }
0x3d37   :  { %9149 = vmatpush3.bf16.msra.mxu1 %v9148_v9  ;;  %v7474_v9 = vld [vmem:[%s12093_s5 + $0x10] sm:$0xff] }
0x3d38   :  { %9150 = vmatprep.subr.bf16.mxu1 %v9490_v31 }
0x3d39   :  { %7066 = vperm.xlu1 %9228, %v7048_v25  }
0x3d3b   :  { %9152 = vmatpush3.bf16.msra.mxu1 %v9151_v10  ;;  %v7476_v10 = vld [vmem:[%s12093_s5 + $0x20] sm:$0xff] }
0x3d3d   :  { %7257 = vrot.lane.b32.xlu1 %v11789_v4, %s12092_s21 }
0x3dac   :  { %v7052_v7 = vpop.permute.xlu1 %7051 }
0x3dad   :  { %v7069_v15 = vmul.f32 %v11722_v6, %v7052_v7  ;;  %v7477_v7 = vld [vmem:[%s12093_s5 + $0x28] sm:$0xff] }
0x3daf   :  { %v7073_v21 = vsel %vm338_vm2, %v7069_v15, 0.0  ;;  %v9160_v15 = vpack.c.bf16 %v7477_v7, %v7476_v10 }
0x3db0   :  { %v7057_v59 = vpop.permute.xlu1 %7056 }
0x3db1   :  { %v7070_v17 = vmul.f32 %v11728_v43, %v7057_v59 }
0x3db3   :  { %v7074_v45 = vsel %vm338_vm2, %v7070_v17, 0.0 }
0x3db4   :  { %v7075_v49 = vadd.f32 %v7074_v45, %v7073_v21  ;;  %v7062_v22 = vpop.permute.xlu1 %7061  ;;  %v7478_v21 = vld [vmem:[%s12093_s5 + $0x30] sm:$0xff]  ;;  %v7479_v45 = vld [vmem:[%s12093_s5 + $0x38] sm:$0xff] }
0x3db5   :  { %v7071_v28 = vmul.f32 %v11736_v35, %v7062_v22 }
0x3db6   :  { %v7076_v38 = vrot.slane %v7075_v49, 4 }
0x3db7   :  { %v7082_v34 = vsel %vm338_vm2, %v7071_v28, 0.0  ;;  %v7480_v28 = vld [vmem:[%s12093_s5 + $0x40] sm:$0xff] }
0x3db8   :  { %v7077_v30 = vadd.f32 %v7076_v38, %v7075_v49  ;;  %v7067_v24 = vpop.permute.xlu1 %7066  ;;  %v9163_v49 = vpack.c.bf16 %v7479_v45, %v7478_v21  ;;  %v9497_v21 = vmov 1983009808  }
0x3db9   :  { %v7072_v27 = vmul.f32 %v11742_v61, %v7067_v24  ;;  %v7482_v24 = vld [vmem:[%s12093_s5 + $0x50] sm:$0xff]  ;;  %v7634_v45 = vunpack.c.l.s4 %v9497_v21 }
0x3dba   :  { %v7078_v32 = vrot.slane %v7077_v30, 2 }
0x3dbb   :  { %v7083_v6 = vsel %vm338_vm2, %v7072_v27, 0.0 }
0x3dbc   :  { %v7084_v57 = vadd.f32 %v7083_v6, %v7082_v34  ;;  %v7258_v43 = vpop.permute.xlu1 %7257  ;;  %v7079_v39 = vadd.f32 %v7078_v32, %v7077_v30  ;;  %v7481_v30 = vld [vmem:[%s12093_s5 + $0x48] sm:$0xff] }
0x3dbd   :  { %8041 = vmatmul.mubr.msk.f32.vlgmr.msra.gmra.mrb[34].mxu0 %vm79_vm3, %v7258_v43  ;;  %v9166_v27 = vpack.c.bf16 %v7481_v30, %v7480_v28 }
0x3dbe   :  { %v7085_v20 = vrot.slane %v7084_v57, 4  ;;  %8670 = vmatprep.mubr.msk.f32.mxu0 %vm9491_vm1, %v9489_v3  ;;  %v7080_v52 = vrot.slane %v7079_v39, 1  ;;  %9155 = vmatpush3.bf16.msra.mxu0 %v9154_v5 }
0x3dbf   :  { %9156 = vmatprep.subr.bf16.mxu0 %v9490_v31 }
0x3dc0   :  { %v7086_v0 = vadd.f32 %v7085_v20, %v7084_v57  ;;  %v7081_v61 = vadd.f32 %v7080_v52, %v7079_v39 }
0x3dc2   :  { %v7087_v35 = vrot.slane %v7086_v0, 2 }
0x3dc4   :  { %v7088_v44 = vadd.f32 %v7087_v35, %v7086_v0 }
0x3dc6   :  { %v7089_v60 = vrot.slane %v7088_v44, 1 }
0x3dc8   :  { %v7090_v23 = vadd.f32 %v7089_v60, %v7088_v44 }
0x3dca   :  { %v7364_v36 = vsel %vm633_vm5, %v7090_v23, %v7081_v61 }
0x3dcb   :  { %8644 = vmatmul.mubr.msk.f32.vlgmr.msra.gmra.mrb[36].mxu1 %vm338_vm2, %v7364_v36 }
0x3e90   :  { %v7327_v13 = vpop.f32.mrb[34].mxu0 }
0x3e91   :  { %v7346_v3 = vadd.f32 %v7339_v40, %v7327_v13  ;;  %v7329_v25 = vpop.f32.mrb[35].mxu0 }
0x3e92   :  { %v7347_v51 = vadd.f32 %v7343_v29, %v7329_v25 }
0x3e93   :  { %v8043_v16 = vmul.f32 -1.442695, %v7346_v3 }
0x3e95   :  { %9456 = vpow2.f32 %v8043_v16 }
0x3e9e   :  { %v7433_v55 = vpop.f32.mrb[36].mxu1 }
0x3e9f   :  { %v7437_v2 = vadd.f32 %v7433_v55, %v7347_v51  ;;  %v8645_v46 = vpop.f32.mrb[37].mxu1  ;;  %v9457_v63 = vpop.eup %9456 }
0x3ea0   :  { %v7351_v48 = vadd.f32 1.0, %v9457_v63 }
0x3ea1   :  { %v7445_v41 = vadd.f32 %v8054_v56, %v7437_v2 }
0x3ea2   :  { %9458 = vrcp.f32 %v7351_v48 }
0x3ea3   :  { %7447 = vrot.lane.b32.xlu1 %v7445_v41, %s12090_s23 }
0x3eac   :  { %v9459_v12 = vpop.eup %9458 }
0x3f15   :  { %v7448_v19 = vpop.permute.xlu1 %7447 }
0x3f16   :  { %v7450_v50 = vmax.f32 %v7445_v41, %v7448_v19 }
0x3f18   :  { %v7452_v58 = vmul.f32 %v9459_v12, %v7450_v50 }
0x3f1a   :  { %7454 = vrot.lane.b32.xlu1 %v7452_v58, %s12091_s28 }
0x3f1e   :  { %3775 = vrot.lane.b32.xlu1 %v10620_v53, %s12090_s23  ;;  %v9157_v53 = vpack.c.bf16 %v7475_v8, %v7474_v9 }
0x3f20   :  { %9158 = vmatpush3.bf16.msra.mxu0 %v9157_v53 }
0x3f21   :  { %9159 = vmatprep.subr.bf16.mxu0 %v9490_v31 }
0x3f22   :  { %5620 = vrot.lane.b32.xlu1 %v11200_v14, %s12090_s23  ;;  %v7451_v14 = vmul.f32 %v9459_v12, %v11407_v54 }
0x3f24   :  { %9161 = vmatpush3.bf16.msra.mxu0 %v9160_v15 }
0x3f25   :  { %9162 = vmatprep.subr.bf16.mxu0 %v9490_v31 }
0x3f28   :  { %9164 = vmatpush3.bf16.msra.mxu0 %v9163_v49  ;;  %v7635_v49 = vunpack.c.0.s8 %v7634_v45 }
0x3f29   :  { %9165 = vmatprep.subr.bf16.mxu0 %v9490_v31 }
0x3f2a   :  { %v7638_v30 = vsub.s32 %v7635_v49, %v9701_v47 }
0x3f2c   :  { %9167 = vmatpush3.bf16.msra.mxu0 %v9166_v27 }
0x3f2d   :  { %9168 = vmatprep.subr.bf16.mxu0 %v9490_v31  ;;  %v8055_v31 = vld [vmem:[%s12094_s17] ss:$0 sm:$0xff] }
0x3f8c   :  { %v7455_v59 = vpop.permute.xlu1 %7454 }
0x3f8d   :  { %v7457_v17 = vadd.f32 %v7455_v59, %v7451_v14 }
0x3f8f   :  { %9460 = vtanh.f32 %v7457_v17 }
0x3f90   :  { %v3776_v22 = vpop.permute.xlu1 %3775 }
0x3f91   :  { %v3778_v38 = vsel %vm79_vm3, %v10425_v37, %v3776_v22 }
0x3f92   :  { %v3779_v54 = vsel %vm338_vm2, %v3778_v38, %v10898_v18  ;;  %v7483_v18 = vld [vmem:[%s12093_s5 + $0x58] sm:$0xff] }
0x3f93   :  { %3780 = vst.msk [vmem:[#allocation2 + $0x2] sm:$0x3] %vm1934_vm7, %v3779_v54  ;;  %v9169_v32 = vpack.c.bf16 %v7483_v18, %v7482_v24 }
0x3f94   :  { %v5621_v37 = vpop.permute.xlu1 %5620 }
0x3f95   :  { %v5623_v34 = vsel %vm79_vm3, %v11000_v33, %v5621_v37  ;;  %9170 = vmatpush3.bf16.msra.mxu0 %v9169_v32 }
0x3f96   :  { %v5624_v6 = vsel %vm338_vm2, %v5623_v34, %v11493_v26 }
0x3f97   :  { %5625 = vst.msk [vmem:[#allocation2 + $0x4] sm:$0x3] %vm1934_vm7, %v5624_v6 }
0x3f99   :  { %v9461_v57 = vpop.eup %9460 }
0x3f9a   :  { %7460 = vrot.lane.b32.xlu1 %v9461_v57, %s12091_s28 }
0x3f9e   :  { %7465 = vrot.lane.b32.xlu1 %v11789_v4, %s12090_s23 }
0x400c   :  { %v7461_v43 = vpop.permute.xlu1 %7460 }
0x400d   :  { %v7463_v20 = vmul.f32 %v9459_v12, %v7461_v43 }
0x4010   :  { %v7466_v39 = vpop.permute.xlu1 %7465 }
0x4011   :  { %v7468_v33 = vsel %vm79_vm3, %v11592_v42, %v7466_v39 }
0x4012   :  { %v7469_v26 = vsel %vm338_vm2, %v7468_v33, %v7463_v20 }
0x4013   :  { %7470 = vst.msk [vmem:[#allocation2 + $0x6] sm:$0x3] %vm1934_vm7, %v7469_v26 }
0x401a   :  { %v7471_v0 = vld [vmem:[#allocation2] sm:$0xff] }
0x401b   :  { %8671 = vmatmul.mubr.msk.f32.vlgmr.msra.gmra.mrb[36].mxu0 %vm7491_vm8, %v7471_v0 }
0x40ee   :  { %v7561_v35 = vpop.f32.mrb[36].mxu0 }
0x40ef   :  { %v7562_v4 = vadd.f32 %v8055_v31, %v7561_v35  ;;  %v8672_v52 = vpop.f32.mrb[37].mxu0 }
0x40f1   :  { %v7595_v44 = vsel %vm7594_vm9, %v7562_v4, -inf  ;;  %v7578_v60 = vsel %vm7577_vm10, %v7562_v4, -inf  ;;  %v7565_v42 = vsel %vm79_vm3, %v7562_v4, -inf }
0x40f2   :  { %7596 = vmax.xlane.f32.xlu0 %v7595_v44  ;;  %7579 = vmax.xlane.f32.xlu1 %v7578_v60 }
0x40f6   :  { %7566 = vmax.xlane.f32.xlu1 %v7565_v42 }
0x417f   :  { %v7597_v61 = vpop.xlane.xlu0 %7596  ;;  %v7580_v23 = vpop.xlane.xlu1 %7579 }
0x4180   :  { %v7598_v36 = vsub.f32 %v7562_v4, %v7597_v61  ;;  %v7581_v11 = vsub.f32 %v7562_v4, %v7580_v23 }
0x4182   :  { %v7599_v40 = vmul.f32 1.442695, %v7598_v36  ;;  %v7582_v13 = vmul.f32 1.442695, %v7581_v11 }
0x4183   :  { %v7567_v29 = vpop.xlane.xlu1 %7566 }
0x4184   :  { %9462 = vpow2.f32 %v7599_v40  ;;  %v7568_v51 = vsub.f32 %v7562_v4, %v7567_v29 }
0x4185   :  { %9464 = vpow2.f32 %v7582_v13 }
0x4186   :  { %v7569_v55 = vmul.f32 1.442695, %v7568_v51 }
0x4188   :  { %9466 = vpow2.f32 %v7569_v55 }
0x418e   :  { %v9463_v3 = vpop.eup %9462 }
0x418f   :  { %v9465_v25 = vpop.eup %9464  ;;  %7602 = vrot.lane.b32.xlu1 %v9463_v3, %s12092_s21 }
0x4190   :  { %7585 = vrot.lane.b32.xlu0 %v9465_v25, %s12090_s23 }
0x4192   :  { %v9467_v56 = vpop.eup %9466 }
0x4193   :  { %v7571_v2 = vsel %vm79_vm3, %v9467_v56, 0.0 }
0x41b3   :  { %7572 = vadd.xlane.f32.xlu1 %v7571_v2 }
0x4201   :  { %v7603_v16 = vpop.permute.xlu1 %7602 }
0x4202   :  { %v7586_v46 = vpop.permute.xlu0 %7585  ;;  %v7605_v63 = vsel %vm79_vm3, %v7603_v16, 0.0 }
0x4203   :  { %v7588_v41 = vsel %vm79_vm3, %v7586_v46, 0.0 }
0x4204   :  { %7589 = vadd.xlane.f32.xlu0 %v7588_v41 }
0x4208   :  { %7606 = vadd.xlane.f32.xlu0 %v7605_v63 }
0x4240   :  { %v7573_v48 = vpop.xlane.xlu1 %7572 }
0x4241   :  { %9468 = vlog2.f32 %v7573_v48 }
0x424b   :  { %v9469_v12 = vpop.eup %9468 }
0x424c   :  { %v7575_v62 = vmul.f32 0.6931472, %v9469_v12 }
0x424e   :  { %v7576_v53 = vsub.f32 %v7568_v51, %v7575_v62 }
0x4291   :  { %v7590_v19 = vpop.xlane.xlu0 %7589 }
0x4292   :  { %9470 = vlog2.f32 %v7590_v19 }
0x4295   :  { %v7607_v50 = vpop.xlane.xlu0 %7606 }
0x4296   :  { %9472 = vlog2.f32 %v7607_v50 }
0x429c   :  { %v9471_v58 = vpop.eup %9470 }
0x429d   :  { %v7592_v1 = vmul.f32 0.6931472, %v9471_v58 }
0x429f   :  { %v7593_v5 = vsub.f32 %v7581_v11, %v7592_v1 }
0x42a0   :  { %v9473_v9 = vpop.eup %9472 }
0x42a1   :  { %v7609_v8 = vmul.f32 0.6931472, %v9473_v9  ;;  %v7611_v7 = vsel %vm79_vm3, %v7576_v53, %v7593_v5 }
0x42a3   :  { %v7610_v10 = vsub.f32 %v7598_v36, %v7609_v8 }
0x42a5   :  { %v7612_v15 = vsel %vm338_vm2, %v7611_v7, %v7610_v10 }
0x42a6   :  { %v7618_v14 = vrot.slane %v7612_v15, 4  ;;  %v7614_v59 = vrot.slane %v7612_v15, 2  ;;  %v7622_v17 = vrot.slane %v7612_v15, 6 }
0x42a8   :  { %7619 = vrot.lane.b32.xlu0 %v7618_v14, %s12092_s21  ;;  %7615 = vrot.lane.b32.xlu1 %v7614_v59, %s12090_s23  ;;  %s12095_s21 = sld [smem:[#allocation8_spill]] }
0x42ac   :  { %7623 = vrot.lane.b32.xlu1 %v7622_v17, %s12091_s28 }
0x431a   :  { %v7620_v22 = vpop.permute.xlu0 %7619  ;;  %v7616_v38 = vpop.permute.xlu1 %7615 }
0x431b   :  { %v7626_v54 = vsel %vm7491_vm8, %v7612_v15, %v7616_v38  ;;  %v7627_v28 = vsel %vm338_vm2, %v7616_v38, %v7620_v22 }
0x431c   :  { %v7632_v24 = vcombine.low %v7626_v54, %v7627_v28 }
0x431e   :  { %v7624_v37 = vpop.permute.xlu1 %7623  ;;  %v7639_v18 = vrot.slane %v7632_v24, %v7638_v30 }
0x431f   :  { %v7628_v27 = vsel %vm79_vm3, %v7620_v22, %v7624_v37 }
0x4320   :  { %v7646_v34 = vrot.slane %v7628_v27, %v7638_v30 }
0x4322   :  { %v7647_v6 = vcombine.low %v7639_v18, %v7646_v34 }
0x4324   :  { %7649 = vst [vmem:[%s12095_s21] sm:$0x3f] %v7647_v6 }

</bundles_post_ra>
